<compile_context>
chip_gen: v7x
topology: tpu7x:2x2x1
jax: 0.10.0
libtpu: 0.0.40
codegen_flags: <defaults>
</compile_context>

<pallas_src>
import functools

import jax
import jax.numpy as jnp
from jax.experimental import pallas as pl
from jax.experimental.pallas import tpu as pltpu

# ---- TabNet hyperparameters (pytorch_tabnet defaults used by the module) ----
N_D = 8
N_A = 8
N_STEPS = 3
GAMMA_RELAX = 1.3
EPSILON = 1e-15
H = N_D + N_A           # 16  (feat-transformer output width)
H2 = 2 * H              # 32  (GLU pre-activation width)
SQRT_HALF = 0.7071067811865476
LANE = 128              # TPU lane width; batch tiles are multiples of this
BISECT_ITERS = 26       # tau resolution 2^-26 on a unit-width bracket (~f32 eps)


def _sigmoid(x):
    # Single EUP push (tanh); mathematically exact sigmoid, keeps VALU slots free.
    return 0.5 * jnp.tanh(0.5 * x) + 0.5


def _sparsemax_cols(z):
    """Sparsemax along axis 0 (features); lane columns are independent samples.

    Bisection on the threshold tau: f(tau) = sum_i max(z_i - tau, 0) - 1 is
    non-increasing with f(max(z)-1) >= 0 >= f(max(z)).  O(D*N) work per
    iteration and O(D*N) temporaries (vs O(D^2*N) for the pairwise form).
    Kept entirely in f32.
    """
    zmax = jnp.max(z, axis=0, keepdims=True)            # (1, N)
    lo = zmax - 1.0
    hi = zmax
    for _ in range(BISECT_ITERS):
        mid = 0.5 * (lo + hi)
        f = jnp.sum(jnp.maximum(z - mid, 0.0), axis=0, keepdims=True) - 1.0
        gt = f > 0.0
        lo = jnp.where(gt, mid, lo)
        hi = jnp.where(gt, hi, mid)
    tau = 0.5 * (lo + hi)
    return jnp.maximum(z - tau, 0.0)


def tabnet_bilateral_kernel(x_ref, bn_in_ref, ws0_ref, b0_ref, ws1_ref, b1_ref,
                            wspec_ref, bspec_ref, watt_ref, batt_ref, wfin_ref,
                            prob_ref, ent_ref):
    x = x_ref[...]              # (D, 2*tb): per-tile [le_tile | re_tile], batch on lanes
    n = x.shape[1]
    tb = n // 2

    bn_in = bn_in_ref[...]      # (D, 2)            initial BatchNorm1d folded affine
    ws0 = ws0_ref[...]          # (4, 2H, D)        shared GLU fc #0, GBN-scale folded per FT
    b0 = b0_ref[...]            # (4, 2H, 1)        GBN shift
    ws1 = ws1_ref[...]          # (4, 2H, H)        shared GLU fc #1, GBN-scale folded per FT
    b1 = b1_ref[...]            # (4, 2H, 1)
    wspec = wspec_ref[...]      # (4, 2, 2H, H)     independent GLU fcs, GBN-scale folded
    bspec = bspec_ref[...]      # (4, 2, 2H, 1)
    watt = watt_ref[...]        # (n_steps, D, n_a) attentive fcs, GBN-scale folded
    batt = batt_ref[...]        # (n_steps, D, 1)
    wfin = wfin_ref[...]        # (out_dim, n_d)    final mapping (bias=False)

    def glu_layer(h, w, b):
        y = jnp.dot(w, h, preferred_element_type=jnp.float32) + b   # (2H, N)
        return y[:H, :] * _sigmoid(y[H:, :])

    def feat_transformer(h, ft):
        # shared GLU block (first=True, n_glu=2, shared fcs, private GBN)
        h = glu_layer(h, ws0[ft], b0[ft])
        h = (h + glu_layer(h, ws1[ft], b1[ft])) * SQRT_HALF
        # independent GLU block (first=False, n_glu=2)
        h = (h + glu_layer(h, wspec[ft, 0], bspec[ft, 0])) * SQRT_HALF
        h = (h + glu_layer(h, wspec[ft, 1], bspec[ft, 1])) * SQRT_HALF
        return h

    # initial BatchNorm1d (eval mode, folded affine)
    xb = x * bn_in[:, 0:1] + bn_in[:, 1:2]
    prior = jnp.ones_like(xb)                                     # (D, N)
    att = feat_transformer(xb, 0)[N_D:, :]                        # initial splitter
    res = jnp.zeros((N_D, n), jnp.float32)
    ent = jnp.zeros((1, n), jnp.float32)

    for step in range(N_STEPS):
        a = jnp.dot(watt[step], att, preferred_element_type=jnp.float32) + batt[step]
        m = _sparsemax_cols(a * prior)                            # attention mask
        ent = ent + jnp.sum(m * jnp.log(m + EPSILON), axis=0, keepdims=True)
        prior = (GAMMA_RELAX - m) * prior
        # grouped_features=[] -> group-attention matrix is the identity, so the
        # reference's (B,D)@(D,D) group matmul is a no-op and is elided here.
        out = feat_transformer(m * xb, step + 1)
        res = res + jnp.maximum(out[:N_D, :], 0.0)                # ReLU(d) accumulation
        att = out[N_D:, :]

    pred = jnp.dot(wfin, res, preferred_element_type=jnp.float32)  # (out_dim, N)
    prob_ref[...] = _sigmoid(pred[:, :tb]) * _sigmoid(pred[:, tb:])
    # Per-sample (unnormalized, step-summed) sparsity entropy; reduced to the
    # scalar M_loss in the wrapper so global-batch normalization stays correct
    # under tiling / megacore parallelism.
    ent_ref[...] = ent


def _round_up(x, m):
    return (x + m - 1) // m * m


def _vmem_config():
    """Generation-keyed (tile budget, vmem_limit_bytes, batch-tile cap)."""
    phys = None
    try:
        phys = getattr(pltpu.get_tpu_info(), "vmem_capacity_bytes", None)
    except Exception:
        phys = None
    if phys is not None and phys > 64 * 1024 * 1024:
        # v5e / v6e: 128 MiB physical VMEM -> large tiles are free.
        return 56 * 1024 * 1024, 64 * 1024 * 1024, 1024
    # v7x (64 MiB physical) or unknown: stay conservative.
    return 36 * 1024 * 1024, 48 * 1024 * 1024, 512


def _pick_batch_tile(input_dim, out_dim, budget, tb_cap):
    """Largest batch tile (multiple of 128) whose live VMEM fits `budget`.

    With the bisection sparsemax all temporaries are O(D*N), so the estimate
    is linear in the tile width.
    """
    tb = tb_cap
    while tb > LANE:
        n = 2 * tb
        est = 4 * n * (2 * input_dim            # input tile, double buffered
                       + 8 * input_dim          # (D, N) activations / sparsemax temps
                       + 6 * H2                 # GLU temporaries
                       + 2 * (out_dim + 1))     # output tiles, double buffered
        est += 2 * 1024 * 1024                  # resident weights + slack
        if est <= budget:
            break
        tb //= 2
    return max(tb, LANE)


@functools.partial(jax.jit, static_argnames=("tb", "vmem_limit"))
def _forward(le, re, params, *, tb, vmem_limit):
    B, D = le.shape
    out_dim = params["wfin"].shape[0]
    Bp = _round_up(B, tb)
    num_tiles = Bp // tb

    # ---- fold eval-mode GhostBatchNorm affines into the preceding linears ----
    bn_sh, bn_sp, bn_att = params["bn_sh"], params["bn_sp"], params["bn_att"]
    ws0f = bn_sh[:, 0, :, 0][:, :, None] * params["ws0"][None]     # (4, 2H, D)
    b0 = bn_sh[:, 0, :, 1][:, :, None]                             # (4, 2H, 1)
    ws1f = bn_sh[:, 1, :, 0][:, :, None] * params["ws1"][None]     # (4, 2H, H)
    b1 = bn_sh[:, 1, :, 1][:, :, None]                             # (4, 2H, 1)
    wspecf = bn_sp[..., 0][..., None] * params["wspec"]            # (4, 2, 2H, H)
    bspec = bn_sp[..., 1][..., None]                               # (4, 2, 2H, 1)
    wattf = bn_att[..., 0][..., None] * params["watt"]             # (3, D, n_a)
    batt = bn_att[..., 1][..., None]                               # (3, D, 1)

    # ---- batch-on-lanes layout; one slab with per-tile [le | re] interleave ----
    le_t = le.T.astype(jnp.float32)                                # (D, B)
    re_t = re.T.astype(jnp.float32)
    if Bp != B:
        pad = ((0, 0), (0, Bp - B))
        le_t = jnp.pad(le_t, pad)
        re_t = jnp.pad(re_t, pad)
    x_all = jnp.stack([le_t.reshape(D, num_tiles, tb),
                       re_t.reshape(D, num_tiles, tb)],
                      axis=2).reshape(D, 2 * Bp)                   # (D, 2*Bp)

    weights = (params["bn_in"], ws0f, b0, ws1f, b1, wspecf, bspec,
               wattf, batt, params["wfin"])

    def _full_spec(a):
        nd = a.ndim
        return pl.BlockSpec(a.shape, lambda i, _nd=nd: (0,) * _nd)

    in_specs = [pl.BlockSpec((D, 2 * tb), lambda i: (0, i))]
    in_specs += [_full_spec(w) for w in weights]

    prob_t, ent_t = pl.pallas_call(
        tabnet_bilateral_kernel,
        grid=(num_tiles,),
        out_shape=(jax.ShapeDtypeStruct((out_dim, Bp), jnp.float32),
                   jax.ShapeDtypeStruct((1, 2 * Bp), jnp.float32)),
        in_specs=in_specs,
        out_specs=(pl.BlockSpec((out_dim, tb), lambda i: (0, i)),
                   pl.BlockSpec((1, 2 * tb), lambda i: (0, i))),
        compiler_params=pltpu.CompilerParams(
            dimension_semantics=("parallel",),       # batch tiles are independent
            vmem_limit_bytes=vmem_limit),
    )(x_all, *weights)

    prob = prob_t[:, :B].T                                        # (B, out_dim)
    ent = ent_t.reshape(num_tiles, 2, tb)                         # per-tile [le | re]
    ent_total = (jnp.sum(ent[:, 0, :].reshape(Bp)[:B]) +
                 jnp.sum(ent[:, 1, :].reshape(Bp)[:B]))
    m_loss = ent_total / (N_STEPS * B)                            # le_M_loss + re_M_loss
    return prob, m_loss


def tabnet_bilateral(le, re, params):
    B, D = le.shape
    out_dim = params["wfin"].shape[0]
    budget, vmem_limit, tb_cap = _vmem_config()
    tb = _pick_batch_tile(D, out_dim, budget, tb_cap)
    # Keep >= 2 grid tiles when the batch allows so v7x's second TensorCore
    # gets work under dimension_semantics=("parallel",).
    while tb > LANE and (B + tb - 1) // tb < 2:
        tb //= 2
    return _forward(le, re, params, tb=tb, vmem_limit=vmem_limit)


def init_params(key, input_dim, output_dim):
    """Deterministic synthetic parameters matching pytorch_tabnet TabNet shapes.

    Linear weights are stored (out_features, in_features) so the kernel's
    feature-major layout computes y^T = W @ x^T.  BatchNorm / GhostBatchNorm
    run in eval mode, folded to per-feature (scale, shift) on the last axis.
    """
    ks = jax.random.split(key, 12)

    def lin(k, fan_in, shape):
        return jax.random.normal(k, shape, jnp.float32) / jnp.sqrt(float(fan_in))

    def bn_affine(k, dim, lead_shape=()):
        kg, kb, km, kv = jax.random.split(k, 4)
        shape = lead_shape + (dim,)
        gamma = 1.0 + 0.1 * jax.random.normal(kg, shape, jnp.float32)
        beta = 0.05 * jax.random.normal(kb, shape, jnp.float32)
        mean = 0.1 * jax.random.normal(km, shape, jnp.float32)
        var = 1.0 + 0.1 * jax.random.uniform(kv, shape, jnp.float32)
        scale = gamma / jnp.sqrt(var + 1e-5)
        shift = beta - mean * scale
        return jnp.stack([scale, shift], axis=-1)       # lead_shape + (dim, 2)

    # TODO(synk): train-mode GhostBatchNorm (virtual-batch statistics) is not modeled;
    # all BN layers run in eval mode (running stats folded to per-feature affine).
    params = {
        "bn_in": bn_affine(ks[0], input_dim),                     # (D, 2)
        "ws0": lin(ks[1], input_dim, (H2, input_dim)),            # shared fc 0
        "ws1": lin(ks[2], H, (H2, H)),                            # shared fc 1
        "bn_sh": bn_affine(ks[3], H2, (N_STEPS + 1, 2)),          # (4, 2, 2H, 2)
        "wspec": lin(ks[4], H, (N_STEPS + 1, 2, H2, H)),          # (4, 2, 2H, H)
        "bn_sp": bn_affine(ks[5], H2, (N_STEPS + 1, 2)),          # (4, 2, 2H, 2)
        "watt": lin(ks[6], N_A, (N_STEPS, input_dim, N_A)),       # (3, D, n_a)
        "bn_att": bn_affine(ks[7], input_dim, (N_STEPS,)),        # (3, D, 2)
        "wfin": lin(ks[8], N_D, (output_dim, N_D)),               # (out, n_d)
    }
    return params


if __name__ == "__main__":
    B, D, OUT = 4, 16, 1
    key = jax.random.PRNGKey(0)
    k_le, k_re, k_par = jax.random.split(key, 3)
    le = jax.random.normal(k_le, (B, D), jnp.float32)
    re = jax.random.normal(k_re, (B, D), jnp.float32)
    params = init_params(k_par, D, OUT)

    prob, m_loss = tabnet_bilateral(le, re, params)
    jax.block_until_ready((prob, m_loss))

    assert prob.shape == (B, OUT) and m_loss.shape == ()
    assert bool(jnp.all(jnp.isfinite(prob))) and bool(jnp.isfinite(m_loss))
    assert bool(jnp.all((prob >= 0.0) & (prob <= 1.0)))
    print("KERNEL_OK")
</pallas_src>

<mosaic_0001>
module attributes {stable_mosaic.version = 11 : i64} {
  func.func @tabnet_bilateral_kernel(%arg0: i32, %arg1: memref<16x256xf32, #tpu.memory_space<vmem>>, %arg2: memref<16x2xf32, #tpu.memory_space<vmem>>, %arg3: memref<4x32x16xf32, #tpu.memory_space<vmem>>, %arg4: memref<4x32x1xf32, #tpu.memory_space<vmem>>, %arg5: memref<4x32x16xf32, #tpu.memory_space<vmem>>, %arg6: memref<4x32x1xf32, #tpu.memory_space<vmem>>, %arg7: memref<4x2x32x16xf32, #tpu.memory_space<vmem>>, %arg8: memref<4x2x32x1xf32, #tpu.memory_space<vmem>>, %arg9: memref<3x16x8xf32, #tpu.memory_space<vmem>>, %arg10: memref<3x16x1xf32, #tpu.memory_space<vmem>>, %arg11: memref<1x8xf32, #tpu.memory_space<vmem>>, %arg12: memref<1x128xf32, #tpu.memory_space<vmem>>, %arg13: memref<1x256xf32, #tpu.memory_space<vmem>>) attributes {dimension_semantics = [#tpu.dimension_semantics<parallel>], iteration_bounds = array<i64: 1>, scalar_prefetch = 0 : i64, scratch_operands = 0 : i64, tpu.core_type = #tpu.core_type<tc>, window_params = [{transform_indices = @transform_0, window_bounds = array<i64: 16, 256>}, {pipeline_mode = #tpu.pipeline_mode<synchronous>, transform_indices = @transform_1, window_bounds = array<i64: 16, 2>}, {pipeline_mode = #tpu.pipeline_mode<synchronous>, transform_indices = @transform_2, window_bounds = array<i64: 4, 32, 16>}, {pipeline_mode = #tpu.pipeline_mode<synchronous>, transform_indices = @transform_3, window_bounds = array<i64: 4, 32, 1>}, {pipeline_mode = #tpu.pipeline_mode<synchronous>, transform_indices = @transform_4, window_bounds = array<i64: 4, 32, 16>}, {pipeline_mode = #tpu.pipeline_mode<synchronous>, transform_indices = @transform_5, window_bounds = array<i64: 4, 32, 1>}, {pipeline_mode = #tpu.pipeline_mode<synchronous>, transform_indices = @transform_6, window_bounds = array<i64: 4, 2, 32, 16>}, {pipeline_mode = #tpu.pipeline_mode<synchronous>, transform_indices = @transform_7, window_bounds = array<i64: 4, 2, 32, 1>}, {pipeline_mode = #tpu.pipeline_mode<synchronous>, transform_indices = @transform_8, window_bounds = array<i64: 3, 16, 8>}, {pipeline_mode = #tpu.pipeline_mode<synchronous>, transform_indices = @transform_9, window_bounds = array<i64: 3, 16, 1>}, {pipeline_mode = #tpu.pipeline_mode<synchronous>, transform_indices = @transform_10, window_bounds = array<i64: 1, 8>}, {transform_indices = @transform_11, window_bounds = array<i64: 1, 128>}, {transform_indices = @transform_12, window_bounds = array<i64: 1, 256>}]} {
    %c0 = arith.constant 0 : index
    %c0_0 = arith.constant 0 : index
    %0 = vector.load %arg1[%c0, %c0_0] : memref<16x256xf32, #tpu.memory_space<vmem>>, vector<16x256xf32>
    %c0_1 = arith.constant 0 : index
    %c0_2 = arith.constant 0 : index
    %1 = vector.load %arg2[%c0_1, %c0_2] : memref<16x2xf32, #tpu.memory_space<vmem>>, vector<16x2xf32>
    %c0_3 = arith.constant 0 : index
    %c0_4 = arith.constant 0 : index
    %c0_5 = arith.constant 0 : index
    %2 = vector.load %arg3[%c0_3, %c0_4, %c0_5] : memref<4x32x16xf32, #tpu.memory_space<vmem>>, vector<4x32x16xf32>
    %c0_6 = arith.constant 0 : index
    %c0_7 = arith.constant 0 : index
    %c0_8 = arith.constant 0 : index
    %3 = vector.load %arg4[%c0_6, %c0_7, %c0_8] : memref<4x32x1xf32, #tpu.memory_space<vmem>>, vector<4x32x1xf32>
    %c0_9 = arith.constant 0 : index
    %c0_10 = arith.constant 0 : index
    %c0_11 = arith.constant 0 : index
    %4 = vector.load %arg5[%c0_9, %c0_10, %c0_11] : memref<4x32x16xf32, #tpu.memory_space<vmem>>, vector<4x32x16xf32>
    %c0_12 = arith.constant 0 : index
    %c0_13 = arith.constant 0 : index
    %c0_14 = arith.constant 0 : index
    %5 = vector.load %arg6[%c0_12, %c0_13, %c0_14] : memref<4x32x1xf32, #tpu.memory_space<vmem>>, vector<4x32x1xf32>
    %c0_15 = arith.constant 0 : index
    %c0_16 = arith.constant 0 : index
    %c0_17 = arith.constant 0 : index
    %c0_18 = arith.constant 0 : index
    %6 = vector.load %arg7[%c0_15, %c0_16, %c0_17, %c0_18] : memref<4x2x32x16xf32, #tpu.memory_space<vmem>>, vector<4x2x32x16xf32>
    %c0_19 = arith.constant 0 : index
    %c0_20 = arith.constant 0 : index
    %c0_21 = arith.constant 0 : index
    %c0_22 = arith.constant 0 : index
    %7 = vector.load %arg8[%c0_19, %c0_20, %c0_21, %c0_22] : memref<4x2x32x1xf32, #tpu.memory_space<vmem>>, vector<4x2x32x1xf32>
    %c0_23 = arith.constant 0 : index
    %c0_24 = arith.constant 0 : index
    %c0_25 = arith.constant 0 : index
    %8 = vector.load %arg9[%c0_23, %c0_24, %c0_25] : memref<3x16x8xf32, #tpu.memory_space<vmem>>, vector<3x16x8xf32>
    %c0_26 = arith.constant 0 : index
    %c0_27 = arith.constant 0 : index
    %c0_28 = arith.constant 0 : index
    %9 = vector.load %arg10[%c0_26, %c0_27, %c0_28] : memref<3x16x1xf32, #tpu.memory_space<vmem>>, vector<3x16x1xf32>
    %c0_29 = arith.constant 0 : index
    %c0_30 = arith.constant 0 : index
    %10 = vector.load %arg11[%c0_29, %c0_30] : memref<1x8xf32, #tpu.memory_space<vmem>>, vector<1x8xf32>
    %11 = vector.extract_strided_slice %1 {offsets = [0, 0], sizes = [16, 1], strides = [1, 1]} : vector<16x2xf32> to vector<16x1xf32>
    %12 = vector.broadcast %11 : vector<16x1xf32> to vector<16x256xf32>
    %13 = arith.mulf %0, %12 : vector<16x256xf32>
    %14 = vector.extract_strided_slice %1 {offsets = [0, 1], sizes = [16, 1], strides = [1, 1]} : vector<16x2xf32> to vector<16x1xf32>
    %15 = vector.broadcast %14 : vector<16x1xf32> to vector<16x256xf32>
    %16 = arith.addf %13, %15 : vector<16x256xf32>
    %cst = arith.constant 1.000000e+00 : f32
    %17 = vector.broadcast %cst : f32 to vector<16x256xf32>
    %18 = vector.extract_strided_slice %2 {offsets = [0, 0, 0], sizes = [1, 32, 16], strides = [1, 1, 1]} : vector<4x32x16xf32> to vector<1x32x16xf32>
    %19 = vector.shape_cast %18 : vector<1x32x16xf32> to vector<32x16xf32>
    %20 = vector.extract_strided_slice %3 {offsets = [0, 0, 0], sizes = [1, 32, 1], strides = [1, 1, 1]} : vector<4x32x1xf32> to vector<1x32x1xf32>
    %21 = vector.shape_cast %20 : vector<1x32x1xf32> to vector<32x1xf32>
    %cst_31 = arith.constant dense<0.000000e+00> : vector<32x256xf32>
    %22 = tpu.matmul %19, %16, %cst_31 {dimension_numbers = #tpu.dot_dimension_numbers<[1], [0], [0], [1], [0, 0, 1, 1], [], []>} : vector<32x16xf32>, vector<16x256xf32>, vector<32x256xf32> -> vector<32x256xf32>
    %23 = vector.broadcast %21 : vector<32x1xf32> to vector<32x256xf32>
    %24 = arith.addf %22, %23 : vector<32x256xf32>
    %25 = vector.extract_strided_slice %24 {offsets = [0, 0], sizes = [16, 256], strides = [1, 1]} : vector<32x256xf32> to vector<16x256xf32>
    %26 = vector.extract_strided_slice %24 {offsets = [16, 0], sizes = [16, 256], strides = [1, 1]} : vector<32x256xf32> to vector<16x256xf32>
    %cst_32 = arith.constant 5.000000e-01 : f32
    %27 = vector.broadcast %cst_32 : f32 to vector<16x256xf32>
    %28 = arith.mulf %27, %26 : vector<16x256xf32>
    %29 = math.tanh %28 : vector<16x256xf32>
    %cst_33 = arith.constant 5.000000e-01 : f32
    %30 = vector.broadcast %cst_33 : f32 to vector<16x256xf32>
    %31 = arith.mulf %30, %29 : vector<16x256xf32>
    %cst_34 = arith.constant 5.000000e-01 : f32
    %32 = vector.broadcast %cst_34 : f32 to vector<16x256xf32>
    %33 = arith.addf %31, %32 : vector<16x256xf32>
    %34 = arith.mulf %25, %33 : vector<16x256xf32>
    %35 = vector.extract_strided_slice %4 {offsets = [0, 0, 0], sizes = [1, 32, 16], strides = [1, 1, 1]} : vector<4x32x16xf32> to vector<1x32x16xf32>
    %36 = vector.shape_cast %35 : vector<1x32x16xf32> to vector<32x16xf32>
    %37 = vector.extract_strided_slice %5 {offsets = [0, 0, 0], sizes = [1, 32, 1], strides = [1, 1, 1]} : vector<4x32x1xf32> to vector<1x32x1xf32>
    %38 = vector.shape_cast %37 : vector<1x32x1xf32> to vector<32x1xf32>
    %cst_35 = arith.constant dense<0.000000e+00> : vector<32x256xf32>
    %39 = tpu.matmul %36, %34, %cst_35 {dimension_numbers = #tpu.dot_dimension_numbers<[1], [0], [0], [1], [0, 0, 1, 1], [], []>} : vector<32x16xf32>, vector<16x256xf32>, vector<32x256xf32> -> vector<32x256xf32>
    %40 = vector.broadcast %38 : vector<32x1xf32> to vector<32x256xf32>
    %41 = arith.addf %39, %40 : vector<32x256xf32>
    %42 = vector.extract_strided_slice %41 {offsets = [0, 0], sizes = [16, 256], strides = [1, 1]} : vector<32x256xf32> to vector<16x256xf32>
    %43 = vector.extract_strided_slice %41 {offsets = [16, 0], sizes = [16, 256], strides = [1, 1]} : vector<32x256xf32> to vector<16x256xf32>
    %cst_36 = arith.constant 5.000000e-01 : f32
    %44 = vector.broadcast %cst_36 : f32 to vector<16x256xf32>
    %45 = arith.mulf %44, %43 : vector<16x256xf32>
    %46 = math.tanh %45 : vector<16x256xf32>
    %cst_37 = arith.constant 5.000000e-01 : f32
    %47 = vector.broadcast %cst_37 : f32 to vector<16x256xf32>
    %48 = arith.mulf %47, %46 : vector<16x256xf32>
    %cst_38 = arith.constant 5.000000e-01 : f32
    %49 = vector.broadcast %cst_38 : f32 to vector<16x256xf32>
    %50 = arith.addf %48, %49 : vector<16x256xf32>
    %51 = arith.mulf %42, %50 : vector<16x256xf32>
    %52 = arith.addf %34, %51 : vector<16x256xf32>
    %cst_39 = arith.constant 0.707106769 : f32
    %53 = vector.broadcast %cst_39 : f32 to vector<16x256xf32>
    %54 = arith.mulf %52, %53 : vector<16x256xf32>
    %55 = vector.extract_strided_slice %6 {offsets = [0, 0, 0, 0], sizes = [1, 1, 32, 16], strides = [1, 1, 1, 1]} : vector<4x2x32x16xf32> to vector<1x1x32x16xf32>
    %56 = vector.shape_cast %55 : vector<1x1x32x16xf32> to vector<32x16xf32>
    %57 = vector.extract_strided_slice %7 {offsets = [0, 0, 0, 0], sizes = [1, 1, 32, 1], strides = [1, 1, 1, 1]} : vector<4x2x32x1xf32> to vector<1x1x32x1xf32>
    %58 = vector.shape_cast %57 : vector<1x1x32x1xf32> to vector<32x1xf32>
    %cst_40 = arith.constant dense<0.000000e+00> : vector<32x256xf32>
    %59 = tpu.matmul %56, %54, %cst_40 {dimension_numbers = #tpu.dot_dimension_numbers<[1], [0], [0], [1], [0, 0, 1, 1], [], []>} : vector<32x16xf32>, vector<16x256xf32>, vector<32x256xf32> -> vector<32x256xf32>
    %60 = vector.broadcast %58 : vector<32x1xf32> to vector<32x256xf32>
    %61 = arith.addf %59, %60 : vector<32x256xf32>
    %62 = vector.extract_strided_slice %61 {offsets = [0, 0], sizes = [16, 256], strides = [1, 1]} : vector<32x256xf32> to vector<16x256xf32>
    %63 = vector.extract_strided_slice %61 {offsets = [16, 0], sizes = [16, 256], strides = [1, 1]} : vector<32x256xf32> to vector<16x256xf32>
    %cst_41 = arith.constant 5.000000e-01 : f32
    %64 = vector.broadcast %cst_41 : f32 to vector<16x256xf32>
    %65 = arith.mulf %64, %63 : vector<16x256xf32>
    %66 = math.tanh %65 : vector<16x256xf32>
    %cst_42 = arith.constant 5.000000e-01 : f32
    %67 = vector.broadcast %cst_42 : f32 to vector<16x256xf32>
    %68 = arith.mulf %67, %66 : vector<16x256xf32>
    %cst_43 = arith.constant 5.000000e-01 : f32
    %69 = vector.broadcast %cst_43 : f32 to vector<16x256xf32>
    %70 = arith.addf %68, %69 : vector<16x256xf32>
    %71 = arith.mulf %62, %70 : vector<16x256xf32>
    %72 = arith.addf %54, %71 : vector<16x256xf32>
    %cst_44 = arith.constant 0.707106769 : f32
    %73 = vector.broadcast %cst_44 : f32 to vector<16x256xf32>
    %74 = arith.mulf %72, %73 : vector<16x256xf32>
    %75 = vector.extract_strided_slice %6 {offsets = [0, 1, 0, 0], sizes = [1, 1, 32, 16], strides = [1, 1, 1, 1]} : vector<4x2x32x16xf32> to vector<1x1x32x16xf32>
    %76 = vector.shape_cast %75 : vector<1x1x32x16xf32> to vector<32x16xf32>
    %77 = vector.extract_strided_slice %7 {offsets = [0, 1, 0, 0], sizes = [1, 1, 32, 1], strides = [1, 1, 1, 1]} : vector<4x2x32x1xf32> to vector<1x1x32x1xf32>
    %78 = vector.shape_cast %77 : vector<1x1x32x1xf32> to vector<32x1xf32>
    %cst_45 = arith.constant dense<0.000000e+00> : vector<32x256xf32>
    %79 = tpu.matmul %76, %74, %cst_45 {dimension_numbers = #tpu.dot_dimension_numbers<[1], [0], [0], [1], [0, 0, 1, 1], [], []>} : vector<32x16xf32>, vector<16x256xf32>, vector<32x256xf32> -> vector<32x256xf32>
    %80 = vector.broadcast %78 : vector<32x1xf32> to vector<32x256xf32>
    %81 = arith.addf %79, %80 : vector<32x256xf32>
    %82 = vector.extract_strided_slice %81 {offsets = [0, 0], sizes = [16, 256], strides = [1, 1]} : vector<32x256xf32> to vector<16x256xf32>
    %83 = vector.extract_strided_slice %81 {offsets = [16, 0], sizes = [16, 256], strides = [1, 1]} : vector<32x256xf32> to vector<16x256xf32>
    %cst_46 = arith.constant 5.000000e-01 : f32
    %84 = vector.broadcast %cst_46 : f32 to vector<16x256xf32>
    %85 = arith.mulf %84, %83 : vector<16x256xf32>
    %86 = math.tanh %85 : vector<16x256xf32>
    %cst_47 = arith.constant 5.000000e-01 : f32
    %87 = vector.broadcast %cst_47 : f32 to vector<16x256xf32>
    %88 = arith.mulf %87, %86 : vector<16x256xf32>
    %cst_48 = arith.constant 5.000000e-01 : f32
    %89 = vector.broadcast %cst_48 : f32 to vector<16x256xf32>
    %90 = arith.addf %88, %89 : vector<16x256xf32>
    %91 = arith.mulf %82, %90 : vector<16x256xf32>
    %92 = arith.addf %74, %91 : vector<16x256xf32>
    %cst_49 = arith.constant 0.707106769 : f32
    %93 = vector.broadcast %cst_49 : f32 to vector<16x256xf32>
    %94 = arith.mulf %92, %93 : vector<16x256xf32>
    %95 = vector.extract_strided_slice %94 {offsets = [8, 0], sizes = [8, 256], strides = [1, 1]} : vector<16x256xf32> to vector<8x256xf32>
    %cst_50 = arith.constant 0.000000e+00 : f32
    %96 = vector.broadcast %cst_50 : f32 to vector<8x256xf32>
    %cst_51 = arith.constant 0.000000e+00 : f32
    %97 = vector.broadcast %cst_51 : f32 to vector<1x256xf32>
    %98 = vector.extract_strided_slice %8 {offsets = [0, 0, 0], sizes = [1, 16, 8], strides = [1, 1, 1]} : vector<3x16x8xf32> to vector<1x16x8xf32>
    %99 = vector.shape_cast %98 : vector<1x16x8xf32> to vector<16x8xf32>
    %cst_52 = arith.constant dense<0.000000e+00> : vector<16x256xf32>
    %100 = tpu.matmul %99, %95, %cst_52 {dimension_numbers = #tpu.dot_dimension_numbers<[1], [0], [0], [1], [0, 0, 1, 1], [], []>} : vector<16x8xf32>, vector<8x256xf32>, vector<16x256xf32> -> vector<16x256xf32>
    %101 = vector.extract_strided_slice %9 {offsets = [0, 0, 0], sizes = [1, 16, 1], strides = [1, 1, 1]} : vector<3x16x1xf32> to vector<1x16x1xf32>
    %102 = vector.shape_cast %101 : vector<1x16x1xf32> to vector<16x1xf32>
    %103 = vector.broadcast %102 : vector<16x1xf32> to vector<16x256xf32>
    %104 = arith.addf %100, %103 : vector<16x256xf32>
    %105 = arith.mulf %104, %17 : vector<16x256xf32>
    %cst_53 = arith.constant dense<0xFF800000> : vector<256xf32>
    %106 = vector.multi_reduction <maximumf>, %105, %cst_53 [0] : vector<16x256xf32> to vector<256xf32>
    %107 = vector.shape_cast %106 : vector<256xf32> to vector<1x256xf32>
    %cst_54 = arith.constant 1.000000e+00 : f32
    %108 = vector.broadcast %cst_54 : f32 to vector<1x256xf32>
    %109 = arith.subf %107, %108 : vector<1x256xf32>
    %110 = arith.addf %109, %107 : vector<1x256xf32>
    %cst_55 = arith.constant 5.000000e-01 : f32
    %111 = vector.broadcast %cst_55 : f32 to vector<1x256xf32>
    %112 = arith.mulf %111, %110 : vector<1x256xf32>
    %113 = vector.broadcast %112 : vector<1x256xf32> to vector<16x256xf32>
    %114 = arith.subf %105, %113 : vector<16x256xf32>
    %cst_56 = arith.constant 0.000000e+00 : f32
    %115 = vector.broadcast %cst_56 : f32 to vector<16x256xf32>
    %116 = arith.maximumf %114, %115 : vector<16x256xf32>
    %cst_57 = arith.constant dense<0.000000e+00> : vector<256xf32>
    %117 = vector.multi_reduction <add>, %116, %cst_57 [0] : vector<16x256xf32> to vector<256xf32>
    %118 = vector.shape_cast %117 : vector<256xf32> to vector<1x256xf32>
    %cst_58 = arith.constant 1.000000e+00 : f32
    %119 = vector.broadcast %cst_58 : f32 to vector<1x256xf32>
    %120 = arith.subf %118, %119 : vector<1x256xf32>
    %cst_59 = arith.constant 0.000000e+00 : f32
    %121 = vector.broadcast %cst_59 : f32 to vector<1x256xf32>
    %122 = arith.cmpf ogt, %120, %121 : vector<1x256xf32>
    %123 = arith.select %122, %112, %109 : vector<1x256xi1>, vector<1x256xf32>
    %124 = arith.select %122, %107, %112 : vector<1x256xi1>, vector<1x256xf32>
    %125 = arith.addf %123, %124 : vector<1x256xf32>
    %cst_60 = arith.constant 5.000000e-01 : f32
    %126 = vector.broadcast %cst_60 : f32 to vector<1x256xf32>
    %127 = arith.mulf %126, %125 : vector<1x256xf32>
    %128 = vector.broadcast %127 : vector<1x256xf32> to vector<16x256xf32>
    %129 = arith.subf %105, %128 : vector<16x256xf32>
    %cst_61 = arith.constant 0.000000e+00 : f32
    %130 = vector.broadcast %cst_61 : f32 to vector<16x256xf32>
    %131 = arith.maximumf %129, %130 : vector<16x256xf32>
    %cst_62 = arith.constant dense<0.000000e+00> : vector<256xf32>
    %132 = vector.multi_reduction <add>, %131, %cst_62 [0] : vector<16x256xf32> to vector<256xf32>
    %133 = vector.shape_cast %132 : vector<256xf32> to vector<1x256xf32>
    %cst_63 = arith.constant 1.000000e+00 : f32
    %134 = vector.broadcast %cst_63 : f32 to vector<1x256xf32>
    %135 = arith.subf %133, %134 : vector<1x256xf32>
    %cst_64 = arith.constant 0.000000e+00 : f32
    %136 = vector.broadcast %cst_64 : f32 to vector<1x256xf32>
    %137 = arith.cmpf ogt, %135, %136 : vector<1x256xf32>
    %138 = arith.select %137, %127, %123 : vector<1x256xi1>, vector<1x256xf32>
    %139 = arith.select %137, %124, %127 : vector<1x256xi1>, vector<1x256xf32>
    %140 = arith.addf %138, %139 : vector<1x256xf32>
    %cst_65 = arith.constant 5.000000e-01 : f32
    %141 = vector.broadcast %cst_65 : f32 to vector<1x256xf32>
    %142 = arith.mulf %141, %140 : vector<1x256xf32>
    %143 = vector.broadcast %142 : vector<1x256xf32> to vector<16x256xf32>
    %144 = arith.subf %105, %143 : vector<16x256xf32>
    %cst_66 = arith.constant 0.000000e+00 : f32
    %145 = vector.broadcast %cst_66 : f32 to vector<16x256xf32>
    %146 = arith.maximumf %144, %145 : vector<16x256xf32>
    %cst_67 = arith.constant dense<0.000000e+00> : vector<256xf32>
    %147 = vector.multi_reduction <add>, %146, %cst_67 [0] : vector<16x256xf32> to vector<256xf32>
    %148 = vector.shape_cast %147 : vector<256xf32> to vector<1x256xf32>
    %cst_68 = arith.constant 1.000000e+00 : f32
    %149 = vector.broadcast %cst_68 : f32 to vector<1x256xf32>
    %150 = arith.subf %148, %149 : vector<1x256xf32>
    %cst_69 = arith.constant 0.000000e+00 : f32
    %151 = vector.broadcast %cst_69 : f32 to vector<1x256xf32>
    %152 = arith.cmpf ogt, %150, %151 : vector<1x256xf32>
    %153 = arith.select %152, %142, %138 : vector<1x256xi1>, vector<1x256xf32>
    %154 = arith.select %152, %139, %142 : vector<1x256xi1>, vector<1x256xf32>
    %155 = arith.addf %153, %154 : vector<1x256xf32>
    %cst_70 = arith.constant 5.000000e-01 : f32
    %156 = vector.broadcast %cst_70 : f32 to vector<1x256xf32>
    %157 = arith.mulf %156, %155 : vector<1x256xf32>
    %158 = vector.broadcast %157 : vector<1x256xf32> to vector<16x256xf32>
    %159 = arith.subf %105, %158 : vector<16x256xf32>
    %cst_71 = arith.constant 0.000000e+00 : f32
    %160 = vector.broadcast %cst_71 : f32 to vector<16x256xf32>
    %161 = arith.maximumf %159, %160 : vector<16x256xf32>
    %cst_72 = arith.constant dense<0.000000e+00> : vector<256xf32>
    %162 = vector.multi_reduction <add>, %161, %cst_72 [0] : vector<16x256xf32> to vector<256xf32>
    %163 = vector.shape_cast %162 : vector<256xf32> to vector<1x256xf32>
    %cst_73 = arith.constant 1.000000e+00 : f32
    %164 = vector.broadcast %cst_73 : f32 to vector<1x256xf32>
    %165 = arith.subf %163, %164 : vector<1x256xf32>
    %cst_74 = arith.constant 0.000000e+00 : f32
    %166 = vector.broadcast %cst_74 : f32 to vector<1x256xf32>
    %167 = arith.cmpf ogt, %165, %166 : vector<1x256xf32>
    %168 = arith.select %167, %157, %153 : vector<1x256xi1>, vector<1x256xf32>
    %169 = arith.select %167, %154, %157 : vector<1x256xi1>, vector<1x256xf32>
    %170 = arith.addf %168, %169 : vector<1x256xf32>
    %cst_75 = arith.constant 5.000000e-01 : f32
    %171 = vector.broadcast %cst_75 : f32 to vector<1x256xf32>
    %172 = arith.mulf %171, %170 : vector<1x256xf32>
    %173 = vector.broadcast %172 : vector<1x256xf32> to vector<16x256xf32>
    %174 = arith.subf %105, %173 : vector<16x256xf32>
    %cst_76 = arith.constant 0.000000e+00 : f32
    %175 = vector.broadcast %cst_76 : f32 to vector<16x256xf32>
    %176 = arith.maximumf %174, %175 : vector<16x256xf32>
    %cst_77 = arith.constant dense<0.000000e+00> : vector<256xf32>
    %177 = vector.multi_reduction <add>, %176, %cst_77 [0] : vector<16x256xf32> to vector<256xf32>
    %178 = vector.shape_cast %177 : vector<256xf32> to vector<1x256xf32>
    %cst_78 = arith.constant 1.000000e+00 : f32
    %179 = vector.broadcast %cst_78 : f32 to vector<1x256xf32>
    %180 = arith.subf %178, %179 : vector<1x256xf32>
    %cst_79 = arith.constant 0.000000e+00 : f32
    %181 = vector.broadcast %cst_79 : f32 to vector<1x256xf32>
    %182 = arith.cmpf ogt, %180, %181 : vector<1x256xf32>
    %183 = arith.select %182, %172, %168 : vector<1x256xi1>, vector<1x256xf32>
    %184 = arith.select %182, %169, %172 : vector<1x256xi1>, vector<1x256xf32>
    %185 = arith.addf %183, %184 : vector<1x256xf32>
    %cst_80 = arith.constant 5.000000e-01 : f32
    %186 = vector.broadcast %cst_80 : f32 to vector<1x256xf32>
    %187 = arith.mulf %186, %185 : vector<1x256xf32>
    %188 = vector.broadcast %187 : vector<1x256xf32> to vector<16x256xf32>
    %189 = arith.subf %105, %188 : vector<16x256xf32>
    %cst_81 = arith.constant 0.000000e+00 : f32
    %190 = vector.broadcast %cst_81 : f32 to vector<16x256xf32>
    %191 = arith.maximumf %189, %190 : vector<16x256xf32>
    %cst_82 = arith.constant dense<0.000000e+00> : vector<256xf32>
    %192 = vector.multi_reduction <add>, %191, %cst_82 [0] : vector<16x256xf32> to vector<256xf32>
    %193 = vector.shape_cast %192 : vector<256xf32> to vector<1x256xf32>
    %cst_83 = arith.constant 1.000000e+00 : f32
    %194 = vector.broadcast %cst_83 : f32 to vector<1x256xf32>
    %195 = arith.subf %193, %194 : vector<1x256xf32>
    %cst_84 = arith.constant 0.000000e+00 : f32
    %196 = vector.broadcast %cst_84 : f32 to vector<1x256xf32>
    %197 = arith.cmpf ogt, %195, %196 : vector<1x256xf32>
    %198 = arith.select %197, %187, %183 : vector<1x256xi1>, vector<1x256xf32>
    %199 = arith.select %197, %184, %187 : vector<1x256xi1>, vector<1x256xf32>
    %200 = arith.addf %198, %199 : vector<1x256xf32>
    %cst_85 = arith.constant 5.000000e-01 : f32
    %201 = vector.broadcast %cst_85 : f32 to vector<1x256xf32>
    %202 = arith.mulf %201, %200 : vector<1x256xf32>
    %203 = vector.broadcast %202 : vector<1x256xf32> to vector<16x256xf32>
    %204 = arith.subf %105, %203 : vector<16x256xf32>
    %cst_86 = arith.constant 0.000000e+00 : f32
    %205 = vector.broadcast %cst_86 : f32 to vector<16x256xf32>
    %206 = arith.maximumf %204, %205 : vector<16x256xf32>
    %cst_87 = arith.constant dense<0.000000e+00> : vector<256xf32>
    %207 = vector.multi_reduction <add>, %206, %cst_87 [0] : vector<16x256xf32> to vector<256xf32>
    %208 = vector.shape_cast %207 : vector<256xf32> to vector<1x256xf32>
    %cst_88 = arith.constant 1.000000e+00 : f32
    %209 = vector.broadcast %cst_88 : f32 to vector<1x256xf32>
    %210 = arith.subf %208, %209 : vector<1x256xf32>
    %cst_89 = arith.constant 0.000000e+00 : f32
    %211 = vector.broadcast %cst_89 : f32 to vector<1x256xf32>
    %212 = arith.cmpf ogt, %210, %211 : vector<1x256xf32>
    %213 = arith.select %212, %202, %198 : vector<1x256xi1>, vector<1x256xf32>
    %214 = arith.select %212, %199, %202 : vector<1x256xi1>, vector<1x256xf32>
    %215 = arith.addf %213, %214 : vector<1x256xf32>
    %cst_90 = arith.constant 5.000000e-01 : f32
    %216 = vector.broadcast %cst_90 : f32 to vector<1x256xf32>
    %217 = arith.mulf %216, %215 : vector<1x256xf32>
    %218 = vector.broadcast %217 : vector<1x256xf32> to vector<16x256xf32>
    %219 = arith.subf %105, %218 : vector<16x256xf32>
    %cst_91 = arith.constant 0.000000e+00 : f32
    %220 = vector.broadcast %cst_91 : f32 to vector<16x256xf32>
    %221 = arith.maximumf %219, %220 : vector<16x256xf32>
    %cst_92 = arith.constant dense<0.000000e+00> : vector<256xf32>
    %222 = vector.multi_reduction <add>, %221, %cst_92 [0] : vector<16x256xf32> to vector<256xf32>
    %223 = vector.shape_cast %222 : vector<256xf32> to vector<1x256xf32>
    %cst_93 = arith.constant 1.000000e+00 : f32
    %224 = vector.broadcast %cst_93 : f32 to vector<1x256xf32>
    %225 = arith.subf %223, %224 : vector<1x256xf32>
    %cst_94 = arith.constant 0.000000e+00 : f32
    %226 = vector.broadcast %cst_94 : f32 to vector<1x256xf32>
    %227 = arith.cmpf ogt, %225, %226 : vector<1x256xf32>
    %228 = arith.select %227, %217, %213 : vector<1x256xi1>, vector<1x256xf32>
    %229 = arith.select %227, %214, %217 : vector<1x256xi1>, vector<1x256xf32>
    %230 = arith.addf %228, %229 : vector<1x256xf32>
    %cst_95 = arith.constant 5.000000e-01 : f32
    %231 = vector.broadcast %cst_95 : f32 to vector<1x256xf32>
    %232 = arith.mulf %231, %230 : vector<1x256xf32>
    %233 = vector.broadcast %232 : vector<1x256xf32> to vector<16x256xf32>
    %234 = arith.subf %105, %233 : vector<16x256xf32>
    %cst_96 = arith.constant 0.000000e+00 : f32
    %235 = vector.broadcast %cst_96 : f32 to vector<16x256xf32>
    %236 = arith.maximumf %234, %235 : vector<16x256xf32>
    %cst_97 = arith.constant dense<0.000000e+00> : vector<256xf32>
    %237 = vector.multi_reduction <add>, %236, %cst_97 [0] : vector<16x256xf32> to vector<256xf32>
    %238 = vector.shape_cast %237 : vector<256xf32> to vector<1x256xf32>
    %cst_98 = arith.constant 1.000000e+00 : f32
    %239 = vector.broadcast %cst_98 : f32 to vector<1x256xf32>
    %240 = arith.subf %238, %239 : vector<1x256xf32>
    %cst_99 = arith.constant 0.000000e+00 : f32
    %241 = vector.broadcast %cst_99 : f32 to vector<1x256xf32>
    %242 = arith.cmpf ogt, %240, %241 : vector<1x256xf32>
    %243 = arith.select %242, %232, %228 : vector<1x256xi1>, vector<1x256xf32>
    %244 = arith.select %242, %229, %232 : vector<1x256xi1>, vector<1x256xf32>
    %245 = arith.addf %243, %244 : vector<1x256xf32>
    %cst_100 = arith.constant 5.000000e-01 : f32
    %246 = vector.broadcast %cst_100 : f32 to vector<1x256xf32>
    %247 = arith.mulf %246, %245 : vector<1x256xf32>
    %248 = vector.broadcast %247 : vector<1x256xf32> to vector<16x256xf32>
    %249 = arith.subf %105, %248 : vector<16x256xf32>
    %cst_101 = arith.constant 0.000000e+00 : f32
    %250 = vector.broadcast %cst_101 : f32 to vector<16x256xf32>
    %251 = arith.maximumf %249, %250 : vector<16x256xf32>
    %cst_102 = arith.constant dense<0.000000e+00> : vector<256xf32>
    %252 = vector.multi_reduction <add>, %251, %cst_102 [0] : vector<16x256xf32> to vector<256xf32>
    %253 = vector.shape_cast %252 : vector<256xf32> to vector<1x256xf32>
    %cst_103 = arith.constant 1.000000e+00 : f32
    %254 = vector.broadcast %cst_103 : f32 to vector<1x256xf32>
    %255 = arith.subf %253, %254 : vector<1x256xf32>
    %cst_104 = arith.constant 0.000000e+00 : f32
    %256 = vector.broadcast %cst_104 : f32 to vector<1x256xf32>
    %257 = arith.cmpf ogt, %255, %256 : vector<1x256xf32>
    %258 = arith.select %257, %247, %243 : vector<1x256xi1>, vector<1x256xf32>
    %259 = arith.select %257, %244, %247 : vector<1x256xi1>, vector<1x256xf32>
    %260 = arith.addf %258, %259 : vector<1x256xf32>
    %cst_105 = arith.constant 5.000000e-01 : f32
    %261 = vector.broadcast %cst_105 : f32 to vector<1x256xf32>
    %262 = arith.mulf %261, %260 : vector<1x256xf32>
    %263 = vector.broadcast %262 : vector<1x256xf32> to vector<16x256xf32>
    %264 = arith.subf %105, %263 : vector<16x256xf32>
    %cst_106 = arith.constant 0.000000e+00 : f32
    %265 = vector.broadcast %cst_106 : f32 to vector<16x256xf32>
    %266 = arith.maximumf %264, %265 : vector<16x256xf32>
    %cst_107 = arith.constant dense<0.000000e+00> : vector<256xf32>
    %267 = vector.multi_reduction <add>, %266, %cst_107 [0] : vector<16x256xf32> to vector<256xf32>
    %268 = vector.shape_cast %267 : vector<256xf32> to vector<1x256xf32>
    %cst_108 = arith.constant 1.000000e+00 : f32
    %269 = vector.broadcast %cst_108 : f32 to vector<1x256xf32>
    %270 = arith.subf %268, %269 : vector<1x256xf32>
    %cst_109 = arith.constant 0.000000e+00 : f32
    %271 = vector.broadcast %cst_109 : f32 to vector<1x256xf32>
    %272 = arith.cmpf ogt, %270, %271 : vector<1x256xf32>
    %273 = arith.select %272, %262, %258 : vector<1x256xi1>, vector<1x256xf32>
    %274 = arith.select %272, %259, %262 : vector<1x256xi1>, vector<1x256xf32>
    %275 = arith.addf %273, %274 : vector<1x256xf32>
    %cst_110 = arith.constant 5.000000e-01 : f32
    %276 = vector.broadcast %cst_110 : f32 to vector<1x256xf32>
    %277 = arith.mulf %276, %275 : vector<1x256xf32>
    %278 = vector.broadcast %277 : vector<1x256xf32> to vector<16x256xf32>
    %279 = arith.subf %105, %278 : vector<16x256xf32>
    %cst_111 = arith.constant 0.000000e+00 : f32
    %280 = vector.broadcast %cst_111 : f32 to vector<16x256xf32>
    %281 = arith.maximumf %279, %280 : vector<16x256xf32>
    %cst_112 = arith.constant dense<0.000000e+00> : vector<256xf32>
    %282 = vector.multi_reduction <add>, %281, %cst_112 [0] : vector<16x256xf32> to vector<256xf32>
    %283 = vector.shape_cast %282 : vector<256xf32> to vector<1x256xf32>
    %cst_113 = arith.constant 1.000000e+00 : f32
    %284 = vector.broadcast %cst_113 : f32 to vector<1x256xf32>
    %285 = arith.subf %283, %284 : vector<1x256xf32>
    %cst_114 = arith.constant 0.000000e+00 : f32
    %286 = vector.broadcast %cst_114 : f32 to vector<1x256xf32>
    %287 = arith.cmpf ogt, %285, %286 : vector<1x256xf32>
    %288 = arith.select %287, %277, %273 : vector<1x256xi1>, vector<1x256xf32>
    %289 = arith.select %287, %274, %277 : vector<1x256xi1>, vector<1x256xf32>
    %290 = arith.addf %288, %289 : vector<1x256xf32>
    %cst_115 = arith.constant 5.000000e-01 : f32
    %291 = vector.broadcast %cst_115 : f32 to vector<1x256xf32>
    %292 = arith.mulf %291, %290 : vector<1x256xf32>
    %293 = vector.broadcast %292 : vector<1x256xf32> to vector<16x256xf32>
    %294 = arith.subf %105, %293 : vector<16x256xf32>
    %cst_116 = arith.constant 0.000000e+00 : f32
    %295 = vector.broadcast %cst_116 : f32 to vector<16x256xf32>
    %296 = arith.maximumf %294, %295 : vector<16x256xf32>
    %cst_117 = arith.constant dense<0.000000e+00> : vector<256xf32>
    %297 = vector.multi_reduction <add>, %296, %cst_117 [0] : vector<16x256xf32> to vector<256xf32>
    %298 = vector.shape_cast %297 : vector<256xf32> to vector<1x256xf32>
    %cst_118 = arith.constant 1.000000e+00 : f32
    %299 = vector.broadcast %cst_118 : f32 to vector<1x256xf32>
    %300 = arith.subf %298, %299 : vector<1x256xf32>
    %cst_119 = arith.constant 0.000000e+00 : f32
    %301 = vector.broadcast %cst_119 : f32 to vector<1x256xf32>
    %302 = arith.cmpf ogt, %300, %301 : vector<1x256xf32>
    %303 = arith.select %302, %292, %288 : vector<1x256xi1>, vector<1x256xf32>
    %304 = arith.select %302, %289, %292 : vector<1x256xi1>, vector<1x256xf32>
    %305 = arith.addf %303, %304 : vector<1x256xf32>
    %cst_120 = arith.constant 5.000000e-01 : f32
    %306 = vector.broadcast %cst_120 : f32 to vector<1x256xf32>
    %307 = arith.mulf %306, %305 : vector<1x256xf32>
    %308 = vector.broadcast %307 : vector<1x256xf32> to vector<16x256xf32>
    %309 = arith.subf %105, %308 : vector<16x256xf32>
    %cst_121 = arith.constant 0.000000e+00 : f32
    %310 = vector.broadcast %cst_121 : f32 to vector<16x256xf32>
    %311 = arith.maximumf %309, %310 : vector<16x256xf32>
    %cst_122 = arith.constant dense<0.000000e+00> : vector<256xf32>
    %312 = vector.multi_reduction <add>, %311, %cst_122 [0] : vector<16x256xf32> to vector<256xf32>
    %313 = vector.shape_cast %312 : vector<256xf32> to vector<1x256xf32>
    %cst_123 = arith.constant 1.000000e+00 : f32
    %314 = vector.broadcast %cst_123 : f32 to vector<1x256xf32>
    %315 = arith.subf %313, %314 : vector<1x256xf32>
    %cst_124 = arith.constant 0.000000e+00 : f32
    %316 = vector.broadcast %cst_124 : f32 to vector<1x256xf32>
    %317 = arith.cmpf ogt, %315, %316 : vector<1x256xf32>
    %318 = arith.select %317, %307, %303 : vector<1x256xi1>, vector<1x256xf32>
    %319 = arith.select %317, %304, %307 : vector<1x256xi1>, vector<1x256xf32>
    %320 = arith.addf %318, %319 : vector<1x256xf32>
    %cst_125 = arith.constant 5.000000e-01 : f32
    %321 = vector.broadcast %cst_125 : f32 to vector<1x256xf32>
    %322 = arith.mulf %321, %320 : vector<1x256xf32>
    %323 = vector.broadcast %322 : vector<1x256xf32> to vector<16x256xf32>
    %324 = arith.subf %105, %323 : vector<16x256xf32>
    %cst_126 = arith.constant 0.000000e+00 : f32
    %325 = vector.broadcast %cst_126 : f32 to vector<16x256xf32>
    %326 = arith.maximumf %324, %325 : vector<16x256xf32>
    %cst_127 = arith.constant dense<0.000000e+00> : vector<256xf32>
    %327 = vector.multi_reduction <add>, %326, %cst_127 [0] : vector<16x256xf32> to vector<256xf32>
    %328 = vector.shape_cast %327 : vector<256xf32> to vector<1x256xf32>
    %cst_128 = arith.constant 1.000000e+00 : f32
    %329 = vector.broadcast %cst_128 : f32 to vector<1x256xf32>
    %330 = arith.subf %328, %329 : vector<1x256xf32>
    %cst_129 = arith.constant 0.000000e+00 : f32
    %331 = vector.broadcast %cst_129 : f32 to vector<1x256xf32>
    %332 = arith.cmpf ogt, %330, %331 : vector<1x256xf32>
    %333 = arith.select %332, %322, %318 : vector<1x256xi1>, vector<1x256xf32>
    %334 = arith.select %332, %319, %322 : vector<1x256xi1>, vector<1x256xf32>
    %335 = arith.addf %333, %334 : vector<1x256xf32>
    %cst_130 = arith.constant 5.000000e-01 : f32
    %336 = vector.broadcast %cst_130 : f32 to vector<1x256xf32>
    %337 = arith.mulf %336, %335 : vector<1x256xf32>
    %338 = vector.broadcast %337 : vector<1x256xf32> to vector<16x256xf32>
    %339 = arith.subf %105, %338 : vector<16x256xf32>
    %cst_131 = arith.constant 0.000000e+00 : f32
    %340 = vector.broadcast %cst_131 : f32 to vector<16x256xf32>
    %341 = arith.maximumf %339, %340 : vector<16x256xf32>
    %cst_132 = arith.constant dense<0.000000e+00> : vector<256xf32>
    %342 = vector.multi_reduction <add>, %341, %cst_132 [0] : vector<16x256xf32> to vector<256xf32>
    %343 = vector.shape_cast %342 : vector<256xf32> to vector<1x256xf32>
    %cst_133 = arith.constant 1.000000e+00 : f32
    %344 = vector.broadcast %cst_133 : f32 to vector<1x256xf32>
    %345 = arith.subf %343, %344 : vector<1x256xf32>
    %cst_134 = arith.constant 0.000000e+00 : f32
    %346 = vector.broadcast %cst_134 : f32 to vector<1x256xf32>
    %347 = arith.cmpf ogt, %345, %346 : vector<1x256xf32>
    %348 = arith.select %347, %337, %333 : vector<1x256xi1>, vector<1x256xf32>
    %349 = arith.select %347, %334, %337 : vector<1x256xi1>, vector<1x256xf32>
    %350 = arith.addf %348, %349 : vector<1x256xf32>
    %cst_135 = arith.constant 5.000000e-01 : f32
    %351 = vector.broadcast %cst_135 : f32 to vector<1x256xf32>
    %352 = arith.mulf %351, %350 : vector<1x256xf32>
    %353 = vector.broadcast %352 : vector<1x256xf32> to vector<16x256xf32>
    %354 = arith.subf %105, %353 : vector<16x256xf32>
    %cst_136 = arith.constant 0.000000e+00 : f32
    %355 = vector.broadcast %cst_136 : f32 to vector<16x256xf32>
    %356 = arith.maximumf %354, %355 : vector<16x256xf32>
    %cst_137 = arith.constant dense<0.000000e+00> : vector<256xf32>
    %357 = vector.multi_reduction <add>, %356, %cst_137 [0] : vector<16x256xf32> to vector<256xf32>
    %358 = vector.shape_cast %357 : vector<256xf32> to vector<1x256xf32>
    %cst_138 = arith.constant 1.000000e+00 : f32
    %359 = vector.broadcast %cst_138 : f32 to vector<1x256xf32>
    %360 = arith.subf %358, %359 : vector<1x256xf32>
    %cst_139 = arith.constant 0.000000e+00 : f32
    %361 = vector.broadcast %cst_139 : f32 to vector<1x256xf32>
    %362 = arith.cmpf ogt, %360, %361 : vector<1x256xf32>
    %363 = arith.select %362, %352, %348 : vector<1x256xi1>, vector<1x256xf32>
    %364 = arith.select %362, %349, %352 : vector<1x256xi1>, vector<1x256xf32>
    %365 = arith.addf %363, %364 : vector<1x256xf32>
    %cst_140 = arith.constant 5.000000e-01 : f32
    %366 = vector.broadcast %cst_140 : f32 to vector<1x256xf32>
    %367 = arith.mulf %366, %365 : vector<1x256xf32>
    %368 = vector.broadcast %367 : vector<1x256xf32> to vector<16x256xf32>
    %369 = arith.subf %105, %368 : vector<16x256xf32>
    %cst_141 = arith.constant 0.000000e+00 : f32
    %370 = vector.broadcast %cst_141 : f32 to vector<16x256xf32>
    %371 = arith.maximumf %369, %370 : vector<16x256xf32>
    %cst_142 = arith.constant dense<0.000000e+00> : vector<256xf32>
    %372 = vector.multi_reduction <add>, %371, %cst_142 [0] : vector<16x256xf32> to vector<256xf32>
    %373 = vector.shape_cast %372 : vector<256xf32> to vector<1x256xf32>
    %cst_143 = arith.constant 1.000000e+00 : f32
    %374 = vector.broadcast %cst_143 : f32 to vector<1x256xf32>
    %375 = arith.subf %373, %374 : vector<1x256xf32>
    %cst_144 = arith.constant 0.000000e+00 : f32
    %376 = vector.broadcast %cst_144 : f32 to vector<1x256xf32>
    %377 = arith.cmpf ogt, %375, %376 : vector<1x256xf32>
    %378 = arith.select %377, %367, %363 : vector<1x256xi1>, vector<1x256xf32>
    %379 = arith.select %377, %364, %367 : vector<1x256xi1>, vector<1x256xf32>
    %380 = arith.addf %378, %379 : vector<1x256xf32>
    %cst_145 = arith.constant 5.000000e-01 : f32
    %381 = vector.broadcast %cst_145 : f32 to vector<1x256xf32>
    %382 = arith.mulf %381, %380 : vector<1x256xf32>
    %383 = vector.broadcast %382 : vector<1x256xf32> to vector<16x256xf32>
    %384 = arith.subf %105, %383 : vector<16x256xf32>
    %cst_146 = arith.constant 0.000000e+00 : f32
    %385 = vector.broadcast %cst_146 : f32 to vector<16x256xf32>
    %386 = arith.maximumf %384, %385 : vector<16x256xf32>
    %cst_147 = arith.constant dense<0.000000e+00> : vector<256xf32>
    %387 = vector.multi_reduction <add>, %386, %cst_147 [0] : vector<16x256xf32> to vector<256xf32>
    %388 = vector.shape_cast %387 : vector<256xf32> to vector<1x256xf32>
    %cst_148 = arith.constant 1.000000e+00 : f32
    %389 = vector.broadcast %cst_148 : f32 to vector<1x256xf32>
    %390 = arith.subf %388, %389 : vector<1x256xf32>
    %cst_149 = arith.constant 0.000000e+00 : f32
    %391 = vector.broadcast %cst_149 : f32 to vector<1x256xf32>
    %392 = arith.cmpf ogt, %390, %391 : vector<1x256xf32>
    %393 = arith.select %392, %382, %378 : vector<1x256xi1>, vector<1x256xf32>
    %394 = arith.select %392, %379, %382 : vector<1x256xi1>, vector<1x256xf32>
    %395 = arith.addf %393, %394 : vector<1x256xf32>
    %cst_150 = arith.constant 5.000000e-01 : f32
    %396 = vector.broadcast %cst_150 : f32 to vector<1x256xf32>
    %397 = arith.mulf %396, %395 : vector<1x256xf32>
    %398 = vector.broadcast %397 : vector<1x256xf32> to vector<16x256xf32>
    %399 = arith.subf %105, %398 : vector<16x256xf32>
    %cst_151 = arith.constant 0.000000e+00 : f32
    %400 = vector.broadcast %cst_151 : f32 to vector<16x256xf32>
    %401 = arith.maximumf %399, %400 : vector<16x256xf32>
    %cst_152 = arith.constant dense<0.000000e+00> : vector<256xf32>
    %402 = vector.multi_reduction <add>, %401, %cst_152 [0] : vector<16x256xf32> to vector<256xf32>
    %403 = vector.shape_cast %402 : vector<256xf32> to vector<1x256xf32>
    %cst_153 = arith.constant 1.000000e+00 : f32
    %404 = vector.broadcast %cst_153 : f32 to vector<1x256xf32>
    %405 = arith.subf %403, %404 : vector<1x256xf32>
    %cst_154 = arith.constant 0.000000e+00 : f32
    %406 = vector.broadcast %cst_154 : f32 to vector<1x256xf32>
    %407 = arith.cmpf ogt, %405, %406 : vector<1x256xf32>
    %408 = arith.select %407, %397, %393 : vector<1x256xi1>, vector<1x256xf32>
    %409 = arith.select %407, %394, %397 : vector<1x256xi1>, vector<1x256xf32>
    %410 = arith.addf %408, %409 : vector<1x256xf32>
    %cst_155 = arith.constant 5.000000e-01 : f32
    %411 = vector.broadcast %cst_155 : f32 to vector<1x256xf32>
    %412 = arith.mulf %411, %410 : vector<1x256xf32>
    %413 = vector.broadcast %412 : vector<1x256xf32> to vector<16x256xf32>
    %414 = arith.subf %105, %413 : vector<16x256xf32>
    %cst_156 = arith.constant 0.000000e+00 : f32
    %415 = vector.broadcast %cst_156 : f32 to vector<16x256xf32>
    %416 = arith.maximumf %414, %415 : vector<16x256xf32>
    %cst_157 = arith.constant dense<0.000000e+00> : vector<256xf32>
    %417 = vector.multi_reduction <add>, %416, %cst_157 [0] : vector<16x256xf32> to vector<256xf32>
    %418 = vector.shape_cast %417 : vector<256xf32> to vector<1x256xf32>
    %cst_158 = arith.constant 1.000000e+00 : f32
    %419 = vector.broadcast %cst_158 : f32 to vector<1x256xf32>
    %420 = arith.subf %418, %419 : vector<1x256xf32>
    %cst_159 = arith.constant 0.000000e+00 : f32
    %421 = vector.broadcast %cst_159 : f32 to vector<1x256xf32>
    %422 = arith.cmpf ogt, %420, %421 : vector<1x256xf32>
    %423 = arith.select %422, %412, %408 : vector<1x256xi1>, vector<1x256xf32>
    %424 = arith.select %422, %409, %412 : vector<1x256xi1>, vector<1x256xf32>
    %425 = arith.addf %423, %424 : vector<1x256xf32>
    %cst_160 = arith.constant 5.000000e-01 : f32
    %426 = vector.broadcast %cst_160 : f32 to vector<1x256xf32>
    %427 = arith.mulf %426, %425 : vector<1x256xf32>
    %428 = vector.broadcast %427 : vector<1x256xf32> to vector<16x256xf32>
    %429 = arith.subf %105, %428 : vector<16x256xf32>
    %cst_161 = arith.constant 0.000000e+00 : f32
    %430 = vector.broadcast %cst_161 : f32 to vector<16x256xf32>
    %431 = arith.maximumf %429, %430 : vector<16x256xf32>
    %cst_162 = arith.constant dense<0.000000e+00> : vector<256xf32>
    %432 = vector.multi_reduction <add>, %431, %cst_162 [0] : vector<16x256xf32> to vector<256xf32>
    %433 = vector.shape_cast %432 : vector<256xf32> to vector<1x256xf32>
    %cst_163 = arith.constant 1.000000e+00 : f32
    %434 = vector.broadcast %cst_163 : f32 to vector<1x256xf32>
    %435 = arith.subf %433, %434 : vector<1x256xf32>
    %cst_164 = arith.constant 0.000000e+00 : f32
    %436 = vector.broadcast %cst_164 : f32 to vector<1x256xf32>
    %437 = arith.cmpf ogt, %435, %436 : vector<1x256xf32>
    %438 = arith.select %437, %427, %423 : vector<1x256xi1>, vector<1x256xf32>
    %439 = arith.select %437, %424, %427 : vector<1x256xi1>, vector<1x256xf32>
    %440 = arith.addf %438, %439 : vector<1x256xf32>
    %cst_165 = arith.constant 5.000000e-01 : f32
    %441 = vector.broadcast %cst_165 : f32 to vector<1x256xf32>
    %442 = arith.mulf %441, %440 : vector<1x256xf32>
    %443 = vector.broadcast %442 : vector<1x256xf32> to vector<16x256xf32>
    %444 = arith.subf %105, %443 : vector<16x256xf32>
    %cst_166 = arith.constant 0.000000e+00 : f32
    %445 = vector.broadcast %cst_166 : f32 to vector<16x256xf32>
    %446 = arith.maximumf %444, %445 : vector<16x256xf32>
    %cst_167 = arith.constant dense<0.000000e+00> : vector<256xf32>
    %447 = vector.multi_reduction <add>, %446, %cst_167 [0] : vector<16x256xf32> to vector<256xf32>
    %448 = vector.shape_cast %447 : vector<256xf32> to vector<1x256xf32>
    %cst_168 = arith.constant 1.000000e+00 : f32
    %449 = vector.broadcast %cst_168 : f32 to vector<1x256xf32>
    %450 = arith.subf %448, %449 : vector<1x256xf32>
    %cst_169 = arith.constant 0.000000e+00 : f32
    %451 = vector.broadcast %cst_169 : f32 to vector<1x256xf32>
    %452 = arith.cmpf ogt, %450, %451 : vector<1x256xf32>
    %453 = arith.select %452, %442, %438 : vector<1x256xi1>, vector<1x256xf32>
    %454 = arith.select %452, %439, %442 : vector<1x256xi1>, vector<1x256xf32>
    %455 = arith.addf %453, %454 : vector<1x256xf32>
    %cst_170 = arith.constant 5.000000e-01 : f32
    %456 = vector.broadcast %cst_170 : f32 to vector<1x256xf32>
    %457 = arith.mulf %456, %455 : vector<1x256xf32>
    %458 = vector.broadcast %457 : vector<1x256xf32> to vector<16x256xf32>
    %459 = arith.subf %105, %458 : vector<16x256xf32>
    %cst_171 = arith.constant 0.000000e+00 : f32
    %460 = vector.broadcast %cst_171 : f32 to vector<16x256xf32>
    %461 = arith.maximumf %459, %460 : vector<16x256xf32>
    %cst_172 = arith.constant dense<0.000000e+00> : vector<256xf32>
    %462 = vector.multi_reduction <add>, %461, %cst_172 [0] : vector<16x256xf32> to vector<256xf32>
    %463 = vector.shape_cast %462 : vector<256xf32> to vector<1x256xf32>
    %cst_173 = arith.constant 1.000000e+00 : f32
    %464 = vector.broadcast %cst_173 : f32 to vector<1x256xf32>
    %465 = arith.subf %463, %464 : vector<1x256xf32>
    %cst_174 = arith.constant 0.000000e+00 : f32
    %466 = vector.broadcast %cst_174 : f32 to vector<1x256xf32>
    %467 = arith.cmpf ogt, %465, %466 : vector<1x256xf32>
    %468 = arith.select %467, %457, %453 : vector<1x256xi1>, vector<1x256xf32>
    %469 = arith.select %467, %454, %457 : vector<1x256xi1>, vector<1x256xf32>
    %470 = arith.addf %468, %469 : vector<1x256xf32>
    %cst_175 = arith.constant 5.000000e-01 : f32
    %471 = vector.broadcast %cst_175 : f32 to vector<1x256xf32>
    %472 = arith.mulf %471, %470 : vector<1x256xf32>
    %473 = vector.broadcast %472 : vector<1x256xf32> to vector<16x256xf32>
    %474 = arith.subf %105, %473 : vector<16x256xf32>
    %cst_176 = arith.constant 0.000000e+00 : f32
    %475 = vector.broadcast %cst_176 : f32 to vector<16x256xf32>
    %476 = arith.maximumf %474, %475 : vector<16x256xf32>
    %cst_177 = arith.constant dense<0.000000e+00> : vector<256xf32>
    %477 = vector.multi_reduction <add>, %476, %cst_177 [0] : vector<16x256xf32> to vector<256xf32>
    %478 = vector.shape_cast %477 : vector<256xf32> to vector<1x256xf32>
    %cst_178 = arith.constant 1.000000e+00 : f32
    %479 = vector.broadcast %cst_178 : f32 to vector<1x256xf32>
    %480 = arith.subf %478, %479 : vector<1x256xf32>
    %cst_179 = arith.constant 0.000000e+00 : f32
    %481 = vector.broadcast %cst_179 : f32 to vector<1x256xf32>
    %482 = arith.cmpf ogt, %480, %481 : vector<1x256xf32>
    %483 = arith.select %482, %472, %468 : vector<1x256xi1>, vector<1x256xf32>
    %484 = arith.select %482, %469, %472 : vector<1x256xi1>, vector<1x256xf32>
    %485 = arith.addf %483, %484 : vector<1x256xf32>
    %cst_180 = arith.constant 5.000000e-01 : f32
    %486 = vector.broadcast %cst_180 : f32 to vector<1x256xf32>
    %487 = arith.mulf %486, %485 : vector<1x256xf32>
    %488 = vector.broadcast %487 : vector<1x256xf32> to vector<16x256xf32>
    %489 = arith.subf %105, %488 : vector<16x256xf32>
    %cst_181 = arith.constant 0.000000e+00 : f32
    %490 = vector.broadcast %cst_181 : f32 to vector<16x256xf32>
    %491 = arith.maximumf %489, %490 : vector<16x256xf32>
    %cst_182 = arith.constant dense<0.000000e+00> : vector<256xf32>
    %492 = vector.multi_reduction <add>, %491, %cst_182 [0] : vector<16x256xf32> to vector<256xf32>
    %493 = vector.shape_cast %492 : vector<256xf32> to vector<1x256xf32>
    %cst_183 = arith.constant 1.000000e+00 : f32
    %494 = vector.broadcast %cst_183 : f32 to vector<1x256xf32>
    %495 = arith.subf %493, %494 : vector<1x256xf32>
    %cst_184 = arith.constant 0.000000e+00 : f32
    %496 = vector.broadcast %cst_184 : f32 to vector<1x256xf32>
    %497 = arith.cmpf ogt, %495, %496 : vector<1x256xf32>
    %498 = arith.select %497, %487, %483 : vector<1x256xi1>, vector<1x256xf32>
    %499 = arith.select %497, %484, %487 : vector<1x256xi1>, vector<1x256xf32>
    %500 = arith.addf %498, %499 : vector<1x256xf32>
    %cst_185 = arith.constant 5.000000e-01 : f32
    %501 = vector.broadcast %cst_185 : f32 to vector<1x256xf32>
    %502 = arith.mulf %501, %500 : vector<1x256xf32>
    %503 = vector.broadcast %502 : vector<1x256xf32> to vector<16x256xf32>
    %504 = arith.subf %105, %503 : vector<16x256xf32>
    %cst_186 = arith.constant 0.000000e+00 : f32
    %505 = vector.broadcast %cst_186 : f32 to vector<16x256xf32>
    %506 = arith.maximumf %504, %505 : vector<16x256xf32>
    %cst_187 = arith.constant 1.000000e-15 : f32
    %507 = vector.broadcast %cst_187 : f32 to vector<16x256xf32>
    %508 = arith.addf %506, %507 : vector<16x256xf32>
    %509 = math.log %508 : vector<16x256xf32>
    %510 = arith.mulf %506, %509 : vector<16x256xf32>
    %cst_188 = arith.constant dense<0.000000e+00> : vector<256xf32>
    %511 = vector.multi_reduction <add>, %510, %cst_188 [0] : vector<16x256xf32> to vector<256xf32>
    %512 = vector.shape_cast %511 : vector<256xf32> to vector<1x256xf32>
    %513 = arith.addf %97, %512 : vector<1x256xf32>
    %cst_189 = arith.constant 1.300000e+00 : f32
    %514 = vector.broadcast %cst_189 : f32 to vector<16x256xf32>
    %515 = arith.subf %514, %506 : vector<16x256xf32>
    %516 = arith.mulf %515, %17 : vector<16x256xf32>
    %517 = arith.mulf %506, %16 : vector<16x256xf32>
    %518 = vector.extract_strided_slice %2 {offsets = [1, 0, 0], sizes = [1, 32, 16], strides = [1, 1, 1]} : vector<4x32x16xf32> to vector<1x32x16xf32>
    %519 = vector.shape_cast %518 : vector<1x32x16xf32> to vector<32x16xf32>
    %520 = vector.extract_strided_slice %3 {offsets = [1, 0, 0], sizes = [1, 32, 1], strides = [1, 1, 1]} : vector<4x32x1xf32> to vector<1x32x1xf32>
    %521 = vector.shape_cast %520 : vector<1x32x1xf32> to vector<32x1xf32>
    %cst_190 = arith.constant dense<0.000000e+00> : vector<32x256xf32>
    %522 = tpu.matmul %519, %517, %cst_190 {dimension_numbers = #tpu.dot_dimension_numbers<[1], [0], [0], [1], [0, 0, 1, 1], [], []>} : vector<32x16xf32>, vector<16x256xf32>, vector<32x256xf32> -> vector<32x256xf32>
    %523 = vector.broadcast %521 : vector<32x1xf32> to vector<32x256xf32>
    %524 = arith.addf %522, %523 : vector<32x256xf32>
    %525 = vector.extract_strided_slice %524 {offsets = [0, 0], sizes = [16, 256], strides = [1, 1]} : vector<32x256xf32> to vector<16x256xf32>
    %526 = vector.extract_strided_slice %524 {offsets = [16, 0], sizes = [16, 256], strides = [1, 1]} : vector<32x256xf32> to vector<16x256xf32>
    %cst_191 = arith.constant 5.000000e-01 : f32
    %527 = vector.broadcast %cst_191 : f32 to vector<16x256xf32>
    %528 = arith.mulf %527, %526 : vector<16x256xf32>
    %529 = math.tanh %528 : vector<16x256xf32>
    %cst_192 = arith.constant 5.000000e-01 : f32
    %530 = vector.broadcast %cst_192 : f32 to vector<16x256xf32>
    %531 = arith.mulf %530, %529 : vector<16x256xf32>
    %cst_193 = arith.constant 5.000000e-01 : f32
    %532 = vector.broadcast %cst_193 : f32 to vector<16x256xf32>
    %533 = arith.addf %531, %532 : vector<16x256xf32>
    %534 = arith.mulf %525, %533 : vector<16x256xf32>
    %535 = vector.extract_strided_slice %4 {offsets = [1, 0, 0], sizes = [1, 32, 16], strides = [1, 1, 1]} : vector<4x32x16xf32> to vector<1x32x16xf32>
    %536 = vector.shape_cast %535 : vector<1x32x16xf32> to vector<32x16xf32>
    %537 = vector.extract_strided_slice %5 {offsets = [1, 0, 0], sizes = [1, 32, 1], strides = [1, 1, 1]} : vector<4x32x1xf32> to vector<1x32x1xf32>
    %538 = vector.shape_cast %537 : vector<1x32x1xf32> to vector<32x1xf32>
    %cst_194 = arith.constant dense<0.000000e+00> : vector<32x256xf32>
    %539 = tpu.matmul %536, %534, %cst_194 {dimension_numbers = #tpu.dot_dimension_numbers<[1], [0], [0], [1], [0, 0, 1, 1], [], []>} : vector<32x16xf32>, vector<16x256xf32>, vector<32x256xf32> -> vector<32x256xf32>
    %540 = vector.broadcast %538 : vector<32x1xf32> to vector<32x256xf32>
    %541 = arith.addf %539, %540 : vector<32x256xf32>
    %542 = vector.extract_strided_slice %541 {offsets = [0, 0], sizes = [16, 256], strides = [1, 1]} : vector<32x256xf32> to vector<16x256xf32>
    %543 = vector.extract_strided_slice %541 {offsets = [16, 0], sizes = [16, 256], strides = [1, 1]} : vector<32x256xf32> to vector<16x256xf32>
    %cst_195 = arith.constant 5.000000e-01 : f32
    %544 = vector.broadcast %cst_195 : f32 to vector<16x256xf32>
    %545 = arith.mulf %544, %543 : vector<16x256xf32>
    %546 = math.tanh %545 : vector<16x256xf32>
    %cst_196 = arith.constant 5.000000e-01 : f32
    %547 = vector.broadcast %cst_196 : f32 to vector<16x256xf32>
    %548 = arith.mulf %547, %546 : vector<16x256xf32>
    %cst_197 = arith.constant 5.000000e-01 : f32
    %549 = vector.broadcast %cst_197 : f32 to vector<16x256xf32>
    %550 = arith.addf %548, %549 : vector<16x256xf32>
    %551 = arith.mulf %542, %550 : vector<16x256xf32>
    %552 = arith.addf %534, %551 : vector<16x256xf32>
    %cst_198 = arith.constant 0.707106769 : f32
    %553 = vector.broadcast %cst_198 : f32 to vector<16x256xf32>
    %554 = arith.mulf %552, %553 : vector<16x256xf32>
    %555 = vector.extract_strided_slice %6 {offsets = [1, 0, 0, 0], sizes = [1, 1, 32, 16], strides = [1, 1, 1, 1]} : vector<4x2x32x16xf32> to vector<1x1x32x16xf32>
    %556 = vector.shape_cast %555 : vector<1x1x32x16xf32> to vector<32x16xf32>
    %557 = vector.extract_strided_slice %7 {offsets = [1, 0, 0, 0], sizes = [1, 1, 32, 1], strides = [1, 1, 1, 1]} : vector<4x2x32x1xf32> to vector<1x1x32x1xf32>
    %558 = vector.shape_cast %557 : vector<1x1x32x1xf32> to vector<32x1xf32>
    %cst_199 = arith.constant dense<0.000000e+00> : vector<32x256xf32>
    %559 = tpu.matmul %556, %554, %cst_199 {dimension_numbers = #tpu.dot_dimension_numbers<[1], [0], [0], [1], [0, 0, 1, 1], [], []>} : vector<32x16xf32>, vector<16x256xf32>, vector<32x256xf32> -> vector<32x256xf32>
    %560 = vector.broadcast %558 : vector<32x1xf32> to vector<32x256xf32>
    %561 = arith.addf %559, %560 : vector<32x256xf32>
    %562 = vector.extract_strided_slice %561 {offsets = [0, 0], sizes = [16, 256], strides = [1, 1]} : vector<32x256xf32> to vector<16x256xf32>
    %563 = vector.extract_strided_slice %561 {offsets = [16, 0], sizes = [16, 256], strides = [1, 1]} : vector<32x256xf32> to vector<16x256xf32>
    %cst_200 = arith.constant 5.000000e-01 : f32
    %564 = vector.broadcast %cst_200 : f32 to vector<16x256xf32>
    %565 = arith.mulf %564, %563 : vector<16x256xf32>
    %566 = math.tanh %565 : vector<16x256xf32>
    %cst_201 = arith.constant 5.000000e-01 : f32
    %567 = vector.broadcast %cst_201 : f32 to vector<16x256xf32>
    %568 = arith.mulf %567, %566 : vector<16x256xf32>
    %cst_202 = arith.constant 5.000000e-01 : f32
    %569 = vector.broadcast %cst_202 : f32 to vector<16x256xf32>
    %570 = arith.addf %568, %569 : vector<16x256xf32>
    %571 = arith.mulf %562, %570 : vector<16x256xf32>
    %572 = arith.addf %554, %571 : vector<16x256xf32>
    %cst_203 = arith.constant 0.707106769 : f32
    %573 = vector.broadcast %cst_203 : f32 to vector<16x256xf32>
    %574 = arith.mulf %572, %573 : vector<16x256xf32>
    %575 = vector.extract_strided_slice %6 {offsets = [1, 1, 0, 0], sizes = [1, 1, 32, 16], strides = [1, 1, 1, 1]} : vector<4x2x32x16xf32> to vector<1x1x32x16xf32>
    %576 = vector.shape_cast %575 : vector<1x1x32x16xf32> to vector<32x16xf32>
    %577 = vector.extract_strided_slice %7 {offsets = [1, 1, 0, 0], sizes = [1, 1, 32, 1], strides = [1, 1, 1, 1]} : vector<4x2x32x1xf32> to vector<1x1x32x1xf32>
    %578 = vector.shape_cast %577 : vector<1x1x32x1xf32> to vector<32x1xf32>
    %cst_204 = arith.constant dense<0.000000e+00> : vector<32x256xf32>
    %579 = tpu.matmul %576, %574, %cst_204 {dimension_numbers = #tpu.dot_dimension_numbers<[1], [0], [0], [1], [0, 0, 1, 1], [], []>} : vector<32x16xf32>, vector<16x256xf32>, vector<32x256xf32> -> vector<32x256xf32>
    %580 = vector.broadcast %578 : vector<32x1xf32> to vector<32x256xf32>
    %581 = arith.addf %579, %580 : vector<32x256xf32>
    %582 = vector.extract_strided_slice %581 {offsets = [0, 0], sizes = [16, 256], strides = [1, 1]} : vector<32x256xf32> to vector<16x256xf32>
    %583 = vector.extract_strided_slice %581 {offsets = [16, 0], sizes = [16, 256], strides = [1, 1]} : vector<32x256xf32> to vector<16x256xf32>
    %cst_205 = arith.constant 5.000000e-01 : f32
    %584 = vector.broadcast %cst_205 : f32 to vector<16x256xf32>
    %585 = arith.mulf %584, %583 : vector<16x256xf32>
    %586 = math.tanh %585 : vector<16x256xf32>
    %cst_206 = arith.constant 5.000000e-01 : f32
    %587 = vector.broadcast %cst_206 : f32 to vector<16x256xf32>
    %588 = arith.mulf %587, %586 : vector<16x256xf32>
    %cst_207 = arith.constant 5.000000e-01 : f32
    %589 = vector.broadcast %cst_207 : f32 to vector<16x256xf32>
    %590 = arith.addf %588, %589 : vector<16x256xf32>
    %591 = arith.mulf %582, %590 : vector<16x256xf32>
    %592 = arith.addf %574, %591 : vector<16x256xf32>
    %cst_208 = arith.constant 0.707106769 : f32
    %593 = vector.broadcast %cst_208 : f32 to vector<16x256xf32>
    %594 = arith.mulf %592, %593 : vector<16x256xf32>
    %595 = vector.extract_strided_slice %594 {offsets = [0, 0], sizes = [8, 256], strides = [1, 1]} : vector<16x256xf32> to vector<8x256xf32>
    %cst_209 = arith.constant 0.000000e+00 : f32
    %596 = vector.broadcast %cst_209 : f32 to vector<8x256xf32>
    %597 = arith.maximumf %595, %596 : vector<8x256xf32>
    %598 = arith.addf %96, %597 : vector<8x256xf32>
    %599 = vector.extract_strided_slice %594 {offsets = [8, 0], sizes = [8, 256], strides = [1, 1]} : vector<16x256xf32> to vector<8x256xf32>
    %600 = vector.extract_strided_slice %8 {offsets = [1, 0, 0], sizes = [1, 16, 8], strides = [1, 1, 1]} : vector<3x16x8xf32> to vector<1x16x8xf32>
    %601 = vector.shape_cast %600 : vector<1x16x8xf32> to vector<16x8xf32>
    %cst_210 = arith.constant dense<0.000000e+00> : vector<16x256xf32>
    %602 = tpu.matmul %601, %599, %cst_210 {dimension_numbers = #tpu.dot_dimension_numbers<[1], [0], [0], [1], [0, 0, 1, 1], [], []>} : vector<16x8xf32>, vector<8x256xf32>, vector<16x256xf32> -> vector<16x256xf32>
    %603 = vector.extract_strided_slice %9 {offsets = [1, 0, 0], sizes = [1, 16, 1], strides = [1, 1, 1]} : vector<3x16x1xf32> to vector<1x16x1xf32>
    %604 = vector.shape_cast %603 : vector<1x16x1xf32> to vector<16x1xf32>
    %605 = vector.broadcast %604 : vector<16x1xf32> to vector<16x256xf32>
    %606 = arith.addf %602, %605 : vector<16x256xf32>
    %607 = arith.mulf %606, %516 : vector<16x256xf32>
    %cst_211 = arith.constant dense<0xFF800000> : vector<256xf32>
    %608 = vector.multi_reduction <maximumf>, %607, %cst_211 [0] : vector<16x256xf32> to vector<256xf32>
    %609 = vector.shape_cast %608 : vector<256xf32> to vector<1x256xf32>
    %cst_212 = arith.constant 1.000000e+00 : f32
    %610 = vector.broadcast %cst_212 : f32 to vector<1x256xf32>
    %611 = arith.subf %609, %610 : vector<1x256xf32>
    %612 = arith.addf %611, %609 : vector<1x256xf32>
    %cst_213 = arith.constant 5.000000e-01 : f32
    %613 = vector.broadcast %cst_213 : f32 to vector<1x256xf32>
    %614 = arith.mulf %613, %612 : vector<1x256xf32>
    %615 = vector.broadcast %614 : vector<1x256xf32> to vector<16x256xf32>
    %616 = arith.subf %607, %615 : vector<16x256xf32>
    %cst_214 = arith.constant 0.000000e+00 : f32
    %617 = vector.broadcast %cst_214 : f32 to vector<16x256xf32>
    %618 = arith.maximumf %616, %617 : vector<16x256xf32>
    %cst_215 = arith.constant dense<0.000000e+00> : vector<256xf32>
    %619 = vector.multi_reduction <add>, %618, %cst_215 [0] : vector<16x256xf32> to vector<256xf32>
    %620 = vector.shape_cast %619 : vector<256xf32> to vector<1x256xf32>
    %cst_216 = arith.constant 1.000000e+00 : f32
    %621 = vector.broadcast %cst_216 : f32 to vector<1x256xf32>
    %622 = arith.subf %620, %621 : vector<1x256xf32>
    %cst_217 = arith.constant 0.000000e+00 : f32
    %623 = vector.broadcast %cst_217 : f32 to vector<1x256xf32>
    %624 = arith.cmpf ogt, %622, %623 : vector<1x256xf32>
    %625 = arith.select %624, %614, %611 : vector<1x256xi1>, vector<1x256xf32>
    %626 = arith.select %624, %609, %614 : vector<1x256xi1>, vector<1x256xf32>
    %627 = arith.addf %625, %626 : vector<1x256xf32>
    %cst_218 = arith.constant 5.000000e-01 : f32
    %628 = vector.broadcast %cst_218 : f32 to vector<1x256xf32>
    %629 = arith.mulf %628, %627 : vector<1x256xf32>
    %630 = vector.broadcast %629 : vector<1x256xf32> to vector<16x256xf32>
    %631 = arith.subf %607, %630 : vector<16x256xf32>
    %cst_219 = arith.constant 0.000000e+00 : f32
    %632 = vector.broadcast %cst_219 : f32 to vector<16x256xf32>
    %633 = arith.maximumf %631, %632 : vector<16x256xf32>
    %cst_220 = arith.constant dense<0.000000e+00> : vector<256xf32>
    %634 = vector.multi_reduction <add>, %633, %cst_220 [0] : vector<16x256xf32> to vector<256xf32>
    %635 = vector.shape_cast %634 : vector<256xf32> to vector<1x256xf32>
    %cst_221 = arith.constant 1.000000e+00 : f32
    %636 = vector.broadcast %cst_221 : f32 to vector<1x256xf32>
    %637 = arith.subf %635, %636 : vector<1x256xf32>
    %cst_222 = arith.constant 0.000000e+00 : f32
    %638 = vector.broadcast %cst_222 : f32 to vector<1x256xf32>
    %639 = arith.cmpf ogt, %637, %638 : vector<1x256xf32>
    %640 = arith.select %639, %629, %625 : vector<1x256xi1>, vector<1x256xf32>
    %641 = arith.select %639, %626, %629 : vector<1x256xi1>, vector<1x256xf32>
    %642 = arith.addf %640, %641 : vector<1x256xf32>
    %cst_223 = arith.constant 5.000000e-01 : f32
    %643 = vector.broadcast %cst_223 : f32 to vector<1x256xf32>
    %644 = arith.mulf %643, %642 : vector<1x256xf32>
    %645 = vector.broadcast %644 : vector<1x256xf32> to vector<16x256xf32>
    %646 = arith.subf %607, %645 : vector<16x256xf32>
    %cst_224 = arith.constant 0.000000e+00 : f32
    %647 = vector.broadcast %cst_224 : f32 to vector<16x256xf32>
    %648 = arith.maximumf %646, %647 : vector<16x256xf32>
    %cst_225 = arith.constant dense<0.000000e+00> : vector<256xf32>
    %649 = vector.multi_reduction <add>, %648, %cst_225 [0] : vector<16x256xf32> to vector<256xf32>
    %650 = vector.shape_cast %649 : vector<256xf32> to vector<1x256xf32>
    %cst_226 = arith.constant 1.000000e+00 : f32
    %651 = vector.broadcast %cst_226 : f32 to vector<1x256xf32>
    %652 = arith.subf %650, %651 : vector<1x256xf32>
    %cst_227 = arith.constant 0.000000e+00 : f32
    %653 = vector.broadcast %cst_227 : f32 to vector<1x256xf32>
    %654 = arith.cmpf ogt, %652, %653 : vector<1x256xf32>
    %655 = arith.select %654, %644, %640 : vector<1x256xi1>, vector<1x256xf32>
    %656 = arith.select %654, %641, %644 : vector<1x256xi1>, vector<1x256xf32>
    %657 = arith.addf %655, %656 : vector<1x256xf32>
    %cst_228 = arith.constant 5.000000e-01 : f32
    %658 = vector.broadcast %cst_228 : f32 to vector<1x256xf32>
    %659 = arith.mulf %658, %657 : vector<1x256xf32>
    %660 = vector.broadcast %659 : vector<1x256xf32> to vector<16x256xf32>
    %661 = arith.subf %607, %660 : vector<16x256xf32>
    %cst_229 = arith.constant 0.000000e+00 : f32
    %662 = vector.broadcast %cst_229 : f32 to vector<16x256xf32>
    %663 = arith.maximumf %661, %662 : vector<16x256xf32>
    %cst_230 = arith.constant dense<0.000000e+00> : vector<256xf32>
    %664 = vector.multi_reduction <add>, %663, %cst_230 [0] : vector<16x256xf32> to vector<256xf32>
    %665 = vector.shape_cast %664 : vector<256xf32> to vector<1x256xf32>
    %cst_231 = arith.constant 1.000000e+00 : f32
    %666 = vector.broadcast %cst_231 : f32 to vector<1x256xf32>
    %667 = arith.subf %665, %666 : vector<1x256xf32>
    %cst_232 = arith.constant 0.000000e+00 : f32
    %668 = vector.broadcast %cst_232 : f32 to vector<1x256xf32>
    %669 = arith.cmpf ogt, %667, %668 : vector<1x256xf32>
    %670 = arith.select %669, %659, %655 : vector<1x256xi1>, vector<1x256xf32>
    %671 = arith.select %669, %656, %659 : vector<1x256xi1>, vector<1x256xf32>
    %672 = arith.addf %670, %671 : vector<1x256xf32>
    %cst_233 = arith.constant 5.000000e-01 : f32
    %673 = vector.broadcast %cst_233 : f32 to vector<1x256xf32>
    %674 = arith.mulf %673, %672 : vector<1x256xf32>
    %675 = vector.broadcast %674 : vector<1x256xf32> to vector<16x256xf32>
    %676 = arith.subf %607, %675 : vector<16x256xf32>
    %cst_234 = arith.constant 0.000000e+00 : f32
    %677 = vector.broadcast %cst_234 : f32 to vector<16x256xf32>
    %678 = arith.maximumf %676, %677 : vector<16x256xf32>
    %cst_235 = arith.constant dense<0.000000e+00> : vector<256xf32>
    %679 = vector.multi_reduction <add>, %678, %cst_235 [0] : vector<16x256xf32> to vector<256xf32>
    %680 = vector.shape_cast %679 : vector<256xf32> to vector<1x256xf32>
    %cst_236 = arith.constant 1.000000e+00 : f32
    %681 = vector.broadcast %cst_236 : f32 to vector<1x256xf32>
    %682 = arith.subf %680, %681 : vector<1x256xf32>
    %cst_237 = arith.constant 0.000000e+00 : f32
    %683 = vector.broadcast %cst_237 : f32 to vector<1x256xf32>
    %684 = arith.cmpf ogt, %682, %683 : vector<1x256xf32>
    %685 = arith.select %684, %674, %670 : vector<1x256xi1>, vector<1x256xf32>
    %686 = arith.select %684, %671, %674 : vector<1x256xi1>, vector<1x256xf32>
    %687 = arith.addf %685, %686 : vector<1x256xf32>
    %cst_238 = arith.constant 5.000000e-01 : f32
    %688 = vector.broadcast %cst_238 : f32 to vector<1x256xf32>
    %689 = arith.mulf %688, %687 : vector<1x256xf32>
    %690 = vector.broadcast %689 : vector<1x256xf32> to vector<16x256xf32>
    %691 = arith.subf %607, %690 : vector<16x256xf32>
    %cst_239 = arith.constant 0.000000e+00 : f32
    %692 = vector.broadcast %cst_239 : f32 to vector<16x256xf32>
    %693 = arith.maximumf %691, %692 : vector<16x256xf32>
    %cst_240 = arith.constant dense<0.000000e+00> : vector<256xf32>
    %694 = vector.multi_reduction <add>, %693, %cst_240 [0] : vector<16x256xf32> to vector<256xf32>
    %695 = vector.shape_cast %694 : vector<256xf32> to vector<1x256xf32>
    %cst_241 = arith.constant 1.000000e+00 : f32
    %696 = vector.broadcast %cst_241 : f32 to vector<1x256xf32>
    %697 = arith.subf %695, %696 : vector<1x256xf32>
    %cst_242 = arith.constant 0.000000e+00 : f32
    %698 = vector.broadcast %cst_242 : f32 to vector<1x256xf32>
    %699 = arith.cmpf ogt, %697, %698 : vector<1x256xf32>
    %700 = arith.select %699, %689, %685 : vector<1x256xi1>, vector<1x256xf32>
    %701 = arith.select %699, %686, %689 : vector<1x256xi1>, vector<1x256xf32>
    %702 = arith.addf %700, %701 : vector<1x256xf32>
    %cst_243 = arith.constant 5.000000e-01 : f32
    %703 = vector.broadcast %cst_243 : f32 to vector<1x256xf32>
    %704 = arith.mulf %703, %702 : vector<1x256xf32>
    %705 = vector.broadcast %704 : vector<1x256xf32> to vector<16x256xf32>
    %706 = arith.subf %607, %705 : vector<16x256xf32>
    %cst_244 = arith.constant 0.000000e+00 : f32
    %707 = vector.broadcast %cst_244 : f32 to vector<16x256xf32>
    %708 = arith.maximumf %706, %707 : vector<16x256xf32>
    %cst_245 = arith.constant dense<0.000000e+00> : vector<256xf32>
    %709 = vector.multi_reduction <add>, %708, %cst_245 [0] : vector<16x256xf32> to vector<256xf32>
    %710 = vector.shape_cast %709 : vector<256xf32> to vector<1x256xf32>
    %cst_246 = arith.constant 1.000000e+00 : f32
    %711 = vector.broadcast %cst_246 : f32 to vector<1x256xf32>
    %712 = arith.subf %710, %711 : vector<1x256xf32>
    %cst_247 = arith.constant 0.000000e+00 : f32
    %713 = vector.broadcast %cst_247 : f32 to vector<1x256xf32>
    %714 = arith.cmpf ogt, %712, %713 : vector<1x256xf32>
    %715 = arith.select %714, %704, %700 : vector<1x256xi1>, vector<1x256xf32>
    %716 = arith.select %714, %701, %704 : vector<1x256xi1>, vector<1x256xf32>
    %717 = arith.addf %715, %716 : vector<1x256xf32>
    %cst_248 = arith.constant 5.000000e-01 : f32
    %718 = vector.broadcast %cst_248 : f32 to vector<1x256xf32>
    %719 = arith.mulf %718, %717 : vector<1x256xf32>
    %720 = vector.broadcast %719 : vector<1x256xf32> to vector<16x256xf32>
    %721 = arith.subf %607, %720 : vector<16x256xf32>
    %cst_249 = arith.constant 0.000000e+00 : f32
    %722 = vector.broadcast %cst_249 : f32 to vector<16x256xf32>
    %723 = arith.maximumf %721, %722 : vector<16x256xf32>
    %cst_250 = arith.constant dense<0.000000e+00> : vector<256xf32>
    %724 = vector.multi_reduction <add>, %723, %cst_250 [0] : vector<16x256xf32> to vector<256xf32>
    %725 = vector.shape_cast %724 : vector<256xf32> to vector<1x256xf32>
    %cst_251 = arith.constant 1.000000e+00 : f32
    %726 = vector.broadcast %cst_251 : f32 to vector<1x256xf32>
    %727 = arith.subf %725, %726 : vector<1x256xf32>
    %cst_252 = arith.constant 0.000000e+00 : f32
    %728 = vector.broadcast %cst_252 : f32 to vector<1x256xf32>
    %729 = arith.cmpf ogt, %727, %728 : vector<1x256xf32>
    %730 = arith.select %729, %719, %715 : vector<1x256xi1>, vector<1x256xf32>
    %731 = arith.select %729, %716, %719 : vector<1x256xi1>, vector<1x256xf32>
    %732 = arith.addf %730, %731 : vector<1x256xf32>
    %cst_253 = arith.constant 5.000000e-01 : f32
    %733 = vector.broadcast %cst_253 : f32 to vector<1x256xf32>
    %734 = arith.mulf %733, %732 : vector<1x256xf32>
    %735 = vector.broadcast %734 : vector<1x256xf32> to vector<16x256xf32>
    %736 = arith.subf %607, %735 : vector<16x256xf32>
    %cst_254 = arith.constant 0.000000e+00 : f32
    %737 = vector.broadcast %cst_254 : f32 to vector<16x256xf32>
    %738 = arith.maximumf %736, %737 : vector<16x256xf32>
    %cst_255 = arith.constant dense<0.000000e+00> : vector<256xf32>
    %739 = vector.multi_reduction <add>, %738, %cst_255 [0] : vector<16x256xf32> to vector<256xf32>
    %740 = vector.shape_cast %739 : vector<256xf32> to vector<1x256xf32>
    %cst_256 = arith.constant 1.000000e+00 : f32
    %741 = vector.broadcast %cst_256 : f32 to vector<1x256xf32>
    %742 = arith.subf %740, %741 : vector<1x256xf32>
    %cst_257 = arith.constant 0.000000e+00 : f32
    %743 = vector.broadcast %cst_257 : f32 to vector<1x256xf32>
    %744 = arith.cmpf ogt, %742, %743 : vector<1x256xf32>
    %745 = arith.select %744, %734, %730 : vector<1x256xi1>, vector<1x256xf32>
    %746 = arith.select %744, %731, %734 : vector<1x256xi1>, vector<1x256xf32>
    %747 = arith.addf %745, %746 : vector<1x256xf32>
    %cst_258 = arith.constant 5.000000e-01 : f32
    %748 = vector.broadcast %cst_258 : f32 to vector<1x256xf32>
    %749 = arith.mulf %748, %747 : vector<1x256xf32>
    %750 = vector.broadcast %749 : vector<1x256xf32> to vector<16x256xf32>
    %751 = arith.subf %607, %750 : vector<16x256xf32>
    %cst_259 = arith.constant 0.000000e+00 : f32
    %752 = vector.broadcast %cst_259 : f32 to vector<16x256xf32>
    %753 = arith.maximumf %751, %752 : vector<16x256xf32>
    %cst_260 = arith.constant dense<0.000000e+00> : vector<256xf32>
    %754 = vector.multi_reduction <add>, %753, %cst_260 [0] : vector<16x256xf32> to vector<256xf32>
    %755 = vector.shape_cast %754 : vector<256xf32> to vector<1x256xf32>
    %cst_261 = arith.constant 1.000000e+00 : f32
    %756 = vector.broadcast %cst_261 : f32 to vector<1x256xf32>
    %757 = arith.subf %755, %756 : vector<1x256xf32>
    %cst_262 = arith.constant 0.000000e+00 : f32
    %758 = vector.broadcast %cst_262 : f32 to vector<1x256xf32>
    %759 = arith.cmpf ogt, %757, %758 : vector<1x256xf32>
    %760 = arith.select %759, %749, %745 : vector<1x256xi1>, vector<1x256xf32>
    %761 = arith.select %759, %746, %749 : vector<1x256xi1>, vector<1x256xf32>
    %762 = arith.addf %760, %761 : vector<1x256xf32>
    %cst_263 = arith.constant 5.000000e-01 : f32
    %763 = vector.broadcast %cst_263 : f32 to vector<1x256xf32>
    %764 = arith.mulf %763, %762 : vector<1x256xf32>
    %765 = vector.broadcast %764 : vector<1x256xf32> to vector<16x256xf32>
    %766 = arith.subf %607, %765 : vector<16x256xf32>
    %cst_264 = arith.constant 0.000000e+00 : f32
    %767 = vector.broadcast %cst_264 : f32 to vector<16x256xf32>
    %768 = arith.maximumf %766, %767 : vector<16x256xf32>
    %cst_265 = arith.constant dense<0.000000e+00> : vector<256xf32>
    %769 = vector.multi_reduction <add>, %768, %cst_265 [0] : vector<16x256xf32> to vector<256xf32>
    %770 = vector.shape_cast %769 : vector<256xf32> to vector<1x256xf32>
    %cst_266 = arith.constant 1.000000e+00 : f32
    %771 = vector.broadcast %cst_266 : f32 to vector<1x256xf32>
    %772 = arith.subf %770, %771 : vector<1x256xf32>
    %cst_267 = arith.constant 0.000000e+00 : f32
    %773 = vector.broadcast %cst_267 : f32 to vector<1x256xf32>
    %774 = arith.cmpf ogt, %772, %773 : vector<1x256xf32>
    %775 = arith.select %774, %764, %760 : vector<1x256xi1>, vector<1x256xf32>
    %776 = arith.select %774, %761, %764 : vector<1x256xi1>, vector<1x256xf32>
    %777 = arith.addf %775, %776 : vector<1x256xf32>
    %cst_268 = arith.constant 5.000000e-01 : f32
    %778 = vector.broadcast %cst_268 : f32 to vector<1x256xf32>
    %779 = arith.mulf %778, %777 : vector<1x256xf32>
    %780 = vector.broadcast %779 : vector<1x256xf32> to vector<16x256xf32>
    %781 = arith.subf %607, %780 : vector<16x256xf32>
    %cst_269 = arith.constant 0.000000e+00 : f32
    %782 = vector.broadcast %cst_269 : f32 to vector<16x256xf32>
    %783 = arith.maximumf %781, %782 : vector<16x256xf32>
    %cst_270 = arith.constant dense<0.000000e+00> : vector<256xf32>
    %784 = vector.multi_reduction <add>, %783, %cst_270 [0] : vector<16x256xf32> to vector<256xf32>
    %785 = vector.shape_cast %784 : vector<256xf32> to vector<1x256xf32>
    %cst_271 = arith.constant 1.000000e+00 : f32
    %786 = vector.broadcast %cst_271 : f32 to vector<1x256xf32>
    %787 = arith.subf %785, %786 : vector<1x256xf32>
    %cst_272 = arith.constant 0.000000e+00 : f32
    %788 = vector.broadcast %cst_272 : f32 to vector<1x256xf32>
    %789 = arith.cmpf ogt, %787, %788 : vector<1x256xf32>
    %790 = arith.select %789, %779, %775 : vector<1x256xi1>, vector<1x256xf32>
    %791 = arith.select %789, %776, %779 : vector<1x256xi1>, vector<1x256xf32>
    %792 = arith.addf %790, %791 : vector<1x256xf32>
    %cst_273 = arith.constant 5.000000e-01 : f32
    %793 = vector.broadcast %cst_273 : f32 to vector<1x256xf32>
    %794 = arith.mulf %793, %792 : vector<1x256xf32>
    %795 = vector.broadcast %794 : vector<1x256xf32> to vector<16x256xf32>
    %796 = arith.subf %607, %795 : vector<16x256xf32>
    %cst_274 = arith.constant 0.000000e+00 : f32
    %797 = vector.broadcast %cst_274 : f32 to vector<16x256xf32>
    %798 = arith.maximumf %796, %797 : vector<16x256xf32>
    %cst_275 = arith.constant dense<0.000000e+00> : vector<256xf32>
    %799 = vector.multi_reduction <add>, %798, %cst_275 [0] : vector<16x256xf32> to vector<256xf32>
    %800 = vector.shape_cast %799 : vector<256xf32> to vector<1x256xf32>
    %cst_276 = arith.constant 1.000000e+00 : f32
    %801 = vector.broadcast %cst_276 : f32 to vector<1x256xf32>
    %802 = arith.subf %800, %801 : vector<1x256xf32>
    %cst_277 = arith.constant 0.000000e+00 : f32
    %803 = vector.broadcast %cst_277 : f32 to vector<1x256xf32>
    %804 = arith.cmpf ogt, %802, %803 : vector<1x256xf32>
    %805 = arith.select %804, %794, %790 : vector<1x256xi1>, vector<1x256xf32>
    %806 = arith.select %804, %791, %794 : vector<1x256xi1>, vector<1x256xf32>
    %807 = arith.addf %805, %806 : vector<1x256xf32>
    %cst_278 = arith.constant 5.000000e-01 : f32
    %808 = vector.broadcast %cst_278 : f32 to vector<1x256xf32>
    %809 = arith.mulf %808, %807 : vector<1x256xf32>
    %810 = vector.broadcast %809 : vector<1x256xf32> to vector<16x256xf32>
    %811 = arith.subf %607, %810 : vector<16x256xf32>
    %cst_279 = arith.constant 0.000000e+00 : f32
    %812 = vector.broadcast %cst_279 : f32 to vector<16x256xf32>
    %813 = arith.maximumf %811, %812 : vector<16x256xf32>
    %cst_280 = arith.constant dense<0.000000e+00> : vector<256xf32>
    %814 = vector.multi_reduction <add>, %813, %cst_280 [0] : vector<16x256xf32> to vector<256xf32>
    %815 = vector.shape_cast %814 : vector<256xf32> to vector<1x256xf32>
    %cst_281 = arith.constant 1.000000e+00 : f32
    %816 = vector.broadcast %cst_281 : f32 to vector<1x256xf32>
    %817 = arith.subf %815, %816 : vector<1x256xf32>
    %cst_282 = arith.constant 0.000000e+00 : f32
    %818 = vector.broadcast %cst_282 : f32 to vector<1x256xf32>
    %819 = arith.cmpf ogt, %817, %818 : vector<1x256xf32>
    %820 = arith.select %819, %809, %805 : vector<1x256xi1>, vector<1x256xf32>
    %821 = arith.select %819, %806, %809 : vector<1x256xi1>, vector<1x256xf32>
    %822 = arith.addf %820, %821 : vector<1x256xf32>
    %cst_283 = arith.constant 5.000000e-01 : f32
    %823 = vector.broadcast %cst_283 : f32 to vector<1x256xf32>
    %824 = arith.mulf %823, %822 : vector<1x256xf32>
    %825 = vector.broadcast %824 : vector<1x256xf32> to vector<16x256xf32>
    %826 = arith.subf %607, %825 : vector<16x256xf32>
    %cst_284 = arith.constant 0.000000e+00 : f32
    %827 = vector.broadcast %cst_284 : f32 to vector<16x256xf32>
    %828 = arith.maximumf %826, %827 : vector<16x256xf32>
    %cst_285 = arith.constant dense<0.000000e+00> : vector<256xf32>
    %829 = vector.multi_reduction <add>, %828, %cst_285 [0] : vector<16x256xf32> to vector<256xf32>
    %830 = vector.shape_cast %829 : vector<256xf32> to vector<1x256xf32>
    %cst_286 = arith.constant 1.000000e+00 : f32
    %831 = vector.broadcast %cst_286 : f32 to vector<1x256xf32>
    %832 = arith.subf %830, %831 : vector<1x256xf32>
    %cst_287 = arith.constant 0.000000e+00 : f32
    %833 = vector.broadcast %cst_287 : f32 to vector<1x256xf32>
    %834 = arith.cmpf ogt, %832, %833 : vector<1x256xf32>
    %835 = arith.select %834, %824, %820 : vector<1x256xi1>, vector<1x256xf32>
    %836 = arith.select %834, %821, %824 : vector<1x256xi1>, vector<1x256xf32>
    %837 = arith.addf %835, %836 : vector<1x256xf32>
    %cst_288 = arith.constant 5.000000e-01 : f32
    %838 = vector.broadcast %cst_288 : f32 to vector<1x256xf32>
    %839 = arith.mulf %838, %837 : vector<1x256xf32>
    %840 = vector.broadcast %839 : vector<1x256xf32> to vector<16x256xf32>
    %841 = arith.subf %607, %840 : vector<16x256xf32>
    %cst_289 = arith.constant 0.000000e+00 : f32
    %842 = vector.broadcast %cst_289 : f32 to vector<16x256xf32>
    %843 = arith.maximumf %841, %842 : vector<16x256xf32>
    %cst_290 = arith.constant dense<0.000000e+00> : vector<256xf32>
    %844 = vector.multi_reduction <add>, %843, %cst_290 [0] : vector<16x256xf32> to vector<256xf32>
    %845 = vector.shape_cast %844 : vector<256xf32> to vector<1x256xf32>
    %cst_291 = arith.constant 1.000000e+00 : f32
    %846 = vector.broadcast %cst_291 : f32 to vector<1x256xf32>
    %847 = arith.subf %845, %846 : vector<1x256xf32>
    %cst_292 = arith.constant 0.000000e+00 : f32
    %848 = vector.broadcast %cst_292 : f32 to vector<1x256xf32>
    %849 = arith.cmpf ogt, %847, %848 : vector<1x256xf32>
    %850 = arith.select %849, %839, %835 : vector<1x256xi1>, vector<1x256xf32>
    %851 = arith.select %849, %836, %839 : vector<1x256xi1>, vector<1x256xf32>
    %852 = arith.addf %850, %851 : vector<1x256xf32>
    %cst_293 = arith.constant 5.000000e-01 : f32
    %853 = vector.broadcast %cst_293 : f32 to vector<1x256xf32>
    %854 = arith.mulf %853, %852 : vector<1x256xf32>
    %855 = vector.broadcast %854 : vector<1x256xf32> to vector<16x256xf32>
    %856 = arith.subf %607, %855 : vector<16x256xf32>
    %cst_294 = arith.constant 0.000000e+00 : f32
    %857 = vector.broadcast %cst_294 : f32 to vector<16x256xf32>
    %858 = arith.maximumf %856, %857 : vector<16x256xf32>
    %cst_295 = arith.constant dense<0.000000e+00> : vector<256xf32>
    %859 = vector.multi_reduction <add>, %858, %cst_295 [0] : vector<16x256xf32> to vector<256xf32>
    %860 = vector.shape_cast %859 : vector<256xf32> to vector<1x256xf32>
    %cst_296 = arith.constant 1.000000e+00 : f32
    %861 = vector.broadcast %cst_296 : f32 to vector<1x256xf32>
    %862 = arith.subf %860, %861 : vector<1x256xf32>
    %cst_297 = arith.constant 0.000000e+00 : f32
    %863 = vector.broadcast %cst_297 : f32 to vector<1x256xf32>
    %864 = arith.cmpf ogt, %862, %863 : vector<1x256xf32>
    %865 = arith.select %864, %854, %850 : vector<1x256xi1>, vector<1x256xf32>
    %866 = arith.select %864, %851, %854 : vector<1x256xi1>, vector<1x256xf32>
    %867 = arith.addf %865, %866 : vector<1x256xf32>
    %cst_298 = arith.constant 5.000000e-01 : f32
    %868 = vector.broadcast %cst_298 : f32 to vector<1x256xf32>
    %869 = arith.mulf %868, %867 : vector<1x256xf32>
    %870 = vector.broadcast %869 : vector<1x256xf32> to vector<16x256xf32>
    %871 = arith.subf %607, %870 : vector<16x256xf32>
    %cst_299 = arith.constant 0.000000e+00 : f32
    %872 = vector.broadcast %cst_299 : f32 to vector<16x256xf32>
    %873 = arith.maximumf %871, %872 : vector<16x256xf32>
    %cst_300 = arith.constant dense<0.000000e+00> : vector<256xf32>
    %874 = vector.multi_reduction <add>, %873, %cst_300 [0] : vector<16x256xf32> to vector<256xf32>
    %875 = vector.shape_cast %874 : vector<256xf32> to vector<1x256xf32>
    %cst_301 = arith.constant 1.000000e+00 : f32
    %876 = vector.broadcast %cst_301 : f32 to vector<1x256xf32>
    %877 = arith.subf %875, %876 : vector<1x256xf32>
    %cst_302 = arith.constant 0.000000e+00 : f32
    %878 = vector.broadcast %cst_302 : f32 to vector<1x256xf32>
    %879 = arith.cmpf ogt, %877, %878 : vector<1x256xf32>
    %880 = arith.select %879, %869, %865 : vector<1x256xi1>, vector<1x256xf32>
    %881 = arith.select %879, %866, %869 : vector<1x256xi1>, vector<1x256xf32>
    %882 = arith.addf %880, %881 : vector<1x256xf32>
    %cst_303 = arith.constant 5.000000e-01 : f32
    %883 = vector.broadcast %cst_303 : f32 to vector<1x256xf32>
    %884 = arith.mulf %883, %882 : vector<1x256xf32>
    %885 = vector.broadcast %884 : vector<1x256xf32> to vector<16x256xf32>
    %886 = arith.subf %607, %885 : vector<16x256xf32>
    %cst_304 = arith.constant 0.000000e+00 : f32
    %887 = vector.broadcast %cst_304 : f32 to vector<16x256xf32>
    %888 = arith.maximumf %886, %887 : vector<16x256xf32>
    %cst_305 = arith.constant dense<0.000000e+00> : vector<256xf32>
    %889 = vector.multi_reduction <add>, %888, %cst_305 [0] : vector<16x256xf32> to vector<256xf32>
    %890 = vector.shape_cast %889 : vector<256xf32> to vector<1x256xf32>
    %cst_306 = arith.constant 1.000000e+00 : f32
    %891 = vector.broadcast %cst_306 : f32 to vector<1x256xf32>
    %892 = arith.subf %890, %891 : vector<1x256xf32>
    %cst_307 = arith.constant 0.000000e+00 : f32
    %893 = vector.broadcast %cst_307 : f32 to vector<1x256xf32>
    %894 = arith.cmpf ogt, %892, %893 : vector<1x256xf32>
    %895 = arith.select %894, %884, %880 : vector<1x256xi1>, vector<1x256xf32>
    %896 = arith.select %894, %881, %884 : vector<1x256xi1>, vector<1x256xf32>
    %897 = arith.addf %895, %896 : vector<1x256xf32>
    %cst_308 = arith.constant 5.000000e-01 : f32
    %898 = vector.broadcast %cst_308 : f32 to vector<1x256xf32>
    %899 = arith.mulf %898, %897 : vector<1x256xf32>
    %900 = vector.broadcast %899 : vector<1x256xf32> to vector<16x256xf32>
    %901 = arith.subf %607, %900 : vector<16x256xf32>
    %cst_309 = arith.constant 0.000000e+00 : f32
    %902 = vector.broadcast %cst_309 : f32 to vector<16x256xf32>
    %903 = arith.maximumf %901, %902 : vector<16x256xf32>
    %cst_310 = arith.constant dense<0.000000e+00> : vector<256xf32>
    %904 = vector.multi_reduction <add>, %903, %cst_310 [0] : vector<16x256xf32> to vector<256xf32>
    %905 = vector.shape_cast %904 : vector<256xf32> to vector<1x256xf32>
    %cst_311 = arith.constant 1.000000e+00 : f32
    %906 = vector.broadcast %cst_311 : f32 to vector<1x256xf32>
    %907 = arith.subf %905, %906 : vector<1x256xf32>
    %cst_312 = arith.constant 0.000000e+00 : f32
    %908 = vector.broadcast %cst_312 : f32 to vector<1x256xf32>
    %909 = arith.cmpf ogt, %907, %908 : vector<1x256xf32>
    %910 = arith.select %909, %899, %895 : vector<1x256xi1>, vector<1x256xf32>
    %911 = arith.select %909, %896, %899 : vector<1x256xi1>, vector<1x256xf32>
    %912 = arith.addf %910, %911 : vector<1x256xf32>
    %cst_313 = arith.constant 5.000000e-01 : f32
    %913 = vector.broadcast %cst_313 : f32 to vector<1x256xf32>
    %914 = arith.mulf %913, %912 : vector<1x256xf32>
    %915 = vector.broadcast %914 : vector<1x256xf32> to vector<16x256xf32>
    %916 = arith.subf %607, %915 : vector<16x256xf32>
    %cst_314 = arith.constant 0.000000e+00 : f32
    %917 = vector.broadcast %cst_314 : f32 to vector<16x256xf32>
    %918 = arith.maximumf %916, %917 : vector<16x256xf32>
    %cst_315 = arith.constant dense<0.000000e+00> : vector<256xf32>
    %919 = vector.multi_reduction <add>, %918, %cst_315 [0] : vector<16x256xf32> to vector<256xf32>
    %920 = vector.shape_cast %919 : vector<256xf32> to vector<1x256xf32>
    %cst_316 = arith.constant 1.000000e+00 : f32
    %921 = vector.broadcast %cst_316 : f32 to vector<1x256xf32>
    %922 = arith.subf %920, %921 : vector<1x256xf32>
    %cst_317 = arith.constant 0.000000e+00 : f32
    %923 = vector.broadcast %cst_317 : f32 to vector<1x256xf32>
    %924 = arith.cmpf ogt, %922, %923 : vector<1x256xf32>
    %925 = arith.select %924, %914, %910 : vector<1x256xi1>, vector<1x256xf32>
    %926 = arith.select %924, %911, %914 : vector<1x256xi1>, vector<1x256xf32>
    %927 = arith.addf %925, %926 : vector<1x256xf32>
    %cst_318 = arith.constant 5.000000e-01 : f32
    %928 = vector.broadcast %cst_318 : f32 to vector<1x256xf32>
    %929 = arith.mulf %928, %927 : vector<1x256xf32>
    %930 = vector.broadcast %929 : vector<1x256xf32> to vector<16x256xf32>
    %931 = arith.subf %607, %930 : vector<16x256xf32>
    %cst_319 = arith.constant 0.000000e+00 : f32
    %932 = vector.broadcast %cst_319 : f32 to vector<16x256xf32>
    %933 = arith.maximumf %931, %932 : vector<16x256xf32>
    %cst_320 = arith.constant dense<0.000000e+00> : vector<256xf32>
    %934 = vector.multi_reduction <add>, %933, %cst_320 [0] : vector<16x256xf32> to vector<256xf32>
    %935 = vector.shape_cast %934 : vector<256xf32> to vector<1x256xf32>
    %cst_321 = arith.constant 1.000000e+00 : f32
    %936 = vector.broadcast %cst_321 : f32 to vector<1x256xf32>
    %937 = arith.subf %935, %936 : vector<1x256xf32>
    %cst_322 = arith.constant 0.000000e+00 : f32
    %938 = vector.broadcast %cst_322 : f32 to vector<1x256xf32>
    %939 = arith.cmpf ogt, %937, %938 : vector<1x256xf32>
    %940 = arith.select %939, %929, %925 : vector<1x256xi1>, vector<1x256xf32>
    %941 = arith.select %939, %926, %929 : vector<1x256xi1>, vector<1x256xf32>
    %942 = arith.addf %940, %941 : vector<1x256xf32>
    %cst_323 = arith.constant 5.000000e-01 : f32
    %943 = vector.broadcast %cst_323 : f32 to vector<1x256xf32>
    %944 = arith.mulf %943, %942 : vector<1x256xf32>
    %945 = vector.broadcast %944 : vector<1x256xf32> to vector<16x256xf32>
    %946 = arith.subf %607, %945 : vector<16x256xf32>
    %cst_324 = arith.constant 0.000000e+00 : f32
    %947 = vector.broadcast %cst_324 : f32 to vector<16x256xf32>
    %948 = arith.maximumf %946, %947 : vector<16x256xf32>
    %cst_325 = arith.constant dense<0.000000e+00> : vector<256xf32>
    %949 = vector.multi_reduction <add>, %948, %cst_325 [0] : vector<16x256xf32> to vector<256xf32>
    %950 = vector.shape_cast %949 : vector<256xf32> to vector<1x256xf32>
    %cst_326 = arith.constant 1.000000e+00 : f32
    %951 = vector.broadcast %cst_326 : f32 to vector<1x256xf32>
    %952 = arith.subf %950, %951 : vector<1x256xf32>
    %cst_327 = arith.constant 0.000000e+00 : f32
    %953 = vector.broadcast %cst_327 : f32 to vector<1x256xf32>
    %954 = arith.cmpf ogt, %952, %953 : vector<1x256xf32>
    %955 = arith.select %954, %944, %940 : vector<1x256xi1>, vector<1x256xf32>
    %956 = arith.select %954, %941, %944 : vector<1x256xi1>, vector<1x256xf32>
    %957 = arith.addf %955, %956 : vector<1x256xf32>
    %cst_328 = arith.constant 5.000000e-01 : f32
    %958 = vector.broadcast %cst_328 : f32 to vector<1x256xf32>
    %959 = arith.mulf %958, %957 : vector<1x256xf32>
    %960 = vector.broadcast %959 : vector<1x256xf32> to vector<16x256xf32>
    %961 = arith.subf %607, %960 : vector<16x256xf32>
    %cst_329 = arith.constant 0.000000e+00 : f32
    %962 = vector.broadcast %cst_329 : f32 to vector<16x256xf32>
    %963 = arith.maximumf %961, %962 : vector<16x256xf32>
    %cst_330 = arith.constant dense<0.000000e+00> : vector<256xf32>
    %964 = vector.multi_reduction <add>, %963, %cst_330 [0] : vector<16x256xf32> to vector<256xf32>
    %965 = vector.shape_cast %964 : vector<256xf32> to vector<1x256xf32>
    %cst_331 = arith.constant 1.000000e+00 : f32
    %966 = vector.broadcast %cst_331 : f32 to vector<1x256xf32>
    %967 = arith.subf %965, %966 : vector<1x256xf32>
    %cst_332 = arith.constant 0.000000e+00 : f32
    %968 = vector.broadcast %cst_332 : f32 to vector<1x256xf32>
    %969 = arith.cmpf ogt, %967, %968 : vector<1x256xf32>
    %970 = arith.select %969, %959, %955 : vector<1x256xi1>, vector<1x256xf32>
    %971 = arith.select %969, %956, %959 : vector<1x256xi1>, vector<1x256xf32>
    %972 = arith.addf %970, %971 : vector<1x256xf32>
    %cst_333 = arith.constant 5.000000e-01 : f32
    %973 = vector.broadcast %cst_333 : f32 to vector<1x256xf32>
    %974 = arith.mulf %973, %972 : vector<1x256xf32>
    %975 = vector.broadcast %974 : vector<1x256xf32> to vector<16x256xf32>
    %976 = arith.subf %607, %975 : vector<16x256xf32>
    %cst_334 = arith.constant 0.000000e+00 : f32
    %977 = vector.broadcast %cst_334 : f32 to vector<16x256xf32>
    %978 = arith.maximumf %976, %977 : vector<16x256xf32>
    %cst_335 = arith.constant dense<0.000000e+00> : vector<256xf32>
    %979 = vector.multi_reduction <add>, %978, %cst_335 [0] : vector<16x256xf32> to vector<256xf32>
    %980 = vector.shape_cast %979 : vector<256xf32> to vector<1x256xf32>
    %cst_336 = arith.constant 1.000000e+00 : f32
    %981 = vector.broadcast %cst_336 : f32 to vector<1x256xf32>
    %982 = arith.subf %980, %981 : vector<1x256xf32>
    %cst_337 = arith.constant 0.000000e+00 : f32
    %983 = vector.broadcast %cst_337 : f32 to vector<1x256xf32>
    %984 = arith.cmpf ogt, %982, %983 : vector<1x256xf32>
    %985 = arith.select %984, %974, %970 : vector<1x256xi1>, vector<1x256xf32>
    %986 = arith.select %984, %971, %974 : vector<1x256xi1>, vector<1x256xf32>
    %987 = arith.addf %985, %986 : vector<1x256xf32>
    %cst_338 = arith.constant 5.000000e-01 : f32
    %988 = vector.broadcast %cst_338 : f32 to vector<1x256xf32>
    %989 = arith.mulf %988, %987 : vector<1x256xf32>
    %990 = vector.broadcast %989 : vector<1x256xf32> to vector<16x256xf32>
    %991 = arith.subf %607, %990 : vector<16x256xf32>
    %cst_339 = arith.constant 0.000000e+00 : f32
    %992 = vector.broadcast %cst_339 : f32 to vector<16x256xf32>
    %993 = arith.maximumf %991, %992 : vector<16x256xf32>
    %cst_340 = arith.constant dense<0.000000e+00> : vector<256xf32>
    %994 = vector.multi_reduction <add>, %993, %cst_340 [0] : vector<16x256xf32> to vector<256xf32>
    %995 = vector.shape_cast %994 : vector<256xf32> to vector<1x256xf32>
    %cst_341 = arith.constant 1.000000e+00 : f32
    %996 = vector.broadcast %cst_341 : f32 to vector<1x256xf32>
    %997 = arith.subf %995, %996 : vector<1x256xf32>
    %cst_342 = arith.constant 0.000000e+00 : f32
    %998 = vector.broadcast %cst_342 : f32 to vector<1x256xf32>
    %999 = arith.cmpf ogt, %997, %998 : vector<1x256xf32>
    %1000 = arith.select %999, %989, %985 : vector<1x256xi1>, vector<1x256xf32>
    %1001 = arith.select %999, %986, %989 : vector<1x256xi1>, vector<1x256xf32>
    %1002 = arith.addf %1000, %1001 : vector<1x256xf32>
    %cst_343 = arith.constant 5.000000e-01 : f32
    %1003 = vector.broadcast %cst_343 : f32 to vector<1x256xf32>
    %1004 = arith.mulf %1003, %1002 : vector<1x256xf32>
    %1005 = vector.broadcast %1004 : vector<1x256xf32> to vector<16x256xf32>
    %1006 = arith.subf %607, %1005 : vector<16x256xf32>
    %cst_344 = arith.constant 0.000000e+00 : f32
    %1007 = vector.broadcast %cst_344 : f32 to vector<16x256xf32>
    %1008 = arith.maximumf %1006, %1007 : vector<16x256xf32>
    %cst_345 = arith.constant 1.000000e-15 : f32
    %1009 = vector.broadcast %cst_345 : f32 to vector<16x256xf32>
    %1010 = arith.addf %1008, %1009 : vector<16x256xf32>
    %1011 = math.log %1010 : vector<16x256xf32>
    %1012 = arith.mulf %1008, %1011 : vector<16x256xf32>
    %cst_346 = arith.constant dense<0.000000e+00> : vector<256xf32>
    %1013 = vector.multi_reduction <add>, %1012, %cst_346 [0] : vector<16x256xf32> to vector<256xf32>
    %1014 = vector.shape_cast %1013 : vector<256xf32> to vector<1x256xf32>
    %1015 = arith.addf %513, %1014 : vector<1x256xf32>
    %cst_347 = arith.constant 1.300000e+00 : f32
    %1016 = vector.broadcast %cst_347 : f32 to vector<16x256xf32>
    %1017 = arith.subf %1016, %1008 : vector<16x256xf32>
    %1018 = arith.mulf %1017, %516 : vector<16x256xf32>
    %1019 = arith.mulf %1008, %16 : vector<16x256xf32>
    %1020 = vector.extract_strided_slice %2 {offsets = [2, 0, 0], sizes = [1, 32, 16], strides = [1, 1, 1]} : vector<4x32x16xf32> to vector<1x32x16xf32>
    %1021 = vector.shape_cast %1020 : vector<1x32x16xf32> to vector<32x16xf32>
    %1022 = vector.extract_strided_slice %3 {offsets = [2, 0, 0], sizes = [1, 32, 1], strides = [1, 1, 1]} : vector<4x32x1xf32> to vector<1x32x1xf32>
    %1023 = vector.shape_cast %1022 : vector<1x32x1xf32> to vector<32x1xf32>
    %cst_348 = arith.constant dense<0.000000e+00> : vector<32x256xf32>
    %1024 = tpu.matmul %1021, %1019, %cst_348 {dimension_numbers = #tpu.dot_dimension_numbers<[1], [0], [0], [1], [0, 0, 1, 1], [], []>} : vector<32x16xf32>, vector<16x256xf32>, vector<32x256xf32> -> vector<32x256xf32>
    %1025 = vector.broadcast %1023 : vector<32x1xf32> to vector<32x256xf32>
    %1026 = arith.addf %1024, %1025 : vector<32x256xf32>
    %1027 = vector.extract_strided_slice %1026 {offsets = [0, 0], sizes = [16, 256], strides = [1, 1]} : vector<32x256xf32> to vector<16x256xf32>
    %1028 = vector.extract_strided_slice %1026 {offsets = [16, 0], sizes = [16, 256], strides = [1, 1]} : vector<32x256xf32> to vector<16x256xf32>
    %cst_349 = arith.constant 5.000000e-01 : f32
    %1029 = vector.broadcast %cst_349 : f32 to vector<16x256xf32>
    %1030 = arith.mulf %1029, %1028 : vector<16x256xf32>
    %1031 = math.tanh %1030 : vector<16x256xf32>
    %cst_350 = arith.constant 5.000000e-01 : f32
    %1032 = vector.broadcast %cst_350 : f32 to vector<16x256xf32>
    %1033 = arith.mulf %1032, %1031 : vector<16x256xf32>
    %cst_351 = arith.constant 5.000000e-01 : f32
    %1034 = vector.broadcast %cst_351 : f32 to vector<16x256xf32>
    %1035 = arith.addf %1033, %1034 : vector<16x256xf32>
    %1036 = arith.mulf %1027, %1035 : vector<16x256xf32>
    %1037 = vector.extract_strided_slice %4 {offsets = [2, 0, 0], sizes = [1, 32, 16], strides = [1, 1, 1]} : vector<4x32x16xf32> to vector<1x32x16xf32>
    %1038 = vector.shape_cast %1037 : vector<1x32x16xf32> to vector<32x16xf32>
    %1039 = vector.extract_strided_slice %5 {offsets = [2, 0, 0], sizes = [1, 32, 1], strides = [1, 1, 1]} : vector<4x32x1xf32> to vector<1x32x1xf32>
    %1040 = vector.shape_cast %1039 : vector<1x32x1xf32> to vector<32x1xf32>
    %cst_352 = arith.constant dense<0.000000e+00> : vector<32x256xf32>
    %1041 = tpu.matmul %1038, %1036, %cst_352 {dimension_numbers = #tpu.dot_dimension_numbers<[1], [0], [0], [1], [0, 0, 1, 1], [], []>} : vector<32x16xf32>, vector<16x256xf32>, vector<32x256xf32> -> vector<32x256xf32>
    %1042 = vector.broadcast %1040 : vector<32x1xf32> to vector<32x256xf32>
    %1043 = arith.addf %1041, %1042 : vector<32x256xf32>
    %1044 = vector.extract_strided_slice %1043 {offsets = [0, 0], sizes = [16, 256], strides = [1, 1]} : vector<32x256xf32> to vector<16x256xf32>
    %1045 = vector.extract_strided_slice %1043 {offsets = [16, 0], sizes = [16, 256], strides = [1, 1]} : vector<32x256xf32> to vector<16x256xf32>
    %cst_353 = arith.constant 5.000000e-01 : f32
    %1046 = vector.broadcast %cst_353 : f32 to vector<16x256xf32>
    %1047 = arith.mulf %1046, %1045 : vector<16x256xf32>
    %1048 = math.tanh %1047 : vector<16x256xf32>
    %cst_354 = arith.constant 5.000000e-01 : f32
    %1049 = vector.broadcast %cst_354 : f32 to vector<16x256xf32>
    %1050 = arith.mulf %1049, %1048 : vector<16x256xf32>
    %cst_355 = arith.constant 5.000000e-01 : f32
    %1051 = vector.broadcast %cst_355 : f32 to vector<16x256xf32>
    %1052 = arith.addf %1050, %1051 : vector<16x256xf32>
    %1053 = arith.mulf %1044, %1052 : vector<16x256xf32>
    %1054 = arith.addf %1036, %1053 : vector<16x256xf32>
    %cst_356 = arith.constant 0.707106769 : f32
    %1055 = vector.broadcast %cst_356 : f32 to vector<16x256xf32>
    %1056 = arith.mulf %1054, %1055 : vector<16x256xf32>
    %1057 = vector.extract_strided_slice %6 {offsets = [2, 0, 0, 0], sizes = [1, 1, 32, 16], strides = [1, 1, 1, 1]} : vector<4x2x32x16xf32> to vector<1x1x32x16xf32>
    %1058 = vector.shape_cast %1057 : vector<1x1x32x16xf32> to vector<32x16xf32>
    %1059 = vector.extract_strided_slice %7 {offsets = [2, 0, 0, 0], sizes = [1, 1, 32, 1], strides = [1, 1, 1, 1]} : vector<4x2x32x1xf32> to vector<1x1x32x1xf32>
    %1060 = vector.shape_cast %1059 : vector<1x1x32x1xf32> to vector<32x1xf32>
    %cst_357 = arith.constant dense<0.000000e+00> : vector<32x256xf32>
    %1061 = tpu.matmul %1058, %1056, %cst_357 {dimension_numbers = #tpu.dot_dimension_numbers<[1], [0], [0], [1], [0, 0, 1, 1], [], []>} : vector<32x16xf32>, vector<16x256xf32>, vector<32x256xf32> -> vector<32x256xf32>
    %1062 = vector.broadcast %1060 : vector<32x1xf32> to vector<32x256xf32>
    %1063 = arith.addf %1061, %1062 : vector<32x256xf32>
    %1064 = vector.extract_strided_slice %1063 {offsets = [0, 0], sizes = [16, 256], strides = [1, 1]} : vector<32x256xf32> to vector<16x256xf32>
    %1065 = vector.extract_strided_slice %1063 {offsets = [16, 0], sizes = [16, 256], strides = [1, 1]} : vector<32x256xf32> to vector<16x256xf32>
    %cst_358 = arith.constant 5.000000e-01 : f32
    %1066 = vector.broadcast %cst_358 : f32 to vector<16x256xf32>
    %1067 = arith.mulf %1066, %1065 : vector<16x256xf32>
    %1068 = math.tanh %1067 : vector<16x256xf32>
    %cst_359 = arith.constant 5.000000e-01 : f32
    %1069 = vector.broadcast %cst_359 : f32 to vector<16x256xf32>
    %1070 = arith.mulf %1069, %1068 : vector<16x256xf32>
    %cst_360 = arith.constant 5.000000e-01 : f32
    %1071 = vector.broadcast %cst_360 : f32 to vector<16x256xf32>
    %1072 = arith.addf %1070, %1071 : vector<16x256xf32>
    %1073 = arith.mulf %1064, %1072 : vector<16x256xf32>
    %1074 = arith.addf %1056, %1073 : vector<16x256xf32>
    %cst_361 = arith.constant 0.707106769 : f32
    %1075 = vector.broadcast %cst_361 : f32 to vector<16x256xf32>
    %1076 = arith.mulf %1074, %1075 : vector<16x256xf32>
    %1077 = vector.extract_strided_slice %6 {offsets = [2, 1, 0, 0], sizes = [1, 1, 32, 16], strides = [1, 1, 1, 1]} : vector<4x2x32x16xf32> to vector<1x1x32x16xf32>
    %1078 = vector.shape_cast %1077 : vector<1x1x32x16xf32> to vector<32x16xf32>
    %1079 = vector.extract_strided_slice %7 {offsets = [2, 1, 0, 0], sizes = [1, 1, 32, 1], strides = [1, 1, 1, 1]} : vector<4x2x32x1xf32> to vector<1x1x32x1xf32>
    %1080 = vector.shape_cast %1079 : vector<1x1x32x1xf32> to vector<32x1xf32>
    %cst_362 = arith.constant dense<0.000000e+00> : vector<32x256xf32>
    %1081 = tpu.matmul %1078, %1076, %cst_362 {dimension_numbers = #tpu.dot_dimension_numbers<[1], [0], [0], [1], [0, 0, 1, 1], [], []>} : vector<32x16xf32>, vector<16x256xf32>, vector<32x256xf32> -> vector<32x256xf32>
    %1082 = vector.broadcast %1080 : vector<32x1xf32> to vector<32x256xf32>
    %1083 = arith.addf %1081, %1082 : vector<32x256xf32>
    %1084 = vector.extract_strided_slice %1083 {offsets = [0, 0], sizes = [16, 256], strides = [1, 1]} : vector<32x256xf32> to vector<16x256xf32>
    %1085 = vector.extract_strided_slice %1083 {offsets = [16, 0], sizes = [16, 256], strides = [1, 1]} : vector<32x256xf32> to vector<16x256xf32>
    %cst_363 = arith.constant 5.000000e-01 : f32
    %1086 = vector.broadcast %cst_363 : f32 to vector<16x256xf32>
    %1087 = arith.mulf %1086, %1085 : vector<16x256xf32>
    %1088 = math.tanh %1087 : vector<16x256xf32>
    %cst_364 = arith.constant 5.000000e-01 : f32
    %1089 = vector.broadcast %cst_364 : f32 to vector<16x256xf32>
    %1090 = arith.mulf %1089, %1088 : vector<16x256xf32>
    %cst_365 = arith.constant 5.000000e-01 : f32
    %1091 = vector.broadcast %cst_365 : f32 to vector<16x256xf32>
    %1092 = arith.addf %1090, %1091 : vector<16x256xf32>
    %1093 = arith.mulf %1084, %1092 : vector<16x256xf32>
    %1094 = arith.addf %1076, %1093 : vector<16x256xf32>
    %cst_366 = arith.constant 0.707106769 : f32
    %1095 = vector.broadcast %cst_366 : f32 to vector<16x256xf32>
    %1096 = arith.mulf %1094, %1095 : vector<16x256xf32>
    %1097 = vector.extract_strided_slice %1096 {offsets = [0, 0], sizes = [8, 256], strides = [1, 1]} : vector<16x256xf32> to vector<8x256xf32>
    %cst_367 = arith.constant 0.000000e+00 : f32
    %1098 = vector.broadcast %cst_367 : f32 to vector<8x256xf32>
    %1099 = arith.maximumf %1097, %1098 : vector<8x256xf32>
    %1100 = arith.addf %598, %1099 : vector<8x256xf32>
    %1101 = vector.extract_strided_slice %1096 {offsets = [8, 0], sizes = [8, 256], strides = [1, 1]} : vector<16x256xf32> to vector<8x256xf32>
    %1102 = vector.extract_strided_slice %8 {offsets = [2, 0, 0], sizes = [1, 16, 8], strides = [1, 1, 1]} : vector<3x16x8xf32> to vector<1x16x8xf32>
    %1103 = vector.shape_cast %1102 : vector<1x16x8xf32> to vector<16x8xf32>
    %cst_368 = arith.constant dense<0.000000e+00> : vector<16x256xf32>
    %1104 = tpu.matmul %1103, %1101, %cst_368 {dimension_numbers = #tpu.dot_dimension_numbers<[1], [0], [0], [1], [0, 0, 1, 1], [], []>} : vector<16x8xf32>, vector<8x256xf32>, vector<16x256xf32> -> vector<16x256xf32>
    %1105 = vector.extract_strided_slice %9 {offsets = [2, 0, 0], sizes = [1, 16, 1], strides = [1, 1, 1]} : vector<3x16x1xf32> to vector<1x16x1xf32>
    %1106 = vector.shape_cast %1105 : vector<1x16x1xf32> to vector<16x1xf32>
    %1107 = vector.broadcast %1106 : vector<16x1xf32> to vector<16x256xf32>
    %1108 = arith.addf %1104, %1107 : vector<16x256xf32>
    %1109 = arith.mulf %1108, %1018 : vector<16x256xf32>
    %cst_369 = arith.constant dense<0xFF800000> : vector<256xf32>
    %1110 = vector.multi_reduction <maximumf>, %1109, %cst_369 [0] : vector<16x256xf32> to vector<256xf32>
    %1111 = vector.shape_cast %1110 : vector<256xf32> to vector<1x256xf32>
    %cst_370 = arith.constant 1.000000e+00 : f32
    %1112 = vector.broadcast %cst_370 : f32 to vector<1x256xf32>
    %1113 = arith.subf %1111, %1112 : vector<1x256xf32>
    %1114 = arith.addf %1113, %1111 : vector<1x256xf32>
    %cst_371 = arith.constant 5.000000e-01 : f32
    %1115 = vector.broadcast %cst_371 : f32 to vector<1x256xf32>
    %1116 = arith.mulf %1115, %1114 : vector<1x256xf32>
    %1117 = vector.broadcast %1116 : vector<1x256xf32> to vector<16x256xf32>
    %1118 = arith.subf %1109, %1117 : vector<16x256xf32>
    %cst_372 = arith.constant 0.000000e+00 : f32
    %1119 = vector.broadcast %cst_372 : f32 to vector<16x256xf32>
    %1120 = arith.maximumf %1118, %1119 : vector<16x256xf32>
    %cst_373 = arith.constant dense<0.000000e+00> : vector<256xf32>
    %1121 = vector.multi_reduction <add>, %1120, %cst_373 [0] : vector<16x256xf32> to vector<256xf32>
    %1122 = vector.shape_cast %1121 : vector<256xf32> to vector<1x256xf32>
    %cst_374 = arith.constant 1.000000e+00 : f32
    %1123 = vector.broadcast %cst_374 : f32 to vector<1x256xf32>
    %1124 = arith.subf %1122, %1123 : vector<1x256xf32>
    %cst_375 = arith.constant 0.000000e+00 : f32
    %1125 = vector.broadcast %cst_375 : f32 to vector<1x256xf32>
    %1126 = arith.cmpf ogt, %1124, %1125 : vector<1x256xf32>
    %1127 = arith.select %1126, %1116, %1113 : vector<1x256xi1>, vector<1x256xf32>
    %1128 = arith.select %1126, %1111, %1116 : vector<1x256xi1>, vector<1x256xf32>
    %1129 = arith.addf %1127, %1128 : vector<1x256xf32>
    %cst_376 = arith.constant 5.000000e-01 : f32
    %1130 = vector.broadcast %cst_376 : f32 to vector<1x256xf32>
    %1131 = arith.mulf %1130, %1129 : vector<1x256xf32>
    %1132 = vector.broadcast %1131 : vector<1x256xf32> to vector<16x256xf32>
    %1133 = arith.subf %1109, %1132 : vector<16x256xf32>
    %cst_377 = arith.constant 0.000000e+00 : f32
    %1134 = vector.broadcast %cst_377 : f32 to vector<16x256xf32>
    %1135 = arith.maximumf %1133, %1134 : vector<16x256xf32>
    %cst_378 = arith.constant dense<0.000000e+00> : vector<256xf32>
    %1136 = vector.multi_reduction <add>, %1135, %cst_378 [0] : vector<16x256xf32> to vector<256xf32>
    %1137 = vector.shape_cast %1136 : vector<256xf32> to vector<1x256xf32>
    %cst_379 = arith.constant 1.000000e+00 : f32
    %1138 = vector.broadcast %cst_379 : f32 to vector<1x256xf32>
    %1139 = arith.subf %1137, %1138 : vector<1x256xf32>
    %cst_380 = arith.constant 0.000000e+00 : f32
    %1140 = vector.broadcast %cst_380 : f32 to vector<1x256xf32>
    %1141 = arith.cmpf ogt, %1139, %1140 : vector<1x256xf32>
    %1142 = arith.select %1141, %1131, %1127 : vector<1x256xi1>, vector<1x256xf32>
    %1143 = arith.select %1141, %1128, %1131 : vector<1x256xi1>, vector<1x256xf32>
    %1144 = arith.addf %1142, %1143 : vector<1x256xf32>
    %cst_381 = arith.constant 5.000000e-01 : f32
    %1145 = vector.broadcast %cst_381 : f32 to vector<1x256xf32>
    %1146 = arith.mulf %1145, %1144 : vector<1x256xf32>
    %1147 = vector.broadcast %1146 : vector<1x256xf32> to vector<16x256xf32>
    %1148 = arith.subf %1109, %1147 : vector<16x256xf32>
    %cst_382 = arith.constant 0.000000e+00 : f32
    %1149 = vector.broadcast %cst_382 : f32 to vector<16x256xf32>
    %1150 = arith.maximumf %1148, %1149 : vector<16x256xf32>
    %cst_383 = arith.constant dense<0.000000e+00> : vector<256xf32>
    %1151 = vector.multi_reduction <add>, %1150, %cst_383 [0] : vector<16x256xf32> to vector<256xf32>
    %1152 = vector.shape_cast %1151 : vector<256xf32> to vector<1x256xf32>
    %cst_384 = arith.constant 1.000000e+00 : f32
    %1153 = vector.broadcast %cst_384 : f32 to vector<1x256xf32>
    %1154 = arith.subf %1152, %1153 : vector<1x256xf32>
    %cst_385 = arith.constant 0.000000e+00 : f32
    %1155 = vector.broadcast %cst_385 : f32 to vector<1x256xf32>
    %1156 = arith.cmpf ogt, %1154, %1155 : vector<1x256xf32>
    %1157 = arith.select %1156, %1146, %1142 : vector<1x256xi1>, vector<1x256xf32>
    %1158 = arith.select %1156, %1143, %1146 : vector<1x256xi1>, vector<1x256xf32>
    %1159 = arith.addf %1157, %1158 : vector<1x256xf32>
    %cst_386 = arith.constant 5.000000e-01 : f32
    %1160 = vector.broadcast %cst_386 : f32 to vector<1x256xf32>
    %1161 = arith.mulf %1160, %1159 : vector<1x256xf32>
    %1162 = vector.broadcast %1161 : vector<1x256xf32> to vector<16x256xf32>
    %1163 = arith.subf %1109, %1162 : vector<16x256xf32>
    %cst_387 = arith.constant 0.000000e+00 : f32
    %1164 = vector.broadcast %cst_387 : f32 to vector<16x256xf32>
    %1165 = arith.maximumf %1163, %1164 : vector<16x256xf32>
    %cst_388 = arith.constant dense<0.000000e+00> : vector<256xf32>
    %1166 = vector.multi_reduction <add>, %1165, %cst_388 [0] : vector<16x256xf32> to vector<256xf32>
    %1167 = vector.shape_cast %1166 : vector<256xf32> to vector<1x256xf32>
    %cst_389 = arith.constant 1.000000e+00 : f32
    %1168 = vector.broadcast %cst_389 : f32 to vector<1x256xf32>
    %1169 = arith.subf %1167, %1168 : vector<1x256xf32>
    %cst_390 = arith.constant 0.000000e+00 : f32
    %1170 = vector.broadcast %cst_390 : f32 to vector<1x256xf32>
    %1171 = arith.cmpf ogt, %1169, %1170 : vector<1x256xf32>
    %1172 = arith.select %1171, %1161, %1157 : vector<1x256xi1>, vector<1x256xf32>
    %1173 = arith.select %1171, %1158, %1161 : vector<1x256xi1>, vector<1x256xf32>
    %1174 = arith.addf %1172, %1173 : vector<1x256xf32>
    %cst_391 = arith.constant 5.000000e-01 : f32
    %1175 = vector.broadcast %cst_391 : f32 to vector<1x256xf32>
    %1176 = arith.mulf %1175, %1174 : vector<1x256xf32>
    %1177 = vector.broadcast %1176 : vector<1x256xf32> to vector<16x256xf32>
    %1178 = arith.subf %1109, %1177 : vector<16x256xf32>
    %cst_392 = arith.constant 0.000000e+00 : f32
    %1179 = vector.broadcast %cst_392 : f32 to vector<16x256xf32>
    %1180 = arith.maximumf %1178, %1179 : vector<16x256xf32>
    %cst_393 = arith.constant dense<0.000000e+00> : vector<256xf32>
    %1181 = vector.multi_reduction <add>, %1180, %cst_393 [0] : vector<16x256xf32> to vector<256xf32>
    %1182 = vector.shape_cast %1181 : vector<256xf32> to vector<1x256xf32>
    %cst_394 = arith.constant 1.000000e+00 : f32
    %1183 = vector.broadcast %cst_394 : f32 to vector<1x256xf32>
    %1184 = arith.subf %1182, %1183 : vector<1x256xf32>
    %cst_395 = arith.constant 0.000000e+00 : f32
    %1185 = vector.broadcast %cst_395 : f32 to vector<1x256xf32>
    %1186 = arith.cmpf ogt, %1184, %1185 : vector<1x256xf32>
    %1187 = arith.select %1186, %1176, %1172 : vector<1x256xi1>, vector<1x256xf32>
    %1188 = arith.select %1186, %1173, %1176 : vector<1x256xi1>, vector<1x256xf32>
    %1189 = arith.addf %1187, %1188 : vector<1x256xf32>
    %cst_396 = arith.constant 5.000000e-01 : f32
    %1190 = vector.broadcast %cst_396 : f32 to vector<1x256xf32>
    %1191 = arith.mulf %1190, %1189 : vector<1x256xf32>
    %1192 = vector.broadcast %1191 : vector<1x256xf32> to vector<16x256xf32>
    %1193 = arith.subf %1109, %1192 : vector<16x256xf32>
    %cst_397 = arith.constant 0.000000e+00 : f32
    %1194 = vector.broadcast %cst_397 : f32 to vector<16x256xf32>
    %1195 = arith.maximumf %1193, %1194 : vector<16x256xf32>
    %cst_398 = arith.constant dense<0.000000e+00> : vector<256xf32>
    %1196 = vector.multi_reduction <add>, %1195, %cst_398 [0] : vector<16x256xf32> to vector<256xf32>
    %1197 = vector.shape_cast %1196 : vector<256xf32> to vector<1x256xf32>
    %cst_399 = arith.constant 1.000000e+00 : f32
    %1198 = vector.broadcast %cst_399 : f32 to vector<1x256xf32>
    %1199 = arith.subf %1197, %1198 : vector<1x256xf32>
    %cst_400 = arith.constant 0.000000e+00 : f32
    %1200 = vector.broadcast %cst_400 : f32 to vector<1x256xf32>
    %1201 = arith.cmpf ogt, %1199, %1200 : vector<1x256xf32>
    %1202 = arith.select %1201, %1191, %1187 : vector<1x256xi1>, vector<1x256xf32>
    %1203 = arith.select %1201, %1188, %1191 : vector<1x256xi1>, vector<1x256xf32>
    %1204 = arith.addf %1202, %1203 : vector<1x256xf32>
    %cst_401 = arith.constant 5.000000e-01 : f32
    %1205 = vector.broadcast %cst_401 : f32 to vector<1x256xf32>
    %1206 = arith.mulf %1205, %1204 : vector<1x256xf32>
    %1207 = vector.broadcast %1206 : vector<1x256xf32> to vector<16x256xf32>
    %1208 = arith.subf %1109, %1207 : vector<16x256xf32>
    %cst_402 = arith.constant 0.000000e+00 : f32
    %1209 = vector.broadcast %cst_402 : f32 to vector<16x256xf32>
    %1210 = arith.maximumf %1208, %1209 : vector<16x256xf32>
    %cst_403 = arith.constant dense<0.000000e+00> : vector<256xf32>
    %1211 = vector.multi_reduction <add>, %1210, %cst_403 [0] : vector<16x256xf32> to vector<256xf32>
    %1212 = vector.shape_cast %1211 : vector<256xf32> to vector<1x256xf32>
    %cst_404 = arith.constant 1.000000e+00 : f32
    %1213 = vector.broadcast %cst_404 : f32 to vector<1x256xf32>
    %1214 = arith.subf %1212, %1213 : vector<1x256xf32>
    %cst_405 = arith.constant 0.000000e+00 : f32
    %1215 = vector.broadcast %cst_405 : f32 to vector<1x256xf32>
    %1216 = arith.cmpf ogt, %1214, %1215 : vector<1x256xf32>
    %1217 = arith.select %1216, %1206, %1202 : vector<1x256xi1>, vector<1x256xf32>
    %1218 = arith.select %1216, %1203, %1206 : vector<1x256xi1>, vector<1x256xf32>
    %1219 = arith.addf %1217, %1218 : vector<1x256xf32>
    %cst_406 = arith.constant 5.000000e-01 : f32
    %1220 = vector.broadcast %cst_406 : f32 to vector<1x256xf32>
    %1221 = arith.mulf %1220, %1219 : vector<1x256xf32>
    %1222 = vector.broadcast %1221 : vector<1x256xf32> to vector<16x256xf32>
    %1223 = arith.subf %1109, %1222 : vector<16x256xf32>
    %cst_407 = arith.constant 0.000000e+00 : f32
    %1224 = vector.broadcast %cst_407 : f32 to vector<16x256xf32>
    %1225 = arith.maximumf %1223, %1224 : vector<16x256xf32>
    %cst_408 = arith.constant dense<0.000000e+00> : vector<256xf32>
    %1226 = vector.multi_reduction <add>, %1225, %cst_408 [0] : vector<16x256xf32> to vector<256xf32>
    %1227 = vector.shape_cast %1226 : vector<256xf32> to vector<1x256xf32>
    %cst_409 = arith.constant 1.000000e+00 : f32
    %1228 = vector.broadcast %cst_409 : f32 to vector<1x256xf32>
    %1229 = arith.subf %1227, %1228 : vector<1x256xf32>
    %cst_410 = arith.constant 0.000000e+00 : f32
    %1230 = vector.broadcast %cst_410 : f32 to vector<1x256xf32>
    %1231 = arith.cmpf ogt, %1229, %1230 : vector<1x256xf32>
    %1232 = arith.select %1231, %1221, %1217 : vector<1x256xi1>, vector<1x256xf32>
    %1233 = arith.select %1231, %1218, %1221 : vector<1x256xi1>, vector<1x256xf32>
    %1234 = arith.addf %1232, %1233 : vector<1x256xf32>
    %cst_411 = arith.constant 5.000000e-01 : f32
    %1235 = vector.broadcast %cst_411 : f32 to vector<1x256xf32>
    %1236 = arith.mulf %1235, %1234 : vector<1x256xf32>
    %1237 = vector.broadcast %1236 : vector<1x256xf32> to vector<16x256xf32>
    %1238 = arith.subf %1109, %1237 : vector<16x256xf32>
    %cst_412 = arith.constant 0.000000e+00 : f32
    %1239 = vector.broadcast %cst_412 : f32 to vector<16x256xf32>
    %1240 = arith.maximumf %1238, %1239 : vector<16x256xf32>
    %cst_413 = arith.constant dense<0.000000e+00> : vector<256xf32>
    %1241 = vector.multi_reduction <add>, %1240, %cst_413 [0] : vector<16x256xf32> to vector<256xf32>
    %1242 = vector.shape_cast %1241 : vector<256xf32> to vector<1x256xf32>
    %cst_414 = arith.constant 1.000000e+00 : f32
    %1243 = vector.broadcast %cst_414 : f32 to vector<1x256xf32>
    %1244 = arith.subf %1242, %1243 : vector<1x256xf32>
    %cst_415 = arith.constant 0.000000e+00 : f32
    %1245 = vector.broadcast %cst_415 : f32 to vector<1x256xf32>
    %1246 = arith.cmpf ogt, %1244, %1245 : vector<1x256xf32>
    %1247 = arith.select %1246, %1236, %1232 : vector<1x256xi1>, vector<1x256xf32>
    %1248 = arith.select %1246, %1233, %1236 : vector<1x256xi1>, vector<1x256xf32>
    %1249 = arith.addf %1247, %1248 : vector<1x256xf32>
    %cst_416 = arith.constant 5.000000e-01 : f32
    %1250 = vector.broadcast %cst_416 : f32 to vector<1x256xf32>
    %1251 = arith.mulf %1250, %1249 : vector<1x256xf32>
    %1252 = vector.broadcast %1251 : vector<1x256xf32> to vector<16x256xf32>
    %1253 = arith.subf %1109, %1252 : vector<16x256xf32>
    %cst_417 = arith.constant 0.000000e+00 : f32
    %1254 = vector.broadcast %cst_417 : f32 to vector<16x256xf32>
    %1255 = arith.maximumf %1253, %1254 : vector<16x256xf32>
    %cst_418 = arith.constant dense<0.000000e+00> : vector<256xf32>
    %1256 = vector.multi_reduction <add>, %1255, %cst_418 [0] : vector<16x256xf32> to vector<256xf32>
    %1257 = vector.shape_cast %1256 : vector<256xf32> to vector<1x256xf32>
    %cst_419 = arith.constant 1.000000e+00 : f32
    %1258 = vector.broadcast %cst_419 : f32 to vector<1x256xf32>
    %1259 = arith.subf %1257, %1258 : vector<1x256xf32>
    %cst_420 = arith.constant 0.000000e+00 : f32
    %1260 = vector.broadcast %cst_420 : f32 to vector<1x256xf32>
    %1261 = arith.cmpf ogt, %1259, %1260 : vector<1x256xf32>
    %1262 = arith.select %1261, %1251, %1247 : vector<1x256xi1>, vector<1x256xf32>
    %1263 = arith.select %1261, %1248, %1251 : vector<1x256xi1>, vector<1x256xf32>
    %1264 = arith.addf %1262, %1263 : vector<1x256xf32>
    %cst_421 = arith.constant 5.000000e-01 : f32
    %1265 = vector.broadcast %cst_421 : f32 to vector<1x256xf32>
    %1266 = arith.mulf %1265, %1264 : vector<1x256xf32>
    %1267 = vector.broadcast %1266 : vector<1x256xf32> to vector<16x256xf32>
    %1268 = arith.subf %1109, %1267 : vector<16x256xf32>
    %cst_422 = arith.constant 0.000000e+00 : f32
    %1269 = vector.broadcast %cst_422 : f32 to vector<16x256xf32>
    %1270 = arith.maximumf %1268, %1269 : vector<16x256xf32>
    %cst_423 = arith.constant dense<0.000000e+00> : vector<256xf32>
    %1271 = vector.multi_reduction <add>, %1270, %cst_423 [0] : vector<16x256xf32> to vector<256xf32>
    %1272 = vector.shape_cast %1271 : vector<256xf32> to vector<1x256xf32>
    %cst_424 = arith.constant 1.000000e+00 : f32
    %1273 = vector.broadcast %cst_424 : f32 to vector<1x256xf32>
    %1274 = arith.subf %1272, %1273 : vector<1x256xf32>
    %cst_425 = arith.constant 0.000000e+00 : f32
    %1275 = vector.broadcast %cst_425 : f32 to vector<1x256xf32>
    %1276 = arith.cmpf ogt, %1274, %1275 : vector<1x256xf32>
    %1277 = arith.select %1276, %1266, %1262 : vector<1x256xi1>, vector<1x256xf32>
    %1278 = arith.select %1276, %1263, %1266 : vector<1x256xi1>, vector<1x256xf32>
    %1279 = arith.addf %1277, %1278 : vector<1x256xf32>
    %cst_426 = arith.constant 5.000000e-01 : f32
    %1280 = vector.broadcast %cst_426 : f32 to vector<1x256xf32>
    %1281 = arith.mulf %1280, %1279 : vector<1x256xf32>
    %1282 = vector.broadcast %1281 : vector<1x256xf32> to vector<16x256xf32>
    %1283 = arith.subf %1109, %1282 : vector<16x256xf32>
    %cst_427 = arith.constant 0.000000e+00 : f32
    %1284 = vector.broadcast %cst_427 : f32 to vector<16x256xf32>
    %1285 = arith.maximumf %1283, %1284 : vector<16x256xf32>
    %cst_428 = arith.constant dense<0.000000e+00> : vector<256xf32>
    %1286 = vector.multi_reduction <add>, %1285, %cst_428 [0] : vector<16x256xf32> to vector<256xf32>
    %1287 = vector.shape_cast %1286 : vector<256xf32> to vector<1x256xf32>
    %cst_429 = arith.constant 1.000000e+00 : f32
    %1288 = vector.broadcast %cst_429 : f32 to vector<1x256xf32>
    %1289 = arith.subf %1287, %1288 : vector<1x256xf32>
    %cst_430 = arith.constant 0.000000e+00 : f32
    %1290 = vector.broadcast %cst_430 : f32 to vector<1x256xf32>
    %1291 = arith.cmpf ogt, %1289, %1290 : vector<1x256xf32>
    %1292 = arith.select %1291, %1281, %1277 : vector<1x256xi1>, vector<1x256xf32>
    %1293 = arith.select %1291, %1278, %1281 : vector<1x256xi1>, vector<1x256xf32>
    %1294 = arith.addf %1292, %1293 : vector<1x256xf32>
    %cst_431 = arith.constant 5.000000e-01 : f32
    %1295 = vector.broadcast %cst_431 : f32 to vector<1x256xf32>
    %1296 = arith.mulf %1295, %1294 : vector<1x256xf32>
    %1297 = vector.broadcast %1296 : vector<1x256xf32> to vector<16x256xf32>
    %1298 = arith.subf %1109, %1297 : vector<16x256xf32>
    %cst_432 = arith.constant 0.000000e+00 : f32
    %1299 = vector.broadcast %cst_432 : f32 to vector<16x256xf32>
    %1300 = arith.maximumf %1298, %1299 : vector<16x256xf32>
    %cst_433 = arith.constant dense<0.000000e+00> : vector<256xf32>
    %1301 = vector.multi_reduction <add>, %1300, %cst_433 [0] : vector<16x256xf32> to vector<256xf32>
    %1302 = vector.shape_cast %1301 : vector<256xf32> to vector<1x256xf32>
    %cst_434 = arith.constant 1.000000e+00 : f32
    %1303 = vector.broadcast %cst_434 : f32 to vector<1x256xf32>
    %1304 = arith.subf %1302, %1303 : vector<1x256xf32>
    %cst_435 = arith.constant 0.000000e+00 : f32
    %1305 = vector.broadcast %cst_435 : f32 to vector<1x256xf32>
    %1306 = arith.cmpf ogt, %1304, %1305 : vector<1x256xf32>
    %1307 = arith.select %1306, %1296, %1292 : vector<1x256xi1>, vector<1x256xf32>
    %1308 = arith.select %1306, %1293, %1296 : vector<1x256xi1>, vector<1x256xf32>
    %1309 = arith.addf %1307, %1308 : vector<1x256xf32>
    %cst_436 = arith.constant 5.000000e-01 : f32
    %1310 = vector.broadcast %cst_436 : f32 to vector<1x256xf32>
    %1311 = arith.mulf %1310, %1309 : vector<1x256xf32>
    %1312 = vector.broadcast %1311 : vector<1x256xf32> to vector<16x256xf32>
    %1313 = arith.subf %1109, %1312 : vector<16x256xf32>
    %cst_437 = arith.constant 0.000000e+00 : f32
    %1314 = vector.broadcast %cst_437 : f32 to vector<16x256xf32>
    %1315 = arith.maximumf %1313, %1314 : vector<16x256xf32>
    %cst_438 = arith.constant dense<0.000000e+00> : vector<256xf32>
    %1316 = vector.multi_reduction <add>, %1315, %cst_438 [0] : vector<16x256xf32> to vector<256xf32>
    %1317 = vector.shape_cast %1316 : vector<256xf32> to vector<1x256xf32>
    %cst_439 = arith.constant 1.000000e+00 : f32
    %1318 = vector.broadcast %cst_439 : f32 to vector<1x256xf32>
    %1319 = arith.subf %1317, %1318 : vector<1x256xf32>
    %cst_440 = arith.constant 0.000000e+00 : f32
    %1320 = vector.broadcast %cst_440 : f32 to vector<1x256xf32>
    %1321 = arith.cmpf ogt, %1319, %1320 : vector<1x256xf32>
    %1322 = arith.select %1321, %1311, %1307 : vector<1x256xi1>, vector<1x256xf32>
    %1323 = arith.select %1321, %1308, %1311 : vector<1x256xi1>, vector<1x256xf32>
    %1324 = arith.addf %1322, %1323 : vector<1x256xf32>
    %cst_441 = arith.constant 5.000000e-01 : f32
    %1325 = vector.broadcast %cst_441 : f32 to vector<1x256xf32>
    %1326 = arith.mulf %1325, %1324 : vector<1x256xf32>
    %1327 = vector.broadcast %1326 : vector<1x256xf32> to vector<16x256xf32>
    %1328 = arith.subf %1109, %1327 : vector<16x256xf32>
    %cst_442 = arith.constant 0.000000e+00 : f32
    %1329 = vector.broadcast %cst_442 : f32 to vector<16x256xf32>
    %1330 = arith.maximumf %1328, %1329 : vector<16x256xf32>
    %cst_443 = arith.constant dense<0.000000e+00> : vector<256xf32>
    %1331 = vector.multi_reduction <add>, %1330, %cst_443 [0] : vector<16x256xf32> to vector<256xf32>
    %1332 = vector.shape_cast %1331 : vector<256xf32> to vector<1x256xf32>
    %cst_444 = arith.constant 1.000000e+00 : f32
    %1333 = vector.broadcast %cst_444 : f32 to vector<1x256xf32>
    %1334 = arith.subf %1332, %1333 : vector<1x256xf32>
    %cst_445 = arith.constant 0.000000e+00 : f32
    %1335 = vector.broadcast %cst_445 : f32 to vector<1x256xf32>
    %1336 = arith.cmpf ogt, %1334, %1335 : vector<1x256xf32>
    %1337 = arith.select %1336, %1326, %1322 : vector<1x256xi1>, vector<1x256xf32>
    %1338 = arith.select %1336, %1323, %1326 : vector<1x256xi1>, vector<1x256xf32>
    %1339 = arith.addf %1337, %1338 : vector<1x256xf32>
    %cst_446 = arith.constant 5.000000e-01 : f32
    %1340 = vector.broadcast %cst_446 : f32 to vector<1x256xf32>
    %1341 = arith.mulf %1340, %1339 : vector<1x256xf32>
    %1342 = vector.broadcast %1341 : vector<1x256xf32> to vector<16x256xf32>
    %1343 = arith.subf %1109, %1342 : vector<16x256xf32>
    %cst_447 = arith.constant 0.000000e+00 : f32
    %1344 = vector.broadcast %cst_447 : f32 to vector<16x256xf32>
    %1345 = arith.maximumf %1343, %1344 : vector<16x256xf32>
    %cst_448 = arith.constant dense<0.000000e+00> : vector<256xf32>
    %1346 = vector.multi_reduction <add>, %1345, %cst_448 [0] : vector<16x256xf32> to vector<256xf32>
    %1347 = vector.shape_cast %1346 : vector<256xf32> to vector<1x256xf32>
    %cst_449 = arith.constant 1.000000e+00 : f32
    %1348 = vector.broadcast %cst_449 : f32 to vector<1x256xf32>
    %1349 = arith.subf %1347, %1348 : vector<1x256xf32>
    %cst_450 = arith.constant 0.000000e+00 : f32
    %1350 = vector.broadcast %cst_450 : f32 to vector<1x256xf32>
    %1351 = arith.cmpf ogt, %1349, %1350 : vector<1x256xf32>
    %1352 = arith.select %1351, %1341, %1337 : vector<1x256xi1>, vector<1x256xf32>
    %1353 = arith.select %1351, %1338, %1341 : vector<1x256xi1>, vector<1x256xf32>
    %1354 = arith.addf %1352, %1353 : vector<1x256xf32>
    %cst_451 = arith.constant 5.000000e-01 : f32
    %1355 = vector.broadcast %cst_451 : f32 to vector<1x256xf32>
    %1356 = arith.mulf %1355, %1354 : vector<1x256xf32>
    %1357 = vector.broadcast %1356 : vector<1x256xf32> to vector<16x256xf32>
    %1358 = arith.subf %1109, %1357 : vector<16x256xf32>
    %cst_452 = arith.constant 0.000000e+00 : f32
    %1359 = vector.broadcast %cst_452 : f32 to vector<16x256xf32>
    %1360 = arith.maximumf %1358, %1359 : vector<16x256xf32>
    %cst_453 = arith.constant dense<0.000000e+00> : vector<256xf32>
    %1361 = vector.multi_reduction <add>, %1360, %cst_453 [0] : vector<16x256xf32> to vector<256xf32>
    %1362 = vector.shape_cast %1361 : vector<256xf32> to vector<1x256xf32>
    %cst_454 = arith.constant 1.000000e+00 : f32
    %1363 = vector.broadcast %cst_454 : f32 to vector<1x256xf32>
    %1364 = arith.subf %1362, %1363 : vector<1x256xf32>
    %cst_455 = arith.constant 0.000000e+00 : f32
    %1365 = vector.broadcast %cst_455 : f32 to vector<1x256xf32>
    %1366 = arith.cmpf ogt, %1364, %1365 : vector<1x256xf32>
    %1367 = arith.select %1366, %1356, %1352 : vector<1x256xi1>, vector<1x256xf32>
    %1368 = arith.select %1366, %1353, %1356 : vector<1x256xi1>, vector<1x256xf32>
    %1369 = arith.addf %1367, %1368 : vector<1x256xf32>
    %cst_456 = arith.constant 5.000000e-01 : f32
    %1370 = vector.broadcast %cst_456 : f32 to vector<1x256xf32>
    %1371 = arith.mulf %1370, %1369 : vector<1x256xf32>
    %1372 = vector.broadcast %1371 : vector<1x256xf32> to vector<16x256xf32>
    %1373 = arith.subf %1109, %1372 : vector<16x256xf32>
    %cst_457 = arith.constant 0.000000e+00 : f32
    %1374 = vector.broadcast %cst_457 : f32 to vector<16x256xf32>
    %1375 = arith.maximumf %1373, %1374 : vector<16x256xf32>
    %cst_458 = arith.constant dense<0.000000e+00> : vector<256xf32>
    %1376 = vector.multi_reduction <add>, %1375, %cst_458 [0] : vector<16x256xf32> to vector<256xf32>
    %1377 = vector.shape_cast %1376 : vector<256xf32> to vector<1x256xf32>
    %cst_459 = arith.constant 1.000000e+00 : f32
    %1378 = vector.broadcast %cst_459 : f32 to vector<1x256xf32>
    %1379 = arith.subf %1377, %1378 : vector<1x256xf32>
    %cst_460 = arith.constant 0.000000e+00 : f32
    %1380 = vector.broadcast %cst_460 : f32 to vector<1x256xf32>
    %1381 = arith.cmpf ogt, %1379, %1380 : vector<1x256xf32>
    %1382 = arith.select %1381, %1371, %1367 : vector<1x256xi1>, vector<1x256xf32>
    %1383 = arith.select %1381, %1368, %1371 : vector<1x256xi1>, vector<1x256xf32>
    %1384 = arith.addf %1382, %1383 : vector<1x256xf32>
    %cst_461 = arith.constant 5.000000e-01 : f32
    %1385 = vector.broadcast %cst_461 : f32 to vector<1x256xf32>
    %1386 = arith.mulf %1385, %1384 : vector<1x256xf32>
    %1387 = vector.broadcast %1386 : vector<1x256xf32> to vector<16x256xf32>
    %1388 = arith.subf %1109, %1387 : vector<16x256xf32>
    %cst_462 = arith.constant 0.000000e+00 : f32
    %1389 = vector.broadcast %cst_462 : f32 to vector<16x256xf32>
    %1390 = arith.maximumf %1388, %1389 : vector<16x256xf32>
    %cst_463 = arith.constant dense<0.000000e+00> : vector<256xf32>
    %1391 = vector.multi_reduction <add>, %1390, %cst_463 [0] : vector<16x256xf32> to vector<256xf32>
    %1392 = vector.shape_cast %1391 : vector<256xf32> to vector<1x256xf32>
    %cst_464 = arith.constant 1.000000e+00 : f32
    %1393 = vector.broadcast %cst_464 : f32 to vector<1x256xf32>
    %1394 = arith.subf %1392, %1393 : vector<1x256xf32>
    %cst_465 = arith.constant 0.000000e+00 : f32
    %1395 = vector.broadcast %cst_465 : f32 to vector<1x256xf32>
    %1396 = arith.cmpf ogt, %1394, %1395 : vector<1x256xf32>
    %1397 = arith.select %1396, %1386, %1382 : vector<1x256xi1>, vector<1x256xf32>
    %1398 = arith.select %1396, %1383, %1386 : vector<1x256xi1>, vector<1x256xf32>
    %1399 = arith.addf %1397, %1398 : vector<1x256xf32>
    %cst_466 = arith.constant 5.000000e-01 : f32
    %1400 = vector.broadcast %cst_466 : f32 to vector<1x256xf32>
    %1401 = arith.mulf %1400, %1399 : vector<1x256xf32>
    %1402 = vector.broadcast %1401 : vector<1x256xf32> to vector<16x256xf32>
    %1403 = arith.subf %1109, %1402 : vector<16x256xf32>
    %cst_467 = arith.constant 0.000000e+00 : f32
    %1404 = vector.broadcast %cst_467 : f32 to vector<16x256xf32>
    %1405 = arith.maximumf %1403, %1404 : vector<16x256xf32>
    %cst_468 = arith.constant dense<0.000000e+00> : vector<256xf32>
    %1406 = vector.multi_reduction <add>, %1405, %cst_468 [0] : vector<16x256xf32> to vector<256xf32>
    %1407 = vector.shape_cast %1406 : vector<256xf32> to vector<1x256xf32>
    %cst_469 = arith.constant 1.000000e+00 : f32
    %1408 = vector.broadcast %cst_469 : f32 to vector<1x256xf32>
    %1409 = arith.subf %1407, %1408 : vector<1x256xf32>
    %cst_470 = arith.constant 0.000000e+00 : f32
    %1410 = vector.broadcast %cst_470 : f32 to vector<1x256xf32>
    %1411 = arith.cmpf ogt, %1409, %1410 : vector<1x256xf32>
    %1412 = arith.select %1411, %1401, %1397 : vector<1x256xi1>, vector<1x256xf32>
    %1413 = arith.select %1411, %1398, %1401 : vector<1x256xi1>, vector<1x256xf32>
    %1414 = arith.addf %1412, %1413 : vector<1x256xf32>
    %cst_471 = arith.constant 5.000000e-01 : f32
    %1415 = vector.broadcast %cst_471 : f32 to vector<1x256xf32>
    %1416 = arith.mulf %1415, %1414 : vector<1x256xf32>
    %1417 = vector.broadcast %1416 : vector<1x256xf32> to vector<16x256xf32>
    %1418 = arith.subf %1109, %1417 : vector<16x256xf32>
    %cst_472 = arith.constant 0.000000e+00 : f32
    %1419 = vector.broadcast %cst_472 : f32 to vector<16x256xf32>
    %1420 = arith.maximumf %1418, %1419 : vector<16x256xf32>
    %cst_473 = arith.constant dense<0.000000e+00> : vector<256xf32>
    %1421 = vector.multi_reduction <add>, %1420, %cst_473 [0] : vector<16x256xf32> to vector<256xf32>
    %1422 = vector.shape_cast %1421 : vector<256xf32> to vector<1x256xf32>
    %cst_474 = arith.constant 1.000000e+00 : f32
    %1423 = vector.broadcast %cst_474 : f32 to vector<1x256xf32>
    %1424 = arith.subf %1422, %1423 : vector<1x256xf32>
    %cst_475 = arith.constant 0.000000e+00 : f32
    %1425 = vector.broadcast %cst_475 : f32 to vector<1x256xf32>
    %1426 = arith.cmpf ogt, %1424, %1425 : vector<1x256xf32>
    %1427 = arith.select %1426, %1416, %1412 : vector<1x256xi1>, vector<1x256xf32>
    %1428 = arith.select %1426, %1413, %1416 : vector<1x256xi1>, vector<1x256xf32>
    %1429 = arith.addf %1427, %1428 : vector<1x256xf32>
    %cst_476 = arith.constant 5.000000e-01 : f32
    %1430 = vector.broadcast %cst_476 : f32 to vector<1x256xf32>
    %1431 = arith.mulf %1430, %1429 : vector<1x256xf32>
    %1432 = vector.broadcast %1431 : vector<1x256xf32> to vector<16x256xf32>
    %1433 = arith.subf %1109, %1432 : vector<16x256xf32>
    %cst_477 = arith.constant 0.000000e+00 : f32
    %1434 = vector.broadcast %cst_477 : f32 to vector<16x256xf32>
    %1435 = arith.maximumf %1433, %1434 : vector<16x256xf32>
    %cst_478 = arith.constant dense<0.000000e+00> : vector<256xf32>
    %1436 = vector.multi_reduction <add>, %1435, %cst_478 [0] : vector<16x256xf32> to vector<256xf32>
    %1437 = vector.shape_cast %1436 : vector<256xf32> to vector<1x256xf32>
    %cst_479 = arith.constant 1.000000e+00 : f32
    %1438 = vector.broadcast %cst_479 : f32 to vector<1x256xf32>
    %1439 = arith.subf %1437, %1438 : vector<1x256xf32>
    %cst_480 = arith.constant 0.000000e+00 : f32
    %1440 = vector.broadcast %cst_480 : f32 to vector<1x256xf32>
    %1441 = arith.cmpf ogt, %1439, %1440 : vector<1x256xf32>
    %1442 = arith.select %1441, %1431, %1427 : vector<1x256xi1>, vector<1x256xf32>
    %1443 = arith.select %1441, %1428, %1431 : vector<1x256xi1>, vector<1x256xf32>
    %1444 = arith.addf %1442, %1443 : vector<1x256xf32>
    %cst_481 = arith.constant 5.000000e-01 : f32
    %1445 = vector.broadcast %cst_481 : f32 to vector<1x256xf32>
    %1446 = arith.mulf %1445, %1444 : vector<1x256xf32>
    %1447 = vector.broadcast %1446 : vector<1x256xf32> to vector<16x256xf32>
    %1448 = arith.subf %1109, %1447 : vector<16x256xf32>
    %cst_482 = arith.constant 0.000000e+00 : f32
    %1449 = vector.broadcast %cst_482 : f32 to vector<16x256xf32>
    %1450 = arith.maximumf %1448, %1449 : vector<16x256xf32>
    %cst_483 = arith.constant dense<0.000000e+00> : vector<256xf32>
    %1451 = vector.multi_reduction <add>, %1450, %cst_483 [0] : vector<16x256xf32> to vector<256xf32>
    %1452 = vector.shape_cast %1451 : vector<256xf32> to vector<1x256xf32>
    %cst_484 = arith.constant 1.000000e+00 : f32
    %1453 = vector.broadcast %cst_484 : f32 to vector<1x256xf32>
    %1454 = arith.subf %1452, %1453 : vector<1x256xf32>
    %cst_485 = arith.constant 0.000000e+00 : f32
    %1455 = vector.broadcast %cst_485 : f32 to vector<1x256xf32>
    %1456 = arith.cmpf ogt, %1454, %1455 : vector<1x256xf32>
    %1457 = arith.select %1456, %1446, %1442 : vector<1x256xi1>, vector<1x256xf32>
    %1458 = arith.select %1456, %1443, %1446 : vector<1x256xi1>, vector<1x256xf32>
    %1459 = arith.addf %1457, %1458 : vector<1x256xf32>
    %cst_486 = arith.constant 5.000000e-01 : f32
    %1460 = vector.broadcast %cst_486 : f32 to vector<1x256xf32>
    %1461 = arith.mulf %1460, %1459 : vector<1x256xf32>
    %1462 = vector.broadcast %1461 : vector<1x256xf32> to vector<16x256xf32>
    %1463 = arith.subf %1109, %1462 : vector<16x256xf32>
    %cst_487 = arith.constant 0.000000e+00 : f32
    %1464 = vector.broadcast %cst_487 : f32 to vector<16x256xf32>
    %1465 = arith.maximumf %1463, %1464 : vector<16x256xf32>
    %cst_488 = arith.constant dense<0.000000e+00> : vector<256xf32>
    %1466 = vector.multi_reduction <add>, %1465, %cst_488 [0] : vector<16x256xf32> to vector<256xf32>
    %1467 = vector.shape_cast %1466 : vector<256xf32> to vector<1x256xf32>
    %cst_489 = arith.constant 1.000000e+00 : f32
    %1468 = vector.broadcast %cst_489 : f32 to vector<1x256xf32>
    %1469 = arith.subf %1467, %1468 : vector<1x256xf32>
    %cst_490 = arith.constant 0.000000e+00 : f32
    %1470 = vector.broadcast %cst_490 : f32 to vector<1x256xf32>
    %1471 = arith.cmpf ogt, %1469, %1470 : vector<1x256xf32>
    %1472 = arith.select %1471, %1461, %1457 : vector<1x256xi1>, vector<1x256xf32>
    %1473 = arith.select %1471, %1458, %1461 : vector<1x256xi1>, vector<1x256xf32>
    %1474 = arith.addf %1472, %1473 : vector<1x256xf32>
    %cst_491 = arith.constant 5.000000e-01 : f32
    %1475 = vector.broadcast %cst_491 : f32 to vector<1x256xf32>
    %1476 = arith.mulf %1475, %1474 : vector<1x256xf32>
    %1477 = vector.broadcast %1476 : vector<1x256xf32> to vector<16x256xf32>
    %1478 = arith.subf %1109, %1477 : vector<16x256xf32>
    %cst_492 = arith.constant 0.000000e+00 : f32
    %1479 = vector.broadcast %cst_492 : f32 to vector<16x256xf32>
    %1480 = arith.maximumf %1478, %1479 : vector<16x256xf32>
    %cst_493 = arith.constant dense<0.000000e+00> : vector<256xf32>
    %1481 = vector.multi_reduction <add>, %1480, %cst_493 [0] : vector<16x256xf32> to vector<256xf32>
    %1482 = vector.shape_cast %1481 : vector<256xf32> to vector<1x256xf32>
    %cst_494 = arith.constant 1.000000e+00 : f32
    %1483 = vector.broadcast %cst_494 : f32 to vector<1x256xf32>
    %1484 = arith.subf %1482, %1483 : vector<1x256xf32>
    %cst_495 = arith.constant 0.000000e+00 : f32
    %1485 = vector.broadcast %cst_495 : f32 to vector<1x256xf32>
    %1486 = arith.cmpf ogt, %1484, %1485 : vector<1x256xf32>
    %1487 = arith.select %1486, %1476, %1472 : vector<1x256xi1>, vector<1x256xf32>
    %1488 = arith.select %1486, %1473, %1476 : vector<1x256xi1>, vector<1x256xf32>
    %1489 = arith.addf %1487, %1488 : vector<1x256xf32>
    %cst_496 = arith.constant 5.000000e-01 : f32
    %1490 = vector.broadcast %cst_496 : f32 to vector<1x256xf32>
    %1491 = arith.mulf %1490, %1489 : vector<1x256xf32>
    %1492 = vector.broadcast %1491 : vector<1x256xf32> to vector<16x256xf32>
    %1493 = arith.subf %1109, %1492 : vector<16x256xf32>
    %cst_497 = arith.constant 0.000000e+00 : f32
    %1494 = vector.broadcast %cst_497 : f32 to vector<16x256xf32>
    %1495 = arith.maximumf %1493, %1494 : vector<16x256xf32>
    %cst_498 = arith.constant dense<0.000000e+00> : vector<256xf32>
    %1496 = vector.multi_reduction <add>, %1495, %cst_498 [0] : vector<16x256xf32> to vector<256xf32>
    %1497 = vector.shape_cast %1496 : vector<256xf32> to vector<1x256xf32>
    %cst_499 = arith.constant 1.000000e+00 : f32
    %1498 = vector.broadcast %cst_499 : f32 to vector<1x256xf32>
    %1499 = arith.subf %1497, %1498 : vector<1x256xf32>
    %cst_500 = arith.constant 0.000000e+00 : f32
    %1500 = vector.broadcast %cst_500 : f32 to vector<1x256xf32>
    %1501 = arith.cmpf ogt, %1499, %1500 : vector<1x256xf32>
    %1502 = arith.select %1501, %1491, %1487 : vector<1x256xi1>, vector<1x256xf32>
    %1503 = arith.select %1501, %1488, %1491 : vector<1x256xi1>, vector<1x256xf32>
    %1504 = arith.addf %1502, %1503 : vector<1x256xf32>
    %cst_501 = arith.constant 5.000000e-01 : f32
    %1505 = vector.broadcast %cst_501 : f32 to vector<1x256xf32>
    %1506 = arith.mulf %1505, %1504 : vector<1x256xf32>
    %1507 = vector.broadcast %1506 : vector<1x256xf32> to vector<16x256xf32>
    %1508 = arith.subf %1109, %1507 : vector<16x256xf32>
    %cst_502 = arith.constant 0.000000e+00 : f32
    %1509 = vector.broadcast %cst_502 : f32 to vector<16x256xf32>
    %1510 = arith.maximumf %1508, %1509 : vector<16x256xf32>
    %cst_503 = arith.constant 1.000000e-15 : f32
    %1511 = vector.broadcast %cst_503 : f32 to vector<16x256xf32>
    %1512 = arith.addf %1510, %1511 : vector<16x256xf32>
    %1513 = math.log %1512 : vector<16x256xf32>
    %1514 = arith.mulf %1510, %1513 : vector<16x256xf32>
    %cst_504 = arith.constant dense<0.000000e+00> : vector<256xf32>
    %1515 = vector.multi_reduction <add>, %1514, %cst_504 [0] : vector<16x256xf32> to vector<256xf32>
    %1516 = vector.shape_cast %1515 : vector<256xf32> to vector<1x256xf32>
    %1517 = arith.addf %1015, %1516 : vector<1x256xf32>
    %1518 = arith.mulf %1510, %16 : vector<16x256xf32>
    %1519 = vector.extract_strided_slice %2 {offsets = [3, 0, 0], sizes = [1, 32, 16], strides = [1, 1, 1]} : vector<4x32x16xf32> to vector<1x32x16xf32>
    %1520 = vector.shape_cast %1519 : vector<1x32x16xf32> to vector<32x16xf32>
    %1521 = vector.extract_strided_slice %3 {offsets = [3, 0, 0], sizes = [1, 32, 1], strides = [1, 1, 1]} : vector<4x32x1xf32> to vector<1x32x1xf32>
    %1522 = vector.shape_cast %1521 : vector<1x32x1xf32> to vector<32x1xf32>
    %cst_505 = arith.constant dense<0.000000e+00> : vector<32x256xf32>
    %1523 = tpu.matmul %1520, %1518, %cst_505 {dimension_numbers = #tpu.dot_dimension_numbers<[1], [0], [0], [1], [0, 0, 1, 1], [], []>} : vector<32x16xf32>, vector<16x256xf32>, vector<32x256xf32> -> vector<32x256xf32>
    %1524 = vector.broadcast %1522 : vector<32x1xf32> to vector<32x256xf32>
    %1525 = arith.addf %1523, %1524 : vector<32x256xf32>
    %1526 = vector.extract_strided_slice %1525 {offsets = [0, 0], sizes = [16, 256], strides = [1, 1]} : vector<32x256xf32> to vector<16x256xf32>
    %1527 = vector.extract_strided_slice %1525 {offsets = [16, 0], sizes = [16, 256], strides = [1, 1]} : vector<32x256xf32> to vector<16x256xf32>
    %cst_506 = arith.constant 5.000000e-01 : f32
    %1528 = vector.broadcast %cst_506 : f32 to vector<16x256xf32>
    %1529 = arith.mulf %1528, %1527 : vector<16x256xf32>
    %1530 = math.tanh %1529 : vector<16x256xf32>
    %cst_507 = arith.constant 5.000000e-01 : f32
    %1531 = vector.broadcast %cst_507 : f32 to vector<16x256xf32>
    %1532 = arith.mulf %1531, %1530 : vector<16x256xf32>
    %cst_508 = arith.constant 5.000000e-01 : f32
    %1533 = vector.broadcast %cst_508 : f32 to vector<16x256xf32>
    %1534 = arith.addf %1532, %1533 : vector<16x256xf32>
    %1535 = arith.mulf %1526, %1534 : vector<16x256xf32>
    %1536 = vector.extract_strided_slice %4 {offsets = [3, 0, 0], sizes = [1, 32, 16], strides = [1, 1, 1]} : vector<4x32x16xf32> to vector<1x32x16xf32>
    %1537 = vector.shape_cast %1536 : vector<1x32x16xf32> to vector<32x16xf32>
    %1538 = vector.extract_strided_slice %5 {offsets = [3, 0, 0], sizes = [1, 32, 1], strides = [1, 1, 1]} : vector<4x32x1xf32> to vector<1x32x1xf32>
    %1539 = vector.shape_cast %1538 : vector<1x32x1xf32> to vector<32x1xf32>
    %cst_509 = arith.constant dense<0.000000e+00> : vector<32x256xf32>
    %1540 = tpu.matmul %1537, %1535, %cst_509 {dimension_numbers = #tpu.dot_dimension_numbers<[1], [0], [0], [1], [0, 0, 1, 1], [], []>} : vector<32x16xf32>, vector<16x256xf32>, vector<32x256xf32> -> vector<32x256xf32>
    %1541 = vector.broadcast %1539 : vector<32x1xf32> to vector<32x256xf32>
    %1542 = arith.addf %1540, %1541 : vector<32x256xf32>
    %1543 = vector.extract_strided_slice %1542 {offsets = [0, 0], sizes = [16, 256], strides = [1, 1]} : vector<32x256xf32> to vector<16x256xf32>
    %1544 = vector.extract_strided_slice %1542 {offsets = [16, 0], sizes = [16, 256], strides = [1, 1]} : vector<32x256xf32> to vector<16x256xf32>
    %cst_510 = arith.constant 5.000000e-01 : f32
    %1545 = vector.broadcast %cst_510 : f32 to vector<16x256xf32>
    %1546 = arith.mulf %1545, %1544 : vector<16x256xf32>
    %1547 = math.tanh %1546 : vector<16x256xf32>
    %cst_511 = arith.constant 5.000000e-01 : f32
    %1548 = vector.broadcast %cst_511 : f32 to vector<16x256xf32>
    %1549 = arith.mulf %1548, %1547 : vector<16x256xf32>
    %cst_512 = arith.constant 5.000000e-01 : f32
    %1550 = vector.broadcast %cst_512 : f32 to vector<16x256xf32>
    %1551 = arith.addf %1549, %1550 : vector<16x256xf32>
    %1552 = arith.mulf %1543, %1551 : vector<16x256xf32>
    %1553 = arith.addf %1535, %1552 : vector<16x256xf32>
    %cst_513 = arith.constant 0.707106769 : f32
    %1554 = vector.broadcast %cst_513 : f32 to vector<16x256xf32>
    %1555 = arith.mulf %1553, %1554 : vector<16x256xf32>
    %1556 = vector.extract_strided_slice %6 {offsets = [3, 0, 0, 0], sizes = [1, 1, 32, 16], strides = [1, 1, 1, 1]} : vector<4x2x32x16xf32> to vector<1x1x32x16xf32>
    %1557 = vector.shape_cast %1556 : vector<1x1x32x16xf32> to vector<32x16xf32>
    %1558 = vector.extract_strided_slice %7 {offsets = [3, 0, 0, 0], sizes = [1, 1, 32, 1], strides = [1, 1, 1, 1]} : vector<4x2x32x1xf32> to vector<1x1x32x1xf32>
    %1559 = vector.shape_cast %1558 : vector<1x1x32x1xf32> to vector<32x1xf32>
    %cst_514 = arith.constant dense<0.000000e+00> : vector<32x256xf32>
    %1560 = tpu.matmul %1557, %1555, %cst_514 {dimension_numbers = #tpu.dot_dimension_numbers<[1], [0], [0], [1], [0, 0, 1, 1], [], []>} : vector<32x16xf32>, vector<16x256xf32>, vector<32x256xf32> -> vector<32x256xf32>
    %1561 = vector.broadcast %1559 : vector<32x1xf32> to vector<32x256xf32>
    %1562 = arith.addf %1560, %1561 : vector<32x256xf32>
    %1563 = vector.extract_strided_slice %1562 {offsets = [0, 0], sizes = [16, 256], strides = [1, 1]} : vector<32x256xf32> to vector<16x256xf32>
    %1564 = vector.extract_strided_slice %1562 {offsets = [16, 0], sizes = [16, 256], strides = [1, 1]} : vector<32x256xf32> to vector<16x256xf32>
    %cst_515 = arith.constant 5.000000e-01 : f32
    %1565 = vector.broadcast %cst_515 : f32 to vector<16x256xf32>
    %1566 = arith.mulf %1565, %1564 : vector<16x256xf32>
    %1567 = math.tanh %1566 : vector<16x256xf32>
    %cst_516 = arith.constant 5.000000e-01 : f32
    %1568 = vector.broadcast %cst_516 : f32 to vector<16x256xf32>
    %1569 = arith.mulf %1568, %1567 : vector<16x256xf32>
    %cst_517 = arith.constant 5.000000e-01 : f32
    %1570 = vector.broadcast %cst_517 : f32 to vector<16x256xf32>
    %1571 = arith.addf %1569, %1570 : vector<16x256xf32>
    %1572 = arith.mulf %1563, %1571 : vector<16x256xf32>
    %1573 = arith.addf %1555, %1572 : vector<16x256xf32>
    %cst_518 = arith.constant 0.707106769 : f32
    %1574 = vector.broadcast %cst_518 : f32 to vector<16x256xf32>
    %1575 = arith.mulf %1573, %1574 : vector<16x256xf32>
    %1576 = vector.extract_strided_slice %6 {offsets = [3, 1, 0, 0], sizes = [1, 1, 32, 16], strides = [1, 1, 1, 1]} : vector<4x2x32x16xf32> to vector<1x1x32x16xf32>
    %1577 = vector.shape_cast %1576 : vector<1x1x32x16xf32> to vector<32x16xf32>
    %1578 = vector.extract_strided_slice %7 {offsets = [3, 1, 0, 0], sizes = [1, 1, 32, 1], strides = [1, 1, 1, 1]} : vector<4x2x32x1xf32> to vector<1x1x32x1xf32>
    %1579 = vector.shape_cast %1578 : vector<1x1x32x1xf32> to vector<32x1xf32>
    %cst_519 = arith.constant dense<0.000000e+00> : vector<32x256xf32>
    %1580 = tpu.matmul %1577, %1575, %cst_519 {dimension_numbers = #tpu.dot_dimension_numbers<[1], [0], [0], [1], [0, 0, 1, 1], [], []>} : vector<32x16xf32>, vector<16x256xf32>, vector<32x256xf32> -> vector<32x256xf32>
    %1581 = vector.broadcast %1579 : vector<32x1xf32> to vector<32x256xf32>
    %1582 = arith.addf %1580, %1581 : vector<32x256xf32>
    %1583 = vector.extract_strided_slice %1582 {offsets = [0, 0], sizes = [16, 256], strides = [1, 1]} : vector<32x256xf32> to vector<16x256xf32>
    %1584 = vector.extract_strided_slice %1582 {offsets = [16, 0], sizes = [16, 256], strides = [1, 1]} : vector<32x256xf32> to vector<16x256xf32>
    %cst_520 = arith.constant 5.000000e-01 : f32
    %1585 = vector.broadcast %cst_520 : f32 to vector<16x256xf32>
    %1586 = arith.mulf %1585, %1584 : vector<16x256xf32>
    %1587 = math.tanh %1586 : vector<16x256xf32>
    %cst_521 = arith.constant 5.000000e-01 : f32
    %1588 = vector.broadcast %cst_521 : f32 to vector<16x256xf32>
    %1589 = arith.mulf %1588, %1587 : vector<16x256xf32>
    %cst_522 = arith.constant 5.000000e-01 : f32
    %1590 = vector.broadcast %cst_522 : f32 to vector<16x256xf32>
    %1591 = arith.addf %1589, %1590 : vector<16x256xf32>
    %1592 = arith.mulf %1583, %1591 : vector<16x256xf32>
    %1593 = arith.addf %1575, %1592 : vector<16x256xf32>
    %cst_523 = arith.constant 0.707106769 : f32
    %1594 = vector.broadcast %cst_523 : f32 to vector<16x256xf32>
    %1595 = arith.mulf %1593, %1594 : vector<16x256xf32>
    %1596 = vector.extract_strided_slice %1595 {offsets = [0, 0], sizes = [8, 256], strides = [1, 1]} : vector<16x256xf32> to vector<8x256xf32>
    %cst_524 = arith.constant 0.000000e+00 : f32
    %1597 = vector.broadcast %cst_524 : f32 to vector<8x256xf32>
    %1598 = arith.maximumf %1596, %1597 : vector<8x256xf32>
    %1599 = arith.addf %1100, %1598 : vector<8x256xf32>
    %cst_525 = arith.constant dense<0.000000e+00> : vector<1x256xf32>
    %1600 = tpu.matmul %10, %1599, %cst_525 {dimension_numbers = #tpu.dot_dimension_numbers<[1], [0], [0], [1], [0, 0, 1, 1], [], []>} : vector<1x8xf32>, vector<8x256xf32>, vector<1x256xf32> -> vector<1x256xf32>
    %1601 = vector.extract_strided_slice %1600 {offsets = [0, 0], sizes = [1, 128], strides = [1, 1]} : vector<1x256xf32> to vector<1x128xf32>
    %cst_526 = arith.constant 5.000000e-01 : f32
    %1602 = vector.broadcast %cst_526 : f32 to vector<1x128xf32>
    %1603 = arith.mulf %1602, %1601 : vector<1x128xf32>
    %1604 = math.tanh %1603 : vector<1x128xf32>
    %cst_527 = arith.constant 5.000000e-01 : f32
    %1605 = vector.broadcast %cst_527 : f32 to vector<1x128xf32>
    %1606 = arith.mulf %1605, %1604 : vector<1x128xf32>
    %cst_528 = arith.constant 5.000000e-01 : f32
    %1607 = vector.broadcast %cst_528 : f32 to vector<1x128xf32>
    %1608 = arith.addf %1606, %1607 : vector<1x128xf32>
    %1609 = vector.extract_strided_slice %1600 {offsets = [0, 128], sizes = [1, 128], strides = [1, 1]} : vector<1x256xf32> to vector<1x128xf32>
    %cst_529 = arith.constant 5.000000e-01 : f32
    %1610 = vector.broadcast %cst_529 : f32 to vector<1x128xf32>
    %1611 = arith.mulf %1610, %1609 : vector<1x128xf32>
    %1612 = math.tanh %1611 : vector<1x128xf32>
    %cst_530 = arith.constant 5.000000e-01 : f32
    %1613 = vector.broadcast %cst_530 : f32 to vector<1x128xf32>
    %1614 = arith.mulf %1613, %1612 : vector<1x128xf32>
    %cst_531 = arith.constant 5.000000e-01 : f32
    %1615 = vector.broadcast %cst_531 : f32 to vector<1x128xf32>
    %1616 = arith.addf %1614, %1615 : vector<1x128xf32>
    %1617 = arith.mulf %1608, %1616 : vector<1x128xf32>
    %c0_532 = arith.constant 0 : index
    %c0_533 = arith.constant 0 : index
    %1618 = vector.load %arg12[%c0_532, %c0_533] : memref<1x128xf32, #tpu.memory_space<vmem>>, vector<1x128xf32>
    tpu.vector_store %arg12[%c0_532, %c0_533], %1617 {strides = array<i32>} : memref<1x128xf32, #tpu.memory_space<vmem>>, vector<1x128xf32>,
    %c0_534 = arith.constant 0 : index
    %c0_535 = arith.constant 0 : index
    %1619 = vector.load %arg13[%c0_534, %c0_535] : memref<1x256xf32, #tpu.memory_space<vmem>>, vector<1x256xf32>
    tpu.vector_store %arg13[%c0_534, %c0_535], %1517 {strides = array<i32>} : memref<1x256xf32, #tpu.memory_space<vmem>>, vector<1x256xf32>,
    return
  }
  func.func @transform_0(%arg0: i32) -> (i32, i32) {
    %c0_i32 = arith.constant 0 : i32
    %c0_i32_0 = arith.constant 0 : i32
    return %c0_i32, %arg0 : i32, i32
  }
  func.func @transform_1(%arg0: i32) -> (i32, i32) {
    %c0_i32 = arith.constant 0 : i32
    %c0_i32_0 = arith.constant 0 : i32
    %c0_i32_1 = arith.constant 0 : i32
    return %c0_i32, %c0_i32_0 : i32, i32
  }
  func.func @transform_2(%arg0: i32) -> (i32, i32, i32) {
    %c0_i32 = arith.constant 0 : i32
    %c0_i32_0 = arith.constant 0 : i32
    %c0_i32_1 = arith.constant 0 : i32
    %c0_i32_2 = arith.constant 0 : i32
    return %c0_i32, %c0_i32_0, %c0_i32_1 : i32, i32, i32
  }
  func.func @transform_3(%arg0: i32) -> (i32, i32, i32) {
    %c0_i32 = arith.constant 0 : i32
    %c0_i32_0 = arith.constant 0 : i32
    %c0_i32_1 = arith.constant 0 : i32
    %c0_i32_2 = arith.constant 0 : i32
    return %c0_i32, %c0_i32_0, %c0_i32_1 : i32, i32, i32
  }
  func.func @transform_4(%arg0: i32) -> (i32, i32, i32) {
    %c0_i32 = arith.constant 0 : i32
    %c0_i32_0 = arith.constant 0 : i32
    %c0_i32_1 = arith.constant 0 : i32
    %c0_i32_2 = arith.constant 0 : i32
    return %c0_i32, %c0_i32_0, %c0_i32_1 : i32, i32, i32
  }
  func.func @transform_5(%arg0: i32) -> (i32, i32, i32) {
    %c0_i32 = arith.constant 0 : i32
    %c0_i32_0 = arith.constant 0 : i32
    %c0_i32_1 = arith.constant 0 : i32
    %c0_i32_2 = arith.constant 0 : i32
    return %c0_i32, %c0_i32_0, %c0_i32_1 : i32, i32, i32
  }
  func.func @transform_6(%arg0: i32) -> (i32, i32, i32, i32) {
    %c0_i32 = arith.constant 0 : i32
    %c0_i32_0 = arith.constant 0 : i32
    %c0_i32_1 = arith.constant 0 : i32
    %c0_i32_2 = arith.constant 0 : i32
    %c0_i32_3 = arith.constant 0 : i32
    return %c0_i32, %c0_i32_0, %c0_i32_1, %c0_i32_2 : i32, i32, i32, i32
  }
  func.func @transform_7(%arg0: i32) -> (i32, i32, i32, i32) {
    %c0_i32 = arith.constant 0 : i32
    %c0_i32_0 = arith.constant 0 : i32
    %c0_i32_1 = arith.constant 0 : i32
    %c0_i32_2 = arith.constant 0 : i32
    %c0_i32_3 = arith.constant 0 : i32
    return %c0_i32, %c0_i32_0, %c0_i32_1, %c0_i32_2 : i32, i32, i32, i32
  }
  func.func @transform_8(%arg0: i32) -> (i32, i32, i32) {
    %c0_i32 = arith.constant 0 : i32
    %c0_i32_0 = arith.constant 0 : i32
    %c0_i32_1 = arith.constant 0 : i32
    %c0_i32_2 = arith.constant 0 : i32
    return %c0_i32, %c0_i32_0, %c0_i32_1 : i32, i32, i32
  }
  func.func @transform_9(%arg0: i32) -> (i32, i32, i32) {
    %c0_i32 = arith.constant 0 : i32
    %c0_i32_0 = arith.constant 0 : i32
    %c0_i32_1 = arith.constant 0 : i32
    %c0_i32_2 = arith.constant 0 : i32
    return %c0_i32, %c0_i32_0, %c0_i32_1 : i32, i32, i32
  }
  func.func @transform_10(%arg0: i32) -> (i32, i32) {
    %c0_i32 = arith.constant 0 : i32
    %c0_i32_0 = arith.constant 0 : i32
    %c0_i32_1 = arith.constant 0 : i32
    return %c0_i32, %c0_i32_0 : i32, i32
  }
  func.func @transform_11(%arg0: i32) -> (i32, i32) {
    %c0_i32 = arith.constant 0 : i32
    %c0_i32_0 = arith.constant 0 : i32
    return %c0_i32, %arg0 : i32, i32
  }
  func.func @transform_12(%arg0: i32) -> (i32, i32) {
    %c0_i32 = arith.constant 0 : i32
    %c0_i32_0 = arith.constant 0 : i32
    return %c0_i32, %arg0 : i32, i32
  }
}

</mosaic_0001>

<bundles_post_ra>
// kernel: _forward.1
= control target key start
LH: loop header
LB: loop body
LE: loop exit
PB: predicated region body
PF: predicated region fallthrough
CT: control target
= control target key end

     0   :  { %v6249_v0 = vmov 1   ;;  %v6250_v1 = vmov 0   ;;  %v7614_v8 = vmov 0.0   ;;  %vm233_vm0 = vcmask 130048   ;;  %s7601_s1 = inlined_call_operand.vmem [shape: f32[16,2], index: 1, kind: input, shape index: {}]   ;;  %s7602_s3 = inlined_call_operand.vmem [shape: f32[4,32,1], index: 3, kind: input, shape index: {}]   ;;  %s7603_s5 = inlined_call_operand.vmem [shape: f32[4,32,1], index: 5, kind: input, shape index: {}]   ;;  %s7604_s7 = inlined_call_operand.vmem [shape: f32[4,2,32,1], index: 7, kind: input, shape index: {}]   ;;  %s7605_s9 = inlined_call_operand.vmem [shape: f32[3,16,1], index: 9, kind: input, shape index: {}]   ;;  %s7606_s0 = inlined_call_operand.vmem [shape: f32[16,256], index: 0, kind: input, shape index: {}]   ;;  %s7607_s2 = inlined_call_operand.vmem [shape: f32[4,32,16], index: 2, kind: input, shape index: {}]   ;;  %s7608_s4 = inlined_call_operand.vmem [shape: f32[4,32,16], index: 4, kind: input, shape index: {}]   ;;  %s7609_s6 = inlined_call_operand.vmem [shape: f32[4,2,32,16], index: 6, kind: input, shape index: {}]   ;;  %s7610_s8 = inlined_call_operand.vmem [shape: f32[3,16,8], index: 8, kind: input, shape index: {}]   ;;  %s7611_s12 = inlined_call_operand.vmem [shape: f32[1,256], index: 12, kind: output, shape index: {1}]   ;;  %s7612_s10 = inlined_call_operand.vmem [shape: f32[1,8], index: 10, kind: input, shape index: {}]   ;;  %s7613_s11 = inlined_call_operand.vmem [shape: f32[1,128], index: 11, kind: output, shape index: {0}]  }
   0x1   :  { %6099 = vset.pattern.permute.xlu1 %v6249_v0  ;;  %6098 = vset.pattern.permute.xlu0 %v6250_v1  ;;  %v44_v2 = vld [vmem:[%s7601_s1] sm:$0xff]  ;;  %v45_v3 = vld [vmem:[%s7601_s1 + $0x8] sm:$0xff]  ;;  %v64_v4 = vld [vmem:[%s7602_s3 + $0x10] sm:$0xff]  ;;  %vm792_vm1 = vcmask 64512  }
   0x2   :  { %202 = vperm.xlu1 %6099, %v44_v2   ;;  %189 = vperm.xlu0 %6098, %v44_v2   ;;  %v65_v5 = vld [vmem:[%s7602_s3 + $0x18] sm:$0xff]  ;;  %v62_v6 = vld [vmem:[%s7602_s3] sm:$0xff]  ;;  %v63_v7 = vld [vmem:[%s7602_s3 + $0x8] sm:$0xff] }
   0x3   :  { %310 = vmatprep.mubr.f32.mxu0 %v7614_v8  ;;  %v96_v9 = vld [vmem:[%s7603_s5 + $0x10] sm:$0xff]  ;;  %451 = vmatprep.mubr.f32.mxu1 %v7614_v8  ;;  %v97_v10 = vld [vmem:[%s7603_s5 + $0x18] sm:$0xff]  ;;  %v94_v11 = vld [vmem:[%s7603_s5] sm:$0xff] }
   0x4   :  { %v95_v12 = vld [vmem:[%s7603_s5 + $0x8] sm:$0xff]  ;;  %v144_v13 = vld [vmem:[%s7604_s7 + $0x10] sm:$0xff]  ;;  %v145_v14 = vld [vmem:[%s7604_s7 + $0x18] sm:$0xff] }
   0x5   :  { %v142_v15 = vld [vmem:[%s7604_s7] sm:$0xff]  ;;  %v143_v16 = vld [vmem:[%s7604_s7 + $0x8] sm:$0xff]  ;;  %v149_v17 = vld [vmem:[%s7604_s7 + $0x38] sm:$0xff] }
   0x6   :  { %206 = vperm.xlu1 %6099, %v45_v3   ;;  %194 = vperm.xlu0 %6098, %v45_v3   ;;  %v147_v18 = vld [vmem:[%s7604_s7 + $0x28] sm:$0xff]  ;;  %v180_v19 = vld [vmem:[%s7605_s9] sm:$0xff]  ;;  %v68_v21 = vld [vmem:[%s7602_s3 + $0x30] sm:$0xff] }
   0x7   :  { %v181_v20 = vld [vmem:[%s7605_s9 + $0x8] sm:$0xff]  ;;  %v69_v22 = vld [vmem:[%s7602_s3 + $0x38] sm:$0xff]  ;;  %v66_v23 = vld [vmem:[%s7602_s3 + $0x20] sm:$0xff] }
   0x8   :  { %v67_v24 = vld [vmem:[%s7602_s3 + $0x28] sm:$0xff]  ;;  %v100_v25 = vld [vmem:[%s7603_s5 + $0x30] sm:$0xff]  ;;  %v101_v26 = vld [vmem:[%s7603_s5 + $0x38] sm:$0xff] }
   0x9   :  { %v98_v27 = vld [vmem:[%s7603_s5 + $0x20] sm:$0xff]  ;;  %v99_v28 = vld [vmem:[%s7603_s5 + $0x28] sm:$0xff]  ;;  %v152_v29 = vld [vmem:[%s7604_s7 + $0x50] sm:$0xff] }
   0xa   :  { %225 = vperm.xlu0 %6098, %v64_v4   ;;  %6100 = vset.pattern.permute.xlu1 %v6250_v1  ;;  %v153_v30 = vld [vmem:[%s7604_s7 + $0x58] sm:$0xff]  ;;  %v150_v31 = vld [vmem:[%s7604_s7 + $0x40] sm:$0xff]  ;;  %v151_v32 = vld [vmem:[%s7604_s7 + $0x48] sm:$0xff] }
   0xb   :  { %230 = vperm.xlu1 %6100, %v65_v5   ;;  %v157_v33 = vld [vmem:[%s7604_s7 + $0x78] sm:$0xff]  ;;  %v155_v34 = vld [vmem:[%s7604_s7 + $0x68] sm:$0xff]  ;;  %v182_v35 = vld [vmem:[%s7605_s9 + $0x10] sm:$0xff] }
   0xc   :  { %v183_v36 = vld [vmem:[%s7605_s9 + $0x18] sm:$0xff]  ;;  %v72_v37 = vld [vmem:[%s7602_s3 + $0x50] sm:$0xff]  ;;  %v70_v39 = vld [vmem:[%s7602_s3 + $0x40] sm:$0xff] }
   0xd   :  { %v73_v38 = vld [vmem:[%s7602_s3 + $0x58] sm:$0xff]  ;;  %v71_v40 = vld [vmem:[%s7602_s3 + $0x48] sm:$0xff]  ;;  %v104_v41 = vld [vmem:[%s7603_s5 + $0x50] sm:$0xff] }
   0xe   :  { %215 = vperm.xlu0 %6098, %v62_v6   ;;  %v105_v42 = vld [vmem:[%s7603_s5 + $0x58] sm:$0xff]  ;;  %v102_v43 = vld [vmem:[%s7603_s5 + $0x40] sm:$0xff]  ;;  %v103_v44 = vld [vmem:[%s7603_s5 + $0x48] sm:$0xff] }
   0xf   :  { %220 = vperm.xlu1 %6100, %v63_v7   ;;  %v160_v45 = vld [vmem:[%s7604_s7 + $0x90] sm:$0xff]  ;;  %v161_v46 = vld [vmem:[%s7604_s7 + $0x98] sm:$0xff]  ;;  %v158_v47 = vld [vmem:[%s7604_s7 + $0x80] sm:$0xff] }
  0x10   :  { %v159_v48 = vld [vmem:[%s7604_s7 + $0x88] sm:$0xff]  ;;  %v165_v49 = vld [vmem:[%s7604_s7 + $0xb8] sm:$0xff]  ;;  %v184_v51 = vld [vmem:[%s7605_s9 + $0x20] sm:$0xff] }
  0x11   :  { %v163_v50 = vld [vmem:[%s7604_s7 + $0xa8] sm:$0xff]  ;;  %v76_v53 = vld [vmem:[%s7602_s3 + $0x70] sm:$0xff]  ;;  %v77_v54 = vld [vmem:[%s7602_s3 + $0x78] sm:$0xff] }
  0x12   :  { %367 = vperm.xlu0 %6098, %v96_v9   ;;  %v185_v52 = vld [vmem:[%s7605_s9 + $0x28] sm:$0xff]  ;;  %v74_v55 = vld [vmem:[%s7602_s3 + $0x60] sm:$0xff]  ;;  %v108_v57 = vld [vmem:[%s7603_s5 + $0x70] sm:$0xff] }
  0x13   :  { %372 = vperm.xlu1 %6100, %v97_v10   ;;  %v75_v56 = vld [vmem:[%s7602_s3 + $0x68] sm:$0xff]  ;;  %v109_v58 = vld [vmem:[%s7603_s5 + $0x78] sm:$0xff]  ;;  %v106_v59 = vld [vmem:[%s7603_s5 + $0x60] sm:$0xff] }
  0x14   :  { %v107_v60 = vld [vmem:[%s7603_s5 + $0x68] sm:$0xff]  ;;  %v168_v61 = vld [vmem:[%s7604_s7 + $0xd0] sm:$0xff]  ;;  %v169_v62 = vld [vmem:[%s7604_s7 + $0xd8] sm:$0xff] }
  0x15   :  { %v166_v63 = vld [vmem:[%s7604_s7 + $0xc0] sm:$0xff]  ;;  %v167_v0 = vld [vmem:[%s7604_s7 + $0xc8] sm:$0xff]  ;;  %v156_v1 = vld [vmem:[%s7604_s7 + $0x70] sm:$0xff] }
  0x16   :  { %357 = vperm.xlu0 %6098, %v94_v11   ;;  %v164_v2 = vld [vmem:[%s7604_s7 + $0xb0] sm:$0xff]  ;;  %v40_v5 = vld [vmem:[%s7606_s0] sm:$0xff]  ;;  %v41_v6 = vld [vmem:[%s7606_s0 + $0x8] sm:$0xff] }
  0x17   :  { %362 = vperm.xlu1 %6100, %v95_v12   ;;  %v42_v7 = vld [vmem:[%s7606_s0 + $0x10] sm:$0xff]  ;;  %v43_v9 = vld [vmem:[%s7606_s0 + $0x18] sm:$0xff] }
  0x18   :  { %v172_v10 = vld [vmem:[%s7604_s7 + $0xf0] sm:$0xff] }
  0x1a   :  { %516 = vperm.xlu0 %6098, %v144_v13   ;;  %v154_v13 = vld [vmem:[%s7604_s7 + $0x60] sm:$0xff] }
  0x1b   :  { %521 = vperm.xlu1 %6100, %v145_v14  }
  0x1e   :  { %506 = vperm.xlu0 %6098, %v142_v15  }
  0x1f   :  { %511 = vperm.xlu1 %6100, %v143_v16  }
  0x22   :  { %668 = vperm.xlu0 %6098, %v149_v17  }
  0x23   :  { %659 = vperm.xlu1 %6100, %v147_v18   ;;  %v162_v18 = vld [vmem:[%s7604_s7 + $0xa0] sm:$0xff] }
  0x26   :  { %784 = vperm.xlu0 %6098, %v180_v19  }
  0x27   :  { %789 = vperm.xlu1 %6100, %v181_v20  }
  0x2a   :  { %1840 = vperm.xlu0 %6098, %v68_v21  }
  0x2b   :  { %1845 = vperm.xlu1 %6100, %v69_v22  }
  0x2e   :  { %1830 = vperm.xlu0 %6098, %v66_v23   ;;  %v170_v23 = vld [vmem:[%s7604_s7 + $0xe0] sm:$0xff] }
  0x2f   :  { %1835 = vperm.xlu1 %6100, %v67_v24  }
  0x32   :  { %1981 = vperm.xlu0 %6098, %v100_v25  }
  0x33   :  { %1986 = vperm.xlu1 %6100, %v101_v26   ;;  %v46_v26 = vld [vmem:[%s7607_s2] sm:$0xff] }
  0x36   :  { %1971 = vperm.xlu0 %6098, %v98_v27   ;;  %v47_v27 = vld [vmem:[%s7607_s2 + $0x8] sm:$0xff] }
  0x37   :  { %1976 = vperm.xlu1 %6100, %v99_v28   ;;  %v48_v28 = vld [vmem:[%s7607_s2 + $0x10] sm:$0xff] }
  0x3a   :  { %2130 = vperm.xlu0 %6098, %v152_v29   ;;  %v49_v29 = vld [vmem:[%s7607_s2 + $0x18] sm:$0xff] }
  0x3b   :  { %2135 = vperm.xlu1 %6100, %v153_v30  }
  0x3e   :  { %2120 = vperm.xlu0 %6098, %v150_v31  }
  0x3f   :  { %2125 = vperm.xlu1 %6100, %v151_v32  }
  0x42   :  { %2284 = vperm.xlu0 %6098, %v157_v33  }
  0x43   :  { %2274 = vperm.xlu1 %6100, %v155_v34  }
  0x46   :  { %2422 = vperm.xlu0 %6098, %v182_v35  }
  0x47   :  { %2427 = vperm.xlu1 %6100, %v183_v36  }
  0x4a   :  { %3485 = vperm.xlu0 %6098, %v72_v37  }
  0x4b   :  { %3490 = vperm.xlu1 %6100, %v73_v38  }
  0x4e   :  { %3475 = vperm.xlu0 %6098, %v70_v39  }
  0x4f   :  { %3480 = vperm.xlu1 %6100, %v71_v40  }
  0x52   :  { %3626 = vperm.xlu0 %6098, %v104_v41  }
  0x53   :  { %3631 = vperm.xlu1 %6100, %v105_v42  }
  0x56   :  { %3616 = vperm.xlu0 %6098, %v102_v43  }
  0x57   :  { %3621 = vperm.xlu1 %6100, %v103_v44  }
  0x5a   :  { %3775 = vperm.xlu0 %6098, %v160_v45  }
  0x5b   :  { %3780 = vperm.xlu1 %6100, %v161_v46  }
  0x5e   :  { %3765 = vperm.xlu0 %6098, %v158_v47  }
  0x5f   :  { %3770 = vperm.xlu1 %6100, %v159_v48  }
  0x62   :  { %3929 = vperm.xlu0 %6098, %v165_v49  }
  0x63   :  { %3919 = vperm.xlu1 %6100, %v163_v50  }
  0x66   :  { %4067 = vperm.xlu0 %6098, %v184_v51  }
  0x67   :  { %4072 = vperm.xlu1 %6100, %v185_v52  }
  0x6a   :  { %5122 = vperm.xlu0 %6098, %v76_v53  }
  0x6b   :  { %5127 = vperm.xlu1 %6100, %v77_v54  }
  0x6e   :  { %5112 = vperm.xlu0 %6098, %v74_v55  }
  0x6f   :  { %5117 = vperm.xlu1 %6100, %v75_v56  }
  0x72   :  { %5263 = vperm.xlu0 %6098, %v108_v57  }
  0x73   :  { %5268 = vperm.xlu1 %6100, %v109_v58  }
  0x76   :  { %5253 = vperm.xlu0 %6098, %v106_v59  }
  0x77   :  { %5258 = vperm.xlu1 %6100, %v107_v60  }
  0x7a   :  { %5412 = vperm.xlu0 %6098, %v168_v61  }
  0x7b   :  { %5417 = vperm.xlu1 %6100, %v169_v62  }
  0x7e   :  { %5402 = vperm.xlu0 %6098, %v166_v63  }
  0x7f   :  { %5407 = vperm.xlu1 %6100, %v167_v0  }
  0x81   :  { %v203_v3 = vpop.permute.xlu1 %202  ;;  %v190_v4 = vpop.permute.xlu0 %189 }
  0x82   :  { %2279 = vperm.xlu0 %6098, %v156_v1   ;;  %v197_v11 = vmul.f32 %v190_v4, %v40_v5  ;;  %v198_v12 = vmul.f32 %v190_v4, %v41_v6 }
  0x83   :  { %3924 = vperm.xlu1 %6100, %v164_v2  }
  0x84   :  { %v6533_v19 = vadd.f32 %v203_v3, %v197_v11  ;;  %v6535_v20 = vadd.f32 %v203_v3, %v198_v12  ;;  %v80_v11 = vld [vmem:[%s7608_s4 + $0x10] sm:$0xff]  ;;  %v81_v12 = vld [vmem:[%s7608_s4 + $0x18] sm:$0xff] }
  0x85   :  { %v195_v14 = vpop.permute.xlu0 %194  ;;  %v207_v17 = vpop.permute.xlu1 %206 }
  0x86   :  { %v199_v15 = vmul.f32 %v195_v14, %v42_v7  ;;  %v200_v16 = vmul.f32 %v195_v14, %v43_v9  ;;  %5560 = vperm.xlu0 %6098, %v172_v10   ;;  %v78_v9 = vld [vmem:[%s7608_s4] sm:$0xff]  ;;  %v79_v10 = vld [vmem:[%s7608_s4 + $0x8] sm:$0xff] }
  0x87   :  { %2269 = vperm.xlu1 %6100, %v154_v13  }
  0x88   :  { %v6537_v21 = vadd.f32 %v207_v17, %v199_v15  ;;  %v6539_v22 = vadd.f32 %v207_v17, %v200_v16 }
  0x89   :  { %v226_v34 = vpop.permute.xlu0 %225 }
  0x8a   :  { %3914 = vperm.xlu0 %6098, %v162_v18   ;;  %v6030_v24 = vpack.c.bf16 %v6539_v22, %v6535_v20  ;;  %v6032_v25 = vpack.c.bf16 %v6537_v21, %v6533_v19  ;;  %v231_v40 = vpop.permute.xlu1 %230 }
  0x8b   :  { %5551 = vperm.xlu1 %6100, %v170_v23  }
  0x8c   :  { %6031 = vmatprep.subr.bf16.mxu0 %v6030_v24 }
  0x8d   :  { %6033 = vmatpush1.bf16.msra.mxu0 %v6032_v25  ;;  %v216_v51 = vpop.permute.xlu0 %215 }
  0x8e   :  { %v221_v61 = vpop.permute.xlu1 %220 }
  0x90   :  { %5797 = vmatmul.mubr.msk.f32.vlgmr.msra.gmra.mrb[0].mxu0 %vm233_vm0, %v46_v26 }
  0x91   :  { %316 = vmatprep.mubr.f32.mxu0 %v7614_v8  ;;  %v368_v17 = vpop.permute.xlu0 %367 }
  0x94   :  { %5798 = vmatmul.mubr.msk.f32.gmra.mrb[2].mxu0 %vm233_vm0, %v47_v27  ;;  %v373_v27 = vpop.permute.xlu1 %372 }
  0x95   :  { %322 = vmatprep.mubr.f32.mxu0 %v7614_v8 }
  0x98   :  { %5799 = vmatmul.mubr.msk.f32.gmra.mrb[4].mxu0 %vm233_vm0, %v48_v28 }
  0x99   :  { %328 = vmatprep.mubr.f32.mxu0 %v7614_v8 }
  0x9c   :  { %5800 = vmatmul.mubr.msk.f32.gmra.mrb[6].mxu0 %vm233_vm0, %v49_v29 }
  0x9d   :  { %600 = vmatprep.mubr.f32.mxu0 %v7614_v8 }
 0x163   :  { %v312_v30 = vpop.f32.mrb[0].mxu0 }
 0x164   :  { %v314_v31 = vpop.f32.mrb[1].mxu0  ;;  %v313_v53 = vadd.f32 %v312_v30, %v216_v51 }
 0x165   :  { %v315_v56 = vadd.f32 %v314_v31, %v216_v51 }
 0x167   :  { %v318_v32 = vpop.f32.mrb[2].mxu0 }
 0x168   :  { %v320_v33 = vpop.f32.mrb[3].mxu0  ;;  %v319_v0 = vadd.f32 %v318_v32, %v221_v61 }
 0x169   :  { %v321_v2 = vadd.f32 %v320_v33, %v221_v61 }
 0x16b   :  { %v324_v35 = vpop.f32.mrb[4].mxu0 }
 0x16c   :  { %v325_v36 = vadd.f32 %v324_v35, %v226_v34  ;;  %v326_v37 = vpop.f32.mrb[5].mxu0 }
 0x16d   :  { %v327_v38 = vadd.f32 %v326_v37, %v226_v34 }
 0x16e   :  { %v335_v39 = vmul.f32 0.5, %v325_v36 }
 0x16f   :  { %v336_v41 = vmul.f32 0.5, %v327_v38  ;;  %v330_v42 = vpop.f32.mrb[6].mxu0  ;;  %v358_v38 = vpop.permute.xlu0 %357 }
 0x170   :  { %6101 = vtanh.f32 %v335_v39  ;;  %v331_v43 = vadd.f32 %v330_v42, %v231_v40  ;;  %v332_v44 = vpop.f32.mrb[7].mxu0 }
 0x171   :  { %6103 = vtanh.f32 %v336_v41  ;;  %v333_v45 = vadd.f32 %v332_v44, %v231_v40 }
 0x172   :  { %v337_v46 = vmul.f32 0.5, %v331_v43 }
 0x173   :  { %v338_v47 = vmul.f32 0.5, %v333_v45 }
 0x174   :  { %6105 = vtanh.f32 %v337_v46 }
 0x175   :  { %6107 = vtanh.f32 %v338_v47 }
 0x17a   :  { %v6102_v48 = vpop.eup %6101 }
 0x17b   :  { %v6104_v49 = vpop.eup %6103  ;;  %v343_v50 = vmul.f32 0.5, %v6102_v48  ;;  %v363_v48 = vpop.permute.xlu1 %362 }
 0x17c   :  { %v344_v52 = vmul.f32 0.5, %v6104_v49 }
 0x17d   :  { %v347_v54 = vadd.f32 0.5, %v343_v50 }
 0x17e   :  { %v6106_v55 = vpop.eup %6105  ;;  %v348_v57 = vadd.f32 0.5, %v344_v52 }
 0x17f   :  { %v6108_v58 = vpop.eup %6107  ;;  %v345_v59 = vmul.f32 0.5, %v6106_v55  ;;  %v6568_v60 = vmul.f32 %v347_v54, %v313_v53 }
 0x180   :  { %v346_v62 = vmul.f32 0.5, %v6108_v58  ;;  %v6570_v63 = vmul.f32 %v348_v57, %v315_v56 }
 0x181   :  { %v349_v1 = vadd.f32 0.5, %v345_v59 }
 0x182   :  { %v350_v3 = vadd.f32 0.5, %v346_v62 }
 0x183   :  { %v6572_v4 = vmul.f32 %v349_v1, %v319_v0 }
 0x184   :  { %v6574_v5 = vmul.f32 %v350_v3, %v321_v2 }
 0x185   :  { %v6036_v7 = vpack.c.bf16 %v6572_v4, %v6568_v60 }
 0x186   :  { %v6034_v6 = vpack.c.bf16 %v6574_v5, %v6570_v63 }
 0x188   :  { %6035 = vmatprep.subr.bf16.mxu1 %v6034_v6  ;;  %v113_v6 = vld [vmem:[%s7609_s6 + $0x18] sm:$0xff] }
 0x189   :  { %6037 = vmatpush1.bf16.msra.mxu1 %v6036_v7 }
 0x18c   :  { %5801 = vmatmul.mubr.msk.f32.vlgmr.msra.gmra.mrb[0].mxu1 %vm233_vm0, %v78_v9 }
 0x18d   :  { %457 = vmatprep.mubr.f32.mxu1 %v7614_v8 }
 0x190   :  { %5802 = vmatmul.mubr.msk.f32.gmra.mrb[2].mxu1 %vm233_vm0, %v79_v10 }
 0x191   :  { %463 = vmatprep.mubr.f32.mxu1 %v7614_v8 }
 0x194   :  { %5803 = vmatmul.mubr.msk.f32.gmra.mrb[4].mxu1 %vm233_vm0, %v80_v11 }
 0x195   :  { %469 = vmatprep.mubr.f32.mxu1 %v7614_v8 }
 0x198   :  { %5804 = vmatmul.mubr.msk.f32.gmra.mrb[6].mxu1 %vm233_vm0, %v81_v12  ;;  %v517_v12 = vpop.permute.xlu0 %516 }
 0x199   :  { %747 = vmatprep.mubr.f32.mxu1 %v7614_v8 }
 0x25f   :  { %v453_v13 = vpop.f32.mrb[0].mxu1 }
 0x260   :  { %v455_v14 = vpop.f32.mrb[1].mxu1  ;;  %v454_v40 = vadd.f32 %v453_v13, %v358_v38 }
 0x261   :  { %v456_v43 = vadd.f32 %v455_v14, %v358_v38 }
 0x263   :  { %v459_v15 = vpop.f32.mrb[2].mxu1 }
 0x264   :  { %v461_v16 = vpop.f32.mrb[3].mxu1  ;;  %v460_v51 = vadd.f32 %v459_v15, %v363_v48 }
 0x265   :  { %v462_v53 = vadd.f32 %v461_v16, %v363_v48 }
 0x267   :  { %v465_v18 = vpop.f32.mrb[4].mxu1 }
 0x268   :  { %v466_v23 = vadd.f32 %v465_v18, %v368_v17  ;;  %v467_v24 = vpop.f32.mrb[5].mxu1  ;;  %v522_v18 = vpop.permute.xlu1 %521 }
 0x269   :  { %v468_v25 = vadd.f32 %v467_v24, %v368_v17 }
 0x26a   :  { %v476_v26 = vmul.f32 0.5, %v466_v23 }
 0x26b   :  { %v477_v28 = vmul.f32 0.5, %v468_v25  ;;  %v471_v29 = vpop.f32.mrb[6].mxu1 }
 0x26c   :  { %6109 = vtanh.f32 %v476_v26  ;;  %v472_v30 = vadd.f32 %v471_v29, %v373_v27  ;;  %v473_v31 = vpop.f32.mrb[7].mxu1 }
 0x26d   :  { %6111 = vtanh.f32 %v477_v28  ;;  %v474_v32 = vadd.f32 %v473_v31, %v373_v27 }
 0x26e   :  { %v478_v33 = vmul.f32 0.5, %v472_v30 }
 0x26f   :  { %v479_v34 = vmul.f32 0.5, %v474_v32 }
 0x270   :  { %6113 = vtanh.f32 %v478_v33  ;;  %v507_v33 = vpop.permute.xlu0 %506 }
 0x271   :  { %6115 = vtanh.f32 %v479_v34 }
 0x276   :  { %v6110_v35 = vpop.eup %6109 }
 0x277   :  { %v6112_v36 = vpop.eup %6111  ;;  %v484_v37 = vmul.f32 0.5, %v6110_v35 }
 0x278   :  { %v485_v39 = vmul.f32 0.5, %v6112_v36 }
 0x279   :  { %v488_v41 = vadd.f32 0.5, %v484_v37 }
 0x27a   :  { %v6114_v42 = vpop.eup %6113  ;;  %v489_v44 = vadd.f32 0.5, %v485_v39 }
 0x27b   :  { %v6116_v45 = vpop.eup %6115  ;;  %v492_v46 = vmul.f32 %v488_v41, %v454_v40  ;;  %v486_v47 = vmul.f32 0.5, %v6114_v42 }
 0x27c   :  { %v493_v49 = vmul.f32 %v489_v44, %v456_v43  ;;  %v487_v50 = vmul.f32 0.5, %v6116_v45  ;;  %v512_v43 = vpop.permute.xlu1 %511 }
 0x27d   :  { %v490_v52 = vadd.f32 0.5, %v486_v47  ;;  %v496_v58 = vadd.f32 %v492_v46, %v6568_v60  ;;  %v110_v60 = vld [vmem:[%s7609_s6] sm:$0xff] }
 0x27e   :  { %v491_v54 = vadd.f32 0.5, %v487_v50  ;;  %v497_v57 = vadd.f32 %v493_v49, %v6570_v63 }
 0x27f   :  { %v494_v55 = vmul.f32 %v490_v52, %v460_v51  ;;  %v6610_v2 = vmul.f32 0.70710677, %v496_v58 }
 0x280   :  { %v495_v56 = vmul.f32 %v491_v54, %v462_v53  ;;  %v6606_v0 = vmul.f32 0.70710677, %v497_v57 }
 0x281   :  { %v498_v59 = vadd.f32 %v494_v55, %v6572_v4  ;;  %v111_v4 = vld [vmem:[%s7609_s6 + $0x8] sm:$0xff] }
 0x282   :  { %v499_v61 = vadd.f32 %v495_v56, %v6574_v5  ;;  %v112_v5 = vld [vmem:[%s7609_s6 + $0x10] sm:$0xff] }
 0x283   :  { %v6604_v62 = vmul.f32 0.70710677, %v498_v59 }
 0x284   :  { %v6608_v1 = vmul.f32 0.70710677, %v499_v61 }
 0x285   :  { %v6040_v63 = vpack.c.bf16 %v6604_v62, %v6610_v2 }
 0x286   :  { %v6038_v3 = vpack.c.bf16 %v6608_v1, %v6606_v0 }
 0x288   :  { %6039 = vmatprep.subr.bf16.mxu0 %v6038_v3 }
 0x289   :  { %6041 = vmatpush1.bf16.msra.mxu0 %v6040_v63  ;;  %v114_v63 = vld [vmem:[%s7609_s6 + $0x20] sm:$0xff] }
 0x28c   :  { %5805 = vmatmul.mubr.msk.f32.vlgmr.msra.gmra.mrb[8].mxu0 %vm233_vm0, %v110_v60 }
 0x28d   :  { %606 = vmatprep.mubr.f32.mxu0 %v7614_v8 }
 0x290   :  { %5806 = vmatmul.mubr.msk.f32.gmra.mrb[10].mxu0 %vm233_vm0, %v111_v4 }
 0x291   :  { %612 = vmatprep.mubr.f32.mxu0 %v7614_v8 }
 0x294   :  { %5807 = vmatmul.mubr.msk.f32.gmra.mrb[12].mxu0 %vm233_vm0, %v112_v5 }
 0x295   :  { %618 = vmatprep.mubr.f32.mxu0 %v7614_v8 }
 0x298   :  { %5808 = vmatmul.mubr.msk.f32.gmra.mrb[14].mxu0 %vm233_vm0, %v113_v6 }
 0x299   :  { %863 = vmatprep.mubr.f32.mxu0 %v7614_v8 }
 0x35f   :  { %v602_v7 = vpop.f32.mrb[8].mxu0 }
 0x360   :  { %v604_v9 = vpop.f32.mrb[9].mxu0  ;;  %v603_v35 = vadd.f32 %v602_v7, %v507_v33 }
 0x361   :  { %v605_v38 = vadd.f32 %v604_v9, %v507_v33  ;;  %v669_v9 = vpop.permute.xlu0 %668 }
 0x363   :  { %v608_v10 = vpop.f32.mrb[10].mxu0 }
 0x364   :  { %v610_v11 = vpop.f32.mrb[11].mxu0  ;;  %v609_v46 = vadd.f32 %v608_v10, %v512_v43 }
 0x365   :  { %v611_v48 = vadd.f32 %v610_v11, %v512_v43 }
 0x367   :  { %v614_v13 = vpop.f32.mrb[12].mxu0 }
 0x368   :  { %v615_v14 = vadd.f32 %v614_v13, %v517_v12  ;;  %v616_v15 = vpop.f32.mrb[13].mxu0 }
 0x369   :  { %v617_v16 = vadd.f32 %v616_v15, %v517_v12 }
 0x36a   :  { %v625_v17 = vmul.f32 0.5, %v615_v14 }
 0x36b   :  { %v626_v23 = vmul.f32 0.5, %v617_v16  ;;  %v620_v24 = vpop.f32.mrb[14].mxu0 }
 0x36c   :  { %6117 = vtanh.f32 %v625_v17  ;;  %v621_v25 = vadd.f32 %v620_v24, %v522_v18  ;;  %v622_v26 = vpop.f32.mrb[15].mxu0 }
 0x36d   :  { %6119 = vtanh.f32 %v626_v23  ;;  %v623_v27 = vadd.f32 %v622_v26, %v522_v18  ;;  %v660_v23 = vpop.permute.xlu1 %659 }
 0x36e   :  { %v627_v28 = vmul.f32 0.5, %v621_v25 }
 0x36f   :  { %v628_v29 = vmul.f32 0.5, %v623_v27 }
 0x370   :  { %6121 = vtanh.f32 %v627_v28 }
 0x371   :  { %6123 = vtanh.f32 %v628_v29 }
 0x376   :  { %v6118_v30 = vpop.eup %6117 }
 0x377   :  { %v6120_v31 = vpop.eup %6119  ;;  %v633_v32 = vmul.f32 0.5, %v6118_v30 }
 0x378   :  { %v634_v34 = vmul.f32 0.5, %v6120_v31 }
 0x379   :  { %v637_v36 = vadd.f32 0.5, %v633_v32 }
 0x37a   :  { %v6122_v37 = vpop.eup %6121  ;;  %v638_v39 = vadd.f32 0.5, %v634_v34 }
 0x37b   :  { %v6124_v40 = vpop.eup %6123  ;;  %v641_v41 = vmul.f32 %v637_v36, %v603_v35  ;;  %v635_v42 = vmul.f32 0.5, %v6122_v37  ;;  %v174_v35 = vld [vmem:[%s7610_s8] sm:$0xff]  ;;  %v175_v36 = vld [vmem:[%s7610_s8 + $0x8] sm:$0xff] }
 0x37c   :  { %v642_v44 = vmul.f32 %v638_v39, %v605_v38  ;;  %v636_v45 = vmul.f32 0.5, %v6124_v40  ;;  %v785_v39 = vpop.permute.xlu0 %784  ;;  %v790_v40 = vpop.permute.xlu1 %789 }
 0x37d   :  { %v639_v47 = vadd.f32 0.5, %v635_v42  ;;  %v645_v53 = vadd.f32 %v641_v41, %v6610_v2 }
 0x37e   :  { %v640_v49 = vadd.f32 0.5, %v636_v45  ;;  %v646_v52 = vadd.f32 %v642_v44, %v6606_v0  ;;  %v116_v0 = vld [vmem:[%s7609_s6 + $0x30] sm:$0xff] }
 0x37f   :  { %v643_v50 = vmul.f32 %v639_v47, %v609_v46  ;;  %v649_v59 = vmul.f32 0.70710677, %v645_v53 }
 0x380   :  { %v644_v51 = vmul.f32 %v640_v49, %v611_v48  ;;  %v650_v57 = vmul.f32 0.70710677, %v646_v52 }
 0x381   :  { %v647_v54 = vadd.f32 %v643_v50, %v6604_v62  ;;  %v115_v62 = vld [vmem:[%s7609_s6 + $0x28] sm:$0xff] }
 0x382   :  { %v648_v55 = vadd.f32 %v644_v51, %v6608_v1  ;;  %v117_v1 = vld [vmem:[%s7609_s6 + $0x38] sm:$0xff] }
 0x383   :  { %v651_v56 = vmul.f32 0.70710677, %v647_v54 }
 0x384   :  { %v652_v58 = vmul.f32 0.70710677, %v648_v55 }
 0x385   :  { %v6044_v3 = vpack.c.bf16 %v651_v56, %v649_v59 }
 0x386   :  { %v6042_v61 = vpack.c.bf16 %v652_v58, %v650_v57 }
 0x388   :  { %6043 = vmatprep.subr.bf16.mxu1 %v6042_v61 }
 0x389   :  { %6045 = vmatpush1.bf16.msra.mxu1 %v6044_v3 }
 0x38c   :  { %5809 = vmatmul.mubr.msk.f32.vlgmr.msra.gmra.mrb[8].mxu1 %vm233_vm0, %v114_v63 }
 0x38d   :  { %751 = vmatprep.mubr.f32.mxu1 %v7614_v8 }
 0x390   :  { %5810 = vmatmul.mubr.msk.f32.gmra.mrb[10].mxu1 %vm233_vm0, %v115_v62 }
 0x391   :  { %757 = vmatprep.mubr.f32.mxu1 %v7614_v8 }
 0x394   :  { %5811 = vmatmul.mubr.msk.f32.gmra.mrb[12].mxu1 %vm233_vm0, %v116_v0 }
 0x395   :  { %761 = vmatprep.mubr.f32.mxu1 %v7614_v8 }
 0x398   :  { %5812 = vmatmul.mubr.msk.f32.gmra.mrb[14].mxu1 %vm233_vm0, %v117_v1 }
 0x399   :  { %1924 = vmatprep.mubr.f32.mxu1 %v7614_v8 }
 0x45f   :  { %v749_v2 = vpop.f32.mrb[8].mxu1 }
 0x460   :  { %v750_v60 = vpop.f32.mrb[9].mxu1 }
 0x463   :  { %v753_v4 = vpop.f32.mrb[10].mxu1 }
 0x464   :  { %v755_v5 = vpop.f32.mrb[11].mxu1  ;;  %v754_v25 = vadd.f32 %v753_v4, %v660_v23 }
 0x465   :  { %v756_v27 = vadd.f32 %v755_v5, %v660_v23 }
 0x467   :  { %v759_v6 = vpop.f32.mrb[12].mxu1 }
 0x468   :  { %v760_v7 = vpop.f32.mrb[13].mxu1 }
 0x46b   :  { %v763_v10 = vpop.f32.mrb[14].mxu1 }
 0x46c   :  { %v764_v11 = vadd.f32 %v763_v10, %v669_v9  ;;  %v765_v12 = vpop.f32.mrb[15].mxu1 }
 0x46d   :  { %v766_v13 = vadd.f32 %v765_v12, %v669_v9 }
 0x46e   :  { %v768_v14 = vmul.f32 0.5, %v764_v11 }
 0x46f   :  { %v769_v15 = vmul.f32 0.5, %v766_v13 }
 0x470   :  { %6125 = vtanh.f32 %v768_v14 }
 0x471   :  { %6127 = vtanh.f32 %v769_v15 }
 0x47a   :  { %v6126_v16 = vpop.eup %6125 }
 0x47b   :  { %v6128_v17 = vpop.eup %6127  ;;  %v772_v18 = vmul.f32 0.5, %v6126_v16 }
 0x47c   :  { %v773_v24 = vmul.f32 0.5, %v6128_v17 }
 0x47d   :  { %v774_v26 = vadd.f32 0.5, %v772_v18 }
 0x47e   :  { %v775_v28 = vadd.f32 0.5, %v773_v24 }
 0x47f   :  { %v776_v29 = vmul.f32 %v774_v26, %v754_v25 }
 0x480   :  { %v777_v30 = vmul.f32 %v775_v28, %v756_v27 }
 0x481   :  { %v778_v31 = vadd.f32 %v776_v29, %v651_v56 }
 0x482   :  { %v779_v32 = vadd.f32 %v777_v30, %v652_v58 }
 0x483   :  { %v780_v34 = vmul.f32 0.70710677, %v778_v31 }
 0x484   :  { %v781_v33 = vmul.f32 0.70710677, %v779_v32 }
 0x486   :  { %799 = vmatprep.subr.mxu0 %v781_v33 }
 0x487   :  { %800 = vmatpush1.msra.mxu0 %v780_v34 }
 0x488   :  { %5813 = vmatmul.mubr.msk.f32.vlgmr.msra.gmra.mrb[16].mxu0 %vm792_vm1, %v174_v35 }
 0x489   :  { %869 = vmatprep.mubr.f32.mxu0 %v7614_v8 }
 0x48c   :  { %5814 = vmatmul.mubr.msk.f32.gmra.mrb[18].mxu0 %vm792_vm1, %v175_v36 }
 0x48d   :  { %2065 = vmatprep.mubr.f32.mxu0 %v7614_v8 }
 0x55b   :  { %v865_v37 = vpop.f32.mrb[16].mxu0 }
 0x55c   :  { %v867_v38 = vpop.f32.mrb[17].mxu0  ;;  %v6670_v42 = vadd.f32 %v865_v37, %v785_v39 }
 0x55d   :  { %v6674_v45 = vadd.f32 %v867_v38, %v785_v39 }
 0x55f   :  { %v871_v41 = vpop.f32.mrb[18].mxu0 }
 0x560   :  { %v6672_v43 = vadd.f32 %v871_v41, %v790_v40  ;;  %v873_v44 = vpop.f32.mrb[19].mxu0 }
 0x561   :  { %v6676_v46 = vadd.f32 %v873_v44, %v790_v40 }
 0x562   :  { %v876_v47 = vmax.f32 %v6670_v42, %v6672_v43 }
 0x563   :  { %v883_v48 = vmax.f32 %v6674_v45, %v6676_v46 }
 0x564   :  { %v877_v49 = vrot.slane %v876_v47, 4 }
 0x565   :  { %v884_v50 = vrot.slane %v883_v48, 4 }
 0x566   :  { %v878_v51 = vmax.f32 %v876_v47, %v877_v49 }
 0x567   :  { %v885_v52 = vmax.f32 %v883_v48, %v884_v50 }
 0x568   :  { %v879_v53 = vrot.slane %v878_v51, 2 }
 0x569   :  { %v886_v54 = vrot.slane %v885_v52, 2 }
 0x56a   :  { %v880_v55 = vmax.f32 %v878_v51, %v879_v53 }
 0x56b   :  { %v887_v56 = vmax.f32 %v885_v52, %v886_v54 }
 0x56c   :  { %v881_v57 = vrot.slane %v880_v55, 1 }
 0x56d   :  { %v888_v58 = vrot.slane %v887_v56, 1 }
 0x56e   :  { %v882_v59 = vmax.f32 %v880_v55, %v881_v57 }
 0x56f   :  { %v889_v61 = vmax.f32 %v887_v56, %v888_v58 }
 0x570   :  { %v5815_v3 = vadd.f32 -1.0, %v882_v59 }
 0x571   :  { %v5816_v63 = vadd.f32 -1.0, %v889_v61 }
 0x572   :  { %v892_v62 = vadd.f32 %v5815_v3, %v882_v59 }
 0x573   :  { %v893_v0 = vadd.f32 %v5816_v63, %v889_v61 }
 0x574   :  { %v894_v1 = vmul.f32 0.5, %v892_v62 }
 0x575   :  { %v895_v2 = vmul.f32 0.5, %v893_v0 }
 0x576   :  { %v896_v60 = vsub.f32 %v6670_v42, %v894_v1  ;;  %v898_v4 = vsub.f32 %v6672_v43, %v894_v1 }
 0x577   :  { %v897_v5 = vsub.f32 %v6674_v45, %v895_v2  ;;  %v899_v6 = vsub.f32 %v6676_v46, %v895_v2 }
 0x578   :  { %v900_v7 = vmax.f32 %v896_v60, 0.0  ;;  %v902_v9 = vmax.f32 %v898_v4, 0.0 }
 0x579   :  { %v901_v10 = vmax.f32 %v897_v5, 0.0  ;;  %v903_v11 = vmax.f32 %v899_v6, 0.0 }
 0x57a   :  { %v904_v12 = vadd.f32 %v902_v9, %v900_v7 }
 0x57b   :  { %v911_v13 = vadd.f32 %v903_v11, %v901_v10 }
 0x57c   :  { %v905_v14 = vrot.slane %v904_v12, 4 }
 0x57d   :  { %v912_v15 = vrot.slane %v911_v13, 4 }
 0x57e   :  { %v906_v16 = vadd.f32 %v905_v14, %v904_v12 }
 0x57f   :  { %v913_v17 = vadd.f32 %v912_v15, %v911_v13 }
 0x580   :  { %v907_v18 = vrot.slane %v906_v16, 2 }
 0x581   :  { %v914_v23 = vrot.slane %v913_v17, 2 }
 0x582   :  { %v908_v24 = vadd.f32 %v907_v18, %v906_v16 }
 0x583   :  { %v915_v25 = vadd.f32 %v914_v23, %v913_v17 }
 0x584   :  { %v909_v26 = vrot.slane %v908_v24, 1 }
 0x585   :  { %v916_v27 = vrot.slane %v915_v25, 1 }
 0x586   :  { %v910_v28 = vadd.f32 %v909_v26, %v908_v24 }
 0x587   :  { %v917_v29 = vadd.f32 %v916_v27, %v915_v25 }
 0x588   :  { %v5817_v30 = vadd.f32 -1.0, %v910_v28 }
 0x589   :  { %v5818_v31 = vadd.f32 -1.0, %v917_v29 }
 0x58a   :  { %vm920_vm2 = vcmp.gt.f32.partialorder %v5817_v30, 0.0 }
 0x58b   :  { %vm921_vm3 = vcmp.gt.f32.partialorder %v5818_v31, 0.0  ;;  %v922_v32 = vsel %vm920_vm2, %v894_v1, %v5815_v3  ;;  %v924_v33 = vsel %vm920_vm2, %v882_v59, %v894_v1 }
 0x58c   :  { %v923_v34 = vsel %vm921_vm3, %v895_v2, %v5816_v63  ;;  %v925_v35 = vsel %vm921_vm3, %v889_v61, %v895_v2  ;;  %v926_v36 = vadd.f32 %v924_v33, %v922_v32 }
 0x58d   :  { %v927_v37 = vadd.f32 %v925_v35, %v923_v34 }
 0x58e   :  { %v928_v38 = vmul.f32 0.5, %v926_v36 }
 0x58f   :  { %v929_v39 = vmul.f32 0.5, %v927_v37 }
 0x590   :  { %v930_v40 = vsub.f32 %v6670_v42, %v928_v38  ;;  %v932_v41 = vsub.f32 %v6672_v43, %v928_v38 }
 0x591   :  { %v931_v44 = vsub.f32 %v6674_v45, %v929_v39  ;;  %v933_v47 = vsub.f32 %v6676_v46, %v929_v39 }
 0x592   :  { %v934_v48 = vmax.f32 %v930_v40, 0.0  ;;  %v936_v49 = vmax.f32 %v932_v41, 0.0 }
 0x593   :  { %v935_v50 = vmax.f32 %v931_v44, 0.0  ;;  %v937_v51 = vmax.f32 %v933_v47, 0.0 }
 0x594   :  { %v938_v52 = vadd.f32 %v936_v49, %v934_v48 }
 0x595   :  { %v945_v53 = vadd.f32 %v937_v51, %v935_v50 }
 0x596   :  { %v939_v54 = vrot.slane %v938_v52, 4 }
 0x597   :  { %v946_v55 = vrot.slane %v945_v53, 4 }
 0x598   :  { %v940_v56 = vadd.f32 %v939_v54, %v938_v52 }
 0x599   :  { %v947_v57 = vadd.f32 %v946_v55, %v945_v53 }
 0x59a   :  { %v941_v58 = vrot.slane %v940_v56, 2 }
 0x59b   :  { %v948_v59 = vrot.slane %v947_v57, 2 }
 0x59c   :  { %v942_v61 = vadd.f32 %v941_v58, %v940_v56 }
 0x59d   :  { %v949_v3 = vadd.f32 %v948_v59, %v947_v57 }
 0x59e   :  { %v943_v63 = vrot.slane %v942_v61, 1 }
 0x59f   :  { %v950_v62 = vrot.slane %v949_v3, 1 }
 0x5a0   :  { %v944_v0 = vadd.f32 %v943_v63, %v942_v61 }
 0x5a1   :  { %v951_v1 = vadd.f32 %v950_v62, %v949_v3 }
 0x5a2   :  { %v5819_v2 = vadd.f32 -1.0, %v944_v0 }
 0x5a3   :  { %v5820_v60 = vadd.f32 -1.0, %v951_v1 }
 0x5a4   :  { %vm954_vm4 = vcmp.gt.f32.partialorder %v5819_v2, 0.0 }
 0x5a5   :  { %vm955_vm5 = vcmp.gt.f32.partialorder %v5820_v60, 0.0  ;;  %v956_v4 = vsel %vm954_vm4, %v928_v38, %v922_v32  ;;  %v958_v5 = vsel %vm954_vm4, %v924_v33, %v928_v38 }
 0x5a6   :  { %v957_v6 = vsel %vm955_vm5, %v929_v39, %v923_v34  ;;  %v959_v7 = vsel %vm955_vm5, %v925_v35, %v929_v39  ;;  %v960_v9 = vadd.f32 %v958_v5, %v956_v4 }
 0x5a7   :  { %v961_v10 = vadd.f32 %v959_v7, %v957_v6 }
 0x5a8   :  { %v962_v11 = vmul.f32 0.5, %v960_v9 }
 0x5a9   :  { %v963_v12 = vmul.f32 0.5, %v961_v10 }
 0x5aa   :  { %v964_v13 = vsub.f32 %v6670_v42, %v962_v11  ;;  %v966_v14 = vsub.f32 %v6672_v43, %v962_v11 }
 0x5ab   :  { %v965_v15 = vsub.f32 %v6674_v45, %v963_v12  ;;  %v967_v16 = vsub.f32 %v6676_v46, %v963_v12 }
 0x5ac   :  { %v968_v17 = vmax.f32 %v964_v13, 0.0  ;;  %v970_v18 = vmax.f32 %v966_v14, 0.0 }
 0x5ad   :  { %v969_v23 = vmax.f32 %v965_v15, 0.0  ;;  %v971_v24 = vmax.f32 %v967_v16, 0.0 }
 0x5ae   :  { %v972_v25 = vadd.f32 %v970_v18, %v968_v17 }
 0x5af   :  { %v979_v26 = vadd.f32 %v971_v24, %v969_v23 }
 0x5b0   :  { %v973_v27 = vrot.slane %v972_v25, 4 }
 0x5b1   :  { %v980_v28 = vrot.slane %v979_v26, 4 }
 0x5b2   :  { %v974_v29 = vadd.f32 %v973_v27, %v972_v25 }
 0x5b3   :  { %v981_v30 = vadd.f32 %v980_v28, %v979_v26 }
 0x5b4   :  { %v975_v31 = vrot.slane %v974_v29, 2 }
 0x5b5   :  { %v982_v32 = vrot.slane %v981_v30, 2 }
 0x5b6   :  { %v976_v33 = vadd.f32 %v975_v31, %v974_v29 }
 0x5b7   :  { %v983_v34 = vadd.f32 %v982_v32, %v981_v30 }
 0x5b8   :  { %v977_v35 = vrot.slane %v976_v33, 1 }
 0x5b9   :  { %v984_v36 = vrot.slane %v983_v34, 1 }
 0x5ba   :  { %v978_v37 = vadd.f32 %v977_v35, %v976_v33 }
 0x5bb   :  { %v985_v38 = vadd.f32 %v984_v36, %v983_v34 }
 0x5bc   :  { %v5821_v39 = vadd.f32 -1.0, %v978_v37 }
 0x5bd   :  { %v5822_v40 = vadd.f32 -1.0, %v985_v38 }
 0x5be   :  { %vm988_vm6 = vcmp.gt.f32.partialorder %v5821_v39, 0.0 }
 0x5bf   :  { %vm989_vm7 = vcmp.gt.f32.partialorder %v5822_v40, 0.0  ;;  %v990_v41 = vsel %vm988_vm6, %v962_v11, %v956_v4  ;;  %v992_v44 = vsel %vm988_vm6, %v958_v5, %v962_v11 }
 0x5c0   :  { %v991_v47 = vsel %vm989_vm7, %v963_v12, %v957_v6  ;;  %v993_v48 = vsel %vm989_vm7, %v959_v7, %v963_v12  ;;  %v994_v49 = vadd.f32 %v992_v44, %v990_v41 }
 0x5c1   :  { %v995_v50 = vadd.f32 %v993_v48, %v991_v47 }
 0x5c2   :  { %v996_v51 = vmul.f32 0.5, %v994_v49 }
 0x5c3   :  { %v997_v52 = vmul.f32 0.5, %v995_v50 }
 0x5c4   :  { %v998_v53 = vsub.f32 %v6670_v42, %v996_v51  ;;  %v1000_v54 = vsub.f32 %v6672_v43, %v996_v51 }
 0x5c5   :  { %v999_v55 = vsub.f32 %v6674_v45, %v997_v52  ;;  %v1001_v56 = vsub.f32 %v6676_v46, %v997_v52 }
 0x5c6   :  { %v1002_v57 = vmax.f32 %v998_v53, 0.0  ;;  %v1004_v58 = vmax.f32 %v1000_v54, 0.0 }
 0x5c7   :  { %v1003_v59 = vmax.f32 %v999_v55, 0.0  ;;  %v1005_v61 = vmax.f32 %v1001_v56, 0.0 }
 0x5c8   :  { %v1006_v3 = vadd.f32 %v1004_v58, %v1002_v57 }
 0x5c9   :  { %v1013_v63 = vadd.f32 %v1005_v61, %v1003_v59 }
 0x5ca   :  { %v1007_v62 = vrot.slane %v1006_v3, 4 }
 0x5cb   :  { %v1014_v0 = vrot.slane %v1013_v63, 4 }
 0x5cc   :  { %v1008_v1 = vadd.f32 %v1007_v62, %v1006_v3 }
 0x5cd   :  { %v1015_v2 = vadd.f32 %v1014_v0, %v1013_v63 }
 0x5ce   :  { %v1009_v60 = vrot.slane %v1008_v1, 2 }
 0x5cf   :  { %v1016_v4 = vrot.slane %v1015_v2, 2 }
 0x5d0   :  { %v1010_v5 = vadd.f32 %v1009_v60, %v1008_v1 }
 0x5d1   :  { %v1017_v6 = vadd.f32 %v1016_v4, %v1015_v2 }
 0x5d2   :  { %v1011_v7 = vrot.slane %v1010_v5, 1 }
 0x5d3   :  { %v1018_v9 = vrot.slane %v1017_v6, 1 }
 0x5d4   :  { %v1012_v10 = vadd.f32 %v1011_v7, %v1010_v5 }
 0x5d5   :  { %v1019_v11 = vadd.f32 %v1018_v9, %v1017_v6 }
 0x5d6   :  { %v5823_v12 = vadd.f32 -1.0, %v1012_v10 }
 0x5d7   :  { %v5824_v13 = vadd.f32 -1.0, %v1019_v11 }
 0x5d8   :  { %vm1022_vm8 = vcmp.gt.f32.partialorder %v5823_v12, 0.0 }
 0x5d9   :  { %vm1023_vm9 = vcmp.gt.f32.partialorder %v5824_v13, 0.0  ;;  %v1024_v14 = vsel %vm1022_vm8, %v996_v51, %v990_v41  ;;  %v1026_v15 = vsel %vm1022_vm8, %v992_v44, %v996_v51 }
 0x5da   :  { %v1025_v16 = vsel %vm1023_vm9, %v997_v52, %v991_v47  ;;  %v1027_v17 = vsel %vm1023_vm9, %v993_v48, %v997_v52  ;;  %v1028_v18 = vadd.f32 %v1026_v15, %v1024_v14 }
 0x5db   :  { %v1029_v23 = vadd.f32 %v1027_v17, %v1025_v16 }
 0x5dc   :  { %v1030_v24 = vmul.f32 0.5, %v1028_v18 }
 0x5dd   :  { %v1031_v25 = vmul.f32 0.5, %v1029_v23 }
 0x5de   :  { %v1032_v26 = vsub.f32 %v6670_v42, %v1030_v24  ;;  %v1034_v27 = vsub.f32 %v6672_v43, %v1030_v24 }
 0x5df   :  { %v1033_v28 = vsub.f32 %v6674_v45, %v1031_v25  ;;  %v1035_v29 = vsub.f32 %v6676_v46, %v1031_v25 }
 0x5e0   :  { %v1036_v30 = vmax.f32 %v1032_v26, 0.0  ;;  %v1038_v31 = vmax.f32 %v1034_v27, 0.0 }
 0x5e1   :  { %v1037_v32 = vmax.f32 %v1033_v28, 0.0  ;;  %v1039_v33 = vmax.f32 %v1035_v29, 0.0 }
 0x5e2   :  { %v1040_v34 = vadd.f32 %v1038_v31, %v1036_v30 }
 0x5e3   :  { %v1047_v35 = vadd.f32 %v1039_v33, %v1037_v32 }
 0x5e4   :  { %v1041_v36 = vrot.slane %v1040_v34, 4 }
 0x5e5   :  { %v1048_v37 = vrot.slane %v1047_v35, 4 }
 0x5e6   :  { %v1042_v38 = vadd.f32 %v1041_v36, %v1040_v34 }
 0x5e7   :  { %v1049_v39 = vadd.f32 %v1048_v37, %v1047_v35 }
 0x5e8   :  { %v1043_v40 = vrot.slane %v1042_v38, 2 }
 0x5e9   :  { %v1050_v41 = vrot.slane %v1049_v39, 2 }
 0x5ea   :  { %v1044_v44 = vadd.f32 %v1043_v40, %v1042_v38 }
 0x5eb   :  { %v1051_v47 = vadd.f32 %v1050_v41, %v1049_v39 }
 0x5ec   :  { %v1045_v48 = vrot.slane %v1044_v44, 1 }
 0x5ed   :  { %v1052_v49 = vrot.slane %v1051_v47, 1 }
 0x5ee   :  { %v1046_v50 = vadd.f32 %v1045_v48, %v1044_v44 }
 0x5ef   :  { %v1053_v51 = vadd.f32 %v1052_v49, %v1051_v47 }
 0x5f0   :  { %v5825_v52 = vadd.f32 -1.0, %v1046_v50 }
 0x5f1   :  { %v5826_v53 = vadd.f32 -1.0, %v1053_v51 }
 0x5f2   :  { %vm1056_vm10 = vcmp.gt.f32.partialorder %v5825_v52, 0.0 }
 0x5f3   :  { %vm1057_vm11 = vcmp.gt.f32.partialorder %v5826_v53, 0.0  ;;  %v1058_v54 = vsel %vm1056_vm10, %v1030_v24, %v1024_v14  ;;  %v1060_v55 = vsel %vm1056_vm10, %v1026_v15, %v1030_v24 }
 0x5f4   :  { %v1059_v56 = vsel %vm1057_vm11, %v1031_v25, %v1025_v16  ;;  %v1061_v57 = vsel %vm1057_vm11, %v1027_v17, %v1031_v25  ;;  %v1062_v58 = vadd.f32 %v1060_v55, %v1058_v54 }
 0x5f5   :  { %v1063_v59 = vadd.f32 %v1061_v57, %v1059_v56 }
 0x5f6   :  { %v1064_v61 = vmul.f32 0.5, %v1062_v58 }
 0x5f7   :  { %v1065_v3 = vmul.f32 0.5, %v1063_v59 }
 0x5f8   :  { %v1066_v63 = vsub.f32 %v6670_v42, %v1064_v61  ;;  %v1068_v62 = vsub.f32 %v6672_v43, %v1064_v61 }
 0x5f9   :  { %v1067_v0 = vsub.f32 %v6674_v45, %v1065_v3  ;;  %v1069_v1 = vsub.f32 %v6676_v46, %v1065_v3 }
 0x5fa   :  { %v1070_v2 = vmax.f32 %v1066_v63, 0.0  ;;  %v1072_v60 = vmax.f32 %v1068_v62, 0.0 }
 0x5fb   :  { %v1071_v4 = vmax.f32 %v1067_v0, 0.0  ;;  %v1073_v5 = vmax.f32 %v1069_v1, 0.0 }
 0x5fc   :  { %v1074_v6 = vadd.f32 %v1072_v60, %v1070_v2 }
 0x5fd   :  { %v1081_v7 = vadd.f32 %v1073_v5, %v1071_v4 }
 0x5fe   :  { %v1075_v9 = vrot.slane %v1074_v6, 4 }
 0x5ff   :  { %v1082_v10 = vrot.slane %v1081_v7, 4 }
 0x600   :  { %v1076_v11 = vadd.f32 %v1075_v9, %v1074_v6 }
 0x601   :  { %v1083_v12 = vadd.f32 %v1082_v10, %v1081_v7 }
 0x602   :  { %v1077_v13 = vrot.slane %v1076_v11, 2 }
 0x603   :  { %v1084_v14 = vrot.slane %v1083_v12, 2 }
 0x604   :  { %v1078_v15 = vadd.f32 %v1077_v13, %v1076_v11 }
 0x605   :  { %v1085_v16 = vadd.f32 %v1084_v14, %v1083_v12 }
 0x606   :  { %v1079_v17 = vrot.slane %v1078_v15, 1 }
 0x607   :  { %v1086_v18 = vrot.slane %v1085_v16, 1 }
 0x608   :  { %v1080_v23 = vadd.f32 %v1079_v17, %v1078_v15 }
 0x609   :  { %v1087_v24 = vadd.f32 %v1086_v18, %v1085_v16 }
 0x60a   :  { %v5827_v25 = vadd.f32 -1.0, %v1080_v23 }
 0x60b   :  { %v5828_v26 = vadd.f32 -1.0, %v1087_v24 }
 0x60c   :  { %vm1090_vm12 = vcmp.gt.f32.partialorder %v5827_v25, 0.0 }
 0x60d   :  { %vm1091_vm13 = vcmp.gt.f32.partialorder %v5828_v26, 0.0  ;;  %v1092_v27 = vsel %vm1090_vm12, %v1064_v61, %v1058_v54  ;;  %v1094_v28 = vsel %vm1090_vm12, %v1060_v55, %v1064_v61 }
 0x60e   :  { %v1093_v29 = vsel %vm1091_vm13, %v1065_v3, %v1059_v56  ;;  %v1095_v30 = vsel %vm1091_vm13, %v1061_v57, %v1065_v3  ;;  %v1096_v31 = vadd.f32 %v1094_v28, %v1092_v27 }
 0x60f   :  { %v1097_v32 = vadd.f32 %v1095_v30, %v1093_v29 }
 0x610   :  { %v1098_v33 = vmul.f32 0.5, %v1096_v31 }
 0x611   :  { %v1099_v34 = vmul.f32 0.5, %v1097_v32 }
 0x612   :  { %v1100_v35 = vsub.f32 %v6670_v42, %v1098_v33  ;;  %v1102_v36 = vsub.f32 %v6672_v43, %v1098_v33 }
 0x613   :  { %v1101_v37 = vsub.f32 %v6674_v45, %v1099_v34  ;;  %v1103_v38 = vsub.f32 %v6676_v46, %v1099_v34 }
 0x614   :  { %v1104_v39 = vmax.f32 %v1100_v35, 0.0  ;;  %v1106_v40 = vmax.f32 %v1102_v36, 0.0 }
 0x615   :  { %v1105_v41 = vmax.f32 %v1101_v37, 0.0  ;;  %v1107_v44 = vmax.f32 %v1103_v38, 0.0 }
 0x616   :  { %v1108_v47 = vadd.f32 %v1106_v40, %v1104_v39 }
 0x617   :  { %v1115_v48 = vadd.f32 %v1107_v44, %v1105_v41 }
 0x618   :  { %v1109_v49 = vrot.slane %v1108_v47, 4 }
 0x619   :  { %v1116_v50 = vrot.slane %v1115_v48, 4 }
 0x61a   :  { %v1110_v51 = vadd.f32 %v1109_v49, %v1108_v47 }
 0x61b   :  { %v1117_v52 = vadd.f32 %v1116_v50, %v1115_v48 }
 0x61c   :  { %v1111_v53 = vrot.slane %v1110_v51, 2 }
 0x61d   :  { %v1118_v54 = vrot.slane %v1117_v52, 2 }
 0x61e   :  { %v1112_v55 = vadd.f32 %v1111_v53, %v1110_v51 }
 0x61f   :  { %v1119_v56 = vadd.f32 %v1118_v54, %v1117_v52 }
 0x620   :  { %v1113_v57 = vrot.slane %v1112_v55, 1 }
 0x621   :  { %v1120_v58 = vrot.slane %v1119_v56, 1 }
 0x622   :  { %v1114_v59 = vadd.f32 %v1113_v57, %v1112_v55 }
 0x623   :  { %v1121_v61 = vadd.f32 %v1120_v58, %v1119_v56 }
 0x624   :  { %v5829_v3 = vadd.f32 -1.0, %v1114_v59 }
 0x625   :  { %v5830_v63 = vadd.f32 -1.0, %v1121_v61 }
 0x626   :  { %vm1124_vm14 = vcmp.gt.f32.partialorder %v5829_v3, 0.0 }
 0x627   :  { %vm1125_vm15 = vcmp.gt.f32.partialorder %v5830_v63, 0.0  ;;  %v1126_v62 = vsel %vm1124_vm14, %v1098_v33, %v1092_v27  ;;  %v1128_v0 = vsel %vm1124_vm14, %v1094_v28, %v1098_v33 }
 0x628   :  { %v1127_v1 = vsel %vm1125_vm15, %v1099_v34, %v1093_v29  ;;  %v1129_v2 = vsel %vm1125_vm15, %v1095_v30, %v1099_v34  ;;  %v1130_v60 = vadd.f32 %v1128_v0, %v1126_v62 }
 0x629   :  { %v1131_v4 = vadd.f32 %v1129_v2, %v1127_v1 }
 0x62a   :  { %v1132_v5 = vmul.f32 0.5, %v1130_v60 }
 0x62b   :  { %v1133_v6 = vmul.f32 0.5, %v1131_v4 }
 0x62c   :  { %v1134_v7 = vsub.f32 %v6670_v42, %v1132_v5  ;;  %v1136_v9 = vsub.f32 %v6672_v43, %v1132_v5 }
 0x62d   :  { %v1135_v10 = vsub.f32 %v6674_v45, %v1133_v6  ;;  %v1137_v11 = vsub.f32 %v6676_v46, %v1133_v6 }
 0x62e   :  { %v1138_v12 = vmax.f32 %v1134_v7, 0.0  ;;  %v1140_v13 = vmax.f32 %v1136_v9, 0.0 }
 0x62f   :  { %v1139_v14 = vmax.f32 %v1135_v10, 0.0  ;;  %v1141_v15 = vmax.f32 %v1137_v11, 0.0 }
 0x630   :  { %v1142_v16 = vadd.f32 %v1140_v13, %v1138_v12 }
 0x631   :  { %v1149_v17 = vadd.f32 %v1141_v15, %v1139_v14 }
 0x632   :  { %v1143_v18 = vrot.slane %v1142_v16, 4 }
 0x633   :  { %v1150_v23 = vrot.slane %v1149_v17, 4 }
 0x634   :  { %v1144_v24 = vadd.f32 %v1143_v18, %v1142_v16 }
 0x635   :  { %v1151_v25 = vadd.f32 %v1150_v23, %v1149_v17 }
 0x636   :  { %v1145_v26 = vrot.slane %v1144_v24, 2 }
 0x637   :  { %v1152_v27 = vrot.slane %v1151_v25, 2 }
 0x638   :  { %v1146_v28 = vadd.f32 %v1145_v26, %v1144_v24 }
 0x639   :  { %v1153_v29 = vadd.f32 %v1152_v27, %v1151_v25 }
 0x63a   :  { %v1147_v30 = vrot.slane %v1146_v28, 1 }
 0x63b   :  { %v1154_v31 = vrot.slane %v1153_v29, 1 }
 0x63c   :  { %v1148_v32 = vadd.f32 %v1147_v30, %v1146_v28 }
 0x63d   :  { %v1155_v33 = vadd.f32 %v1154_v31, %v1153_v29 }
 0x63e   :  { %v5831_v34 = vadd.f32 -1.0, %v1148_v32 }
 0x63f   :  { %v5832_v35 = vadd.f32 -1.0, %v1155_v33 }
 0x640   :  { %vm1158_vm2 = vcmp.gt.f32.partialorder %v5831_v34, 0.0 }
 0x641   :  { %vm1159_vm3 = vcmp.gt.f32.partialorder %v5832_v35, 0.0  ;;  %v1160_v36 = vsel %vm1158_vm2, %v1132_v5, %v1126_v62  ;;  %v1162_v37 = vsel %vm1158_vm2, %v1128_v0, %v1132_v5 }
 0x642   :  { %v1161_v38 = vsel %vm1159_vm3, %v1133_v6, %v1127_v1  ;;  %v1163_v39 = vsel %vm1159_vm3, %v1129_v2, %v1133_v6  ;;  %v1164_v40 = vadd.f32 %v1162_v37, %v1160_v36 }
 0x643   :  { %v1165_v41 = vadd.f32 %v1163_v39, %v1161_v38 }
 0x644   :  { %v1166_v44 = vmul.f32 0.5, %v1164_v40 }
 0x645   :  { %v1167_v47 = vmul.f32 0.5, %v1165_v41 }
 0x646   :  { %v1168_v48 = vsub.f32 %v6670_v42, %v1166_v44  ;;  %v1170_v49 = vsub.f32 %v6672_v43, %v1166_v44 }
 0x647   :  { %v1169_v50 = vsub.f32 %v6674_v45, %v1167_v47  ;;  %v1171_v51 = vsub.f32 %v6676_v46, %v1167_v47 }
 0x648   :  { %v1172_v52 = vmax.f32 %v1168_v48, 0.0  ;;  %v1174_v53 = vmax.f32 %v1170_v49, 0.0 }
 0x649   :  { %v1173_v54 = vmax.f32 %v1169_v50, 0.0  ;;  %v1175_v55 = vmax.f32 %v1171_v51, 0.0 }
 0x64a   :  { %v1176_v56 = vadd.f32 %v1174_v53, %v1172_v52 }
 0x64b   :  { %v1183_v57 = vadd.f32 %v1175_v55, %v1173_v54 }
 0x64c   :  { %v1177_v58 = vrot.slane %v1176_v56, 4 }
 0x64d   :  { %v1184_v59 = vrot.slane %v1183_v57, 4 }
 0x64e   :  { %v1178_v61 = vadd.f32 %v1177_v58, %v1176_v56 }
 0x64f   :  { %v1185_v3 = vadd.f32 %v1184_v59, %v1183_v57 }
 0x650   :  { %v1179_v63 = vrot.slane %v1178_v61, 2 }
 0x651   :  { %v1186_v62 = vrot.slane %v1185_v3, 2 }
 0x652   :  { %v1180_v0 = vadd.f32 %v1179_v63, %v1178_v61 }
 0x653   :  { %v1187_v1 = vadd.f32 %v1186_v62, %v1185_v3 }
 0x654   :  { %v1181_v2 = vrot.slane %v1180_v0, 1 }
 0x655   :  { %v1188_v60 = vrot.slane %v1187_v1, 1 }
 0x656   :  { %v1182_v4 = vadd.f32 %v1181_v2, %v1180_v0 }
 0x657   :  { %v1189_v5 = vadd.f32 %v1188_v60, %v1187_v1 }
 0x658   :  { %v5833_v6 = vadd.f32 -1.0, %v1182_v4 }
 0x659   :  { %v5834_v7 = vadd.f32 -1.0, %v1189_v5 }
 0x65a   :  { %vm1192_vm4 = vcmp.gt.f32.partialorder %v5833_v6, 0.0 }
 0x65b   :  { %vm1193_vm5 = vcmp.gt.f32.partialorder %v5834_v7, 0.0  ;;  %v1194_v9 = vsel %vm1192_vm4, %v1166_v44, %v1160_v36  ;;  %v1196_v10 = vsel %vm1192_vm4, %v1162_v37, %v1166_v44 }
 0x65c   :  { %v1195_v11 = vsel %vm1193_vm5, %v1167_v47, %v1161_v38  ;;  %v1197_v12 = vsel %vm1193_vm5, %v1163_v39, %v1167_v47  ;;  %v1198_v13 = vadd.f32 %v1196_v10, %v1194_v9 }
 0x65d   :  { %v1199_v14 = vadd.f32 %v1197_v12, %v1195_v11 }
 0x65e   :  { %v1200_v15 = vmul.f32 0.5, %v1198_v13 }
 0x65f   :  { %v1201_v16 = vmul.f32 0.5, %v1199_v14 }
 0x660   :  { %v1202_v17 = vsub.f32 %v6670_v42, %v1200_v15  ;;  %v1204_v18 = vsub.f32 %v6672_v43, %v1200_v15 }
 0x661   :  { %v1203_v23 = vsub.f32 %v6674_v45, %v1201_v16  ;;  %v1205_v24 = vsub.f32 %v6676_v46, %v1201_v16 }
 0x662   :  { %v1206_v25 = vmax.f32 %v1202_v17, 0.0  ;;  %v1208_v26 = vmax.f32 %v1204_v18, 0.0 }
 0x663   :  { %v1207_v27 = vmax.f32 %v1203_v23, 0.0  ;;  %v1209_v28 = vmax.f32 %v1205_v24, 0.0 }
 0x664   :  { %v1210_v29 = vadd.f32 %v1208_v26, %v1206_v25 }
 0x665   :  { %v1217_v30 = vadd.f32 %v1209_v28, %v1207_v27 }
 0x666   :  { %v1211_v31 = vrot.slane %v1210_v29, 4 }
 0x667   :  { %v1218_v32 = vrot.slane %v1217_v30, 4 }
 0x668   :  { %v1212_v33 = vadd.f32 %v1211_v31, %v1210_v29 }
 0x669   :  { %v1219_v34 = vadd.f32 %v1218_v32, %v1217_v30 }
 0x66a   :  { %v1213_v35 = vrot.slane %v1212_v33, 2 }
 0x66b   :  { %v1220_v36 = vrot.slane %v1219_v34, 2 }
 0x66c   :  { %v1214_v37 = vadd.f32 %v1213_v35, %v1212_v33 }
 0x66d   :  { %v1221_v38 = vadd.f32 %v1220_v36, %v1219_v34 }
 0x66e   :  { %v1215_v39 = vrot.slane %v1214_v37, 1 }
 0x66f   :  { %v1222_v40 = vrot.slane %v1221_v38, 1 }
 0x670   :  { %v1216_v41 = vadd.f32 %v1215_v39, %v1214_v37 }
 0x671   :  { %v1223_v44 = vadd.f32 %v1222_v40, %v1221_v38 }
 0x672   :  { %v5835_v47 = vadd.f32 -1.0, %v1216_v41 }
 0x673   :  { %v5836_v48 = vadd.f32 -1.0, %v1223_v44 }
 0x674   :  { %vm1226_vm6 = vcmp.gt.f32.partialorder %v5835_v47, 0.0 }
 0x675   :  { %vm1227_vm7 = vcmp.gt.f32.partialorder %v5836_v48, 0.0  ;;  %v1228_v49 = vsel %vm1226_vm6, %v1200_v15, %v1194_v9  ;;  %v1230_v50 = vsel %vm1226_vm6, %v1196_v10, %v1200_v15 }
 0x676   :  { %v1229_v51 = vsel %vm1227_vm7, %v1201_v16, %v1195_v11  ;;  %v1231_v52 = vsel %vm1227_vm7, %v1197_v12, %v1201_v16  ;;  %v1232_v53 = vadd.f32 %v1230_v50, %v1228_v49 }
 0x677   :  { %v1233_v54 = vadd.f32 %v1231_v52, %v1229_v51 }
 0x678   :  { %v1234_v55 = vmul.f32 0.5, %v1232_v53 }
 0x679   :  { %v1235_v56 = vmul.f32 0.5, %v1233_v54 }
 0x67a   :  { %v1236_v57 = vsub.f32 %v6670_v42, %v1234_v55  ;;  %v1238_v58 = vsub.f32 %v6672_v43, %v1234_v55 }
 0x67b   :  { %v1237_v59 = vsub.f32 %v6674_v45, %v1235_v56  ;;  %v1239_v61 = vsub.f32 %v6676_v46, %v1235_v56 }
 0x67c   :  { %v1240_v3 = vmax.f32 %v1236_v57, 0.0  ;;  %v1242_v63 = vmax.f32 %v1238_v58, 0.0 }
 0x67d   :  { %v1241_v62 = vmax.f32 %v1237_v59, 0.0  ;;  %v1243_v0 = vmax.f32 %v1239_v61, 0.0 }
 0x67e   :  { %v1244_v1 = vadd.f32 %v1242_v63, %v1240_v3 }
 0x67f   :  { %v1251_v2 = vadd.f32 %v1243_v0, %v1241_v62 }
 0x680   :  { %v1245_v60 = vrot.slane %v1244_v1, 4 }
 0x681   :  { %v1252_v4 = vrot.slane %v1251_v2, 4 }
 0x682   :  { %v1246_v5 = vadd.f32 %v1245_v60, %v1244_v1 }
 0x683   :  { %v1253_v6 = vadd.f32 %v1252_v4, %v1251_v2 }
 0x684   :  { %v1247_v7 = vrot.slane %v1246_v5, 2 }
 0x685   :  { %v1254_v9 = vrot.slane %v1253_v6, 2 }
 0x686   :  { %v1248_v10 = vadd.f32 %v1247_v7, %v1246_v5 }
 0x687   :  { %v1255_v11 = vadd.f32 %v1254_v9, %v1253_v6 }
 0x688   :  { %v1249_v12 = vrot.slane %v1248_v10, 1 }
 0x689   :  { %v1256_v13 = vrot.slane %v1255_v11, 1 }
 0x68a   :  { %v1250_v14 = vadd.f32 %v1249_v12, %v1248_v10 }
 0x68b   :  { %v1257_v15 = vadd.f32 %v1256_v13, %v1255_v11 }
 0x68c   :  { %v5837_v16 = vadd.f32 -1.0, %v1250_v14 }
 0x68d   :  { %v5838_v17 = vadd.f32 -1.0, %v1257_v15 }
 0x68e   :  { %vm1260_vm8 = vcmp.gt.f32.partialorder %v5837_v16, 0.0 }
 0x68f   :  { %vm1261_vm9 = vcmp.gt.f32.partialorder %v5838_v17, 0.0  ;;  %v1262_v18 = vsel %vm1260_vm8, %v1234_v55, %v1228_v49  ;;  %v1264_v23 = vsel %vm1260_vm8, %v1230_v50, %v1234_v55 }
 0x690   :  { %v1263_v24 = vsel %vm1261_vm9, %v1235_v56, %v1229_v51  ;;  %v1265_v25 = vsel %vm1261_vm9, %v1231_v52, %v1235_v56  ;;  %v1266_v26 = vadd.f32 %v1264_v23, %v1262_v18 }
 0x691   :  { %v1267_v27 = vadd.f32 %v1265_v25, %v1263_v24 }
 0x692   :  { %v1268_v28 = vmul.f32 0.5, %v1266_v26 }
 0x693   :  { %v1269_v29 = vmul.f32 0.5, %v1267_v27 }
 0x694   :  { %v1270_v30 = vsub.f32 %v6670_v42, %v1268_v28  ;;  %v1272_v31 = vsub.f32 %v6672_v43, %v1268_v28 }
 0x695   :  { %v1271_v32 = vsub.f32 %v6674_v45, %v1269_v29  ;;  %v1273_v33 = vsub.f32 %v6676_v46, %v1269_v29 }
 0x696   :  { %v1274_v34 = vmax.f32 %v1270_v30, 0.0  ;;  %v1276_v35 = vmax.f32 %v1272_v31, 0.0 }
 0x697   :  { %v1275_v36 = vmax.f32 %v1271_v32, 0.0  ;;  %v1277_v37 = vmax.f32 %v1273_v33, 0.0 }
 0x698   :  { %v1278_v38 = vadd.f32 %v1276_v35, %v1274_v34 }
 0x699   :  { %v1285_v39 = vadd.f32 %v1277_v37, %v1275_v36 }
 0x69a   :  { %v1279_v40 = vrot.slane %v1278_v38, 4 }
 0x69b   :  { %v1286_v41 = vrot.slane %v1285_v39, 4 }
 0x69c   :  { %v1280_v44 = vadd.f32 %v1279_v40, %v1278_v38 }
 0x69d   :  { %v1287_v47 = vadd.f32 %v1286_v41, %v1285_v39 }
 0x69e   :  { %v1281_v48 = vrot.slane %v1280_v44, 2 }
 0x69f   :  { %v1288_v49 = vrot.slane %v1287_v47, 2 }
 0x6a0   :  { %v1282_v50 = vadd.f32 %v1281_v48, %v1280_v44 }
 0x6a1   :  { %v1289_v51 = vadd.f32 %v1288_v49, %v1287_v47 }
 0x6a2   :  { %v1283_v52 = vrot.slane %v1282_v50, 1 }
 0x6a3   :  { %v1290_v53 = vrot.slane %v1289_v51, 1 }
 0x6a4   :  { %v1284_v54 = vadd.f32 %v1283_v52, %v1282_v50 }
 0x6a5   :  { %v1291_v55 = vadd.f32 %v1290_v53, %v1289_v51 }
 0x6a6   :  { %v5839_v56 = vadd.f32 -1.0, %v1284_v54 }
 0x6a7   :  { %v5840_v57 = vadd.f32 -1.0, %v1291_v55 }
 0x6a8   :  { %vm1294_vm10 = vcmp.gt.f32.partialorder %v5839_v56, 0.0 }
 0x6a9   :  { %vm1295_vm11 = vcmp.gt.f32.partialorder %v5840_v57, 0.0  ;;  %v1296_v58 = vsel %vm1294_vm10, %v1268_v28, %v1262_v18  ;;  %v1298_v59 = vsel %vm1294_vm10, %v1264_v23, %v1268_v28 }
 0x6aa   :  { %v1297_v61 = vsel %vm1295_vm11, %v1269_v29, %v1263_v24  ;;  %v1299_v3 = vsel %vm1295_vm11, %v1265_v25, %v1269_v29  ;;  %v1300_v63 = vadd.f32 %v1298_v59, %v1296_v58 }
 0x6ab   :  { %v1301_v62 = vadd.f32 %v1299_v3, %v1297_v61 }
 0x6ac   :  { %v1302_v0 = vmul.f32 0.5, %v1300_v63 }
 0x6ad   :  { %v1303_v1 = vmul.f32 0.5, %v1301_v62 }
 0x6ae   :  { %v1304_v2 = vsub.f32 %v6670_v42, %v1302_v0  ;;  %v1306_v60 = vsub.f32 %v6672_v43, %v1302_v0 }
 0x6af   :  { %v1305_v4 = vsub.f32 %v6674_v45, %v1303_v1  ;;  %v1307_v5 = vsub.f32 %v6676_v46, %v1303_v1 }
 0x6b0   :  { %v1308_v6 = vmax.f32 %v1304_v2, 0.0  ;;  %v1310_v7 = vmax.f32 %v1306_v60, 0.0 }
 0x6b1   :  { %v1309_v9 = vmax.f32 %v1305_v4, 0.0  ;;  %v1311_v10 = vmax.f32 %v1307_v5, 0.0 }
 0x6b2   :  { %v1312_v11 = vadd.f32 %v1310_v7, %v1308_v6 }
 0x6b3   :  { %v1319_v12 = vadd.f32 %v1311_v10, %v1309_v9 }
 0x6b4   :  { %v1313_v13 = vrot.slane %v1312_v11, 4 }
 0x6b5   :  { %v1320_v14 = vrot.slane %v1319_v12, 4 }
 0x6b6   :  { %v1314_v15 = vadd.f32 %v1313_v13, %v1312_v11 }
 0x6b7   :  { %v1321_v16 = vadd.f32 %v1320_v14, %v1319_v12 }
 0x6b8   :  { %v1315_v17 = vrot.slane %v1314_v15, 2 }
 0x6b9   :  { %v1322_v18 = vrot.slane %v1321_v16, 2 }
 0x6ba   :  { %v1316_v23 = vadd.f32 %v1315_v17, %v1314_v15 }
 0x6bb   :  { %v1323_v24 = vadd.f32 %v1322_v18, %v1321_v16 }
 0x6bc   :  { %v1317_v25 = vrot.slane %v1316_v23, 1 }
 0x6bd   :  { %v1324_v26 = vrot.slane %v1323_v24, 1 }
 0x6be   :  { %v1318_v27 = vadd.f32 %v1317_v25, %v1316_v23 }
 0x6bf   :  { %v1325_v28 = vadd.f32 %v1324_v26, %v1323_v24 }
 0x6c0   :  { %v5841_v29 = vadd.f32 -1.0, %v1318_v27 }
 0x6c1   :  { %v5842_v30 = vadd.f32 -1.0, %v1325_v28 }
 0x6c2   :  { %vm1328_vm12 = vcmp.gt.f32.partialorder %v5841_v29, 0.0 }
 0x6c3   :  { %vm1329_vm13 = vcmp.gt.f32.partialorder %v5842_v30, 0.0  ;;  %v1330_v31 = vsel %vm1328_vm12, %v1302_v0, %v1296_v58  ;;  %v1332_v32 = vsel %vm1328_vm12, %v1298_v59, %v1302_v0 }
 0x6c4   :  { %v1331_v33 = vsel %vm1329_vm13, %v1303_v1, %v1297_v61  ;;  %v1333_v34 = vsel %vm1329_vm13, %v1299_v3, %v1303_v1  ;;  %v1334_v35 = vadd.f32 %v1332_v32, %v1330_v31 }
 0x6c5   :  { %v1335_v36 = vadd.f32 %v1333_v34, %v1331_v33 }
 0x6c6   :  { %v1336_v37 = vmul.f32 0.5, %v1334_v35 }
 0x6c7   :  { %v1337_v38 = vmul.f32 0.5, %v1335_v36 }
 0x6c8   :  { %v1338_v39 = vsub.f32 %v6670_v42, %v1336_v37  ;;  %v1340_v40 = vsub.f32 %v6672_v43, %v1336_v37 }
 0x6c9   :  { %v1339_v41 = vsub.f32 %v6674_v45, %v1337_v38  ;;  %v1341_v44 = vsub.f32 %v6676_v46, %v1337_v38 }
 0x6ca   :  { %v1342_v47 = vmax.f32 %v1338_v39, 0.0  ;;  %v1344_v48 = vmax.f32 %v1340_v40, 0.0 }
 0x6cb   :  { %v1343_v49 = vmax.f32 %v1339_v41, 0.0  ;;  %v1345_v50 = vmax.f32 %v1341_v44, 0.0 }
 0x6cc   :  { %v1346_v51 = vadd.f32 %v1344_v48, %v1342_v47 }
 0x6cd   :  { %v1353_v52 = vadd.f32 %v1345_v50, %v1343_v49 }
 0x6ce   :  { %v1347_v53 = vrot.slane %v1346_v51, 4 }
 0x6cf   :  { %v1354_v54 = vrot.slane %v1353_v52, 4 }
 0x6d0   :  { %v1348_v55 = vadd.f32 %v1347_v53, %v1346_v51 }
 0x6d1   :  { %v1355_v56 = vadd.f32 %v1354_v54, %v1353_v52 }
 0x6d2   :  { %v1349_v57 = vrot.slane %v1348_v55, 2 }
 0x6d3   :  { %v1356_v58 = vrot.slane %v1355_v56, 2 }
 0x6d4   :  { %v1350_v59 = vadd.f32 %v1349_v57, %v1348_v55 }
 0x6d5   :  { %v1357_v61 = vadd.f32 %v1356_v58, %v1355_v56 }
 0x6d6   :  { %v1351_v3 = vrot.slane %v1350_v59, 1 }
 0x6d7   :  { %v1358_v63 = vrot.slane %v1357_v61, 1 }
 0x6d8   :  { %v1352_v62 = vadd.f32 %v1351_v3, %v1350_v59 }
 0x6d9   :  { %v1359_v0 = vadd.f32 %v1358_v63, %v1357_v61 }
 0x6da   :  { %v5843_v1 = vadd.f32 -1.0, %v1352_v62 }
 0x6db   :  { %v5844_v2 = vadd.f32 -1.0, %v1359_v0 }
 0x6dc   :  { %vm1362_vm14 = vcmp.gt.f32.partialorder %v5843_v1, 0.0 }
 0x6dd   :  { %vm1363_vm15 = vcmp.gt.f32.partialorder %v5844_v2, 0.0  ;;  %v1364_v60 = vsel %vm1362_vm14, %v1336_v37, %v1330_v31  ;;  %v1366_v4 = vsel %vm1362_vm14, %v1332_v32, %v1336_v37 }
 0x6de   :  { %v1365_v5 = vsel %vm1363_vm15, %v1337_v38, %v1331_v33  ;;  %v1367_v6 = vsel %vm1363_vm15, %v1333_v34, %v1337_v38  ;;  %v1368_v7 = vadd.f32 %v1366_v4, %v1364_v60 }
 0x6df   :  { %v1369_v9 = vadd.f32 %v1367_v6, %v1365_v5 }
 0x6e0   :  { %v1370_v10 = vmul.f32 0.5, %v1368_v7 }
 0x6e1   :  { %v1371_v11 = vmul.f32 0.5, %v1369_v9 }
 0x6e2   :  { %v1372_v12 = vsub.f32 %v6670_v42, %v1370_v10  ;;  %v1374_v13 = vsub.f32 %v6672_v43, %v1370_v10 }
 0x6e3   :  { %v1373_v14 = vsub.f32 %v6674_v45, %v1371_v11  ;;  %v1375_v15 = vsub.f32 %v6676_v46, %v1371_v11 }
 0x6e4   :  { %v1376_v16 = vmax.f32 %v1372_v12, 0.0  ;;  %v1378_v17 = vmax.f32 %v1374_v13, 0.0 }
 0x6e5   :  { %v1377_v18 = vmax.f32 %v1373_v14, 0.0  ;;  %v1379_v23 = vmax.f32 %v1375_v15, 0.0 }
 0x6e6   :  { %v1380_v24 = vadd.f32 %v1378_v17, %v1376_v16 }
 0x6e7   :  { %v1387_v25 = vadd.f32 %v1379_v23, %v1377_v18 }
 0x6e8   :  { %v1381_v26 = vrot.slane %v1380_v24, 4 }
 0x6e9   :  { %v1388_v27 = vrot.slane %v1387_v25, 4 }
 0x6ea   :  { %v1382_v28 = vadd.f32 %v1381_v26, %v1380_v24 }
 0x6eb   :  { %v1389_v29 = vadd.f32 %v1388_v27, %v1387_v25 }
 0x6ec   :  { %v1383_v30 = vrot.slane %v1382_v28, 2 }
 0x6ed   :  { %v1390_v31 = vrot.slane %v1389_v29, 2 }
 0x6ee   :  { %v1384_v32 = vadd.f32 %v1383_v30, %v1382_v28 }
 0x6ef   :  { %v1391_v33 = vadd.f32 %v1390_v31, %v1389_v29 }
 0x6f0   :  { %v1385_v34 = vrot.slane %v1384_v32, 1 }
 0x6f1   :  { %v1392_v35 = vrot.slane %v1391_v33, 1 }
 0x6f2   :  { %v1386_v36 = vadd.f32 %v1385_v34, %v1384_v32 }
 0x6f3   :  { %v1393_v37 = vadd.f32 %v1392_v35, %v1391_v33 }
 0x6f4   :  { %v5845_v38 = vadd.f32 -1.0, %v1386_v36 }
 0x6f5   :  { %v5846_v39 = vadd.f32 -1.0, %v1393_v37 }
 0x6f6   :  { %vm1396_vm2 = vcmp.gt.f32.partialorder %v5845_v38, 0.0 }
 0x6f7   :  { %vm1397_vm3 = vcmp.gt.f32.partialorder %v5846_v39, 0.0  ;;  %v1398_v40 = vsel %vm1396_vm2, %v1370_v10, %v1364_v60  ;;  %v1400_v41 = vsel %vm1396_vm2, %v1366_v4, %v1370_v10 }
 0x6f8   :  { %v1399_v44 = vsel %vm1397_vm3, %v1371_v11, %v1365_v5  ;;  %v1401_v47 = vsel %vm1397_vm3, %v1367_v6, %v1371_v11  ;;  %v1402_v48 = vadd.f32 %v1400_v41, %v1398_v40 }
 0x6f9   :  { %v1403_v49 = vadd.f32 %v1401_v47, %v1399_v44 }
 0x6fa   :  { %v1404_v50 = vmul.f32 0.5, %v1402_v48 }
 0x6fb   :  { %v1405_v51 = vmul.f32 0.5, %v1403_v49 }
 0x6fc   :  { %v1406_v52 = vsub.f32 %v6670_v42, %v1404_v50  ;;  %v1408_v53 = vsub.f32 %v6672_v43, %v1404_v50 }
 0x6fd   :  { %v1407_v54 = vsub.f32 %v6674_v45, %v1405_v51  ;;  %v1409_v55 = vsub.f32 %v6676_v46, %v1405_v51 }
 0x6fe   :  { %v1410_v56 = vmax.f32 %v1406_v52, 0.0  ;;  %v1412_v57 = vmax.f32 %v1408_v53, 0.0 }
 0x6ff   :  { %v1411_v58 = vmax.f32 %v1407_v54, 0.0  ;;  %v1413_v59 = vmax.f32 %v1409_v55, 0.0 }
 0x700   :  { %v1414_v61 = vadd.f32 %v1412_v57, %v1410_v56 }
 0x701   :  { %v1421_v3 = vadd.f32 %v1413_v59, %v1411_v58 }
 0x702   :  { %v1415_v63 = vrot.slane %v1414_v61, 4 }
 0x703   :  { %v1422_v62 = vrot.slane %v1421_v3, 4 }
 0x704   :  { %v1416_v0 = vadd.f32 %v1415_v63, %v1414_v61 }
 0x705   :  { %v1423_v1 = vadd.f32 %v1422_v62, %v1421_v3 }
 0x706   :  { %v1417_v2 = vrot.slane %v1416_v0, 2 }
 0x707   :  { %v1424_v60 = vrot.slane %v1423_v1, 2 }
 0x708   :  { %v1418_v4 = vadd.f32 %v1417_v2, %v1416_v0 }
 0x709   :  { %v1425_v5 = vadd.f32 %v1424_v60, %v1423_v1 }
 0x70a   :  { %v1419_v6 = vrot.slane %v1418_v4, 1 }
 0x70b   :  { %v1426_v7 = vrot.slane %v1425_v5, 1 }
 0x70c   :  { %v1420_v9 = vadd.f32 %v1419_v6, %v1418_v4 }
 0x70d   :  { %v1427_v10 = vadd.f32 %v1426_v7, %v1425_v5 }
 0x70e   :  { %v5847_v11 = vadd.f32 -1.0, %v1420_v9 }
 0x70f   :  { %v5848_v12 = vadd.f32 -1.0, %v1427_v10 }
 0x710   :  { %vm1430_vm4 = vcmp.gt.f32.partialorder %v5847_v11, 0.0 }
 0x711   :  { %vm1431_vm5 = vcmp.gt.f32.partialorder %v5848_v12, 0.0  ;;  %v1432_v13 = vsel %vm1430_vm4, %v1404_v50, %v1398_v40  ;;  %v1434_v14 = vsel %vm1430_vm4, %v1400_v41, %v1404_v50 }
 0x712   :  { %v1433_v15 = vsel %vm1431_vm5, %v1405_v51, %v1399_v44  ;;  %v1435_v16 = vsel %vm1431_vm5, %v1401_v47, %v1405_v51  ;;  %v1436_v17 = vadd.f32 %v1434_v14, %v1432_v13 }
 0x713   :  { %v1437_v18 = vadd.f32 %v1435_v16, %v1433_v15 }
 0x714   :  { %v1438_v23 = vmul.f32 0.5, %v1436_v17 }
 0x715   :  { %v1439_v24 = vmul.f32 0.5, %v1437_v18 }
 0x716   :  { %v1440_v25 = vsub.f32 %v6670_v42, %v1438_v23  ;;  %v1442_v26 = vsub.f32 %v6672_v43, %v1438_v23 }
 0x717   :  { %v1441_v27 = vsub.f32 %v6674_v45, %v1439_v24  ;;  %v1443_v28 = vsub.f32 %v6676_v46, %v1439_v24 }
 0x718   :  { %v1444_v29 = vmax.f32 %v1440_v25, 0.0  ;;  %v1446_v30 = vmax.f32 %v1442_v26, 0.0 }
 0x719   :  { %v1445_v31 = vmax.f32 %v1441_v27, 0.0  ;;  %v1447_v32 = vmax.f32 %v1443_v28, 0.0 }
 0x71a   :  { %v1448_v33 = vadd.f32 %v1446_v30, %v1444_v29 }
 0x71b   :  { %v1455_v34 = vadd.f32 %v1447_v32, %v1445_v31 }
 0x71c   :  { %v1449_v35 = vrot.slane %v1448_v33, 4 }
 0x71d   :  { %v1456_v36 = vrot.slane %v1455_v34, 4 }
 0x71e   :  { %v1450_v37 = vadd.f32 %v1449_v35, %v1448_v33 }
 0x71f   :  { %v1457_v38 = vadd.f32 %v1456_v36, %v1455_v34 }
 0x720   :  { %v1451_v39 = vrot.slane %v1450_v37, 2 }
 0x721   :  { %v1458_v40 = vrot.slane %v1457_v38, 2 }
 0x722   :  { %v1452_v41 = vadd.f32 %v1451_v39, %v1450_v37 }
 0x723   :  { %v1459_v44 = vadd.f32 %v1458_v40, %v1457_v38 }
 0x724   :  { %v1453_v47 = vrot.slane %v1452_v41, 1 }
 0x725   :  { %v1460_v48 = vrot.slane %v1459_v44, 1 }
 0x726   :  { %v1454_v49 = vadd.f32 %v1453_v47, %v1452_v41 }
 0x727   :  { %v1461_v50 = vadd.f32 %v1460_v48, %v1459_v44 }
 0x728   :  { %v5849_v51 = vadd.f32 -1.0, %v1454_v49 }
 0x729   :  { %v5850_v52 = vadd.f32 -1.0, %v1461_v50 }
 0x72a   :  { %vm1464_vm6 = vcmp.gt.f32.partialorder %v5849_v51, 0.0 }
 0x72b   :  { %vm1465_vm7 = vcmp.gt.f32.partialorder %v5850_v52, 0.0  ;;  %v1466_v53 = vsel %vm1464_vm6, %v1438_v23, %v1432_v13  ;;  %v1468_v54 = vsel %vm1464_vm6, %v1434_v14, %v1438_v23 }
 0x72c   :  { %v1467_v55 = vsel %vm1465_vm7, %v1439_v24, %v1433_v15  ;;  %v1469_v56 = vsel %vm1465_vm7, %v1435_v16, %v1439_v24  ;;  %v1470_v57 = vadd.f32 %v1468_v54, %v1466_v53 }
 0x72d   :  { %v1471_v58 = vadd.f32 %v1469_v56, %v1467_v55 }
 0x72e   :  { %v1472_v59 = vmul.f32 0.5, %v1470_v57 }
 0x72f   :  { %v1473_v61 = vmul.f32 0.5, %v1471_v58 }
 0x730   :  { %v1474_v3 = vsub.f32 %v6670_v42, %v1472_v59  ;;  %v1476_v63 = vsub.f32 %v6672_v43, %v1472_v59 }
 0x731   :  { %v1475_v62 = vsub.f32 %v6674_v45, %v1473_v61  ;;  %v1477_v0 = vsub.f32 %v6676_v46, %v1473_v61 }
 0x732   :  { %v1478_v1 = vmax.f32 %v1474_v3, 0.0  ;;  %v1480_v2 = vmax.f32 %v1476_v63, 0.0 }
 0x733   :  { %v1479_v60 = vmax.f32 %v1475_v62, 0.0  ;;  %v1481_v4 = vmax.f32 %v1477_v0, 0.0 }
 0x734   :  { %v1482_v5 = vadd.f32 %v1480_v2, %v1478_v1 }
 0x735   :  { %v1489_v6 = vadd.f32 %v1481_v4, %v1479_v60 }
 0x736   :  { %v1483_v7 = vrot.slane %v1482_v5, 4 }
 0x737   :  { %v1490_v9 = vrot.slane %v1489_v6, 4 }
 0x738   :  { %v1484_v10 = vadd.f32 %v1483_v7, %v1482_v5 }
 0x739   :  { %v1491_v11 = vadd.f32 %v1490_v9, %v1489_v6 }
 0x73a   :  { %v1485_v12 = vrot.slane %v1484_v10, 2 }
 0x73b   :  { %v1492_v13 = vrot.slane %v1491_v11, 2 }
 0x73c   :  { %v1486_v14 = vadd.f32 %v1485_v12, %v1484_v10 }
 0x73d   :  { %v1493_v15 = vadd.f32 %v1492_v13, %v1491_v11 }
 0x73e   :  { %v1487_v16 = vrot.slane %v1486_v14, 1 }
 0x73f   :  { %v1494_v17 = vrot.slane %v1493_v15, 1 }
 0x740   :  { %v1488_v18 = vadd.f32 %v1487_v16, %v1486_v14 }
 0x741   :  { %v1495_v23 = vadd.f32 %v1494_v17, %v1493_v15 }
 0x742   :  { %v5851_v24 = vadd.f32 -1.0, %v1488_v18 }
 0x743   :  { %v5852_v25 = vadd.f32 -1.0, %v1495_v23 }
 0x744   :  { %vm1498_vm8 = vcmp.gt.f32.partialorder %v5851_v24, 0.0 }
 0x745   :  { %vm1499_vm9 = vcmp.gt.f32.partialorder %v5852_v25, 0.0  ;;  %v1500_v26 = vsel %vm1498_vm8, %v1472_v59, %v1466_v53  ;;  %v1502_v27 = vsel %vm1498_vm8, %v1468_v54, %v1472_v59 }
 0x746   :  { %v1501_v28 = vsel %vm1499_vm9, %v1473_v61, %v1467_v55  ;;  %v1503_v29 = vsel %vm1499_vm9, %v1469_v56, %v1473_v61  ;;  %v1504_v30 = vadd.f32 %v1502_v27, %v1500_v26 }
 0x747   :  { %v1505_v31 = vadd.f32 %v1503_v29, %v1501_v28 }
 0x748   :  { %v1506_v32 = vmul.f32 0.5, %v1504_v30 }
 0x749   :  { %v1507_v33 = vmul.f32 0.5, %v1505_v31 }
 0x74a   :  { %v1508_v34 = vsub.f32 %v6670_v42, %v1506_v32  ;;  %v1510_v35 = vsub.f32 %v6672_v43, %v1506_v32 }
 0x74b   :  { %v1509_v36 = vsub.f32 %v6674_v45, %v1507_v33  ;;  %v1511_v37 = vsub.f32 %v6676_v46, %v1507_v33 }
 0x74c   :  { %v1512_v38 = vmax.f32 %v1508_v34, 0.0  ;;  %v1514_v39 = vmax.f32 %v1510_v35, 0.0 }
 0x74d   :  { %v1513_v40 = vmax.f32 %v1509_v36, 0.0  ;;  %v1515_v41 = vmax.f32 %v1511_v37, 0.0 }
 0x74e   :  { %v1516_v44 = vadd.f32 %v1514_v39, %v1512_v38 }
 0x74f   :  { %v1523_v47 = vadd.f32 %v1515_v41, %v1513_v40 }
 0x750   :  { %v1517_v48 = vrot.slane %v1516_v44, 4 }
 0x751   :  { %v1524_v49 = vrot.slane %v1523_v47, 4 }
 0x752   :  { %v1518_v50 = vadd.f32 %v1517_v48, %v1516_v44 }
 0x753   :  { %v1525_v51 = vadd.f32 %v1524_v49, %v1523_v47 }
 0x754   :  { %v1519_v52 = vrot.slane %v1518_v50, 2 }
 0x755   :  { %v1526_v53 = vrot.slane %v1525_v51, 2 }
 0x756   :  { %v1520_v54 = vadd.f32 %v1519_v52, %v1518_v50 }
 0x757   :  { %v1527_v55 = vadd.f32 %v1526_v53, %v1525_v51 }
 0x758   :  { %v1521_v56 = vrot.slane %v1520_v54, 1 }
 0x759   :  { %v1528_v57 = vrot.slane %v1527_v55, 1 }
 0x75a   :  { %v1522_v58 = vadd.f32 %v1521_v56, %v1520_v54 }
 0x75b   :  { %v1529_v59 = vadd.f32 %v1528_v57, %v1527_v55 }
 0x75c   :  { %v5853_v61 = vadd.f32 -1.0, %v1522_v58 }
 0x75d   :  { %v5854_v3 = vadd.f32 -1.0, %v1529_v59 }
 0x75e   :  { %vm1532_vm10 = vcmp.gt.f32.partialorder %v5853_v61, 0.0 }
 0x75f   :  { %vm1533_vm11 = vcmp.gt.f32.partialorder %v5854_v3, 0.0  ;;  %v1534_v63 = vsel %vm1532_vm10, %v1506_v32, %v1500_v26  ;;  %v1536_v62 = vsel %vm1532_vm10, %v1502_v27, %v1506_v32 }
 0x760   :  { %v1535_v0 = vsel %vm1533_vm11, %v1507_v33, %v1501_v28  ;;  %v1537_v1 = vsel %vm1533_vm11, %v1503_v29, %v1507_v33  ;;  %v1538_v2 = vadd.f32 %v1536_v62, %v1534_v63 }
 0x761   :  { %v1539_v60 = vadd.f32 %v1537_v1, %v1535_v0 }
 0x762   :  { %v1540_v4 = vmul.f32 0.5, %v1538_v2 }
 0x763   :  { %v1541_v5 = vmul.f32 0.5, %v1539_v60 }
 0x764   :  { %v1542_v6 = vsub.f32 %v6670_v42, %v1540_v4  ;;  %v1544_v7 = vsub.f32 %v6672_v43, %v1540_v4 }
 0x765   :  { %v1543_v9 = vsub.f32 %v6674_v45, %v1541_v5  ;;  %v1545_v10 = vsub.f32 %v6676_v46, %v1541_v5 }
 0x766   :  { %v1546_v11 = vmax.f32 %v1542_v6, 0.0  ;;  %v1548_v12 = vmax.f32 %v1544_v7, 0.0 }
 0x767   :  { %v1547_v13 = vmax.f32 %v1543_v9, 0.0  ;;  %v1549_v14 = vmax.f32 %v1545_v10, 0.0 }
 0x768   :  { %v1550_v15 = vadd.f32 %v1548_v12, %v1546_v11 }
 0x769   :  { %v1557_v16 = vadd.f32 %v1549_v14, %v1547_v13 }
 0x76a   :  { %v1551_v17 = vrot.slane %v1550_v15, 4 }
 0x76b   :  { %v1558_v18 = vrot.slane %v1557_v16, 4 }
 0x76c   :  { %v1552_v23 = vadd.f32 %v1551_v17, %v1550_v15 }
 0x76d   :  { %v1559_v24 = vadd.f32 %v1558_v18, %v1557_v16 }
 0x76e   :  { %v1553_v25 = vrot.slane %v1552_v23, 2 }
 0x76f   :  { %v1560_v26 = vrot.slane %v1559_v24, 2 }
 0x770   :  { %v1554_v27 = vadd.f32 %v1553_v25, %v1552_v23 }
 0x771   :  { %v1561_v28 = vadd.f32 %v1560_v26, %v1559_v24 }
 0x772   :  { %v1555_v29 = vrot.slane %v1554_v27, 1 }
 0x773   :  { %v1562_v30 = vrot.slane %v1561_v28, 1 }
 0x774   :  { %v1556_v31 = vadd.f32 %v1555_v29, %v1554_v27 }
 0x775   :  { %v1563_v32 = vadd.f32 %v1562_v30, %v1561_v28 }
 0x776   :  { %v5855_v33 = vadd.f32 -1.0, %v1556_v31 }
 0x777   :  { %v5856_v34 = vadd.f32 -1.0, %v1563_v32 }
 0x778   :  { %vm1566_vm12 = vcmp.gt.f32.partialorder %v5855_v33, 0.0 }
 0x779   :  { %vm1567_vm13 = vcmp.gt.f32.partialorder %v5856_v34, 0.0  ;;  %v1568_v35 = vsel %vm1566_vm12, %v1540_v4, %v1534_v63  ;;  %v1570_v36 = vsel %vm1566_vm12, %v1536_v62, %v1540_v4 }
 0x77a   :  { %v1569_v37 = vsel %vm1567_vm13, %v1541_v5, %v1535_v0  ;;  %v1571_v38 = vsel %vm1567_vm13, %v1537_v1, %v1541_v5  ;;  %v1572_v39 = vadd.f32 %v1570_v36, %v1568_v35 }
 0x77b   :  { %v1573_v40 = vadd.f32 %v1571_v38, %v1569_v37 }
 0x77c   :  { %v1574_v41 = vmul.f32 0.5, %v1572_v39 }
 0x77d   :  { %v1575_v44 = vmul.f32 0.5, %v1573_v40 }
 0x77e   :  { %v1576_v47 = vsub.f32 %v6670_v42, %v1574_v41  ;;  %v1578_v48 = vsub.f32 %v6672_v43, %v1574_v41 }
 0x77f   :  { %v1577_v49 = vsub.f32 %v6674_v45, %v1575_v44  ;;  %v1579_v50 = vsub.f32 %v6676_v46, %v1575_v44 }
 0x780   :  { %v1580_v51 = vmax.f32 %v1576_v47, 0.0  ;;  %v1582_v52 = vmax.f32 %v1578_v48, 0.0 }
 0x781   :  { %v1581_v53 = vmax.f32 %v1577_v49, 0.0  ;;  %v1583_v54 = vmax.f32 %v1579_v50, 0.0 }
 0x782   :  { %v1584_v55 = vadd.f32 %v1582_v52, %v1580_v51 }
 0x783   :  { %v1591_v56 = vadd.f32 %v1583_v54, %v1581_v53 }
 0x784   :  { %v1585_v57 = vrot.slane %v1584_v55, 4 }
 0x785   :  { %v1592_v58 = vrot.slane %v1591_v56, 4 }
 0x786   :  { %v1586_v59 = vadd.f32 %v1585_v57, %v1584_v55 }
 0x787   :  { %v1593_v61 = vadd.f32 %v1592_v58, %v1591_v56 }
 0x788   :  { %v1587_v3 = vrot.slane %v1586_v59, 2 }
 0x789   :  { %v1594_v63 = vrot.slane %v1593_v61, 2 }
 0x78a   :  { %v1588_v62 = vadd.f32 %v1587_v3, %v1586_v59 }
 0x78b   :  { %v1595_v0 = vadd.f32 %v1594_v63, %v1593_v61 }
 0x78c   :  { %v1589_v1 = vrot.slane %v1588_v62, 1 }
 0x78d   :  { %v1596_v2 = vrot.slane %v1595_v0, 1 }
 0x78e   :  { %v1590_v60 = vadd.f32 %v1589_v1, %v1588_v62 }
 0x78f   :  { %v1597_v4 = vadd.f32 %v1596_v2, %v1595_v0 }
 0x790   :  { %v5857_v5 = vadd.f32 -1.0, %v1590_v60 }
 0x791   :  { %v5858_v6 = vadd.f32 -1.0, %v1597_v4 }
 0x792   :  { %vm1600_vm14 = vcmp.gt.f32.partialorder %v5857_v5, 0.0 }
 0x793   :  { %vm1601_vm15 = vcmp.gt.f32.partialorder %v5858_v6, 0.0  ;;  %v1602_v7 = vsel %vm1600_vm14, %v1574_v41, %v1568_v35  ;;  %v1604_v9 = vsel %vm1600_vm14, %v1570_v36, %v1574_v41 }
 0x794   :  { %v1603_v10 = vsel %vm1601_vm15, %v1575_v44, %v1569_v37  ;;  %v1605_v11 = vsel %vm1601_vm15, %v1571_v38, %v1575_v44  ;;  %v1606_v12 = vadd.f32 %v1604_v9, %v1602_v7 }
 0x795   :  { %v1607_v13 = vadd.f32 %v1605_v11, %v1603_v10 }
 0x796   :  { %v1608_v14 = vmul.f32 0.5, %v1606_v12 }
 0x797   :  { %v1609_v15 = vmul.f32 0.5, %v1607_v13 }
 0x798   :  { %v1610_v16 = vsub.f32 %v6670_v42, %v1608_v14  ;;  %v1612_v17 = vsub.f32 %v6672_v43, %v1608_v14 }
 0x799   :  { %v1611_v18 = vsub.f32 %v6674_v45, %v1609_v15  ;;  %v1613_v23 = vsub.f32 %v6676_v46, %v1609_v15 }
 0x79a   :  { %v1614_v24 = vmax.f32 %v1610_v16, 0.0  ;;  %v1616_v25 = vmax.f32 %v1612_v17, 0.0 }
 0x79b   :  { %v1615_v26 = vmax.f32 %v1611_v18, 0.0  ;;  %v1617_v27 = vmax.f32 %v1613_v23, 0.0 }
 0x79c   :  { %v1618_v28 = vadd.f32 %v1616_v25, %v1614_v24 }
 0x79d   :  { %v1625_v29 = vadd.f32 %v1617_v27, %v1615_v26 }
 0x79e   :  { %v1619_v30 = vrot.slane %v1618_v28, 4 }
 0x79f   :  { %v1626_v31 = vrot.slane %v1625_v29, 4 }
 0x7a0   :  { %v1620_v32 = vadd.f32 %v1619_v30, %v1618_v28 }
 0x7a1   :  { %v1627_v33 = vadd.f32 %v1626_v31, %v1625_v29 }
 0x7a2   :  { %v1621_v34 = vrot.slane %v1620_v32, 2 }
 0x7a3   :  { %v1628_v35 = vrot.slane %v1627_v33, 2 }
 0x7a4   :  { %v1622_v36 = vadd.f32 %v1621_v34, %v1620_v32 }
 0x7a5   :  { %v1629_v37 = vadd.f32 %v1628_v35, %v1627_v33 }
 0x7a6   :  { %v1623_v38 = vrot.slane %v1622_v36, 1 }
 0x7a7   :  { %v1630_v39 = vrot.slane %v1629_v37, 1 }
 0x7a8   :  { %v1624_v40 = vadd.f32 %v1623_v38, %v1622_v36 }
 0x7a9   :  { %v1631_v41 = vadd.f32 %v1630_v39, %v1629_v37 }
 0x7aa   :  { %v5859_v44 = vadd.f32 -1.0, %v1624_v40 }
 0x7ab   :  { %v5860_v47 = vadd.f32 -1.0, %v1631_v41 }
 0x7ac   :  { %vm1634_vm2 = vcmp.gt.f32.partialorder %v5859_v44, 0.0 }
 0x7ad   :  { %vm1635_vm3 = vcmp.gt.f32.partialorder %v5860_v47, 0.0  ;;  %v1636_v48 = vsel %vm1634_vm2, %v1608_v14, %v1602_v7  ;;  %v1638_v49 = vsel %vm1634_vm2, %v1604_v9, %v1608_v14 }
 0x7ae   :  { %v1637_v50 = vsel %vm1635_vm3, %v1609_v15, %v1603_v10  ;;  %v1639_v51 = vsel %vm1635_vm3, %v1605_v11, %v1609_v15  ;;  %v1640_v52 = vadd.f32 %v1638_v49, %v1636_v48 }
 0x7af   :  { %v1641_v53 = vadd.f32 %v1639_v51, %v1637_v50 }
 0x7b0   :  { %v1642_v54 = vmul.f32 0.5, %v1640_v52 }
 0x7b1   :  { %v1643_v55 = vmul.f32 0.5, %v1641_v53 }
 0x7b2   :  { %v1644_v56 = vsub.f32 %v6670_v42, %v1642_v54  ;;  %v1646_v57 = vsub.f32 %v6672_v43, %v1642_v54 }
 0x7b3   :  { %v1645_v58 = vsub.f32 %v6674_v45, %v1643_v55  ;;  %v1647_v59 = vsub.f32 %v6676_v46, %v1643_v55 }
 0x7b4   :  { %v1648_v61 = vmax.f32 %v1644_v56, 0.0  ;;  %v1650_v3 = vmax.f32 %v1646_v57, 0.0 }
 0x7b5   :  { %v1649_v63 = vmax.f32 %v1645_v58, 0.0  ;;  %v1651_v62 = vmax.f32 %v1647_v59, 0.0 }
 0x7b6   :  { %v1652_v0 = vadd.f32 %v1650_v3, %v1648_v61 }
 0x7b7   :  { %v1659_v1 = vadd.f32 %v1651_v62, %v1649_v63 }
 0x7b8   :  { %v1653_v2 = vrot.slane %v1652_v0, 4 }
 0x7b9   :  { %v1660_v60 = vrot.slane %v1659_v1, 4 }
 0x7ba   :  { %v1654_v4 = vadd.f32 %v1653_v2, %v1652_v0 }
 0x7bb   :  { %v1661_v5 = vadd.f32 %v1660_v60, %v1659_v1 }
 0x7bc   :  { %v1655_v6 = vrot.slane %v1654_v4, 2 }
 0x7bd   :  { %v1662_v7 = vrot.slane %v1661_v5, 2 }
 0x7be   :  { %v1656_v9 = vadd.f32 %v1655_v6, %v1654_v4 }
 0x7bf   :  { %v1663_v10 = vadd.f32 %v1662_v7, %v1661_v5 }
 0x7c0   :  { %v1657_v11 = vrot.slane %v1656_v9, 1 }
 0x7c1   :  { %v1664_v12 = vrot.slane %v1663_v10, 1 }
 0x7c2   :  { %v1658_v13 = vadd.f32 %v1657_v11, %v1656_v9 }
 0x7c3   :  { %v1665_v14 = vadd.f32 %v1664_v12, %v1663_v10 }
 0x7c4   :  { %v5861_v15 = vadd.f32 -1.0, %v1658_v13 }
 0x7c5   :  { %v5862_v16 = vadd.f32 -1.0, %v1665_v14 }
 0x7c6   :  { %vm1668_vm4 = vcmp.gt.f32.partialorder %v5861_v15, 0.0 }
 0x7c7   :  { %vm1669_vm5 = vcmp.gt.f32.partialorder %v5862_v16, 0.0  ;;  %v1670_v17 = vsel %vm1668_vm4, %v1642_v54, %v1636_v48  ;;  %v1672_v18 = vsel %vm1668_vm4, %v1638_v49, %v1642_v54 }
 0x7c8   :  { %v1671_v23 = vsel %vm1669_vm5, %v1643_v55, %v1637_v50  ;;  %v1673_v24 = vsel %vm1669_vm5, %v1639_v51, %v1643_v55  ;;  %v1674_v25 = vadd.f32 %v1672_v18, %v1670_v17 }
 0x7c9   :  { %v1675_v26 = vadd.f32 %v1673_v24, %v1671_v23 }
 0x7ca   :  { %v1676_v27 = vmul.f32 0.5, %v1674_v25 }
 0x7cb   :  { %v1677_v28 = vmul.f32 0.5, %v1675_v26 }
 0x7cc   :  { %v1678_v29 = vsub.f32 %v6670_v42, %v1676_v27  ;;  %v1680_v30 = vsub.f32 %v6672_v43, %v1676_v27 }
 0x7cd   :  { %v1679_v31 = vsub.f32 %v6674_v45, %v1677_v28  ;;  %v1681_v32 = vsub.f32 %v6676_v46, %v1677_v28 }
 0x7ce   :  { %v1682_v33 = vmax.f32 %v1678_v29, 0.0  ;;  %v1684_v34 = vmax.f32 %v1680_v30, 0.0 }
 0x7cf   :  { %v1683_v35 = vmax.f32 %v1679_v31, 0.0  ;;  %v1685_v36 = vmax.f32 %v1681_v32, 0.0 }
 0x7d0   :  { %v1686_v37 = vadd.f32 %v1684_v34, %v1682_v33 }
 0x7d1   :  { %v1693_v38 = vadd.f32 %v1685_v36, %v1683_v35 }
 0x7d2   :  { %v1687_v39 = vrot.slane %v1686_v37, 4 }
 0x7d3   :  { %v1694_v40 = vrot.slane %v1693_v38, 4 }
 0x7d4   :  { %v1688_v41 = vadd.f32 %v1687_v39, %v1686_v37 }
 0x7d5   :  { %v1695_v44 = vadd.f32 %v1694_v40, %v1693_v38 }
 0x7d6   :  { %v1689_v47 = vrot.slane %v1688_v41, 2 }
 0x7d7   :  { %v1696_v48 = vrot.slane %v1695_v44, 2 }
 0x7d8   :  { %v1690_v49 = vadd.f32 %v1689_v47, %v1688_v41 }
 0x7d9   :  { %v1697_v50 = vadd.f32 %v1696_v48, %v1695_v44 }
 0x7da   :  { %v1691_v51 = vrot.slane %v1690_v49, 1 }
 0x7db   :  { %v1698_v52 = vrot.slane %v1697_v50, 1 }
 0x7dc   :  { %v1692_v53 = vadd.f32 %v1691_v51, %v1690_v49 }
 0x7dd   :  { %v1699_v54 = vadd.f32 %v1698_v52, %v1697_v50 }
 0x7de   :  { %v5863_v55 = vadd.f32 -1.0, %v1692_v53 }
 0x7df   :  { %v5864_v56 = vadd.f32 -1.0, %v1699_v54 }
 0x7e0   :  { %vm1702_vm6 = vcmp.gt.f32.partialorder %v5863_v55, 0.0 }
 0x7e1   :  { %vm1703_vm7 = vcmp.gt.f32.partialorder %v5864_v56, 0.0  ;;  %v1704_v57 = vsel %vm1702_vm6, %v1676_v27, %v1670_v17  ;;  %v1706_v58 = vsel %vm1702_vm6, %v1672_v18, %v1676_v27 }
 0x7e2   :  { %v1705_v59 = vsel %vm1703_vm7, %v1677_v28, %v1671_v23  ;;  %v1707_v61 = vsel %vm1703_vm7, %v1673_v24, %v1677_v28  ;;  %v1708_v3 = vadd.f32 %v1706_v58, %v1704_v57 }
 0x7e3   :  { %v1709_v63 = vadd.f32 %v1707_v61, %v1705_v59 }
 0x7e4   :  { %v1710_v62 = vmul.f32 0.5, %v1708_v3 }
 0x7e5   :  { %v1711_v0 = vmul.f32 0.5, %v1709_v63 }
 0x7e6   :  { %v1712_v1 = vsub.f32 %v6670_v42, %v1710_v62  ;;  %v1714_v2 = vsub.f32 %v6672_v43, %v1710_v62 }
 0x7e7   :  { %v1713_v60 = vsub.f32 %v6674_v45, %v1711_v0  ;;  %v1715_v4 = vsub.f32 %v6676_v46, %v1711_v0 }
 0x7e8   :  { %v1716_v5 = vmax.f32 %v1712_v1, 0.0  ;;  %v1718_v6 = vmax.f32 %v1714_v2, 0.0 }
 0x7e9   :  { %v1717_v7 = vmax.f32 %v1713_v60, 0.0  ;;  %v1719_v9 = vmax.f32 %v1715_v4, 0.0 }
 0x7ea   :  { %v1720_v10 = vadd.f32 %v1718_v6, %v1716_v5 }
 0x7eb   :  { %v1727_v11 = vadd.f32 %v1719_v9, %v1717_v7 }
 0x7ec   :  { %v1721_v12 = vrot.slane %v1720_v10, 4 }
 0x7ed   :  { %v1728_v13 = vrot.slane %v1727_v11, 4 }
 0x7ee   :  { %v1722_v14 = vadd.f32 %v1721_v12, %v1720_v10 }
 0x7ef   :  { %v1729_v15 = vadd.f32 %v1728_v13, %v1727_v11 }
 0x7f0   :  { %v1723_v16 = vrot.slane %v1722_v14, 2 }
 0x7f1   :  { %v1730_v17 = vrot.slane %v1729_v15, 2 }
 0x7f2   :  { %v1724_v18 = vadd.f32 %v1723_v16, %v1722_v14 }
 0x7f3   :  { %v1731_v23 = vadd.f32 %v1730_v17, %v1729_v15 }
 0x7f4   :  { %v1725_v24 = vrot.slane %v1724_v18, 1 }
 0x7f5   :  { %v1732_v25 = vrot.slane %v1731_v23, 1 }
 0x7f6   :  { %v1726_v26 = vadd.f32 %v1725_v24, %v1724_v18 }
 0x7f7   :  { %v1733_v27 = vadd.f32 %v1732_v25, %v1731_v23 }
 0x7f8   :  { %v5865_v28 = vadd.f32 -1.0, %v1726_v26 }
 0x7f9   :  { %v5866_v29 = vadd.f32 -1.0, %v1733_v27 }
 0x7fa   :  { %vm1736_vm8 = vcmp.gt.f32.partialorder %v5865_v28, 0.0 }
 0x7fb   :  { %vm1737_vm9 = vcmp.gt.f32.partialorder %v5866_v29, 0.0  ;;  %v1738_v30 = vsel %vm1736_vm8, %v1710_v62, %v1704_v57  ;;  %v1740_v31 = vsel %vm1736_vm8, %v1706_v58, %v1710_v62  ;;  %v50_v29 = vld [vmem:[%s7607_s2 + $0x20] sm:$0xff] }
 0x7fc   :  { %v1739_v32 = vsel %vm1737_vm9, %v1711_v0, %v1705_v59  ;;  %v1741_v33 = vsel %vm1737_vm9, %v1707_v61, %v1711_v0  ;;  %v1742_v34 = vadd.f32 %v1740_v31, %v1738_v30 }
 0x7fd   :  { %v1743_v35 = vadd.f32 %v1741_v33, %v1739_v32 }
 0x7fe   :  { %v1744_v36 = vmul.f32 0.5, %v1742_v34 }
 0x7ff   :  { %v1745_v37 = vmul.f32 0.5, %v1743_v35 }
 0x800   :  { %v1746_v38 = vsub.f32 %v6670_v42, %v1744_v36  ;;  %v1748_v39 = vsub.f32 %v6672_v43, %v1744_v36 }
 0x801   :  { %v1747_v40 = vsub.f32 %v6674_v45, %v1745_v37  ;;  %v1749_v41 = vsub.f32 %v6676_v46, %v1745_v37 }
 0x802   :  { %v1750_v44 = vmax.f32 %v1746_v38, 0.0  ;;  %v1752_v47 = vmax.f32 %v1748_v39, 0.0 }
 0x803   :  { %v1751_v48 = vmax.f32 %v1747_v40, 0.0  ;;  %v1753_v49 = vmax.f32 %v1749_v41, 0.0 }
 0x804   :  { %v1754_v50 = vadd.f32 %v1752_v47, %v1750_v44 }
 0x805   :  { %v1761_v51 = vadd.f32 %v1753_v49, %v1751_v48  ;;  %v53_v48 = vld [vmem:[%s7607_s2 + $0x38] sm:$0xff] }
 0x806   :  { %v1755_v52 = vrot.slane %v1754_v50, 4 }
 0x807   :  { %v1762_v53 = vrot.slane %v1761_v51, 4 }
 0x808   :  { %v1756_v54 = vadd.f32 %v1755_v52, %v1754_v50 }
 0x809   :  { %v1763_v55 = vadd.f32 %v1762_v53, %v1761_v51 }
 0x80a   :  { %v1757_v56 = vrot.slane %v1756_v54, 2 }
 0x80b   :  { %v1764_v57 = vrot.slane %v1763_v55, 2 }
 0x80c   :  { %v1758_v58 = vadd.f32 %v1757_v56, %v1756_v54 }
 0x80d   :  { %v1765_v59 = vadd.f32 %v1764_v57, %v1763_v55  ;;  %v1841_v55 = vpop.permute.xlu0 %1840 }
 0x80e   :  { %v1759_v61 = vrot.slane %v1758_v58, 1 }
 0x80f   :  { %v1766_v3 = vrot.slane %v1765_v59, 1 }
 0x810   :  { %v1760_v63 = vadd.f32 %v1759_v61, %v1758_v58 }
 0x811   :  { %v1767_v62 = vadd.f32 %v1766_v3, %v1765_v59  ;;  %v1846_v3 = vpop.permute.xlu1 %1845 }
 0x812   :  { %v5867_v0 = vadd.f32 -1.0, %v1760_v63 }
 0x813   :  { %v5868_v1 = vadd.f32 -1.0, %v1767_v62 }
 0x814   :  { %vm1770_vm10 = vcmp.gt.f32.partialorder %v5867_v0, 0.0 }
 0x815   :  { %vm1771_vm11 = vcmp.gt.f32.partialorder %v5868_v1, 0.0  ;;  %v1772_v2 = vsel %vm1770_vm10, %v1744_v36, %v1738_v30  ;;  %v1774_v60 = vsel %vm1770_vm10, %v1740_v31, %v1744_v36  ;;  %v51_v30 = vld [vmem:[%s7607_s2 + $0x28] sm:$0xff]  ;;  %v52_v36 = vld [vmem:[%s7607_s2 + $0x30] sm:$0xff] }
 0x816   :  { %v1773_v4 = vsel %vm1771_vm11, %v1745_v37, %v1739_v32  ;;  %v1775_v5 = vsel %vm1771_vm11, %v1741_v33, %v1745_v37  ;;  %v1776_v6 = vadd.f32 %v1774_v60, %v1772_v2 }
 0x817   :  { %v1777_v7 = vadd.f32 %v1775_v5, %v1773_v4 }
 0x818   :  { %v1778_v9 = vmul.f32 0.5, %v1776_v6 }
 0x819   :  { %v1779_v10 = vmul.f32 0.5, %v1777_v7 }
 0x81a   :  { %v1780_v11 = vsub.f32 %v6670_v42, %v1778_v9  ;;  %v1782_v12 = vsub.f32 %v6672_v43, %v1778_v9  ;;  %v1831_v9 = vpop.permute.xlu0 %1830 }
 0x81b   :  { %v1781_v13 = vsub.f32 %v6674_v45, %v1779_v10  ;;  %v1783_v14 = vsub.f32 %v6676_v46, %v1779_v10 }
 0x81c   :  { %v6790_v15 = vmax.f32 %v1780_v11, 0.0  ;;  %v6792_v16 = vmax.f32 %v1782_v12, 0.0 }
 0x81d   :  { %v6794_v17 = vmax.f32 %v1781_v13, 0.0  ;;  %v6796_v18 = vmax.f32 %v1783_v14, 0.0 }
 0x81e   :  { %v1788_v23 = vadd.f32 1e-15, %v6790_v15  ;;  %v1790_v24 = vadd.f32 1e-15, %v6792_v16  ;;  %v1824_v42 = vmul.f32 %v6790_v15, %v6533_v19  ;;  %v1826_v43 = vmul.f32 %v6792_v16, %v6537_v21 }
 0x81f   :  { %7634 = vst [vmem:[#allocation2_spill] sm:$0xff] %v6796_v18  ;;  %v1789_v45 = vadd.f32 1e-15, %v6794_v17  ;;  %v1791_v46 = vadd.f32 1e-15, %v6796_v18  ;;  %v1825_v25 = vmul.f32 %v6794_v17, %v6535_v20  ;;  %v1827_v26 = vmul.f32 %v6796_v18, %v6539_v22 }
 0x820   :  { %6129 = vlog2.f32 %v1788_v23  ;;  %v6048_v28 = vpack.c.bf16 %v1826_v43, %v1824_v42 }
 0x821   :  { %6131 = vlog2.f32 %v1789_v45  ;;  %v6046_v27 = vpack.c.bf16 %v1827_v26, %v1825_v25  ;;  %v1836_v45 = vpop.permute.xlu1 %1835 }
 0x822   :  { %6133 = vlog2.f32 %v1791_v46 }
 0x823   :  { %6047 = vmatprep.subr.bf16.mxu1 %v6046_v27  ;;  %6135 = vlog2.f32 %v1790_v24 }
 0x824   :  { %6049 = vmatpush1.bf16.msra.mxu1 %v6048_v28 }
 0x827   :  { %5869 = vmatmul.mubr.msk.f32.vlgmr.msra.gmra.mrb[16].mxu1 %vm233_vm0, %v50_v29 }
 0x828   :  { %1930 = vmatprep.mubr.f32.mxu1 %v7614_v8 }
 0x82a   :  { %v6130_v31 = vpop.eup %6129 }
 0x82b   :  { %v6132_v32 = vpop.eup %6131  ;;  %v1793_v33 = vmul.f32 0.6931472, %v6130_v31  ;;  %5870 = vmatmul.mubr.msk.f32.gmra.mrb[18].mxu1 %vm233_vm0, %v51_v30 }
 0x82c   :  { %v6134_v34 = vpop.eup %6133  ;;  %v1795_v35 = vmul.f32 0.6931472, %v6132_v32  ;;  %1936 = vmatprep.mubr.f32.mxu1 %v7614_v8 }
 0x82d   :  { %v6136_v37 = vpop.eup %6135  ;;  %v1799_v38 = vmul.f32 0.6931472, %v6134_v34  ;;  %v1800_v41 = vmul.f32 %v1793_v33, %v6790_v15  ;;  %v82_v34 = vld [vmem:[%s7608_s4 + $0x20] sm:$0xff] }
 0x82e   :  { %v1801_v39 = vmul.f32 %v1795_v35, %v6794_v17  ;;  %v1797_v40 = vmul.f32 0.6931472, %v6136_v37  ;;  %v83_v35 = vld [vmem:[%s7608_s4 + $0x28] sm:$0xff]  ;;  %v85_v37 = vld [vmem:[%s7608_s4 + $0x38] sm:$0xff] }
 0x82f   :  { %v1803_v44 = vmul.f32 %v1799_v38, %v6796_v18  ;;  %5871 = vmatmul.mubr.msk.f32.gmra.mrb[20].mxu1 %vm233_vm0, %v52_v36  ;;  %v84_v36 = vld [vmem:[%s7608_s4 + $0x30] sm:$0xff] }
 0x830   :  { %v1802_v47 = vmul.f32 %v1797_v40, %v6792_v16  ;;  %1942 = vmatprep.mubr.f32.mxu1 %v7614_v8 }
 0x831   :  { %v6832_v49 = vadd.f32 %v1803_v44, %v1801_v39  ;;  %v1982_v44 = vpop.permute.xlu0 %1981 }
 0x832   :  { %v6834_v50 = vadd.f32 %v1802_v47, %v1800_v41 }
 0x833   :  { %5872 = vmatmul.mubr.msk.f32.gmra.mrb[22].mxu1 %vm233_vm0, %v53_v48 }
 0x834   :  { %2214 = vmatprep.mubr.f32.mxu1 %v7614_v8 }
 0x8fa   :  { %v1926_v51 = vpop.f32.mrb[16].mxu1 }
 0x8fb   :  { %v1928_v52 = vpop.f32.mrb[17].mxu1  ;;  %v1927_v11 = vadd.f32 %v1926_v51, %v1831_v9 }
 0x8fc   :  { %v1929_v14 = vadd.f32 %v1928_v52, %v1831_v9 }
 0x8fe   :  { %v1932_v53 = vpop.f32.mrb[18].mxu1 }
 0x8ff   :  { %v1934_v54 = vpop.f32.mrb[19].mxu1  ;;  %v1933_v26 = vadd.f32 %v1932_v53, %v1836_v45 }
 0x900   :  { %v1935_v28 = vadd.f32 %v1934_v54, %v1836_v45  ;;  %v1987_v54 = vpop.permute.xlu1 %1986 }
 0x902   :  { %v1938_v56 = vpop.f32.mrb[20].mxu1 }
 0x903   :  { %v1939_v57 = vadd.f32 %v1938_v56, %v1841_v55  ;;  %v1940_v58 = vpop.f32.mrb[21].mxu1 }
 0x904   :  { %v1941_v59 = vadd.f32 %v1940_v58, %v1841_v55 }
 0x905   :  { %v1949_v61 = vmul.f32 0.5, %v1939_v57 }
 0x906   :  { %v1950_v63 = vmul.f32 0.5, %v1941_v59  ;;  %v1944_v62 = vpop.f32.mrb[22].mxu1 }
 0x907   :  { %6137 = vtanh.f32 %v1949_v61  ;;  %v1945_v0 = vadd.f32 %v1944_v62, %v1846_v3  ;;  %v1946_v1 = vpop.f32.mrb[23].mxu1 }
 0x908   :  { %6139 = vtanh.f32 %v1950_v63  ;;  %v1947_v2 = vadd.f32 %v1946_v1, %v1846_v3  ;;  %v1972_v1 = vpop.permute.xlu0 %1971 }
 0x909   :  { %v1951_v60 = vmul.f32 0.5, %v1945_v0 }
 0x90a   :  { %v1952_v4 = vmul.f32 0.5, %v1947_v2 }
 0x90b   :  { %6141 = vtanh.f32 %v1951_v60 }
 0x90c   :  { %6143 = vtanh.f32 %v1952_v4 }
 0x911   :  { %v6138_v5 = vpop.eup %6137 }
 0x912   :  { %v6140_v6 = vpop.eup %6139  ;;  %v1957_v7 = vmul.f32 0.5, %v6138_v5 }
 0x913   :  { %v1958_v10 = vmul.f32 0.5, %v6140_v6 }
 0x914   :  { %v1961_v12 = vadd.f32 0.5, %v1957_v7 }
 0x915   :  { %v6142_v13 = vpop.eup %6141  ;;  %v1962_v23 = vadd.f32 0.5, %v1958_v10 }
 0x916   :  { %v6144_v24 = vpop.eup %6143  ;;  %v6838_v42 = vmul.f32 %v1961_v12, %v1927_v11  ;;  %v1959_v43 = vmul.f32 0.5, %v6142_v13  ;;  %v1977_v12 = vpop.permute.xlu1 %1976 }
 0x917   :  { %v1960_v46 = vmul.f32 0.5, %v6144_v24  ;;  %v6840_v25 = vmul.f32 %v1962_v23, %v1929_v14 }
 0x918   :  { %v1963_v27 = vadd.f32 0.5, %v1959_v43 }
 0x919   :  { %v1964_v29 = vadd.f32 0.5, %v1960_v46 }
 0x91a   :  { %v6842_v30 = vmul.f32 %v1963_v27, %v1933_v26 }
 0x91b   :  { %v6844_v31 = vmul.f32 %v1964_v29, %v1935_v28 }
 0x91c   :  { %v6052_v33 = vpack.c.bf16 %v6842_v30, %v6838_v42 }
 0x91d   :  { %v6050_v32 = vpack.c.bf16 %v6844_v31, %v6840_v25 }
 0x91f   :  { %6051 = vmatprep.subr.bf16.mxu0 %v6050_v32 }
 0x920   :  { %6053 = vmatpush1.bf16.msra.mxu0 %v6052_v33 }
 0x923   :  { %5873 = vmatmul.mubr.msk.f32.vlgmr.msra.gmra.mrb[20].mxu0 %vm233_vm0, %v82_v34 }
 0x924   :  { %2071 = vmatprep.mubr.f32.mxu0 %v7614_v8 }
 0x927   :  { %5874 = vmatmul.mubr.msk.f32.gmra.mrb[22].mxu0 %vm233_vm0, %v83_v35 }
 0x928   :  { %2077 = vmatprep.mubr.f32.mxu0 %v7614_v8 }
 0x92b   :  { %5875 = vmatmul.mubr.msk.f32.gmra.mrb[24].mxu0 %vm233_vm0, %v84_v36 }
 0x92c   :  { %2083 = vmatprep.mubr.f32.mxu0 %v7614_v8 }
 0x92f   :  { %5876 = vmatmul.mubr.msk.f32.gmra.mrb[26].mxu0 %vm233_vm0, %v85_v37 }
 0x930   :  { %2363 = vmatprep.mubr.f32.mxu0 %v7614_v8 }
 0x9f6   :  { %v2067_v38 = vpop.f32.mrb[20].mxu0 }
 0x9f7   :  { %v2069_v39 = vpop.f32.mrb[21].mxu0  ;;  %v2068_v60 = vadd.f32 %v2067_v38, %v1972_v1 }
 0x9f8   :  { %v2070_v6 = vadd.f32 %v2069_v39, %v1972_v1 }
 0x9fa   :  { %v2073_v40 = vpop.f32.mrb[22].mxu0 }
 0x9fb   :  { %v2075_v41 = vpop.f32.mrb[23].mxu0  ;;  %v2074_v23 = vadd.f32 %v2073_v40, %v1977_v12 }
 0x9fc   :  { %v2076_v43 = vadd.f32 %v2075_v41, %v1977_v12 }
 0x9fe   :  { %v2079_v47 = vpop.f32.mrb[24].mxu0 }
 0x9ff   :  { %v2080_v48 = vadd.f32 %v2079_v47, %v1982_v44  ;;  %v2081_v51 = vpop.f32.mrb[25].mxu0  ;;  %v2131_v47 = vpop.permute.xlu0 %2130 }
 0xa00   :  { %v2082_v52 = vadd.f32 %v2081_v51, %v1982_v44 }
 0xa01   :  { %v2090_v53 = vmul.f32 0.5, %v2080_v48 }
 0xa02   :  { %v2091_v55 = vmul.f32 0.5, %v2082_v52  ;;  %v2085_v56 = vpop.f32.mrb[26].mxu0 }
 0xa03   :  { %6145 = vtanh.f32 %v2090_v53  ;;  %v2086_v57 = vadd.f32 %v2085_v56, %v1987_v54  ;;  %v2087_v58 = vpop.f32.mrb[27].mxu0 }
 0xa04   :  { %6147 = vtanh.f32 %v2091_v55  ;;  %v2088_v59 = vadd.f32 %v2087_v58, %v1987_v54  ;;  %v2136_v55 = vpop.permute.xlu1 %2135 }
 0xa05   :  { %v2092_v61 = vmul.f32 0.5, %v2086_v57 }
 0xa06   :  { %v2093_v3 = vmul.f32 0.5, %v2088_v59 }
 0xa07   :  { %6149 = vtanh.f32 %v2092_v61 }
 0xa08   :  { %6151 = vtanh.f32 %v2093_v3 }
 0xa0d   :  { %v6146_v63 = vpop.eup %6145 }
 0xa0e   :  { %v6148_v62 = vpop.eup %6147  ;;  %v2098_v0 = vmul.f32 0.5, %v6146_v63 }
 0xa0f   :  { %v2099_v2 = vmul.f32 0.5, %v6148_v62 }
 0xa10   :  { %v2102_v4 = vadd.f32 0.5, %v2098_v0 }
 0xa11   :  { %v6150_v5 = vpop.eup %6149  ;;  %v2103_v7 = vadd.f32 0.5, %v2099_v2  ;;  %v2121_v2 = vpop.permute.xlu0 %2120 }
 0xa12   :  { %v6152_v9 = vpop.eup %6151  ;;  %v2106_v10 = vmul.f32 %v2102_v4, %v2068_v60  ;;  %v2100_v11 = vmul.f32 0.5, %v6150_v5 }
 0xa13   :  { %v2107_v13 = vmul.f32 %v2103_v7, %v2070_v6  ;;  %v2101_v14 = vmul.f32 0.5, %v6152_v9 }
 0xa14   :  { %v2104_v24 = vadd.f32 0.5, %v2100_v11  ;;  %v2110_v28 = vadd.f32 %v2106_v10, %v6838_v42  ;;  %v118_v42 = vld [vmem:[%s7609_s6 + $0x40] sm:$0xff] }
 0xa15   :  { %v2105_v45 = vadd.f32 0.5, %v2101_v14  ;;  %v2111_v27 = vadd.f32 %v2107_v13, %v6840_v25  ;;  %v119_v25 = vld [vmem:[%s7609_s6 + $0x48] sm:$0xff]  ;;  %v2126_v13 = vpop.permute.xlu1 %2125 }
 0xa16   :  { %v2108_v46 = vmul.f32 %v2104_v24, %v2074_v23  ;;  %v2114_v36 = vmul.f32 0.70710677, %v2110_v28 }
 0xa17   :  { %v2109_v26 = vmul.f32 %v2105_v45, %v2076_v43  ;;  %v6876_v34 = vmul.f32 0.70710677, %v2111_v27 }
 0xa18   :  { %v2112_v29 = vadd.f32 %v2108_v46, %v6842_v30  ;;  %v120_v30 = vld [vmem:[%s7609_s6 + $0x50] sm:$0xff] }
 0xa19   :  { %v2113_v32 = vadd.f32 %v2109_v26, %v6844_v31  ;;  %v121_v31 = vld [vmem:[%s7609_s6 + $0x58] sm:$0xff] }
 0xa1a   :  { %v6874_v33 = vmul.f32 0.70710677, %v2112_v29 }
 0xa1b   :  { %v6878_v35 = vmul.f32 0.70710677, %v2113_v32 }
 0xa1c   :  { %v6056_v38 = vpack.c.bf16 %v6874_v33, %v2114_v36 }
 0xa1d   :  { %v6054_v37 = vpack.c.bf16 %v6878_v35, %v6876_v34 }
 0xa1f   :  { %6055 = vmatprep.subr.bf16.mxu1 %v6054_v37 }
 0xa20   :  { %6057 = vmatpush1.bf16.msra.mxu1 %v6056_v38 }
 0xa23   :  { %5877 = vmatmul.mubr.msk.f32.vlgmr.msra.gmra.mrb[24].mxu1 %vm233_vm0, %v118_v42 }
 0xa24   :  { %2220 = vmatprep.mubr.f32.mxu1 %v7614_v8 }
 0xa27   :  { %5878 = vmatmul.mubr.msk.f32.gmra.mrb[26].mxu1 %vm233_vm0, %v119_v25 }
 0xa28   :  { %2226 = vmatprep.mubr.f32.mxu1 %v7614_v8 }
 0xa2b   :  { %5879 = vmatmul.mubr.msk.f32.gmra.mrb[28].mxu1 %vm233_vm0, %v120_v30 }
 0xa2c   :  { %2232 = vmatprep.mubr.f32.mxu1 %v7614_v8 }
 0xa2f   :  { %5880 = vmatmul.mubr.msk.f32.gmra.mrb[30].mxu1 %vm233_vm0, %v121_v31 }
 0xa30   :  { %2500 = vmatprep.mubr.f32.mxu1 %v7614_v8 }
 0xaf6   :  { %v2216_v39 = vpop.f32.mrb[24].mxu1 }
 0xaf7   :  { %v2218_v40 = vpop.f32.mrb[25].mxu1  ;;  %v2217_v4 = vadd.f32 %v2216_v39, %v2121_v2 }
 0xaf8   :  { %v2219_v7 = vadd.f32 %v2218_v40, %v2121_v2  ;;  %v2285_v40 = vpop.permute.xlu0 %2284 }
 0xafa   :  { %v2222_v41 = vpop.f32.mrb[26].mxu1 }
 0xafb   :  { %v2224_v44 = vpop.f32.mrb[27].mxu1  ;;  %v2223_v24 = vadd.f32 %v2222_v41, %v2126_v13 }
 0xafc   :  { %v2225_v45 = vadd.f32 %v2224_v44, %v2126_v13  ;;  %v6938_v41 = vpop.permute.xlu0 %2422  ;;  %v6940_v44 = vpop.permute.xlu1 %2274 }
 0xafe   :  { %v2228_v48 = vpop.f32.mrb[28].mxu1 }
 0xaff   :  { %v2229_v51 = vadd.f32 %v2228_v48, %v2131_v47  ;;  %v2230_v52 = vpop.f32.mrb[29].mxu1 }
 0xb00   :  { %v2231_v53 = vadd.f32 %v2230_v52, %v2131_v47  ;;  %v6942_v47 = vpop.permute.xlu0 %3485  ;;  %v6944_v48 = vpop.permute.xlu1 %2427 }
 0xb01   :  { %v2239_v54 = vmul.f32 0.5, %v2229_v51 }
 0xb02   :  { %v2240_v56 = vmul.f32 0.5, %v2231_v53  ;;  %v2234_v57 = vpop.f32.mrb[30].mxu1 }
 0xb03   :  { %6153 = vtanh.f32 %v2239_v54  ;;  %v2235_v58 = vadd.f32 %v2234_v57, %v2136_v55  ;;  %v2236_v59 = vpop.f32.mrb[31].mxu1 }
 0xb04   :  { %6155 = vtanh.f32 %v2240_v56  ;;  %v2237_v61 = vadd.f32 %v2236_v59, %v2136_v55  ;;  %v6946_v51 = vpop.permute.xlu0 %3475  ;;  %v6948_v52 = vpop.permute.xlu1 %3490 }
 0xb05   :  { %v2241_v3 = vmul.f32 0.5, %v2235_v58 }
 0xb06   :  { %v2242_v63 = vmul.f32 0.5, %v2237_v61 }
 0xb07   :  { %6157 = vtanh.f32 %v2241_v3 }
 0xb08   :  { %6159 = vtanh.f32 %v2242_v63  ;;  %v6950_v53 = vpop.permute.xlu0 %3626  ;;  %v6952_v54 = vpop.permute.xlu1 %3480 }
 0xb0c   :  { %v6954_v55 = vpop.permute.xlu0 %3616  ;;  %v6956_v56 = vpop.permute.xlu1 %3631 }
 0xb0d   :  { %v6154_v62 = vpop.eup %6153 }
 0xb0e   :  { %v6156_v0 = vpop.eup %6155  ;;  %v2247_v1 = vmul.f32 0.5, %v6154_v62 }
 0xb0f   :  { %v2248_v60 = vmul.f32 0.5, %v6156_v0 }
 0xb10   :  { %v2251_v5 = vadd.f32 0.5, %v2247_v1  ;;  %v6958_v57 = vpop.permute.xlu0 %3775  ;;  %v6960_v58 = vpop.permute.xlu1 %3621 }
 0xb11   :  { %v6158_v6 = vpop.eup %6157  ;;  %v2252_v9 = vadd.f32 0.5, %v2248_v60 }
 0xb12   :  { %v6160_v10 = vpop.eup %6159  ;;  %v2255_v11 = vmul.f32 %v2251_v5, %v2217_v4  ;;  %v2249_v12 = vmul.f32 0.5, %v6158_v6 }
 0xb13   :  { %v2256_v14 = vmul.f32 %v2252_v9, %v2219_v7  ;;  %v2250_v23 = vmul.f32 0.5, %v6160_v10 }
 0xb14   :  { %v2253_v43 = vadd.f32 0.5, %v2249_v12  ;;  %v2259_v29 = vadd.f32 %v2255_v11, %v2114_v36  ;;  %v125_v36 = vld [vmem:[%s7609_s6 + $0x78] sm:$0xff]  ;;  %v6962_v59 = vpop.permute.xlu0 %3765  ;;  %v6964_v61 = vpop.permute.xlu1 %3780 }
 0xb15   :  { %v2254_v46 = vadd.f32 0.5, %v2250_v23  ;;  %v2260_v28 = vadd.f32 %v2256_v14, %v6876_v34  ;;  %v123_v34 = vld [vmem:[%s7609_s6 + $0x68] sm:$0xff] }
 0xb16   :  { %v2257_v26 = vmul.f32 %v2253_v43, %v2223_v24  ;;  %v6912_v30 = vmul.f32 0.70710677, %v2259_v29 }
 0xb17   :  { %v2258_v27 = vmul.f32 %v2254_v46, %v2225_v45  ;;  %v6908_v42 = vmul.f32 0.70710677, %v2260_v28 }
 0xb18   :  { %v2261_v32 = vadd.f32 %v2257_v26, %v6874_v33  ;;  %v122_v33 = vld [vmem:[%s7609_s6 + $0x60] sm:$0xff]  ;;  %v6966_v3 = vpop.permute.xlu0 %3929  ;;  %v6968_v63 = vpop.permute.xlu1 %3770 }
 0xb19   :  { %v2262_v37 = vadd.f32 %v2258_v27, %v6878_v35  ;;  %v124_v35 = vld [vmem:[%s7609_s6 + $0x70] sm:$0xff] }
 0xb1a   :  { %v6906_v38 = vmul.f32 0.70710677, %v2261_v32 }
 0xb1b   :  { %v6910_v25 = vmul.f32 0.70710677, %v2262_v37 }
 0xb1c   :  { %v6060_v39 = vpack.c.bf16 %v6906_v38, %v6912_v30  ;;  %v6970_v62 = vpop.permute.xlu0 %4067  ;;  %v6972_v0 = vpop.permute.xlu1 %3919 }
 0xb1d   :  { %v6058_v31 = vpack.c.bf16 %v6910_v25, %v6908_v42 }
 0xb1f   :  { %6059 = vmatprep.subr.bf16.mxu0 %v6058_v31 }
 0xb20   :  { %6061 = vmatpush1.bf16.msra.mxu0 %v6060_v39  ;;  %v6974_v1 = vpop.permute.xlu0 %5122  ;;  %v6976_v2 = vpop.permute.xlu1 %4072 }
 0xb21   :  { %7635 = vst [vmem:[#allocation3_spill] sm:$0xff] %v6974_v1  ;;  %7636 = vst [vmem:[#allocation4_spill] sm:$0xff] %v6976_v2 }
 0xb23   :  { %5881 = vmatmul.mubr.msk.f32.vlgmr.msra.gmra.mrb[28].mxu0 %vm233_vm0, %v122_v33 }
 0xb24   :  { %2369 = vmatprep.mubr.f32.mxu0 %v7614_v8  ;;  %v6978_v60 = vpop.permute.xlu0 %5112  ;;  %v6980_v4 = vpop.permute.xlu1 %5127 }
 0xb25   :  { %7637 = vst [vmem:[#allocation5_spill] sm:$0xff] %v6978_v60  ;;  %7638 = vst [vmem:[#allocation6_spill] sm:$0xff] %v6980_v4 }
 0xb27   :  { %5882 = vmatmul.mubr.msk.f32.gmra.mrb[30].mxu0 %vm233_vm0, %v123_v34 }
 0xb28   :  { %2375 = vmatprep.mubr.f32.mxu0 %v7614_v8  ;;  %v6982_v5 = vpop.permute.xlu0 %5263  ;;  %v6984_v6 = vpop.permute.xlu1 %5117 }
 0xb29   :  { %7639 = vst [vmem:[#allocation7_spill] sm:$0xff] %v6982_v5  ;;  %7640 = vst [vmem:[#allocation8_spill] sm:$0xff] %v6984_v6 }
 0xb2b   :  { %5883 = vmatmul.mubr.msk.f32.gmra.mrb[32].mxu0 %vm233_vm0, %v124_v35 }
 0xb2c   :  { %2381 = vmatprep.mubr.f32.mxu0 %v7614_v8  ;;  %v6986_v7 = vpop.permute.xlu0 %5253  ;;  %v6988_v9 = vpop.permute.xlu1 %5268 }
 0xb2d   :  { %7641 = vst [vmem:[#allocation9_spill] sm:$0xff] %v6986_v7  ;;  %7642 = vst [vmem:[#allocation10_spill] sm:$0xff] %v6988_v9 }
 0xb2f   :  { %5884 = vmatmul.mubr.msk.f32.gmra.mrb[34].mxu0 %vm233_vm0, %v125_v36 }
 0xb30   :  { %3569 = vmatprep.mubr.f32.mxu0 %v7614_v8  ;;  %v6990_v10 = vpop.permute.xlu0 %5412  ;;  %v6992_v12 = vpop.permute.xlu1 %5258 }
 0xb31   :  { %7643 = vst [vmem:[#allocation11_spill] sm:$0xff] %v6990_v10  ;;  %7644 = vst [vmem:[#allocation12_spill] sm:$0xff] %v6992_v12 }
 0xb34   :  { %v6994_v14 = vpop.permute.xlu0 %5402  ;;  %v6996_v43 = vpop.permute.xlu1 %5417 }
 0xb35   :  { %7645 = vst [vmem:[#allocation13_spill] sm:$0xff] %v6994_v14  ;;  %7646 = vst [vmem:[#allocation14_spill] sm:$0xff] %v6996_v43 }
 0xb38   :  { %v2280_v45 = vpop.permute.xlu0 %2279  ;;  %v6998_v31 = vpop.permute.xlu1 %5407 }
 0xb39   :  { %7647 = vst [vmem:[#allocation15_spill] sm:$0xff] %v6998_v31 }
 0xb3c   :  { %v7000_v8 = vpop.permute.xlu1 %3924 }
 0xbf6   :  { %v2365_v11 = vpop.f32.mrb[28].mxu0 }
 0xbf7   :  { %v2367_v13 = vpop.f32.mrb[29].mxu0 }
 0xbfa   :  { %v2371_v23 = vpop.f32.mrb[30].mxu0 }
 0xbfb   :  { %v2373_v24 = vpop.f32.mrb[31].mxu0 }
 0xbfe   :  { %v2377_v46 = vpop.f32.mrb[32].mxu0 }
 0xbff   :  { %v2378_v26 = vadd.f32 %v2377_v46, %v2280_v45  ;;  %v2379_v27 = vpop.f32.mrb[33].mxu0 }
 0xc00   :  { %v2380_v28 = vadd.f32 %v2379_v27, %v2280_v45  ;;  %v2270_v45 = vpop.permute.xlu1 %2269 }
 0xc01   :  { %v2388_v29 = vmul.f32 0.5, %v2378_v26  ;;  %v2366_v27 = vadd.f32 %v2365_v11, %v2270_v45  ;;  %v2368_v31 = vadd.f32 %v2367_v13, %v2270_v45 }
 0xc02   :  { %v2389_v32 = vmul.f32 0.5, %v2380_v28  ;;  %v2383_v37 = vpop.f32.mrb[34].mxu0 }
 0xc03   :  { %6161 = vtanh.f32 %v2388_v29  ;;  %v2384_v39 = vadd.f32 %v2383_v37, %v2285_v40  ;;  %v2385_v33 = vpop.f32.mrb[35].mxu0 }
 0xc04   :  { %6163 = vtanh.f32 %v2389_v32  ;;  %v2386_v34 = vadd.f32 %v2385_v33, %v2285_v40  ;;  %v2372_v33 = vadd.f32 %v2371_v23, %v6940_v44  ;;  %v7648_v23 = vmov 0.0  }
 0xc05   :  { %v2390_v35 = vmul.f32 0.5, %v2384_v39 }
 0xc06   :  { %v2391_v36 = vmul.f32 0.5, %v2386_v34 }
 0xc07   :  { %6165 = vtanh.f32 %v2390_v35  ;;  %v2374_v35 = vadd.f32 %v2373_v24, %v6940_v44  ;;  %v177_v44 = vld [vmem:[%s7610_s8 + $0x18] sm:$0xff] }
 0xc08   :  { %6167 = vtanh.f32 %v2391_v36 }
 0xc0d   :  { %v6162_v14 = vpop.eup %6161 }
 0xc0e   :  { %v6164_v46 = vpop.eup %6163  ;;  %v2396_v43 = vmul.f32 0.5, %v6162_v14 }
 0xc0f   :  { %v2397_v26 = vmul.f32 0.5, %v6164_v46 }
 0xc10   :  { %v2400_v28 = vadd.f32 0.5, %v2396_v43 }
 0xc11   :  { %v6166_v10 = vpop.eup %6165  ;;  %v2401_v29 = vadd.f32 0.5, %v2397_v26 }
 0xc12   :  { %v6168_v37 = vpop.eup %6167  ;;  %v7002_v12 = vmul.f32 %v2400_v28, %v2366_v27  ;;  %v2398_v40 = vmul.f32 0.5, %v6166_v10  ;;  %v176_v10 = vld [vmem:[%s7610_s8 + $0x10] sm:$0xff]  ;;  %v7624_v27 = vsub.f32 1.3, %v6790_v15  ;;  %v7622_v28 = vsub.f32 1.3, %v6792_v16 }
 0xc13   :  { %v7004_v32 = vmul.f32 %v2401_v29, %v2368_v31  ;;  %v2399_v39 = vmul.f32 0.5, %v6168_v37 }
 0xc14   :  { %v2402_v34 = vadd.f32 0.5, %v2398_v40  ;;  %v7623_v40 = vsub.f32 1.3, %v6794_v17 }
 0xc15   :  { %v2403_v14 = vadd.f32 0.5, %v2399_v39  ;;  %v7621_v39 = vsub.f32 1.3, %v6796_v18 }
 0xc16   :  { %v2406_v36 = vmul.f32 %v2402_v34, %v2372_v33 }
 0xc17   :  { %v2407_v46 = vmul.f32 %v2403_v14, %v2374_v35 }
 0xc18   :  { %v2410_v11 = vadd.f32 %v2406_v36, %v6906_v38 }
 0xc19   :  { %v2411_v13 = vadd.f32 %v2407_v46, %v6910_v25 }
 0xc1a   :  { %v2414_v45 = vmul.f32 0.70710677, %v2410_v11 }
 0xc1b   :  { %v2415_v43 = vmul.f32 0.70710677, %v2411_v13 }
 0xc1d   :  { %2436 = vmatprep.subr.mxu1 %v2415_v43 }
 0xc1e   :  { %2437 = vmatpush1.msra.mxu1 %v2414_v45 }
 0xc1f   :  { %5885 = vmatmul.mubr.msk.f32.vlgmr.msra.gmra.mrb[32].mxu1 %vm792_vm1, %v176_v10 }
 0xc20   :  { %2506 = vmatprep.mubr.f32.mxu1 %v7648_v23 }
 0xc23   :  { %5886 = vmatmul.mubr.msk.f32.gmra.mrb[34].mxu1 %vm792_vm1, %v177_v44 }
 0xc24   :  { %3710 = vmatprep.mubr.f32.mxu1 %v7648_v23 }
 0xcf2   :  { %v2502_v38 = vpop.f32.mrb[32].mxu1 }
 0xcf3   :  { %v2504_v25 = vpop.f32.mrb[33].mxu1  ;;  %v2503_v24 = vadd.f32 %v2502_v38, %v6938_v41 }
 0xcf4   :  { %v2505_v31 = vadd.f32 %v2504_v25, %v6938_v41 }
 0xcf5   :  { %v7030_v34 = vmul.f32 %v2503_v24, %v7624_v27 }
 0xcf6   :  { %v2508_v26 = vpop.f32.mrb[34].mxu1  ;;  %v7038_v35 = vmul.f32 %v2505_v31, %v7623_v40 }
 0xcf7   :  { %v2509_v29 = vadd.f32 %v2508_v26, %v6944_v48  ;;  %v2510_v37 = vpop.f32.mrb[35].mxu1 }
 0xcf8   :  { %v2511_v33 = vadd.f32 %v2510_v37, %v6944_v48 }
 0xcf9   :  { %v7034_v41 = vmul.f32 %v2509_v29, %v7622_v28 }
 0xcfa   :  { %v7042_v14 = vmul.f32 %v2511_v33, %v7621_v39 }
 0xcfb   :  { %v2517_v36 = vmax.f32 %v7030_v34, %v7034_v41 }
 0xcfc   :  { %v2524_v48 = vmax.f32 %v7038_v35, %v7042_v14 }
 0xcfd   :  { %v2518_v46 = vrot.slane %v2517_v36, 4 }
 0xcfe   :  { %v2525_v11 = vrot.slane %v2524_v48, 4 }
 0xcff   :  { %v2519_v13 = vmax.f32 %v2517_v36, %v2518_v46 }
 0xd00   :  { %v2526_v43 = vmax.f32 %v2524_v48, %v2525_v11 }
 0xd01   :  { %v2520_v45 = vrot.slane %v2519_v13, 2 }
 0xd02   :  { %v2527_v10 = vrot.slane %v2526_v43, 2 }
 0xd03   :  { %v2521_v44 = vmax.f32 %v2519_v13, %v2520_v45 }
 0xd04   :  { %v2528_v38 = vmax.f32 %v2526_v43, %v2527_v10 }
 0xd05   :  { %v2522_v25 = vrot.slane %v2521_v44, 1 }
 0xd06   :  { %v2529_v24 = vrot.slane %v2528_v38, 1 }
 0xd07   :  { %v2523_v31 = vmax.f32 %v2521_v44, %v2522_v25 }
 0xd08   :  { %v2530_v26 = vmax.f32 %v2528_v38, %v2529_v24 }
 0xd09   :  { %v5887_v29 = vadd.f32 -1.0, %v2523_v31 }
 0xd0a   :  { %v5888_v37 = vadd.f32 -1.0, %v2530_v26 }
 0xd0b   :  { %v2533_v33 = vadd.f32 %v5887_v29, %v2523_v31 }
 0xd0c   :  { %v2534_v39 = vadd.f32 %v5888_v37, %v2530_v26 }
 0xd0d   :  { %v2535_v28 = vmul.f32 0.5, %v2533_v33 }
 0xd0e   :  { %v2536_v40 = vmul.f32 0.5, %v2534_v39 }
 0xd0f   :  { %v2537_v27 = vsub.f32 %v7030_v34, %v2535_v28  ;;  %v2539_v7 = vsub.f32 %v7034_v41, %v2535_v28 }
 0xd10   :  { %v2538_v36 = vsub.f32 %v7038_v35, %v2536_v40  ;;  %v2540_v48 = vsub.f32 %v7042_v14, %v2536_v40 }
 0xd11   :  { %v2541_v46 = vmax.f32 %v2537_v27, 0.0  ;;  %v2543_v11 = vmax.f32 %v2539_v7, 0.0 }
 0xd12   :  { %v2542_v13 = vmax.f32 %v2538_v36, 0.0  ;;  %v2544_v43 = vmax.f32 %v2540_v48, 0.0 }
 0xd13   :  { %v2545_v45 = vadd.f32 %v2543_v11, %v2541_v46 }
 0xd14   :  { %v2552_v10 = vadd.f32 %v2544_v43, %v2542_v13 }
 0xd15   :  { %v2546_v44 = vrot.slane %v2545_v45, 4 }
 0xd16   :  { %v2553_v38 = vrot.slane %v2552_v10, 4 }
 0xd17   :  { %v2547_v25 = vadd.f32 %v2546_v44, %v2545_v45 }
 0xd18   :  { %v2554_v24 = vadd.f32 %v2553_v38, %v2552_v10 }
 0xd19   :  { %v2548_v33 = vrot.slane %v2547_v25, 2 }
 0xd1a   :  { %v2555_v39 = vrot.slane %v2554_v24, 2 }
 0xd1b   :  { %v2549_v9 = vadd.f32 %v2548_v33, %v2547_v25 }
 0xd1c   :  { %v2556_v5 = vadd.f32 %v2555_v39, %v2554_v24 }
 0xd1d   :  { %v2550_v6 = vrot.slane %v2549_v9, 1 }
 0xd1e   :  { %v2557_v60 = vrot.slane %v2556_v5, 1 }
 0xd1f   :  { %v2551_v4 = vadd.f32 %v2550_v6, %v2549_v9 }
 0xd20   :  { %v2558_v1 = vadd.f32 %v2557_v60, %v2556_v5 }
 0xd21   :  { %v5889_v18 = vadd.f32 -1.0, %v2551_v4 }
 0xd22   :  { %v5890_v2 = vadd.f32 -1.0, %v2558_v1 }
 0xd23   :  { %vm2561_vm12 = vcmp.gt.f32.partialorder %v5889_v18, 0.0 }
 0xd24   :  { %vm2562_vm13 = vcmp.gt.f32.partialorder %v5890_v2, 0.0  ;;  %v2563_v7 = vsel %vm2561_vm12, %v2535_v28, %v5887_v29  ;;  %v2565_v27 = vsel %vm2561_vm12, %v2523_v31, %v2535_v28 }
 0xd25   :  { %v2564_v36 = vsel %vm2562_vm13, %v2536_v40, %v5888_v37  ;;  %v2566_v48 = vsel %vm2562_vm13, %v2530_v26, %v2536_v40  ;;  %v2567_v46 = vadd.f32 %v2565_v27, %v2563_v7 }
 0xd26   :  { %v2568_v11 = vadd.f32 %v2566_v48, %v2564_v36 }
 0xd27   :  { %v2569_v13 = vmul.f32 0.5, %v2567_v46 }
 0xd28   :  { %v2570_v43 = vmul.f32 0.5, %v2568_v11 }
 0xd29   :  { %v2571_v45 = vsub.f32 %v7030_v34, %v2569_v13  ;;  %v2573_v10 = vsub.f32 %v7034_v41, %v2569_v13 }
 0xd2a   :  { %v2572_v44 = vsub.f32 %v7038_v35, %v2570_v43  ;;  %v2574_v60 = vsub.f32 %v7042_v14, %v2570_v43 }
 0xd2b   :  { %v2575_v4 = vmax.f32 %v2571_v45, 0.0  ;;  %v2577_v1 = vmax.f32 %v2573_v10, 0.0 }
 0xd2c   :  { %v2576_v18 = vmax.f32 %v2572_v44, 0.0  ;;  %v2578_v2 = vmax.f32 %v2574_v60, 0.0 }
 0xd2d   :  { %v2579_v5 = vadd.f32 %v2577_v1, %v2575_v4 }
 0xd2e   :  { %v2586_v6 = vadd.f32 %v2578_v2, %v2576_v18 }
 0xd2f   :  { %v2580_v9 = vrot.slane %v2579_v5, 4 }
 0xd30   :  { %v2587_v28 = vrot.slane %v2586_v6, 4 }
 0xd31   :  { %v2581_v40 = vadd.f32 %v2580_v9, %v2579_v5 }
 0xd32   :  { %v2588_v31 = vadd.f32 %v2587_v28, %v2586_v6 }
 0xd33   :  { %v2582_v26 = vrot.slane %v2581_v40, 2 }
 0xd34   :  { %v2589_v29 = vrot.slane %v2588_v31, 2 }
 0xd35   :  { %v2583_v37 = vadd.f32 %v2582_v26, %v2581_v40 }
 0xd36   :  { %v2590_v38 = vadd.f32 %v2589_v29, %v2588_v31 }
 0xd37   :  { %v2584_v25 = vrot.slane %v2583_v37, 1 }
 0xd38   :  { %v2591_v24 = vrot.slane %v2590_v38, 1 }
 0xd39   :  { %v2585_v33 = vadd.f32 %v2584_v25, %v2583_v37 }
 0xd3a   :  { %v2592_v39 = vadd.f32 %v2591_v24, %v2590_v38 }
 0xd3b   :  { %v5891_v46 = vadd.f32 -1.0, %v2585_v33 }
 0xd3c   :  { %v5892_v11 = vadd.f32 -1.0, %v2592_v39 }
 0xd3d   :  { %vm2595_vm14 = vcmp.gt.f32.partialorder %v5891_v46, 0.0 }
 0xd3e   :  { %vm2596_vm15 = vcmp.gt.f32.partialorder %v5892_v11, 0.0  ;;  %v2597_v45 = vsel %vm2595_vm14, %v2569_v13, %v2563_v7  ;;  %v2599_v10 = vsel %vm2595_vm14, %v2565_v27, %v2569_v13 }
 0xd3f   :  { %v2598_v44 = vsel %vm2596_vm15, %v2570_v43, %v2564_v36  ;;  %v2600_v60 = vsel %vm2596_vm15, %v2566_v48, %v2570_v43  ;;  %v2601_v4 = vadd.f32 %v2599_v10, %v2597_v45 }
 0xd40   :  { %v2602_v1 = vadd.f32 %v2600_v60, %v2598_v44 }
 0xd41   :  { %v2603_v18 = vmul.f32 0.5, %v2601_v4 }
 0xd42   :  { %v2604_v2 = vmul.f32 0.5, %v2602_v1 }
 0xd43   :  { %v2605_v5 = vsub.f32 %v7030_v34, %v2603_v18  ;;  %v2607_v6 = vsub.f32 %v7034_v41, %v2603_v18 }
 0xd44   :  { %v2606_v9 = vsub.f32 %v7038_v35, %v2604_v2  ;;  %v2608_v28 = vsub.f32 %v7042_v14, %v2604_v2 }
 0xd45   :  { %v2609_v40 = vmax.f32 %v2605_v5, 0.0  ;;  %v2611_v31 = vmax.f32 %v2607_v6, 0.0 }
 0xd46   :  { %v2610_v26 = vmax.f32 %v2606_v9, 0.0  ;;  %v2612_v29 = vmax.f32 %v2608_v28, 0.0 }
 0xd47   :  { %v2613_v7 = vadd.f32 %v2611_v31, %v2609_v40 }
 0xd48   :  { %v2620_v27 = vadd.f32 %v2612_v29, %v2610_v26 }
 0xd49   :  { %v2614_v36 = vrot.slane %v2613_v7, 4 }
 0xd4a   :  { %v2621_v48 = vrot.slane %v2620_v27, 4 }
 0xd4b   :  { %v2615_v13 = vadd.f32 %v2614_v36, %v2613_v7 }
 0xd4c   :  { %v2622_v43 = vadd.f32 %v2621_v48, %v2620_v27 }
 0xd4d   :  { %v2616_v37 = vrot.slane %v2615_v13, 2 }
 0xd4e   :  { %v2623_v38 = vrot.slane %v2622_v43, 2 }
 0xd4f   :  { %v2617_v25 = vadd.f32 %v2616_v37, %v2615_v13 }
 0xd50   :  { %v2624_v24 = vadd.f32 %v2623_v38, %v2622_v43 }
 0xd51   :  { %v2618_v33 = vrot.slane %v2617_v25, 1 }
 0xd52   :  { %v2625_v39 = vrot.slane %v2624_v24, 1 }
 0xd53   :  { %v2619_v46 = vadd.f32 %v2618_v33, %v2617_v25 }
 0xd54   :  { %v2626_v11 = vadd.f32 %v2625_v39, %v2624_v24 }
 0xd55   :  { %v5893_v4 = vadd.f32 -1.0, %v2619_v46 }
 0xd56   :  { %v5894_v1 = vadd.f32 -1.0, %v2626_v11 }
 0xd57   :  { %vm2629_vm2 = vcmp.gt.f32.partialorder %v5893_v4, 0.0 }
 0xd58   :  { %vm2630_vm3 = vcmp.gt.f32.partialorder %v5894_v1, 0.0  ;;  %v2631_v5 = vsel %vm2629_vm2, %v2603_v18, %v2597_v45  ;;  %v2633_v6 = vsel %vm2629_vm2, %v2599_v10, %v2603_v18 }
 0xd59   :  { %v2632_v9 = vsel %vm2630_vm3, %v2604_v2, %v2598_v44  ;;  %v2634_v28 = vsel %vm2630_vm3, %v2600_v60, %v2604_v2  ;;  %v2635_v40 = vadd.f32 %v2633_v6, %v2631_v5 }
 0xd5a   :  { %v2636_v31 = vadd.f32 %v2634_v28, %v2632_v9 }
 0xd5b   :  { %v2637_v26 = vmul.f32 0.5, %v2635_v40 }
 0xd5c   :  { %v2638_v29 = vmul.f32 0.5, %v2636_v31 }
 0xd5d   :  { %v2639_v7 = vsub.f32 %v7030_v34, %v2637_v26  ;;  %v2641_v27 = vsub.f32 %v7034_v41, %v2637_v26 }
 0xd5e   :  { %v2640_v36 = vsub.f32 %v7038_v35, %v2638_v29  ;;  %v2642_v48 = vsub.f32 %v7042_v14, %v2638_v29 }
 0xd5f   :  { %v2643_v13 = vmax.f32 %v2639_v7, 0.0  ;;  %v2645_v43 = vmax.f32 %v2641_v27, 0.0 }
 0xd60   :  { %v2644_v37 = vmax.f32 %v2640_v36, 0.0  ;;  %v2646_v38 = vmax.f32 %v2642_v48, 0.0 }
 0xd61   :  { %v2647_v45 = vadd.f32 %v2645_v43, %v2643_v13 }
 0xd62   :  { %v2654_v10 = vadd.f32 %v2646_v38, %v2644_v37 }
 0xd63   :  { %v2648_v44 = vrot.slane %v2647_v45, 4 }
 0xd64   :  { %v2655_v60 = vrot.slane %v2654_v10, 4 }
 0xd65   :  { %v2649_v18 = vadd.f32 %v2648_v44, %v2647_v45 }
 0xd66   :  { %v2656_v2 = vadd.f32 %v2655_v60, %v2654_v10 }
 0xd67   :  { %v2650_v25 = vrot.slane %v2649_v18, 2 }
 0xd68   :  { %v2657_v24 = vrot.slane %v2656_v2, 2 }
 0xd69   :  { %v2651_v33 = vadd.f32 %v2650_v25, %v2649_v18 }
 0xd6a   :  { %v2658_v39 = vadd.f32 %v2657_v24, %v2656_v2 }
 0xd6b   :  { %v2652_v46 = vrot.slane %v2651_v33, 1 }
 0xd6c   :  { %v2659_v11 = vrot.slane %v2658_v39, 1 }
 0xd6d   :  { %v2653_v4 = vadd.f32 %v2652_v46, %v2651_v33 }
 0xd6e   :  { %v2660_v1 = vadd.f32 %v2659_v11, %v2658_v39 }
 0xd6f   :  { %v5895_v40 = vadd.f32 -1.0, %v2653_v4 }
 0xd70   :  { %v5896_v31 = vadd.f32 -1.0, %v2660_v1 }
 0xd71   :  { %vm2663_vm4 = vcmp.gt.f32.partialorder %v5895_v40, 0.0 }
 0xd72   :  { %vm2664_vm5 = vcmp.gt.f32.partialorder %v5896_v31, 0.0  ;;  %v2665_v7 = vsel %vm2663_vm4, %v2637_v26, %v2631_v5  ;;  %v2667_v27 = vsel %vm2663_vm4, %v2633_v6, %v2637_v26 }
 0xd73   :  { %v2666_v36 = vsel %vm2664_vm5, %v2638_v29, %v2632_v9  ;;  %v2668_v48 = vsel %vm2664_vm5, %v2634_v28, %v2638_v29  ;;  %v2669_v13 = vadd.f32 %v2667_v27, %v2665_v7 }
 0xd74   :  { %v2670_v43 = vadd.f32 %v2668_v48, %v2666_v36 }
 0xd75   :  { %v2671_v37 = vmul.f32 0.5, %v2669_v13 }
 0xd76   :  { %v2672_v38 = vmul.f32 0.5, %v2670_v43 }
 0xd77   :  { %v2673_v45 = vsub.f32 %v7030_v34, %v2671_v37  ;;  %v2675_v10 = vsub.f32 %v7034_v41, %v2671_v37 }
 0xd78   :  { %v2674_v44 = vsub.f32 %v7038_v35, %v2672_v38  ;;  %v2676_v60 = vsub.f32 %v7042_v14, %v2672_v38 }
 0xd79   :  { %v2677_v18 = vmax.f32 %v2673_v45, 0.0  ;;  %v2679_v2 = vmax.f32 %v2675_v10, 0.0 }
 0xd7a   :  { %v2678_v25 = vmax.f32 %v2674_v44, 0.0  ;;  %v2680_v24 = vmax.f32 %v2676_v60, 0.0 }
 0xd7b   :  { %v2681_v5 = vadd.f32 %v2679_v2, %v2677_v18 }
 0xd7c   :  { %v2688_v6 = vadd.f32 %v2680_v24, %v2678_v25 }
 0xd7d   :  { %v2682_v9 = vrot.slane %v2681_v5, 4 }
 0xd7e   :  { %v2689_v28 = vrot.slane %v2688_v6, 4 }
 0xd7f   :  { %v2683_v26 = vadd.f32 %v2682_v9, %v2681_v5 }
 0xd80   :  { %v2690_v29 = vadd.f32 %v2689_v28, %v2688_v6 }
 0xd81   :  { %v2684_v33 = vrot.slane %v2683_v26, 2 }
 0xd82   :  { %v2691_v39 = vrot.slane %v2690_v29, 2 }
 0xd83   :  { %v2685_v46 = vadd.f32 %v2684_v33, %v2683_v26 }
 0xd84   :  { %v2692_v11 = vadd.f32 %v2691_v39, %v2690_v29 }
 0xd85   :  { %v2686_v4 = vrot.slane %v2685_v46, 1 }
 0xd86   :  { %v2693_v1 = vrot.slane %v2692_v11, 1 }
 0xd87   :  { %v2687_v40 = vadd.f32 %v2686_v4, %v2685_v46 }
 0xd88   :  { %v2694_v31 = vadd.f32 %v2693_v1, %v2692_v11 }
 0xd89   :  { %v5897_v13 = vadd.f32 -1.0, %v2687_v40 }
 0xd8a   :  { %v5898_v43 = vadd.f32 -1.0, %v2694_v31 }
 0xd8b   :  { %vm2697_vm6 = vcmp.gt.f32.partialorder %v5897_v13, 0.0 }
 0xd8c   :  { %vm2698_vm7 = vcmp.gt.f32.partialorder %v5898_v43, 0.0  ;;  %v2699_v45 = vsel %vm2697_vm6, %v2671_v37, %v2665_v7  ;;  %v2701_v10 = vsel %vm2697_vm6, %v2667_v27, %v2671_v37 }
 0xd8d   :  { %v2700_v44 = vsel %vm2698_vm7, %v2672_v38, %v2666_v36  ;;  %v2702_v60 = vsel %vm2698_vm7, %v2668_v48, %v2672_v38  ;;  %v2703_v18 = vadd.f32 %v2701_v10, %v2699_v45 }
 0xd8e   :  { %v2704_v2 = vadd.f32 %v2702_v60, %v2700_v44 }
 0xd8f   :  { %v2705_v25 = vmul.f32 0.5, %v2703_v18 }
 0xd90   :  { %v2706_v24 = vmul.f32 0.5, %v2704_v2 }
 0xd91   :  { %v2707_v5 = vsub.f32 %v7030_v34, %v2705_v25  ;;  %v2709_v6 = vsub.f32 %v7034_v41, %v2705_v25 }
 0xd92   :  { %v2708_v9 = vsub.f32 %v7038_v35, %v2706_v24  ;;  %v2710_v28 = vsub.f32 %v7042_v14, %v2706_v24 }
 0xd93   :  { %v2711_v26 = vmax.f32 %v2707_v5, 0.0  ;;  %v2713_v29 = vmax.f32 %v2709_v6, 0.0 }
 0xd94   :  { %v2712_v33 = vmax.f32 %v2708_v9, 0.0  ;;  %v2714_v39 = vmax.f32 %v2710_v28, 0.0 }
 0xd95   :  { %v2715_v7 = vadd.f32 %v2713_v29, %v2711_v26 }
 0xd96   :  { %v2722_v27 = vadd.f32 %v2714_v39, %v2712_v33 }
 0xd97   :  { %v2716_v36 = vrot.slane %v2715_v7, 4 }
 0xd98   :  { %v2723_v48 = vrot.slane %v2722_v27, 4 }
 0xd99   :  { %v2717_v37 = vadd.f32 %v2716_v36, %v2715_v7 }
 0xd9a   :  { %v2724_v38 = vadd.f32 %v2723_v48, %v2722_v27 }
 0xd9b   :  { %v2718_v46 = vrot.slane %v2717_v37, 2 }
 0xd9c   :  { %v2725_v11 = vrot.slane %v2724_v38, 2 }
 0xd9d   :  { %v2719_v4 = vadd.f32 %v2718_v46, %v2717_v37 }
 0xd9e   :  { %v2726_v1 = vadd.f32 %v2725_v11, %v2724_v38 }
 0xd9f   :  { %v2720_v40 = vrot.slane %v2719_v4, 1 }
 0xda0   :  { %v2727_v31 = vrot.slane %v2726_v1, 1 }
 0xda1   :  { %v2721_v13 = vadd.f32 %v2720_v40, %v2719_v4 }
 0xda2   :  { %v2728_v43 = vadd.f32 %v2727_v31, %v2726_v1 }
 0xda3   :  { %v5899_v18 = vadd.f32 -1.0, %v2721_v13 }
 0xda4   :  { %v5900_v2 = vadd.f32 -1.0, %v2728_v43 }
 0xda5   :  { %vm2731_vm8 = vcmp.gt.f32.partialorder %v5899_v18, 0.0 }
 0xda6   :  { %vm2732_vm9 = vcmp.gt.f32.partialorder %v5900_v2, 0.0  ;;  %v2733_v5 = vsel %vm2731_vm8, %v2705_v25, %v2699_v45  ;;  %v2735_v6 = vsel %vm2731_vm8, %v2701_v10, %v2705_v25 }
 0xda7   :  { %v2734_v9 = vsel %vm2732_vm9, %v2706_v24, %v2700_v44  ;;  %v2736_v28 = vsel %vm2732_vm9, %v2702_v60, %v2706_v24  ;;  %v2737_v26 = vadd.f32 %v2735_v6, %v2733_v5 }
 0xda8   :  { %v2738_v29 = vadd.f32 %v2736_v28, %v2734_v9 }
 0xda9   :  { %v2739_v33 = vmul.f32 0.5, %v2737_v26 }
 0xdaa   :  { %v2740_v39 = vmul.f32 0.5, %v2738_v29 }
 0xdab   :  { %v2741_v7 = vsub.f32 %v7030_v34, %v2739_v33  ;;  %v2743_v27 = vsub.f32 %v7034_v41, %v2739_v33 }
 0xdac   :  { %v2742_v36 = vsub.f32 %v7038_v35, %v2740_v39  ;;  %v2744_v48 = vsub.f32 %v7042_v14, %v2740_v39 }
 0xdad   :  { %v2745_v37 = vmax.f32 %v2741_v7, 0.0  ;;  %v2747_v38 = vmax.f32 %v2743_v27, 0.0 }
 0xdae   :  { %v2746_v46 = vmax.f32 %v2742_v36, 0.0  ;;  %v2748_v11 = vmax.f32 %v2744_v48, 0.0 }
 0xdaf   :  { %v2749_v45 = vadd.f32 %v2747_v38, %v2745_v37 }
 0xdb0   :  { %v2756_v10 = vadd.f32 %v2748_v11, %v2746_v46 }
 0xdb1   :  { %v2750_v44 = vrot.slane %v2749_v45, 4 }
 0xdb2   :  { %v2757_v60 = vrot.slane %v2756_v10, 4 }
 0xdb3   :  { %v2751_v25 = vadd.f32 %v2750_v44, %v2749_v45 }
 0xdb4   :  { %v2758_v24 = vadd.f32 %v2757_v60, %v2756_v10 }
 0xdb5   :  { %v2752_v4 = vrot.slane %v2751_v25, 2 }
 0xdb6   :  { %v2759_v1 = vrot.slane %v2758_v24, 2 }
 0xdb7   :  { %v2753_v40 = vadd.f32 %v2752_v4, %v2751_v25 }
 0xdb8   :  { %v2760_v31 = vadd.f32 %v2759_v1, %v2758_v24 }
 0xdb9   :  { %v2754_v13 = vrot.slane %v2753_v40, 1 }
 0xdba   :  { %v2761_v43 = vrot.slane %v2760_v31, 1 }
 0xdbb   :  { %v2755_v18 = vadd.f32 %v2754_v13, %v2753_v40 }
 0xdbc   :  { %v2762_v2 = vadd.f32 %v2761_v43, %v2760_v31 }
 0xdbd   :  { %v5901_v26 = vadd.f32 -1.0, %v2755_v18 }
 0xdbe   :  { %v5902_v29 = vadd.f32 -1.0, %v2762_v2 }
 0xdbf   :  { %vm2765_vm10 = vcmp.gt.f32.partialorder %v5901_v26, 0.0 }
 0xdc0   :  { %vm2766_vm11 = vcmp.gt.f32.partialorder %v5902_v29, 0.0  ;;  %v2767_v7 = vsel %vm2765_vm10, %v2739_v33, %v2733_v5  ;;  %v2769_v27 = vsel %vm2765_vm10, %v2735_v6, %v2739_v33 }
 0xdc1   :  { %v2768_v36 = vsel %vm2766_vm11, %v2740_v39, %v2734_v9  ;;  %v2770_v48 = vsel %vm2766_vm11, %v2736_v28, %v2740_v39  ;;  %v2771_v37 = vadd.f32 %v2769_v27, %v2767_v7 }
 0xdc2   :  { %v2772_v38 = vadd.f32 %v2770_v48, %v2768_v36 }
 0xdc3   :  { %v2773_v46 = vmul.f32 0.5, %v2771_v37 }
 0xdc4   :  { %v2774_v11 = vmul.f32 0.5, %v2772_v38 }
 0xdc5   :  { %v2775_v45 = vsub.f32 %v7030_v34, %v2773_v46  ;;  %v2777_v10 = vsub.f32 %v7034_v41, %v2773_v46 }
 0xdc6   :  { %v2776_v44 = vsub.f32 %v7038_v35, %v2774_v11  ;;  %v2778_v60 = vsub.f32 %v7042_v14, %v2774_v11 }
 0xdc7   :  { %v2779_v25 = vmax.f32 %v2775_v45, 0.0  ;;  %v2781_v24 = vmax.f32 %v2777_v10, 0.0 }
 0xdc8   :  { %v2780_v4 = vmax.f32 %v2776_v44, 0.0  ;;  %v2782_v1 = vmax.f32 %v2778_v60, 0.0 }
 0xdc9   :  { %v2783_v5 = vadd.f32 %v2781_v24, %v2779_v25 }
 0xdca   :  { %v2790_v6 = vadd.f32 %v2782_v1, %v2780_v4 }
 0xdcb   :  { %v2784_v9 = vrot.slane %v2783_v5, 4 }
 0xdcc   :  { %v2791_v28 = vrot.slane %v2790_v6, 4 }
 0xdcd   :  { %v2785_v33 = vadd.f32 %v2784_v9, %v2783_v5 }
 0xdce   :  { %v2792_v39 = vadd.f32 %v2791_v28, %v2790_v6 }
 0xdcf   :  { %v2786_v40 = vrot.slane %v2785_v33, 2 }
 0xdd0   :  { %v2793_v31 = vrot.slane %v2792_v39, 2 }
 0xdd1   :  { %v2787_v13 = vadd.f32 %v2786_v40, %v2785_v33 }
 0xdd2   :  { %v2794_v43 = vadd.f32 %v2793_v31, %v2792_v39 }
 0xdd3   :  { %v2788_v18 = vrot.slane %v2787_v13, 1 }
 0xdd4   :  { %v2795_v2 = vrot.slane %v2794_v43, 1 }
 0xdd5   :  { %v2789_v26 = vadd.f32 %v2788_v18, %v2787_v13 }
 0xdd6   :  { %v2796_v29 = vadd.f32 %v2795_v2, %v2794_v43 }
 0xdd7   :  { %v5903_v37 = vadd.f32 -1.0, %v2789_v26 }
 0xdd8   :  { %v5904_v38 = vadd.f32 -1.0, %v2796_v29 }
 0xdd9   :  { %vm2799_vm12 = vcmp.gt.f32.partialorder %v5903_v37, 0.0 }
 0xdda   :  { %vm2800_vm13 = vcmp.gt.f32.partialorder %v5904_v38, 0.0  ;;  %v2801_v45 = vsel %vm2799_vm12, %v2773_v46, %v2767_v7  ;;  %v2803_v10 = vsel %vm2799_vm12, %v2769_v27, %v2773_v46 }
 0xddb   :  { %v2802_v44 = vsel %vm2800_vm13, %v2774_v11, %v2768_v36  ;;  %v2804_v60 = vsel %vm2800_vm13, %v2770_v48, %v2774_v11  ;;  %v2805_v25 = vadd.f32 %v2803_v10, %v2801_v45 }
 0xddc   :  { %v2806_v24 = vadd.f32 %v2804_v60, %v2802_v44 }
 0xddd   :  { %v2807_v4 = vmul.f32 0.5, %v2805_v25 }
 0xdde   :  { %v2808_v1 = vmul.f32 0.5, %v2806_v24 }
 0xddf   :  { %v2809_v5 = vsub.f32 %v7030_v34, %v2807_v4  ;;  %v2811_v6 = vsub.f32 %v7034_v41, %v2807_v4 }
 0xde0   :  { %v2810_v9 = vsub.f32 %v7038_v35, %v2808_v1  ;;  %v2812_v28 = vsub.f32 %v7042_v14, %v2808_v1 }
 0xde1   :  { %v2813_v33 = vmax.f32 %v2809_v5, 0.0  ;;  %v2815_v39 = vmax.f32 %v2811_v6, 0.0 }
 0xde2   :  { %v2814_v40 = vmax.f32 %v2810_v9, 0.0  ;;  %v2816_v31 = vmax.f32 %v2812_v28, 0.0 }
 0xde3   :  { %v2817_v7 = vadd.f32 %v2815_v39, %v2813_v33 }
 0xde4   :  { %v2824_v27 = vadd.f32 %v2816_v31, %v2814_v40 }
 0xde5   :  { %v2818_v36 = vrot.slane %v2817_v7, 4 }
 0xde6   :  { %v2825_v48 = vrot.slane %v2824_v27, 4 }
 0xde7   :  { %v2819_v46 = vadd.f32 %v2818_v36, %v2817_v7 }
 0xde8   :  { %v2826_v11 = vadd.f32 %v2825_v48, %v2824_v27 }
 0xde9   :  { %v2820_v13 = vrot.slane %v2819_v46, 2 }
 0xdea   :  { %v2827_v43 = vrot.slane %v2826_v11, 2 }
 0xdeb   :  { %v2821_v18 = vadd.f32 %v2820_v13, %v2819_v46 }
 0xdec   :  { %v2828_v2 = vadd.f32 %v2827_v43, %v2826_v11 }
 0xded   :  { %v2822_v26 = vrot.slane %v2821_v18, 1 }
 0xdee   :  { %v2829_v29 = vrot.slane %v2828_v2, 1 }
 0xdef   :  { %v2823_v37 = vadd.f32 %v2822_v26, %v2821_v18 }
 0xdf0   :  { %v2830_v38 = vadd.f32 %v2829_v29, %v2828_v2 }
 0xdf1   :  { %v5905_v25 = vadd.f32 -1.0, %v2823_v37 }
 0xdf2   :  { %v5906_v24 = vadd.f32 -1.0, %v2830_v38 }
 0xdf3   :  { %vm2833_vm14 = vcmp.gt.f32.partialorder %v5905_v25, 0.0 }
 0xdf4   :  { %vm2834_vm15 = vcmp.gt.f32.partialorder %v5906_v24, 0.0  ;;  %v2835_v5 = vsel %vm2833_vm14, %v2807_v4, %v2801_v45  ;;  %v2837_v6 = vsel %vm2833_vm14, %v2803_v10, %v2807_v4 }
 0xdf5   :  { %v2836_v9 = vsel %vm2834_vm15, %v2808_v1, %v2802_v44  ;;  %v2838_v28 = vsel %vm2834_vm15, %v2804_v60, %v2808_v1  ;;  %v2839_v33 = vadd.f32 %v2837_v6, %v2835_v5 }
 0xdf6   :  { %v2840_v39 = vadd.f32 %v2838_v28, %v2836_v9 }
 0xdf7   :  { %v2841_v40 = vmul.f32 0.5, %v2839_v33 }
 0xdf8   :  { %v2842_v31 = vmul.f32 0.5, %v2840_v39 }
 0xdf9   :  { %v2843_v7 = vsub.f32 %v7030_v34, %v2841_v40  ;;  %v2845_v27 = vsub.f32 %v7034_v41, %v2841_v40 }
 0xdfa   :  { %v2844_v36 = vsub.f32 %v7038_v35, %v2842_v31  ;;  %v2846_v48 = vsub.f32 %v7042_v14, %v2842_v31 }
 0xdfb   :  { %v2847_v46 = vmax.f32 %v2843_v7, 0.0  ;;  %v2849_v11 = vmax.f32 %v2845_v27, 0.0 }
 0xdfc   :  { %v2848_v13 = vmax.f32 %v2844_v36, 0.0  ;;  %v2850_v43 = vmax.f32 %v2846_v48, 0.0 }
 0xdfd   :  { %v2851_v45 = vadd.f32 %v2849_v11, %v2847_v46 }
 0xdfe   :  { %v2858_v10 = vadd.f32 %v2850_v43, %v2848_v13 }
 0xdff   :  { %v2852_v44 = vrot.slane %v2851_v45, 4 }
 0xe00   :  { %v2859_v60 = vrot.slane %v2858_v10, 4 }
 0xe01   :  { %v2853_v4 = vadd.f32 %v2852_v44, %v2851_v45 }
 0xe02   :  { %v2860_v1 = vadd.f32 %v2859_v60, %v2858_v10 }
 0xe03   :  { %v2854_v18 = vrot.slane %v2853_v4, 2 }
 0xe04   :  { %v2861_v2 = vrot.slane %v2860_v1, 2 }
 0xe05   :  { %v2855_v26 = vadd.f32 %v2854_v18, %v2853_v4 }
 0xe06   :  { %v2862_v29 = vadd.f32 %v2861_v2, %v2860_v1 }
 0xe07   :  { %v2856_v37 = vrot.slane %v2855_v26, 1 }
 0xe08   :  { %v2863_v38 = vrot.slane %v2862_v29, 1 }
 0xe09   :  { %v2857_v25 = vadd.f32 %v2856_v37, %v2855_v26 }
 0xe0a   :  { %v2864_v24 = vadd.f32 %v2863_v38, %v2862_v29 }
 0xe0b   :  { %v5907_v33 = vadd.f32 -1.0, %v2857_v25 }
 0xe0c   :  { %v5908_v39 = vadd.f32 -1.0, %v2864_v24 }
 0xe0d   :  { %vm2867_vm2 = vcmp.gt.f32.partialorder %v5907_v33, 0.0 }
 0xe0e   :  { %vm2868_vm3 = vcmp.gt.f32.partialorder %v5908_v39, 0.0  ;;  %v2869_v7 = vsel %vm2867_vm2, %v2841_v40, %v2835_v5  ;;  %v2871_v27 = vsel %vm2867_vm2, %v2837_v6, %v2841_v40 }
 0xe0f   :  { %v2870_v36 = vsel %vm2868_vm3, %v2842_v31, %v2836_v9  ;;  %v2872_v48 = vsel %vm2868_vm3, %v2838_v28, %v2842_v31  ;;  %v2873_v46 = vadd.f32 %v2871_v27, %v2869_v7 }
 0xe10   :  { %v2874_v11 = vadd.f32 %v2872_v48, %v2870_v36 }
 0xe11   :  { %v2875_v13 = vmul.f32 0.5, %v2873_v46 }
 0xe12   :  { %v2876_v43 = vmul.f32 0.5, %v2874_v11 }
 0xe13   :  { %v2877_v45 = vsub.f32 %v7030_v34, %v2875_v13  ;;  %v2879_v10 = vsub.f32 %v7034_v41, %v2875_v13 }
 0xe14   :  { %v2878_v44 = vsub.f32 %v7038_v35, %v2876_v43  ;;  %v2880_v60 = vsub.f32 %v7042_v14, %v2876_v43 }
 0xe15   :  { %v2881_v4 = vmax.f32 %v2877_v45, 0.0  ;;  %v2883_v1 = vmax.f32 %v2879_v10, 0.0 }
 0xe16   :  { %v2882_v18 = vmax.f32 %v2878_v44, 0.0  ;;  %v2884_v2 = vmax.f32 %v2880_v60, 0.0 }
 0xe17   :  { %v2885_v5 = vadd.f32 %v2883_v1, %v2881_v4 }
 0xe18   :  { %v2892_v6 = vadd.f32 %v2884_v2, %v2882_v18 }
 0xe19   :  { %v2886_v9 = vrot.slane %v2885_v5, 4 }
 0xe1a   :  { %v2893_v28 = vrot.slane %v2892_v6, 4 }
 0xe1b   :  { %v2887_v40 = vadd.f32 %v2886_v9, %v2885_v5 }
 0xe1c   :  { %v2894_v31 = vadd.f32 %v2893_v28, %v2892_v6 }
 0xe1d   :  { %v2888_v26 = vrot.slane %v2887_v40, 2 }
 0xe1e   :  { %v2895_v29 = vrot.slane %v2894_v31, 2 }
 0xe1f   :  { %v2889_v37 = vadd.f32 %v2888_v26, %v2887_v40 }
 0xe20   :  { %v2896_v38 = vadd.f32 %v2895_v29, %v2894_v31 }
 0xe21   :  { %v2890_v25 = vrot.slane %v2889_v37, 1 }
 0xe22   :  { %v2897_v24 = vrot.slane %v2896_v38, 1 }
 0xe23   :  { %v2891_v33 = vadd.f32 %v2890_v25, %v2889_v37 }
 0xe24   :  { %v2898_v39 = vadd.f32 %v2897_v24, %v2896_v38 }
 0xe25   :  { %v5909_v46 = vadd.f32 -1.0, %v2891_v33 }
 0xe26   :  { %v5910_v11 = vadd.f32 -1.0, %v2898_v39 }
 0xe27   :  { %vm2901_vm4 = vcmp.gt.f32.partialorder %v5909_v46, 0.0 }
 0xe28   :  { %vm2902_vm5 = vcmp.gt.f32.partialorder %v5910_v11, 0.0  ;;  %v2903_v45 = vsel %vm2901_vm4, %v2875_v13, %v2869_v7  ;;  %v2905_v10 = vsel %vm2901_vm4, %v2871_v27, %v2875_v13 }
 0xe29   :  { %v2904_v44 = vsel %vm2902_vm5, %v2876_v43, %v2870_v36  ;;  %v2906_v60 = vsel %vm2902_vm5, %v2872_v48, %v2876_v43  ;;  %v2907_v4 = vadd.f32 %v2905_v10, %v2903_v45 }
 0xe2a   :  { %v2908_v1 = vadd.f32 %v2906_v60, %v2904_v44 }
 0xe2b   :  { %v2909_v18 = vmul.f32 0.5, %v2907_v4 }
 0xe2c   :  { %v2910_v2 = vmul.f32 0.5, %v2908_v1 }
 0xe2d   :  { %v2911_v5 = vsub.f32 %v7030_v34, %v2909_v18  ;;  %v2913_v6 = vsub.f32 %v7034_v41, %v2909_v18 }
 0xe2e   :  { %v2912_v9 = vsub.f32 %v7038_v35, %v2910_v2  ;;  %v2914_v28 = vsub.f32 %v7042_v14, %v2910_v2 }
 0xe2f   :  { %v2915_v40 = vmax.f32 %v2911_v5, 0.0  ;;  %v2917_v31 = vmax.f32 %v2913_v6, 0.0 }
 0xe30   :  { %v2916_v26 = vmax.f32 %v2912_v9, 0.0  ;;  %v2918_v29 = vmax.f32 %v2914_v28, 0.0 }
 0xe31   :  { %v2919_v7 = vadd.f32 %v2917_v31, %v2915_v40 }
 0xe32   :  { %v2926_v27 = vadd.f32 %v2918_v29, %v2916_v26 }
 0xe33   :  { %v2920_v36 = vrot.slane %v2919_v7, 4 }
 0xe34   :  { %v2927_v48 = vrot.slane %v2926_v27, 4 }
 0xe35   :  { %v2921_v13 = vadd.f32 %v2920_v36, %v2919_v7 }
 0xe36   :  { %v2928_v43 = vadd.f32 %v2927_v48, %v2926_v27 }
 0xe37   :  { %v2922_v37 = vrot.slane %v2921_v13, 2 }
 0xe38   :  { %v2929_v38 = vrot.slane %v2928_v43, 2 }
 0xe39   :  { %v2923_v25 = vadd.f32 %v2922_v37, %v2921_v13 }
 0xe3a   :  { %v2930_v24 = vadd.f32 %v2929_v38, %v2928_v43 }
 0xe3b   :  { %v2924_v33 = vrot.slane %v2923_v25, 1 }
 0xe3c   :  { %v2931_v39 = vrot.slane %v2930_v24, 1 }
 0xe3d   :  { %v2925_v46 = vadd.f32 %v2924_v33, %v2923_v25 }
 0xe3e   :  { %v2932_v11 = vadd.f32 %v2931_v39, %v2930_v24 }
 0xe3f   :  { %v5911_v4 = vadd.f32 -1.0, %v2925_v46 }
 0xe40   :  { %v5912_v1 = vadd.f32 -1.0, %v2932_v11 }
 0xe41   :  { %vm2935_vm6 = vcmp.gt.f32.partialorder %v5911_v4, 0.0 }
 0xe42   :  { %vm2936_vm7 = vcmp.gt.f32.partialorder %v5912_v1, 0.0  ;;  %v2937_v5 = vsel %vm2935_vm6, %v2909_v18, %v2903_v45  ;;  %v2939_v6 = vsel %vm2935_vm6, %v2905_v10, %v2909_v18 }
 0xe43   :  { %v2938_v9 = vsel %vm2936_vm7, %v2910_v2, %v2904_v44  ;;  %v2940_v28 = vsel %vm2936_vm7, %v2906_v60, %v2910_v2  ;;  %v2941_v40 = vadd.f32 %v2939_v6, %v2937_v5 }
 0xe44   :  { %v2942_v31 = vadd.f32 %v2940_v28, %v2938_v9 }
 0xe45   :  { %v2943_v26 = vmul.f32 0.5, %v2941_v40 }
 0xe46   :  { %v2944_v29 = vmul.f32 0.5, %v2942_v31 }
 0xe47   :  { %v2945_v7 = vsub.f32 %v7030_v34, %v2943_v26  ;;  %v2947_v27 = vsub.f32 %v7034_v41, %v2943_v26 }
 0xe48   :  { %v2946_v36 = vsub.f32 %v7038_v35, %v2944_v29  ;;  %v2948_v48 = vsub.f32 %v7042_v14, %v2944_v29 }
 0xe49   :  { %v2949_v13 = vmax.f32 %v2945_v7, 0.0  ;;  %v2951_v43 = vmax.f32 %v2947_v27, 0.0 }
 0xe4a   :  { %v2950_v37 = vmax.f32 %v2946_v36, 0.0  ;;  %v2952_v38 = vmax.f32 %v2948_v48, 0.0 }
 0xe4b   :  { %v2953_v45 = vadd.f32 %v2951_v43, %v2949_v13 }
 0xe4c   :  { %v2960_v10 = vadd.f32 %v2952_v38, %v2950_v37 }
 0xe4d   :  { %v2954_v44 = vrot.slane %v2953_v45, 4 }
 0xe4e   :  { %v2961_v60 = vrot.slane %v2960_v10, 4 }
 0xe4f   :  { %v2955_v18 = vadd.f32 %v2954_v44, %v2953_v45 }
 0xe50   :  { %v2962_v2 = vadd.f32 %v2961_v60, %v2960_v10 }
 0xe51   :  { %v2956_v25 = vrot.slane %v2955_v18, 2 }
 0xe52   :  { %v2963_v24 = vrot.slane %v2962_v2, 2 }
 0xe53   :  { %v2957_v33 = vadd.f32 %v2956_v25, %v2955_v18 }
 0xe54   :  { %v2964_v39 = vadd.f32 %v2963_v24, %v2962_v2 }
 0xe55   :  { %v2958_v46 = vrot.slane %v2957_v33, 1 }
 0xe56   :  { %v2965_v11 = vrot.slane %v2964_v39, 1 }
 0xe57   :  { %v2959_v4 = vadd.f32 %v2958_v46, %v2957_v33 }
 0xe58   :  { %v2966_v1 = vadd.f32 %v2965_v11, %v2964_v39 }
 0xe59   :  { %v5913_v40 = vadd.f32 -1.0, %v2959_v4 }
 0xe5a   :  { %v5914_v31 = vadd.f32 -1.0, %v2966_v1 }
 0xe5b   :  { %vm2969_vm8 = vcmp.gt.f32.partialorder %v5913_v40, 0.0 }
 0xe5c   :  { %vm2970_vm9 = vcmp.gt.f32.partialorder %v5914_v31, 0.0  ;;  %v2971_v7 = vsel %vm2969_vm8, %v2943_v26, %v2937_v5  ;;  %v2973_v27 = vsel %vm2969_vm8, %v2939_v6, %v2943_v26 }
 0xe5d   :  { %v2972_v36 = vsel %vm2970_vm9, %v2944_v29, %v2938_v9  ;;  %v2974_v48 = vsel %vm2970_vm9, %v2940_v28, %v2944_v29  ;;  %v2975_v13 = vadd.f32 %v2973_v27, %v2971_v7 }
 0xe5e   :  { %v2976_v43 = vadd.f32 %v2974_v48, %v2972_v36 }
 0xe5f   :  { %v2977_v37 = vmul.f32 0.5, %v2975_v13 }
 0xe60   :  { %v2978_v38 = vmul.f32 0.5, %v2976_v43 }
 0xe61   :  { %v2979_v45 = vsub.f32 %v7030_v34, %v2977_v37  ;;  %v2981_v10 = vsub.f32 %v7034_v41, %v2977_v37 }
 0xe62   :  { %v2980_v44 = vsub.f32 %v7038_v35, %v2978_v38  ;;  %v2982_v60 = vsub.f32 %v7042_v14, %v2978_v38 }
 0xe63   :  { %v2983_v18 = vmax.f32 %v2979_v45, 0.0  ;;  %v2985_v2 = vmax.f32 %v2981_v10, 0.0 }
 0xe64   :  { %v2984_v25 = vmax.f32 %v2980_v44, 0.0  ;;  %v2986_v24 = vmax.f32 %v2982_v60, 0.0 }
 0xe65   :  { %v2987_v5 = vadd.f32 %v2985_v2, %v2983_v18 }
 0xe66   :  { %v2994_v6 = vadd.f32 %v2986_v24, %v2984_v25 }
 0xe67   :  { %v2988_v9 = vrot.slane %v2987_v5, 4 }
 0xe68   :  { %v2995_v28 = vrot.slane %v2994_v6, 4 }
 0xe69   :  { %v2989_v26 = vadd.f32 %v2988_v9, %v2987_v5 }
 0xe6a   :  { %v2996_v29 = vadd.f32 %v2995_v28, %v2994_v6 }
 0xe6b   :  { %v2990_v33 = vrot.slane %v2989_v26, 2 }
 0xe6c   :  { %v2997_v39 = vrot.slane %v2996_v29, 2 }
 0xe6d   :  { %v2991_v46 = vadd.f32 %v2990_v33, %v2989_v26 }
 0xe6e   :  { %v2998_v11 = vadd.f32 %v2997_v39, %v2996_v29 }
 0xe6f   :  { %v2992_v4 = vrot.slane %v2991_v46, 1 }
 0xe70   :  { %v2999_v1 = vrot.slane %v2998_v11, 1 }
 0xe71   :  { %v2993_v40 = vadd.f32 %v2992_v4, %v2991_v46 }
 0xe72   :  { %v3000_v31 = vadd.f32 %v2999_v1, %v2998_v11 }
 0xe73   :  { %v5915_v13 = vadd.f32 -1.0, %v2993_v40 }
 0xe74   :  { %v5916_v43 = vadd.f32 -1.0, %v3000_v31 }
 0xe75   :  { %vm3003_vm10 = vcmp.gt.f32.partialorder %v5915_v13, 0.0 }
 0xe76   :  { %vm3004_vm11 = vcmp.gt.f32.partialorder %v5916_v43, 0.0  ;;  %v3005_v45 = vsel %vm3003_vm10, %v2977_v37, %v2971_v7  ;;  %v3007_v10 = vsel %vm3003_vm10, %v2973_v27, %v2977_v37 }
 0xe77   :  { %v3006_v44 = vsel %vm3004_vm11, %v2978_v38, %v2972_v36  ;;  %v3008_v60 = vsel %vm3004_vm11, %v2974_v48, %v2978_v38  ;;  %v3009_v18 = vadd.f32 %v3007_v10, %v3005_v45 }
 0xe78   :  { %v3010_v2 = vadd.f32 %v3008_v60, %v3006_v44 }
 0xe79   :  { %v3011_v25 = vmul.f32 0.5, %v3009_v18 }
 0xe7a   :  { %v3012_v24 = vmul.f32 0.5, %v3010_v2 }
 0xe7b   :  { %v3013_v5 = vsub.f32 %v7030_v34, %v3011_v25  ;;  %v3015_v6 = vsub.f32 %v7034_v41, %v3011_v25 }
 0xe7c   :  { %v3014_v9 = vsub.f32 %v7038_v35, %v3012_v24  ;;  %v3016_v28 = vsub.f32 %v7042_v14, %v3012_v24 }
 0xe7d   :  { %v3017_v26 = vmax.f32 %v3013_v5, 0.0  ;;  %v3019_v29 = vmax.f32 %v3015_v6, 0.0 }
 0xe7e   :  { %v3018_v33 = vmax.f32 %v3014_v9, 0.0  ;;  %v3020_v39 = vmax.f32 %v3016_v28, 0.0 }
 0xe7f   :  { %v3021_v7 = vadd.f32 %v3019_v29, %v3017_v26 }
 0xe80   :  { %v3028_v27 = vadd.f32 %v3020_v39, %v3018_v33 }
 0xe81   :  { %v3022_v36 = vrot.slane %v3021_v7, 4 }
 0xe82   :  { %v3029_v48 = vrot.slane %v3028_v27, 4 }
 0xe83   :  { %v3023_v37 = vadd.f32 %v3022_v36, %v3021_v7 }
 0xe84   :  { %v3030_v38 = vadd.f32 %v3029_v48, %v3028_v27 }
 0xe85   :  { %v3024_v46 = vrot.slane %v3023_v37, 2 }
 0xe86   :  { %v3031_v11 = vrot.slane %v3030_v38, 2 }
 0xe87   :  { %v3025_v4 = vadd.f32 %v3024_v46, %v3023_v37 }
 0xe88   :  { %v3032_v1 = vadd.f32 %v3031_v11, %v3030_v38 }
 0xe89   :  { %v3026_v40 = vrot.slane %v3025_v4, 1 }
 0xe8a   :  { %v3033_v31 = vrot.slane %v3032_v1, 1 }
 0xe8b   :  { %v3027_v13 = vadd.f32 %v3026_v40, %v3025_v4 }
 0xe8c   :  { %v3034_v43 = vadd.f32 %v3033_v31, %v3032_v1 }
 0xe8d   :  { %v5917_v18 = vadd.f32 -1.0, %v3027_v13 }
 0xe8e   :  { %v5918_v2 = vadd.f32 -1.0, %v3034_v43 }
 0xe8f   :  { %vm3037_vm12 = vcmp.gt.f32.partialorder %v5917_v18, 0.0 }
 0xe90   :  { %vm3038_vm13 = vcmp.gt.f32.partialorder %v5918_v2, 0.0  ;;  %v3039_v5 = vsel %vm3037_vm12, %v3011_v25, %v3005_v45  ;;  %v3041_v6 = vsel %vm3037_vm12, %v3007_v10, %v3011_v25 }
 0xe91   :  { %v3040_v9 = vsel %vm3038_vm13, %v3012_v24, %v3006_v44  ;;  %v3042_v28 = vsel %vm3038_vm13, %v3008_v60, %v3012_v24  ;;  %v3043_v26 = vadd.f32 %v3041_v6, %v3039_v5 }
 0xe92   :  { %v3044_v29 = vadd.f32 %v3042_v28, %v3040_v9 }
 0xe93   :  { %v3045_v33 = vmul.f32 0.5, %v3043_v26 }
 0xe94   :  { %v3046_v39 = vmul.f32 0.5, %v3044_v29 }
 0xe95   :  { %v3047_v7 = vsub.f32 %v7030_v34, %v3045_v33  ;;  %v3049_v27 = vsub.f32 %v7034_v41, %v3045_v33 }
 0xe96   :  { %v3048_v36 = vsub.f32 %v7038_v35, %v3046_v39  ;;  %v3050_v48 = vsub.f32 %v7042_v14, %v3046_v39 }
 0xe97   :  { %v3051_v37 = vmax.f32 %v3047_v7, 0.0  ;;  %v3053_v38 = vmax.f32 %v3049_v27, 0.0 }
 0xe98   :  { %v3052_v46 = vmax.f32 %v3048_v36, 0.0  ;;  %v3054_v11 = vmax.f32 %v3050_v48, 0.0 }
 0xe99   :  { %v3055_v45 = vadd.f32 %v3053_v38, %v3051_v37 }
 0xe9a   :  { %v3062_v10 = vadd.f32 %v3054_v11, %v3052_v46 }
 0xe9b   :  { %v3056_v44 = vrot.slane %v3055_v45, 4 }
 0xe9c   :  { %v3063_v60 = vrot.slane %v3062_v10, 4 }
 0xe9d   :  { %v3057_v25 = vadd.f32 %v3056_v44, %v3055_v45 }
 0xe9e   :  { %v3064_v24 = vadd.f32 %v3063_v60, %v3062_v10 }
 0xe9f   :  { %v3058_v4 = vrot.slane %v3057_v25, 2 }
 0xea0   :  { %v3065_v1 = vrot.slane %v3064_v24, 2 }
 0xea1   :  { %v3059_v40 = vadd.f32 %v3058_v4, %v3057_v25 }
 0xea2   :  { %v3066_v31 = vadd.f32 %v3065_v1, %v3064_v24 }
 0xea3   :  { %v3060_v13 = vrot.slane %v3059_v40, 1 }
 0xea4   :  { %v3067_v43 = vrot.slane %v3066_v31, 1 }
 0xea5   :  { %v3061_v18 = vadd.f32 %v3060_v13, %v3059_v40 }
 0xea6   :  { %v3068_v2 = vadd.f32 %v3067_v43, %v3066_v31 }
 0xea7   :  { %v5919_v26 = vadd.f32 -1.0, %v3061_v18 }
 0xea8   :  { %v5920_v29 = vadd.f32 -1.0, %v3068_v2 }
 0xea9   :  { %vm3071_vm14 = vcmp.gt.f32.partialorder %v5919_v26, 0.0 }
 0xeaa   :  { %vm3072_vm15 = vcmp.gt.f32.partialorder %v5920_v29, 0.0  ;;  %v3073_v7 = vsel %vm3071_vm14, %v3045_v33, %v3039_v5  ;;  %v3075_v27 = vsel %vm3071_vm14, %v3041_v6, %v3045_v33 }
 0xeab   :  { %v3074_v36 = vsel %vm3072_vm15, %v3046_v39, %v3040_v9  ;;  %v3076_v48 = vsel %vm3072_vm15, %v3042_v28, %v3046_v39  ;;  %v3077_v37 = vadd.f32 %v3075_v27, %v3073_v7 }
 0xeac   :  { %v3078_v38 = vadd.f32 %v3076_v48, %v3074_v36 }
 0xead   :  { %v3079_v46 = vmul.f32 0.5, %v3077_v37 }
 0xeae   :  { %v3080_v11 = vmul.f32 0.5, %v3078_v38 }
 0xeaf   :  { %v3081_v45 = vsub.f32 %v7030_v34, %v3079_v46  ;;  %v3083_v10 = vsub.f32 %v7034_v41, %v3079_v46 }
 0xeb0   :  { %v3082_v44 = vsub.f32 %v7038_v35, %v3080_v11  ;;  %v3084_v60 = vsub.f32 %v7042_v14, %v3080_v11 }
 0xeb1   :  { %v3085_v25 = vmax.f32 %v3081_v45, 0.0  ;;  %v3087_v24 = vmax.f32 %v3083_v10, 0.0 }
 0xeb2   :  { %v3086_v4 = vmax.f32 %v3082_v44, 0.0  ;;  %v3088_v1 = vmax.f32 %v3084_v60, 0.0 }
 0xeb3   :  { %v3089_v5 = vadd.f32 %v3087_v24, %v3085_v25 }
 0xeb4   :  { %v3096_v6 = vadd.f32 %v3088_v1, %v3086_v4 }
 0xeb5   :  { %v3090_v9 = vrot.slane %v3089_v5, 4 }
 0xeb6   :  { %v3097_v28 = vrot.slane %v3096_v6, 4 }
 0xeb7   :  { %v3091_v33 = vadd.f32 %v3090_v9, %v3089_v5 }
 0xeb8   :  { %v3098_v39 = vadd.f32 %v3097_v28, %v3096_v6 }
 0xeb9   :  { %v3092_v40 = vrot.slane %v3091_v33, 2 }
 0xeba   :  { %v3099_v31 = vrot.slane %v3098_v39, 2 }
 0xebb   :  { %v3093_v13 = vadd.f32 %v3092_v40, %v3091_v33 }
 0xebc   :  { %v3100_v43 = vadd.f32 %v3099_v31, %v3098_v39 }
 0xebd   :  { %v3094_v18 = vrot.slane %v3093_v13, 1 }
 0xebe   :  { %v3101_v2 = vrot.slane %v3100_v43, 1 }
 0xebf   :  { %v3095_v26 = vadd.f32 %v3094_v18, %v3093_v13 }
 0xec0   :  { %v3102_v29 = vadd.f32 %v3101_v2, %v3100_v43 }
 0xec1   :  { %v5921_v37 = vadd.f32 -1.0, %v3095_v26 }
 0xec2   :  { %v5922_v38 = vadd.f32 -1.0, %v3102_v29 }
 0xec3   :  { %vm3105_vm2 = vcmp.gt.f32.partialorder %v5921_v37, 0.0 }
 0xec4   :  { %vm3106_vm3 = vcmp.gt.f32.partialorder %v5922_v38, 0.0  ;;  %v3107_v45 = vsel %vm3105_vm2, %v3079_v46, %v3073_v7  ;;  %v3109_v10 = vsel %vm3105_vm2, %v3075_v27, %v3079_v46 }
 0xec5   :  { %v3108_v44 = vsel %vm3106_vm3, %v3080_v11, %v3074_v36  ;;  %v3110_v60 = vsel %vm3106_vm3, %v3076_v48, %v3080_v11  ;;  %v3111_v25 = vadd.f32 %v3109_v10, %v3107_v45 }
 0xec6   :  { %v3112_v24 = vadd.f32 %v3110_v60, %v3108_v44 }
 0xec7   :  { %v3113_v4 = vmul.f32 0.5, %v3111_v25 }
 0xec8   :  { %v3114_v1 = vmul.f32 0.5, %v3112_v24 }
 0xec9   :  { %v3115_v5 = vsub.f32 %v7030_v34, %v3113_v4  ;;  %v3117_v6 = vsub.f32 %v7034_v41, %v3113_v4 }
 0xeca   :  { %v3116_v9 = vsub.f32 %v7038_v35, %v3114_v1  ;;  %v3118_v28 = vsub.f32 %v7042_v14, %v3114_v1 }
 0xecb   :  { %v3119_v33 = vmax.f32 %v3115_v5, 0.0  ;;  %v3121_v39 = vmax.f32 %v3117_v6, 0.0 }
 0xecc   :  { %v3120_v40 = vmax.f32 %v3116_v9, 0.0  ;;  %v3122_v31 = vmax.f32 %v3118_v28, 0.0 }
 0xecd   :  { %v3123_v7 = vadd.f32 %v3121_v39, %v3119_v33 }
 0xece   :  { %v3130_v27 = vadd.f32 %v3122_v31, %v3120_v40 }
 0xecf   :  { %v3124_v36 = vrot.slane %v3123_v7, 4 }
 0xed0   :  { %v3131_v48 = vrot.slane %v3130_v27, 4 }
 0xed1   :  { %v3125_v46 = vadd.f32 %v3124_v36, %v3123_v7 }
 0xed2   :  { %v3132_v11 = vadd.f32 %v3131_v48, %v3130_v27 }
 0xed3   :  { %v3126_v13 = vrot.slane %v3125_v46, 2 }
 0xed4   :  { %v3133_v43 = vrot.slane %v3132_v11, 2 }
 0xed5   :  { %v3127_v18 = vadd.f32 %v3126_v13, %v3125_v46 }
 0xed6   :  { %v3134_v2 = vadd.f32 %v3133_v43, %v3132_v11 }
 0xed7   :  { %v3128_v26 = vrot.slane %v3127_v18, 1 }
 0xed8   :  { %v3135_v29 = vrot.slane %v3134_v2, 1 }
 0xed9   :  { %v3129_v37 = vadd.f32 %v3128_v26, %v3127_v18 }
 0xeda   :  { %v3136_v38 = vadd.f32 %v3135_v29, %v3134_v2 }
 0xedb   :  { %v5923_v25 = vadd.f32 -1.0, %v3129_v37 }
 0xedc   :  { %v5924_v24 = vadd.f32 -1.0, %v3136_v38 }
 0xedd   :  { %vm3139_vm4 = vcmp.gt.f32.partialorder %v5923_v25, 0.0 }
 0xede   :  { %vm3140_vm5 = vcmp.gt.f32.partialorder %v5924_v24, 0.0  ;;  %v3141_v5 = vsel %vm3139_vm4, %v3113_v4, %v3107_v45  ;;  %v3143_v6 = vsel %vm3139_vm4, %v3109_v10, %v3113_v4 }
 0xedf   :  { %v3142_v9 = vsel %vm3140_vm5, %v3114_v1, %v3108_v44  ;;  %v3144_v28 = vsel %vm3140_vm5, %v3110_v60, %v3114_v1  ;;  %v3145_v33 = vadd.f32 %v3143_v6, %v3141_v5 }
 0xee0   :  { %v3146_v39 = vadd.f32 %v3144_v28, %v3142_v9 }
 0xee1   :  { %v3147_v40 = vmul.f32 0.5, %v3145_v33 }
 0xee2   :  { %v3148_v31 = vmul.f32 0.5, %v3146_v39 }
 0xee3   :  { %v3149_v7 = vsub.f32 %v7030_v34, %v3147_v40  ;;  %v3151_v27 = vsub.f32 %v7034_v41, %v3147_v40 }
 0xee4   :  { %v3150_v36 = vsub.f32 %v7038_v35, %v3148_v31  ;;  %v3152_v48 = vsub.f32 %v7042_v14, %v3148_v31 }
 0xee5   :  { %v3153_v46 = vmax.f32 %v3149_v7, 0.0  ;;  %v3155_v11 = vmax.f32 %v3151_v27, 0.0 }
 0xee6   :  { %v3154_v13 = vmax.f32 %v3150_v36, 0.0  ;;  %v3156_v43 = vmax.f32 %v3152_v48, 0.0 }
 0xee7   :  { %v3157_v45 = vadd.f32 %v3155_v11, %v3153_v46 }
 0xee8   :  { %v3164_v10 = vadd.f32 %v3156_v43, %v3154_v13 }
 0xee9   :  { %v3158_v44 = vrot.slane %v3157_v45, 4 }
 0xeea   :  { %v3165_v60 = vrot.slane %v3164_v10, 4 }
 0xeeb   :  { %v3159_v4 = vadd.f32 %v3158_v44, %v3157_v45 }
 0xeec   :  { %v3166_v1 = vadd.f32 %v3165_v60, %v3164_v10 }
 0xeed   :  { %v3160_v18 = vrot.slane %v3159_v4, 2 }
 0xeee   :  { %v3167_v2 = vrot.slane %v3166_v1, 2 }
 0xeef   :  { %v3161_v26 = vadd.f32 %v3160_v18, %v3159_v4 }
 0xef0   :  { %v3168_v29 = vadd.f32 %v3167_v2, %v3166_v1 }
 0xef1   :  { %v3162_v37 = vrot.slane %v3161_v26, 1 }
 0xef2   :  { %v3169_v38 = vrot.slane %v3168_v29, 1 }
 0xef3   :  { %v3163_v25 = vadd.f32 %v3162_v37, %v3161_v26 }
 0xef4   :  { %v3170_v24 = vadd.f32 %v3169_v38, %v3168_v29 }
 0xef5   :  { %v5925_v33 = vadd.f32 -1.0, %v3163_v25 }
 0xef6   :  { %v5926_v39 = vadd.f32 -1.0, %v3170_v24 }
 0xef7   :  { %vm3173_vm6 = vcmp.gt.f32.partialorder %v5925_v33, 0.0 }
 0xef8   :  { %vm3174_vm7 = vcmp.gt.f32.partialorder %v5926_v39, 0.0  ;;  %v3175_v7 = vsel %vm3173_vm6, %v3147_v40, %v3141_v5  ;;  %v3177_v27 = vsel %vm3173_vm6, %v3143_v6, %v3147_v40 }
 0xef9   :  { %v3176_v36 = vsel %vm3174_vm7, %v3148_v31, %v3142_v9  ;;  %v3178_v48 = vsel %vm3174_vm7, %v3144_v28, %v3148_v31  ;;  %v3179_v46 = vadd.f32 %v3177_v27, %v3175_v7 }
 0xefa   :  { %v3180_v11 = vadd.f32 %v3178_v48, %v3176_v36 }
 0xefb   :  { %v3181_v13 = vmul.f32 0.5, %v3179_v46 }
 0xefc   :  { %v3182_v43 = vmul.f32 0.5, %v3180_v11 }
 0xefd   :  { %v3183_v45 = vsub.f32 %v7030_v34, %v3181_v13  ;;  %v3185_v10 = vsub.f32 %v7034_v41, %v3181_v13 }
 0xefe   :  { %v3184_v44 = vsub.f32 %v7038_v35, %v3182_v43  ;;  %v3186_v60 = vsub.f32 %v7042_v14, %v3182_v43 }
 0xeff   :  { %v3187_v4 = vmax.f32 %v3183_v45, 0.0  ;;  %v3189_v1 = vmax.f32 %v3185_v10, 0.0 }
 0xf00   :  { %v3188_v18 = vmax.f32 %v3184_v44, 0.0  ;;  %v3190_v2 = vmax.f32 %v3186_v60, 0.0 }
 0xf01   :  { %v3191_v5 = vadd.f32 %v3189_v1, %v3187_v4 }
 0xf02   :  { %v3198_v6 = vadd.f32 %v3190_v2, %v3188_v18 }
 0xf03   :  { %v3192_v9 = vrot.slane %v3191_v5, 4 }
 0xf04   :  { %v3199_v28 = vrot.slane %v3198_v6, 4 }
 0xf05   :  { %v3193_v40 = vadd.f32 %v3192_v9, %v3191_v5 }
 0xf06   :  { %v3200_v31 = vadd.f32 %v3199_v28, %v3198_v6 }
 0xf07   :  { %v3194_v26 = vrot.slane %v3193_v40, 2 }
 0xf08   :  { %v3201_v29 = vrot.slane %v3200_v31, 2 }
 0xf09   :  { %v3195_v37 = vadd.f32 %v3194_v26, %v3193_v40 }
 0xf0a   :  { %v3202_v38 = vadd.f32 %v3201_v29, %v3200_v31 }
 0xf0b   :  { %v3196_v25 = vrot.slane %v3195_v37, 1 }
 0xf0c   :  { %v3203_v24 = vrot.slane %v3202_v38, 1 }
 0xf0d   :  { %v3197_v33 = vadd.f32 %v3196_v25, %v3195_v37 }
 0xf0e   :  { %v3204_v39 = vadd.f32 %v3203_v24, %v3202_v38 }
 0xf0f   :  { %v5927_v46 = vadd.f32 -1.0, %v3197_v33 }
 0xf10   :  { %v5928_v11 = vadd.f32 -1.0, %v3204_v39 }
 0xf11   :  { %vm3207_vm8 = vcmp.gt.f32.partialorder %v5927_v46, 0.0 }
 0xf12   :  { %vm3208_vm9 = vcmp.gt.f32.partialorder %v5928_v11, 0.0  ;;  %v3209_v45 = vsel %vm3207_vm8, %v3181_v13, %v3175_v7  ;;  %v3211_v10 = vsel %vm3207_vm8, %v3177_v27, %v3181_v13 }
 0xf13   :  { %v3210_v44 = vsel %vm3208_vm9, %v3182_v43, %v3176_v36  ;;  %v3212_v60 = vsel %vm3208_vm9, %v3178_v48, %v3182_v43  ;;  %v3213_v4 = vadd.f32 %v3211_v10, %v3209_v45 }
 0xf14   :  { %v3214_v1 = vadd.f32 %v3212_v60, %v3210_v44 }
 0xf15   :  { %v3215_v18 = vmul.f32 0.5, %v3213_v4 }
 0xf16   :  { %v3216_v2 = vmul.f32 0.5, %v3214_v1 }
 0xf17   :  { %v3217_v5 = vsub.f32 %v7030_v34, %v3215_v18  ;;  %v3219_v6 = vsub.f32 %v7034_v41, %v3215_v18 }
 0xf18   :  { %v3218_v9 = vsub.f32 %v7038_v35, %v3216_v2  ;;  %v3220_v28 = vsub.f32 %v7042_v14, %v3216_v2 }
 0xf19   :  { %v3221_v40 = vmax.f32 %v3217_v5, 0.0  ;;  %v3223_v31 = vmax.f32 %v3219_v6, 0.0 }
 0xf1a   :  { %v3222_v26 = vmax.f32 %v3218_v9, 0.0  ;;  %v3224_v29 = vmax.f32 %v3220_v28, 0.0 }
 0xf1b   :  { %v3225_v7 = vadd.f32 %v3223_v31, %v3221_v40 }
 0xf1c   :  { %v3232_v27 = vadd.f32 %v3224_v29, %v3222_v26 }
 0xf1d   :  { %v3226_v36 = vrot.slane %v3225_v7, 4 }
 0xf1e   :  { %v3233_v48 = vrot.slane %v3232_v27, 4 }
 0xf1f   :  { %v3227_v13 = vadd.f32 %v3226_v36, %v3225_v7 }
 0xf20   :  { %v3234_v43 = vadd.f32 %v3233_v48, %v3232_v27 }
 0xf21   :  { %v3228_v37 = vrot.slane %v3227_v13, 2 }
 0xf22   :  { %v3235_v38 = vrot.slane %v3234_v43, 2 }
 0xf23   :  { %v3229_v25 = vadd.f32 %v3228_v37, %v3227_v13 }
 0xf24   :  { %v3236_v24 = vadd.f32 %v3235_v38, %v3234_v43 }
 0xf25   :  { %v3230_v33 = vrot.slane %v3229_v25, 1 }
 0xf26   :  { %v3237_v39 = vrot.slane %v3236_v24, 1 }
 0xf27   :  { %v3231_v46 = vadd.f32 %v3230_v33, %v3229_v25 }
 0xf28   :  { %v3238_v11 = vadd.f32 %v3237_v39, %v3236_v24 }
 0xf29   :  { %v5929_v4 = vadd.f32 -1.0, %v3231_v46 }
 0xf2a   :  { %v5930_v1 = vadd.f32 -1.0, %v3238_v11 }
 0xf2b   :  { %vm3241_vm10 = vcmp.gt.f32.partialorder %v5929_v4, 0.0 }
 0xf2c   :  { %vm3242_vm11 = vcmp.gt.f32.partialorder %v5930_v1, 0.0  ;;  %v3243_v5 = vsel %vm3241_vm10, %v3215_v18, %v3209_v45  ;;  %v3245_v6 = vsel %vm3241_vm10, %v3211_v10, %v3215_v18 }
 0xf2d   :  { %v3244_v9 = vsel %vm3242_vm11, %v3216_v2, %v3210_v44  ;;  %v3246_v28 = vsel %vm3242_vm11, %v3212_v60, %v3216_v2  ;;  %v3247_v40 = vadd.f32 %v3245_v6, %v3243_v5 }
 0xf2e   :  { %v3248_v31 = vadd.f32 %v3246_v28, %v3244_v9 }
 0xf2f   :  { %v3249_v26 = vmul.f32 0.5, %v3247_v40 }
 0xf30   :  { %v3250_v29 = vmul.f32 0.5, %v3248_v31 }
 0xf31   :  { %v3251_v7 = vsub.f32 %v7030_v34, %v3249_v26  ;;  %v3253_v27 = vsub.f32 %v7034_v41, %v3249_v26 }
 0xf32   :  { %v3252_v36 = vsub.f32 %v7038_v35, %v3250_v29  ;;  %v3254_v48 = vsub.f32 %v7042_v14, %v3250_v29 }
 0xf33   :  { %v3255_v13 = vmax.f32 %v3251_v7, 0.0  ;;  %v3257_v43 = vmax.f32 %v3253_v27, 0.0 }
 0xf34   :  { %v3256_v37 = vmax.f32 %v3252_v36, 0.0  ;;  %v3258_v38 = vmax.f32 %v3254_v48, 0.0 }
 0xf35   :  { %v3259_v45 = vadd.f32 %v3257_v43, %v3255_v13 }
 0xf36   :  { %v3266_v10 = vadd.f32 %v3258_v38, %v3256_v37 }
 0xf37   :  { %v3260_v44 = vrot.slane %v3259_v45, 4 }
 0xf38   :  { %v3267_v60 = vrot.slane %v3266_v10, 4 }
 0xf39   :  { %v3261_v18 = vadd.f32 %v3260_v44, %v3259_v45 }
 0xf3a   :  { %v3268_v2 = vadd.f32 %v3267_v60, %v3266_v10 }
 0xf3b   :  { %v3262_v25 = vrot.slane %v3261_v18, 2 }
 0xf3c   :  { %v3269_v24 = vrot.slane %v3268_v2, 2 }
 0xf3d   :  { %v3263_v33 = vadd.f32 %v3262_v25, %v3261_v18 }
 0xf3e   :  { %v3270_v39 = vadd.f32 %v3269_v24, %v3268_v2 }
 0xf3f   :  { %v3264_v46 = vrot.slane %v3263_v33, 1 }
 0xf40   :  { %v3271_v11 = vrot.slane %v3270_v39, 1 }
 0xf41   :  { %v3265_v4 = vadd.f32 %v3264_v46, %v3263_v33 }
 0xf42   :  { %v3272_v1 = vadd.f32 %v3271_v11, %v3270_v39 }
 0xf43   :  { %v5931_v40 = vadd.f32 -1.0, %v3265_v4 }
 0xf44   :  { %v5932_v31 = vadd.f32 -1.0, %v3272_v1 }
 0xf45   :  { %vm3275_vm12 = vcmp.gt.f32.partialorder %v5931_v40, 0.0 }
 0xf46   :  { %vm3276_vm13 = vcmp.gt.f32.partialorder %v5932_v31, 0.0  ;;  %v3277_v7 = vsel %vm3275_vm12, %v3249_v26, %v3243_v5  ;;  %v3279_v27 = vsel %vm3275_vm12, %v3245_v6, %v3249_v26 }
 0xf47   :  { %v3278_v36 = vsel %vm3276_vm13, %v3250_v29, %v3244_v9  ;;  %v3280_v48 = vsel %vm3276_vm13, %v3246_v28, %v3250_v29  ;;  %v3281_v13 = vadd.f32 %v3279_v27, %v3277_v7 }
 0xf48   :  { %v3282_v43 = vadd.f32 %v3280_v48, %v3278_v36 }
 0xf49   :  { %v3283_v37 = vmul.f32 0.5, %v3281_v13 }
 0xf4a   :  { %v3284_v38 = vmul.f32 0.5, %v3282_v43 }
 0xf4b   :  { %v3285_v45 = vsub.f32 %v7030_v34, %v3283_v37  ;;  %v3287_v10 = vsub.f32 %v7034_v41, %v3283_v37 }
 0xf4c   :  { %v3286_v44 = vsub.f32 %v7038_v35, %v3284_v38  ;;  %v3288_v60 = vsub.f32 %v7042_v14, %v3284_v38 }
 0xf4d   :  { %v3289_v18 = vmax.f32 %v3285_v45, 0.0  ;;  %v3291_v2 = vmax.f32 %v3287_v10, 0.0 }
 0xf4e   :  { %v3290_v25 = vmax.f32 %v3286_v44, 0.0  ;;  %v3292_v24 = vmax.f32 %v3288_v60, 0.0 }
 0xf4f   :  { %v3293_v5 = vadd.f32 %v3291_v2, %v3289_v18 }
 0xf50   :  { %v3300_v6 = vadd.f32 %v3292_v24, %v3290_v25 }
 0xf51   :  { %v3294_v9 = vrot.slane %v3293_v5, 4 }
 0xf52   :  { %v3301_v28 = vrot.slane %v3300_v6, 4 }
 0xf53   :  { %v3295_v26 = vadd.f32 %v3294_v9, %v3293_v5 }
 0xf54   :  { %v3302_v29 = vadd.f32 %v3301_v28, %v3300_v6 }
 0xf55   :  { %v3296_v33 = vrot.slane %v3295_v26, 2 }
 0xf56   :  { %v3303_v39 = vrot.slane %v3302_v29, 2 }
 0xf57   :  { %v3297_v46 = vadd.f32 %v3296_v33, %v3295_v26 }
 0xf58   :  { %v3304_v11 = vadd.f32 %v3303_v39, %v3302_v29 }
 0xf59   :  { %v3298_v4 = vrot.slane %v3297_v46, 1 }
 0xf5a   :  { %v3305_v1 = vrot.slane %v3304_v11, 1 }
 0xf5b   :  { %v3299_v40 = vadd.f32 %v3298_v4, %v3297_v46 }
 0xf5c   :  { %v3306_v31 = vadd.f32 %v3305_v1, %v3304_v11 }
 0xf5d   :  { %v5933_v13 = vadd.f32 -1.0, %v3299_v40 }
 0xf5e   :  { %v5934_v43 = vadd.f32 -1.0, %v3306_v31 }
 0xf5f   :  { %vm3309_vm14 = vcmp.gt.f32.partialorder %v5933_v13, 0.0 }
 0xf60   :  { %vm3310_vm15 = vcmp.gt.f32.partialorder %v5934_v43, 0.0  ;;  %v3311_v45 = vsel %vm3309_vm14, %v3283_v37, %v3277_v7  ;;  %v3313_v10 = vsel %vm3309_vm14, %v3279_v27, %v3283_v37 }
 0xf61   :  { %v3312_v44 = vsel %vm3310_vm15, %v3284_v38, %v3278_v36  ;;  %v3314_v60 = vsel %vm3310_vm15, %v3280_v48, %v3284_v38  ;;  %v3315_v18 = vadd.f32 %v3313_v10, %v3311_v45 }
 0xf62   :  { %v3316_v2 = vadd.f32 %v3314_v60, %v3312_v44 }
 0xf63   :  { %v3317_v25 = vmul.f32 0.5, %v3315_v18 }
 0xf64   :  { %v3318_v24 = vmul.f32 0.5, %v3316_v2 }
 0xf65   :  { %v3319_v5 = vsub.f32 %v7030_v34, %v3317_v25  ;;  %v3321_v6 = vsub.f32 %v7034_v41, %v3317_v25 }
 0xf66   :  { %v3320_v9 = vsub.f32 %v7038_v35, %v3318_v24  ;;  %v3322_v28 = vsub.f32 %v7042_v14, %v3318_v24 }
 0xf67   :  { %v3323_v26 = vmax.f32 %v3319_v5, 0.0  ;;  %v3325_v29 = vmax.f32 %v3321_v6, 0.0 }
 0xf68   :  { %v3324_v33 = vmax.f32 %v3320_v9, 0.0  ;;  %v3326_v39 = vmax.f32 %v3322_v28, 0.0 }
 0xf69   :  { %v3327_v7 = vadd.f32 %v3325_v29, %v3323_v26 }
 0xf6a   :  { %v3334_v27 = vadd.f32 %v3326_v39, %v3324_v33 }
 0xf6b   :  { %v3328_v36 = vrot.slane %v3327_v7, 4 }
 0xf6c   :  { %v3335_v48 = vrot.slane %v3334_v27, 4 }
 0xf6d   :  { %v3329_v37 = vadd.f32 %v3328_v36, %v3327_v7 }
 0xf6e   :  { %v3336_v38 = vadd.f32 %v3335_v48, %v3334_v27 }
 0xf6f   :  { %v3330_v46 = vrot.slane %v3329_v37, 2 }
 0xf70   :  { %v3337_v11 = vrot.slane %v3336_v38, 2 }
 0xf71   :  { %v3331_v4 = vadd.f32 %v3330_v46, %v3329_v37 }
 0xf72   :  { %v3338_v1 = vadd.f32 %v3337_v11, %v3336_v38 }
 0xf73   :  { %v3332_v40 = vrot.slane %v3331_v4, 1 }
 0xf74   :  { %v3339_v31 = vrot.slane %v3338_v1, 1 }
 0xf75   :  { %v3333_v13 = vadd.f32 %v3332_v40, %v3331_v4 }
 0xf76   :  { %v3340_v43 = vadd.f32 %v3339_v31, %v3338_v1 }
 0xf77   :  { %v5935_v18 = vadd.f32 -1.0, %v3333_v13 }
 0xf78   :  { %v5936_v2 = vadd.f32 -1.0, %v3340_v43 }
 0xf79   :  { %vm3343_vm2 = vcmp.gt.f32.partialorder %v5935_v18, 0.0 }
 0xf7a   :  { %vm3344_vm3 = vcmp.gt.f32.partialorder %v5936_v2, 0.0  ;;  %v3345_v5 = vsel %vm3343_vm2, %v3317_v25, %v3311_v45  ;;  %v3347_v6 = vsel %vm3343_vm2, %v3313_v10, %v3317_v25 }
 0xf7b   :  { %v3346_v9 = vsel %vm3344_vm3, %v3318_v24, %v3312_v44  ;;  %v3348_v28 = vsel %vm3344_vm3, %v3314_v60, %v3318_v24  ;;  %v3349_v26 = vadd.f32 %v3347_v6, %v3345_v5 }
 0xf7c   :  { %v3350_v29 = vadd.f32 %v3348_v28, %v3346_v9 }
 0xf7d   :  { %v3351_v33 = vmul.f32 0.5, %v3349_v26 }
 0xf7e   :  { %v3352_v39 = vmul.f32 0.5, %v3350_v29 }
 0xf7f   :  { %v3353_v7 = vsub.f32 %v7030_v34, %v3351_v33  ;;  %v3355_v27 = vsub.f32 %v7034_v41, %v3351_v33 }
 0xf80   :  { %v3354_v36 = vsub.f32 %v7038_v35, %v3352_v39  ;;  %v3356_v48 = vsub.f32 %v7042_v14, %v3352_v39 }
 0xf81   :  { %v3357_v37 = vmax.f32 %v3353_v7, 0.0  ;;  %v3359_v38 = vmax.f32 %v3355_v27, 0.0 }
 0xf82   :  { %v3358_v46 = vmax.f32 %v3354_v36, 0.0  ;;  %v3360_v11 = vmax.f32 %v3356_v48, 0.0 }
 0xf83   :  { %v3361_v45 = vadd.f32 %v3359_v38, %v3357_v37 }
 0xf84   :  { %v3368_v10 = vadd.f32 %v3360_v11, %v3358_v46 }
 0xf85   :  { %v3362_v44 = vrot.slane %v3361_v45, 4 }
 0xf86   :  { %v3369_v60 = vrot.slane %v3368_v10, 4 }
 0xf87   :  { %v3363_v25 = vadd.f32 %v3362_v44, %v3361_v45 }
 0xf88   :  { %v3370_v24 = vadd.f32 %v3369_v60, %v3368_v10 }
 0xf89   :  { %v3364_v4 = vrot.slane %v3363_v25, 2 }
 0xf8a   :  { %v3371_v1 = vrot.slane %v3370_v24, 2 }
 0xf8b   :  { %v3365_v40 = vadd.f32 %v3364_v4, %v3363_v25 }
 0xf8c   :  { %v3372_v31 = vadd.f32 %v3371_v1, %v3370_v24 }
 0xf8d   :  { %v3366_v13 = vrot.slane %v3365_v40, 1 }
 0xf8e   :  { %v3373_v43 = vrot.slane %v3372_v31, 1 }
 0xf8f   :  { %v3367_v18 = vadd.f32 %v3366_v13, %v3365_v40 }
 0xf90   :  { %v3374_v2 = vadd.f32 %v3373_v43, %v3372_v31 }
 0xf91   :  { %v5937_v26 = vadd.f32 -1.0, %v3367_v18 }
 0xf92   :  { %v5938_v29 = vadd.f32 -1.0, %v3374_v2 }
 0xf93   :  { %vm3377_vm4 = vcmp.gt.f32.partialorder %v5937_v26, 0.0 }
 0xf94   :  { %vm3378_vm5 = vcmp.gt.f32.partialorder %v5938_v29, 0.0  ;;  %v3379_v7 = vsel %vm3377_vm4, %v3351_v33, %v3345_v5  ;;  %v3381_v27 = vsel %vm3377_vm4, %v3347_v6, %v3351_v33 }
 0xf95   :  { %v3380_v36 = vsel %vm3378_vm5, %v3352_v39, %v3346_v9  ;;  %v3382_v48 = vsel %vm3378_vm5, %v3348_v28, %v3352_v39  ;;  %v3383_v37 = vadd.f32 %v3381_v27, %v3379_v7 }
 0xf96   :  { %v3384_v38 = vadd.f32 %v3382_v48, %v3380_v36 }
 0xf97   :  { %v3385_v46 = vmul.f32 0.5, %v3383_v37 }
 0xf98   :  { %v3386_v11 = vmul.f32 0.5, %v3384_v38 }
 0xf99   :  { %v3387_v45 = vsub.f32 %v7030_v34, %v3385_v46  ;;  %v3389_v10 = vsub.f32 %v7034_v41, %v3385_v46 }
 0xf9a   :  { %v3388_v44 = vsub.f32 %v7038_v35, %v3386_v11  ;;  %v3390_v60 = vsub.f32 %v7042_v14, %v3386_v11 }
 0xf9b   :  { %v3391_v25 = vmax.f32 %v3387_v45, 0.0  ;;  %v3393_v24 = vmax.f32 %v3389_v10, 0.0 }
 0xf9c   :  { %v3392_v4 = vmax.f32 %v3388_v44, 0.0  ;;  %v3394_v1 = vmax.f32 %v3390_v60, 0.0 }
 0xf9d   :  { %v3395_v5 = vadd.f32 %v3393_v24, %v3391_v25 }
 0xf9e   :  { %v3402_v6 = vadd.f32 %v3394_v1, %v3392_v4 }
 0xf9f   :  { %v3396_v9 = vrot.slane %v3395_v5, 4 }
 0xfa0   :  { %v3403_v28 = vrot.slane %v3402_v6, 4 }
 0xfa1   :  { %v3397_v33 = vadd.f32 %v3396_v9, %v3395_v5 }
 0xfa2   :  { %v3404_v39 = vadd.f32 %v3403_v28, %v3402_v6 }
 0xfa3   :  { %v3398_v40 = vrot.slane %v3397_v33, 2 }
 0xfa4   :  { %v3405_v31 = vrot.slane %v3404_v39, 2 }
 0xfa5   :  { %v3399_v13 = vadd.f32 %v3398_v40, %v3397_v33 }
 0xfa6   :  { %v3406_v43 = vadd.f32 %v3405_v31, %v3404_v39 }
 0xfa7   :  { %v3400_v18 = vrot.slane %v3399_v13, 1 }
 0xfa8   :  { %v3407_v2 = vrot.slane %v3406_v43, 1 }
 0xfa9   :  { %v3401_v26 = vadd.f32 %v3400_v18, %v3399_v13  ;;  %v54_v13 = vld [vmem:[%s7607_s2 + $0x40] sm:$0xff]  ;;  %v1812_v18 = vrot.slane %v6832_v49, 4 }
 0xfaa   :  { %v3408_v29 = vadd.f32 %v3407_v2, %v3406_v43  ;;  %v55_v43 = vld [vmem:[%s7607_s2 + $0x48] sm:$0xff] }
 0xfab   :  { %v5939_v37 = vadd.f32 -1.0, %v3401_v26  ;;  %v1805_v26 = vrot.slane %v6834_v50, 4 }
 0xfac   :  { %v5940_v38 = vadd.f32 -1.0, %v3408_v29 }
 0xfad   :  { %vm3411_vm6 = vcmp.gt.f32.partialorder %v5939_v37, 0.0 }
 0xfae   :  { %vm3412_vm7 = vcmp.gt.f32.partialorder %v5940_v38, 0.0  ;;  %v3413_v45 = vsel %vm3411_vm6, %v3385_v46, %v3379_v7  ;;  %v3415_v10 = vsel %vm3411_vm6, %v3381_v27, %v3385_v46 }
 0xfaf   :  { %v3414_v44 = vsel %vm3412_vm7, %v3386_v11, %v3380_v36  ;;  %v3416_v60 = vsel %vm3412_vm7, %v3382_v48, %v3386_v11  ;;  %v3417_v25 = vadd.f32 %v3415_v10, %v3413_v45  ;;  %v56_v10 = vld [vmem:[%s7607_s2 + $0x50] sm:$0xff] }
 0xfb0   :  { %v3418_v24 = vadd.f32 %v3416_v60, %v3414_v44  ;;  %v1813_v60 = vadd.f32 %v1812_v18, %v6832_v49  ;;  %v57_v49 = vld [vmem:[%s7607_s2 + $0x58] sm:$0xff] }
 0xfb1   :  { %v3419_v4 = vmul.f32 0.5, %v3417_v25 }
 0xfb2   :  { %v3420_v1 = vmul.f32 0.5, %v3418_v24  ;;  %v1806_v24 = vadd.f32 %v1805_v26, %v6834_v50 }
 0xfb3   :  { %v3421_v5 = vsub.f32 %v7030_v34, %v3419_v4  ;;  %v3423_v6 = vsub.f32 %v7034_v41, %v3419_v4 }
 0xfb4   :  { %v3422_v9 = vsub.f32 %v7038_v35, %v3420_v1  ;;  %v3424_v28 = vsub.f32 %v7042_v14, %v3420_v1  ;;  %v1807_v50 = vrot.slane %v1806_v24, 2 }
 0xfb5   :  { %v7156_v33 = vmax.f32 %v3421_v5, 0.0  ;;  %v7158_v39 = vmax.f32 %v3423_v6, 0.0 }
 0xfb6   :  { %v7160_v7 = vmax.f32 %v3422_v9, 0.0  ;;  %v7162_v27 = vmax.f32 %v3424_v28, 0.0  ;;  %v1814_v28 = vrot.slane %v1813_v60, 2 }
 0xfb7   :  { %v3429_v36 = vadd.f32 1e-15, %v7156_v33  ;;  %v3431_v48 = vadd.f32 1e-15, %v7158_v39  ;;  %v3469_v34 = vmul.f32 %v7156_v33, %v6533_v19  ;;  %v3471_v41 = vmul.f32 %v7158_v39, %v6537_v21 }
 0xfb8   :  { %v3430_v35 = vadd.f32 1e-15, %v7160_v7  ;;  %v3432_v14 = vadd.f32 1e-15, %v7162_v27  ;;  %v3470_v46 = vmul.f32 %v7160_v7, %v6535_v20  ;;  %v3472_v11 = vmul.f32 %v7162_v27, %v6539_v22 }
 0xfb9   :  { %6169 = vlog2.f32 %v3429_v36  ;;  %v6064_v31 = vpack.c.bf16 %v3471_v41, %v3469_v34 }
 0xfba   :  { %6171 = vlog2.f32 %v3430_v35  ;;  %v6062_v40 = vpack.c.bf16 %v3472_v11, %v3470_v46  ;;  %v1815_v35 = vadd.f32 %v1814_v28, %v1813_v60  ;;  %v1808_v46 = vadd.f32 %v1807_v50, %v1806_v24 }
 0xfbb   :  { %6173 = vlog2.f32 %v3432_v14 }
 0xfbc   :  { %6063 = vmatprep.subr.bf16.mxu0 %v6062_v40  ;;  %6175 = vlog2.f32 %v3431_v48  ;;  %v1809_v18 = vrot.slane %v1808_v46, 1 }
 0xfbd   :  { %6065 = vmatpush1.bf16.msra.mxu0 %v6064_v31 }
 0xfc0   :  { %5941 = vmatmul.mubr.msk.f32.vlgmr.msra.gmra.mrb[36].mxu0 %vm233_vm0, %v54_v13  ;;  %v1816_v13 = vrot.slane %v1815_v35, 1 }
 0xfc1   :  { %3575 = vmatprep.mubr.f32.mxu0 %v7648_v23 }
 0xfc3   :  { %v6170_v2 = vpop.eup %6169 }
 0xfc4   :  { %v6172_v29 = vpop.eup %6171  ;;  %v3434_v37 = vmul.f32 0.6931472, %v6170_v2  ;;  %5942 = vmatmul.mubr.msk.f32.gmra.mrb[38].mxu0 %vm233_vm0, %v55_v43 }
 0xfc5   :  { %v6174_v38 = vpop.eup %6173  ;;  %v3436_v45 = vmul.f32 0.6931472, %v6172_v29  ;;  %3581 = vmatprep.mubr.f32.mxu0 %v7648_v23 }
 0xfc6   :  { %v6176_v44 = vpop.eup %6175  ;;  %v3440_v25 = vmul.f32 0.6931472, %v6174_v38  ;;  %v3441_v5 = vmul.f32 %v3434_v37, %v7156_v33  ;;  %v1817_v37 = vadd.f32 %v1816_v13, %v1815_v35 }
 0xfc7   :  { %v3442_v4 = vmul.f32 %v3436_v45, %v7160_v7  ;;  %v3438_v1 = vmul.f32 0.6931472, %v6176_v44  ;;  %v1810_v45 = vadd.f32 %v1809_v18, %v1808_v46 }
 0xfc8   :  { %v3444_v6 = vmul.f32 %v3440_v25, %v7162_v27  ;;  %5943 = vmatmul.mubr.msk.f32.gmra.mrb[40].mxu0 %vm233_vm0, %v56_v10 }
 0xfc9   :  { %v3443_v9 = vmul.f32 %v3438_v1, %v7158_v39  ;;  %3587 = vmatprep.mubr.f32.mxu0 %v7648_v23 }
 0xfca   :  { %v3452_v36 = vadd.f32 %v3444_v6, %v3442_v4 }
 0xfcb   :  { %v3445_v48 = vadd.f32 %v3443_v9, %v3441_v5 }
 0xfcc   :  { %v3453_v34 = vrot.slane %v3452_v36, 4  ;;  %5944 = vmatmul.mubr.msk.f32.gmra.mrb[42].mxu0 %vm233_vm0, %v57_v49 }
 0xfcd   :  { %v3446_v41 = vrot.slane %v3445_v48, 4  ;;  %3859 = vmatprep.mubr.f32.mxu0 %v7648_v23 }
 0xfce   :  { %v3454_v14 = vadd.f32 %v3453_v34, %v3452_v36 }
 0xfcf   :  { %v3447_v11 = vadd.f32 %v3446_v41, %v3445_v48 }
 0xfd0   :  { %v3455_v40 = vrot.slane %v3454_v14, 2 }
 0xfd1   :  { %v3448_v31 = vrot.slane %v3447_v11, 2 }
 0xfd2   :  { %v3456_v43 = vadd.f32 %v3455_v40, %v3454_v14 }
 0xfd3   :  { %v3449_v2 = vadd.f32 %v3448_v31, %v3447_v11 }
 0xfd4   :  { %v3457_v26 = vrot.slane %v3456_v43, 1 }
 0xfd5   :  { %v3450_v29 = vrot.slane %v3449_v2, 1 }
 0xfd6   :  { %v3458_v38 = vadd.f32 %v3457_v26, %v3456_v43 }
 0xfd7   :  { %v3451_v10 = vadd.f32 %v3450_v29, %v3449_v2 }
 0xfd8   :  { %v7204_v44 = vadd.f32 %v3458_v38, %v1817_v37 }
 0xfd9   :  { %v7206_v25 = vadd.f32 %v3451_v10, %v1810_v45 }
0x1093   :  { %v3571_v60 = vpop.f32.mrb[36].mxu0 }
0x1094   :  { %v3573_v4 = vpop.f32.mrb[37].mxu0 }
0x1095   :  { %v3574_v18 = vadd.f32 %v3573_v4, %v6946_v51  ;;  %v86_v4 = vld [vmem:[%s7608_s4 + $0x40] sm:$0xff] }
0x1097   :  { %v3577_v24 = vpop.f32.mrb[38].mxu0 }
0x1098   :  { %v3579_v1 = vpop.f32.mrb[39].mxu0  ;;  %v3578_v45 = vadd.f32 %v3577_v24, %v6952_v54  ;;  %v88_v24 = vld [vmem:[%s7608_s4 + $0x50] sm:$0xff] }
0x109b   :  { %v3583_v5 = vpop.f32.mrb[40].mxu0 }
0x109c   :  { %v3584_v6 = vadd.f32 %v3583_v5, %v6942_v47  ;;  %v3585_v9 = vpop.f32.mrb[41].mxu0  ;;  %v3580_v5 = vadd.f32 %v3579_v1, %v6952_v54  ;;  %v87_v54 = vld [vmem:[%s7608_s4 + $0x48] sm:$0xff]  ;;  %v89_v1 = vld [vmem:[%s7608_s4 + $0x58] sm:$0xff] }
0x109d   :  { %v3586_v49 = vadd.f32 %v3585_v9, %v6942_v47  ;;  %v3572_v47 = vadd.f32 %v3571_v60, %v6946_v51 }
0x109e   :  { %v3594_v28 = vmul.f32 0.5, %v3584_v6 }
0x109f   :  { %v3595_v36 = vmul.f32 0.5, %v3586_v49  ;;  %v3589_v50 = vpop.f32.mrb[42].mxu0 }
0x10a0   :  { %6177 = vtanh.f32 %v3594_v28  ;;  %v3590_v48 = vadd.f32 %v3589_v50, %v6948_v52  ;;  %v3591_v34 = vpop.f32.mrb[43].mxu0 }
0x10a1   :  { %6179 = vtanh.f32 %v3595_v36  ;;  %v3592_v41 = vadd.f32 %v3591_v34, %v6948_v52 }
0x10a2   :  { %v3596_v35 = vmul.f32 0.5, %v3590_v48 }
0x10a3   :  { %v3597_v14 = vmul.f32 0.5, %v3592_v41 }
0x10a4   :  { %6181 = vtanh.f32 %v3596_v35 }
0x10a5   :  { %6183 = vtanh.f32 %v3597_v14 }
0x10aa   :  { %v6178_v46 = vpop.eup %6177 }
0x10ab   :  { %v6180_v11 = vpop.eup %6179  ;;  %v3602_v40 = vmul.f32 0.5, %v6178_v46 }
0x10ac   :  { %v3603_v31 = vmul.f32 0.5, %v6180_v11 }
0x10ad   :  { %v3606_v13 = vadd.f32 0.5, %v3602_v40 }
0x10ae   :  { %v6182_v43 = vpop.eup %6181  ;;  %v3607_v2 = vadd.f32 0.5, %v3603_v31 }
0x10af   :  { %v6184_v26 = vpop.eup %6183  ;;  %v7214_v29 = vmul.f32 %v3606_v13, %v3572_v47  ;;  %v3604_v37 = vmul.f32 0.5, %v6182_v43 }
0x10b0   :  { %v3605_v52 = vmul.f32 0.5, %v6184_v26  ;;  %v7216_v38 = vmul.f32 %v3607_v2, %v3574_v18 }
0x10b1   :  { %v3608_v10 = vadd.f32 0.5, %v3604_v37 }
0x10b2   :  { %v3609_v6 = vadd.f32 0.5, %v3605_v52 }
0x10b3   :  { %v3612_v9 = vmul.f32 %v3608_v10, %v3578_v45 }
0x10b4   :  { %v3613_v60 = vmul.f32 %v3609_v6, %v3580_v5 }
0x10b5   :  { %v6068_v51 = vpack.c.bf16 %v3612_v9, %v7214_v29 }
0x10b6   :  { %v6066_v49 = vpack.c.bf16 %v3613_v60, %v7216_v38 }
0x10b8   :  { %6067 = vmatprep.subr.bf16.mxu1 %v6066_v49 }
0x10b9   :  { %6069 = vmatpush1.bf16.msra.mxu1 %v6068_v51 }
0x10bc   :  { %5945 = vmatmul.mubr.msk.f32.vlgmr.msra.gmra.mrb[36].mxu1 %vm233_vm0, %v86_v4 }
0x10bd   :  { %3716 = vmatprep.mubr.f32.mxu1 %v7648_v23 }
0x10c0   :  { %5946 = vmatmul.mubr.msk.f32.gmra.mrb[38].mxu1 %vm233_vm0, %v87_v54 }
0x10c1   :  { %3722 = vmatprep.mubr.f32.mxu1 %v7648_v23 }
0x10c4   :  { %5947 = vmatmul.mubr.msk.f32.gmra.mrb[40].mxu1 %vm233_vm0, %v88_v24 }
0x10c5   :  { %3728 = vmatprep.mubr.f32.mxu1 %v7648_v23 }
0x10c8   :  { %5948 = vmatmul.mubr.msk.f32.gmra.mrb[42].mxu1 %vm233_vm0, %v89_v1 }
0x10c9   :  { %4008 = vmatprep.mubr.f32.mxu1 %v7648_v23 }
0x118f   :  { %v3712_v28 = vpop.f32.mrb[36].mxu1 }
0x1190   :  { %v3714_v36 = vpop.f32.mrb[37].mxu1 }
0x1191   :  { %v3715_v5 = vadd.f32 %v3714_v36, %v6954_v55 }
0x1193   :  { %v3718_v50 = vpop.f32.mrb[38].mxu1 }
0x1194   :  { %v3720_v48 = vpop.f32.mrb[39].mxu1  ;;  %v3719_v24 = vadd.f32 %v3718_v50, %v6960_v58 }
0x1197   :  { %v3724_v34 = vpop.f32.mrb[40].mxu1 }
0x1198   :  { %v3725_v41 = vadd.f32 %v3724_v34, %v6950_v53  ;;  %v3726_v35 = vpop.f32.mrb[41].mxu1  ;;  %v3721_v34 = vadd.f32 %v3720_v48, %v6960_v58  ;;  %v126_v58 = vld [vmem:[%s7609_s6 + $0x80] sm:$0xff] }
0x1199   :  { %v3727_v14 = vadd.f32 %v3726_v35, %v6950_v53  ;;  %v3713_v53 = vadd.f32 %v3712_v28, %v6954_v55 }
0x119a   :  { %v3735_v46 = vmul.f32 0.5, %v3725_v41 }
0x119b   :  { %v3736_v11 = vmul.f32 0.5, %v3727_v14  ;;  %v3730_v40 = vpop.f32.mrb[42].mxu1 }
0x119c   :  { %6185 = vtanh.f32 %v3735_v46  ;;  %v3731_v31 = vadd.f32 %v3730_v40, %v6956_v56  ;;  %v3732_v47 = vpop.f32.mrb[43].mxu1 }
0x119d   :  { %6187 = vtanh.f32 %v3736_v11  ;;  %v3733_v13 = vadd.f32 %v3732_v47, %v6956_v56 }
0x119e   :  { %v3737_v43 = vmul.f32 0.5, %v3731_v31 }
0x119f   :  { %v3738_v18 = vmul.f32 0.5, %v3733_v13 }
0x11a0   :  { %6189 = vtanh.f32 %v3737_v43 }
0x11a1   :  { %6191 = vtanh.f32 %v3738_v18 }
0x11a6   :  { %v6186_v2 = vpop.eup %6185 }
0x11a7   :  { %v6188_v26 = vpop.eup %6187  ;;  %v3743_v37 = vmul.f32 0.5, %v6186_v2 }
0x11a8   :  { %v3744_v52 = vmul.f32 0.5, %v6188_v26 }
0x11a9   :  { %v3747_v45 = vadd.f32 0.5, %v3743_v37 }
0x11aa   :  { %v6190_v10 = vpop.eup %6189  ;;  %v3748_v6 = vadd.f32 0.5, %v3744_v52 }
0x11ab   :  { %v6192_v49 = vpop.eup %6191  ;;  %v3751_v51 = vmul.f32 %v3747_v45, %v3713_v53  ;;  %v3745_v4 = vmul.f32 0.5, %v6190_v10 }
0x11ac   :  { %v3752_v54 = vmul.f32 %v3748_v6, %v3715_v5  ;;  %v3746_v56 = vmul.f32 0.5, %v6192_v49 }
0x11ad   :  { %v3749_v1 = vadd.f32 0.5, %v3745_v4  ;;  %v3755_v46 = vadd.f32 %v3751_v51, %v7214_v29  ;;  %v127_v29 = vld [vmem:[%s7609_s6 + $0x88] sm:$0xff] }
0x11ae   :  { %v3750_v41 = vadd.f32 0.5, %v3746_v56  ;;  %v3756_v28 = vadd.f32 %v3752_v54, %v7216_v38  ;;  %v128_v38 = vld [vmem:[%s7609_s6 + $0x90] sm:$0xff] }
0x11af   :  { %v3753_v35 = vmul.f32 %v3749_v1, %v3719_v24  ;;  %v3759_v47 = vmul.f32 0.70710677, %v3755_v46 }
0x11b0   :  { %v3754_v14 = vmul.f32 %v3750_v41, %v3721_v34  ;;  %v3760_v40 = vmul.f32 0.70710677, %v3756_v28 }
0x11b1   :  { %v3757_v11 = vadd.f32 %v3753_v35, %v3612_v9  ;;  %v129_v9 = vld [vmem:[%s7609_s6 + $0x98] sm:$0xff] }
0x11b2   :  { %v3758_v55 = vadd.f32 %v3754_v14, %v3613_v60 }
0x11b3   :  { %v3761_v36 = vmul.f32 0.70710677, %v3757_v11 }
0x11b4   :  { %v3762_v31 = vmul.f32 0.70710677, %v3758_v55 }
0x11b5   :  { %v6072_v43 = vpack.c.bf16 %v3761_v36, %v3759_v47 }
0x11b6   :  { %v6070_v13 = vpack.c.bf16 %v3762_v31, %v3760_v40 }
0x11b8   :  { %6071 = vmatprep.subr.bf16.mxu0 %v6070_v13 }
0x11b9   :  { %6073 = vmatpush1.bf16.msra.mxu0 %v6072_v43 }
0x11bc   :  { %5949 = vmatmul.mubr.msk.f32.vlgmr.msra.gmra.mrb[44].mxu0 %vm233_vm0, %v126_v58 }
0x11bd   :  { %3865 = vmatprep.mubr.f32.mxu0 %v7648_v23 }
0x11c0   :  { %5950 = vmatmul.mubr.msk.f32.gmra.mrb[46].mxu0 %vm233_vm0, %v127_v29 }
0x11c1   :  { %3871 = vmatprep.mubr.f32.mxu0 %v7648_v23 }
0x11c4   :  { %5951 = vmatmul.mubr.msk.f32.gmra.mrb[48].mxu0 %vm233_vm0, %v128_v38 }
0x11c5   :  { %3877 = vmatprep.mubr.f32.mxu0 %v7648_v23 }
0x11c8   :  { %5952 = vmatmul.mubr.msk.f32.gmra.mrb[50].mxu0 %vm233_vm0, %v129_v9 }
0x11c9   :  { %4145 = vmatprep.mubr.f32.mxu0 %v7648_v23 }
0x128f   :  { %v3861_v60 = vpop.f32.mrb[44].mxu0 }
0x1290   :  { %v3863_v50 = vpop.f32.mrb[45].mxu0 }
0x1291   :  { %v3864_v35 = vadd.f32 %v3863_v50, %v6962_v59 }
0x1293   :  { %v3867_v48 = vpop.f32.mrb[46].mxu0 }
0x1294   :  { %v3869_v18 = vpop.f32.mrb[47].mxu0  ;;  %v3868_v13 = vadd.f32 %v3867_v48, %v6968_v63 }
0x1295   :  { %v3870_v58 = vadd.f32 %v3869_v18, %v6968_v63  ;;  %v130_v63 = vld [vmem:[%s7609_s6 + $0xa0] sm:$0xff] }
0x1297   :  { %v3873_v2 = vpop.f32.mrb[48].mxu0 }
0x1298   :  { %v3874_v26 = vadd.f32 %v3873_v2, %v6958_v57  ;;  %v3875_v37 = vpop.f32.mrb[49].mxu0 }
0x1299   :  { %v3876_v52 = vadd.f32 %v3875_v37, %v6958_v57  ;;  %v3862_v57 = vadd.f32 %v3861_v60, %v6962_v59 }
0x129a   :  { %v3884_v53 = vmul.f32 0.5, %v3874_v26 }
0x129b   :  { %v3885_v45 = vmul.f32 0.5, %v3876_v52  ;;  %v3879_v10 = vpop.f32.mrb[50].mxu0 }
0x129c   :  { %6193 = vtanh.f32 %v3884_v53  ;;  %v3880_v5 = vadd.f32 %v3879_v10, %v6964_v61  ;;  %v3881_v6 = vpop.f32.mrb[51].mxu0 }
0x129d   :  { %6195 = vtanh.f32 %v3885_v45  ;;  %v3882_v49 = vadd.f32 %v3881_v6, %v6964_v61 }
0x129e   :  { %v3886_v51 = vmul.f32 0.5, %v3880_v5 }
0x129f   :  { %v3887_v4 = vmul.f32 0.5, %v3882_v49 }
0x12a0   :  { %6197 = vtanh.f32 %v3886_v51 }
0x12a1   :  { %6199 = vtanh.f32 %v3887_v4 }
0x12a6   :  { %v6194_v54 = vpop.eup %6193 }
0x12a7   :  { %v6196_v56 = vpop.eup %6195  ;;  %v3892_v24 = vmul.f32 0.5, %v6194_v54 }
0x12a8   :  { %v3893_v1 = vmul.f32 0.5, %v6196_v56 }
0x12a9   :  { %v3896_v34 = vadd.f32 0.5, %v3892_v24 }
0x12aa   :  { %v6198_v41 = vpop.eup %6197  ;;  %v3897_v14 = vadd.f32 0.5, %v3893_v1 }
0x12ab   :  { %v6200_v28 = vpop.eup %6199  ;;  %v3900_v46 = vmul.f32 %v3896_v34, %v3862_v57  ;;  %v3894_v11 = vmul.f32 0.5, %v6198_v41 }
0x12ac   :  { %v3901_v55 = vmul.f32 %v3897_v14, %v3864_v35  ;;  %v3895_v61 = vmul.f32 0.5, %v6200_v28  ;;  %v7310_v14 = vpop.permute.xlu0 %5560 }
0x12ad   :  { %v3898_v43 = vadd.f32 0.5, %v3894_v11  ;;  %v3904_v60 = vadd.f32 %v3900_v46, %v3759_v47 }
0x12ae   :  { %v3899_v29 = vadd.f32 0.5, %v3895_v61  ;;  %v3905_v2 = vadd.f32 %v3901_v55, %v3760_v40  ;;  %v132_v40 = vld [vmem:[%s7609_s6 + $0xb0] sm:$0xff]  ;;  %v2408_v61 = vadd.f32 %v7002_v12, %v6912_v30 }
0x12af   :  { %v3902_v38 = vmul.f32 %v3898_v43, %v3868_v13  ;;  %v3908_v53 = vmul.f32 0.70710677, %v3904_v60 }
0x12b0   :  { %v3903_v9 = vmul.f32 %v3899_v29, %v3870_v58  ;;  %v3909_v59 = vmul.f32 0.70710677, %v3905_v2 }
0x12b1   :  { %v3906_v26 = vadd.f32 %v3902_v38, %v3761_v36  ;;  %v131_v36 = vld [vmem:[%s7609_s6 + $0xa8] sm:$0xff] }
0x12b2   :  { %v3907_v37 = vadd.f32 %v3903_v9, %v3762_v31  ;;  %v133_v31 = vld [vmem:[%s7609_s6 + $0xb8] sm:$0xff] }
0x12b3   :  { %v7280_v52 = vmul.f32 0.70710677, %v3906_v26 }
0x12b4   :  { %v7282_v50 = vmul.f32 0.70710677, %v3907_v37 }
0x12b5   :  { %v6076_v48 = vpack.c.bf16 %v7280_v52, %v3908_v53 }
0x12b6   :  { %v6074_v45 = vpack.c.bf16 %v7282_v50, %v3909_v59 }
0x12b8   :  { %6075 = vmatprep.subr.bf16.mxu1 %v6074_v45  ;;  %v2412_v45 = vmul.f32 0.70710677, %v2408_v61 }
0x12b9   :  { %6077 = vmatpush1.bf16.msra.mxu1 %v6076_v48 }
0x12bc   :  { %5953 = vmatmul.mubr.msk.f32.vlgmr.msra.gmra.mrb[44].mxu1 %vm233_vm0, %v130_v63 }
0x12bd   :  { %4014 = vmatprep.mubr.f32.mxu1 %v7648_v23 }
0x12c0   :  { %5954 = vmatmul.mubr.msk.f32.gmra.mrb[46].mxu1 %vm233_vm0, %v131_v36 }
0x12c1   :  { %4020 = vmatprep.mubr.f32.mxu1 %v7648_v23 }
0x12c4   :  { %5955 = vmatmul.mubr.msk.f32.gmra.mrb[48].mxu1 %vm233_vm0, %v132_v40 }
0x12c5   :  { %4026 = vmatprep.mubr.f32.mxu1 %v7648_v23 }
0x12c8   :  { %5956 = vmatmul.mubr.msk.f32.gmra.mrb[50].mxu1 %vm233_vm0, %v133_v31 }
0x12c9   :  { %5206 = vmatprep.mubr.f32.mxu1 %v7648_v23 }
0x138f   :  { %v4010_v47 = vpop.f32.mrb[44].mxu1 }
0x1390   :  { %v4012_v18 = vpop.f32.mrb[45].mxu1 }
0x1393   :  { %v4016_v10 = vpop.f32.mrb[46].mxu1 }
0x1394   :  { %v4018_v5 = vpop.f32.mrb[47].mxu1  ;;  %v4017_v48 = vadd.f32 %v4016_v10, %v6972_v0 }
0x1395   :  { %v4019_v30 = vadd.f32 %v4018_v5, %v6972_v0  ;;  %v3462_v5 = vsub.f32 1.3, %v7160_v7 }
0x1397   :  { %v4022_v6 = vpop.f32.mrb[48].mxu1 }
0x1398   :  { %v4023_v49 = vadd.f32 %v4022_v6, %v7000_v8  ;;  %v4024_v51 = vpop.f32.mrb[49].mxu1 }
0x1399   :  { %v4025_v4 = vadd.f32 %v4024_v51, %v7000_v8  ;;  %v3915_v8 = vpop.permute.xlu0 %3914 }
0x139a   :  { %v4033_v54 = vmul.f32 0.5, %v4023_v49  ;;  %v4011_v13 = vadd.f32 %v4010_v47, %v3915_v8  ;;  %v4013_v29 = vadd.f32 %v4012_v18, %v3915_v8  ;;  %v2416_v18 = vmax.f32 %v2412_v45, 0.0 }
0x139b   :  { %v4034_v56 = vmul.f32 0.5, %v4025_v4  ;;  %v4028_v24 = vpop.f32.mrb[50].mxu1 }
0x139c   :  { %6201 = vtanh.f32 %v4033_v54  ;;  %v4029_v1 = vadd.f32 %v4028_v24, %v6966_v3  ;;  %v4030_v57 = vpop.f32.mrb[51].mxu1 }
0x139d   :  { %6203 = vtanh.f32 %v4034_v56  ;;  %v4031_v34 = vadd.f32 %v4030_v57, %v6966_v3  ;;  %v2409_v3 = vadd.f32 %v7004_v32, %v6908_v42  ;;  %v7649_v57 = vsub.f32 1.3, %v6790_v15 }
0x139e   :  { %v4035_v41 = vmul.f32 0.5, %v4029_v1  ;;  %v7651_v15 = vsub.f32 1.3, %v6792_v16 }
0x139f   :  { %v4036_v35 = vmul.f32 0.5, %v4031_v34  ;;  %v2413_v31 = vmul.f32 0.70710677, %v2409_v3 }
0x13a0   :  { %6205 = vtanh.f32 %v4035_v41 }
0x13a1   :  { %6207 = vtanh.f32 %v4036_v35  ;;  %v2417_v54 = vmax.f32 %v2413_v31, 0.0 }
0x13a6   :  { %v6202_v28 = vpop.eup %6201 }
0x13a7   :  { %v6204_v46 = vpop.eup %6203  ;;  %v4041_v11 = vmul.f32 0.5, %v6202_v28  ;;  %v3463_v28 = vsub.f32 1.3, %v7158_v39 }
0x13a8   :  { %v4042_v55 = vmul.f32 0.5, %v6204_v46  ;;  %v7650_v46 = vsub.f32 1.3, %v6794_v17 }
0x13a9   :  { %v4045_v43 = vadd.f32 0.5, %v4041_v11 }
0x13aa   :  { %v6206_v58 = vpop.eup %6205  ;;  %v4046_v38 = vadd.f32 0.5, %v4042_v55  ;;  %v3466_v11 = vmul.f32 %v3462_v5, %v7650_v46  ;;  %v3464_v55 = vsub.f32 1.3, %v7162_v27 }
0x13ab   :  { %v6208_v9 = vpop.eup %6207  ;;  %v4049_v2 = vmul.f32 %v4045_v43, %v4011_v13  ;;  %v4043_v60 = vmul.f32 0.5, %v6206_v58  ;;  %v3467_v13 = vmul.f32 %v3463_v28, %v7651_v15  ;;  %v7652_v43 = vld [vmem:[#allocation4_spill] sm:$0xff] }
0x13ac   :  { %v4050_v26 = vmul.f32 %v4046_v38, %v4013_v29  ;;  %v4044_v37 = vmul.f32 0.5, %v6208_v9  ;;  %v7653_v29 = vld [vmem:[#allocation2_spill] sm:$0xff] }
0x13ad   :  { %v4053_v63 = vadd.f32 %v4049_v2, %v3908_v53  ;;  %v4047_v36 = vadd.f32 0.5, %v4043_v60  ;;  %v7654_v39 = vsub.f32 1.3, %v7653_v29 }
0x13ae   :  { %v4054_v12 = vadd.f32 %v4050_v26, %v3909_v59  ;;  %v4048_v40 = vadd.f32 0.5, %v4044_v37  ;;  %v178_v59 = vld [vmem:[%s7610_s8 + $0x20] sm:$0xff] }
0x13af   :  { %v4057_v47 = vmul.f32 0.70710677, %v4053_v63  ;;  %v4051_v6 = vmul.f32 %v4047_v36, %v4017_v48  ;;  %v3468_v38 = vmul.f32 %v3464_v55, %v7654_v39 }
0x13b0   :  { %v4052_v42 = vmul.f32 %v4048_v40, %v4019_v30  ;;  %v4058_v32 = vmul.f32 0.70710677, %v4054_v12 }
0x13b1   :  { %v4061_v49 = vmax.f32 %v4057_v47, 0.0  ;;  %v4055_v51 = vadd.f32 %v4051_v6, %v7280_v52  ;;  %v179_v52 = vld [vmem:[%s7610_s8 + $0x28] sm:$0xff] }
0x13b2   :  { %v4056_v4 = vadd.f32 %v4052_v42, %v7282_v50  ;;  %v4062_v56 = vmax.f32 %v4058_v32, 0.0  ;;  %v3461_v50 = vsub.f32 1.3, %v7156_v33 }
0x13b3   :  { %v7320_v10 = vadd.f32 %v4061_v49, %v2416_v18  ;;  %v4059_v0 = vmul.f32 0.70710677, %v4055_v51 }
0x13b4   :  { %v4060_v53 = vmul.f32 0.70710677, %v4056_v4  ;;  %v7322_v24 = vadd.f32 %v4062_v56, %v2417_v54  ;;  %v3465_v34 = vmul.f32 %v3461_v50, %v7649_v57 }
0x13b6   :  { %4081 = vmatprep.subr.mxu0 %v4060_v53 }
0x13b7   :  { %4082 = vmatpush1.msra.mxu0 %v4059_v0 }
0x13b8   :  { %5957 = vmatmul.mubr.msk.f32.vlgmr.msra.gmra.mrb[52].mxu0 %vm792_vm1, %v178_v59 }
0x13b9   :  { %4151 = vmatprep.mubr.f32.mxu0 %v7648_v23 }
0x13bc   :  { %5958 = vmatmul.mubr.msk.f32.gmra.mrb[54].mxu0 %vm792_vm1, %v179_v52 }
0x13bd   :  { %5347 = vmatprep.mubr.f32.mxu0 %v7648_v23 }
0x148b   :  { %v4147_v1 = vpop.f32.mrb[52].mxu0 }
0x148c   :  { %v4148_v41 = vadd.f32 %v4147_v1, %v6970_v62  ;;  %v4149_v35 = vpop.f32.mrb[53].mxu0 }
0x148d   :  { %v4150_v8 = vadd.f32 %v4149_v35, %v6970_v62 }
0x148e   :  { %v7344_v61 = vmul.f32 %v4148_v41, %v3465_v34 }
0x148f   :  { %v7346_v33 = vmul.f32 %v4150_v8, %v3466_v11  ;;  %v4153_v7 = vpop.f32.mrb[54].mxu0 }
0x1490   :  { %v4154_v58 = vadd.f32 %v4153_v7, %v7652_v43  ;;  %v4155_v3 = vpop.f32.mrb[55].mxu0 }
0x1491   :  { %v4156_v17 = vadd.f32 %v4155_v3, %v7652_v43 }
0x1492   :  { %v7354_v9 = vmul.f32 %v4154_v58, %v3467_v13 }
0x1493   :  { %v7356_v62 = vmul.f32 %v4156_v17, %v3468_v38 }
0x1494   :  { %v4162_v27 = vmax.f32 %v7344_v61, %v7354_v9 }
0x1495   :  { %v4169_v2 = vmax.f32 %v7346_v33, %v7356_v62 }
0x1496   :  { %v4163_v16 = vrot.slane %v4162_v27, 4 }
0x1497   :  { %v4170_v60 = vrot.slane %v4169_v2, 4 }
0x1498   :  { %v4164_v26 = vmax.f32 %v4162_v27, %v4163_v16 }
0x1499   :  { %v4171_v37 = vmax.f32 %v4169_v2, %v4170_v60 }
0x149a   :  { %v4165_v45 = vrot.slane %v4164_v26, 2 }
0x149b   :  { %v4172_v48 = vrot.slane %v4171_v37, 2 }
0x149c   :  { %v4166_v63 = vmax.f32 %v4164_v26, %v4165_v45 }
0x149d   :  { %v4173_v36 = vmax.f32 %v4171_v37, %v4172_v48 }
0x149e   :  { %v4167_v30 = vrot.slane %v4166_v63, 1 }
0x149f   :  { %v4174_v12 = vrot.slane %v4173_v36, 1 }
0x14a0   :  { %v4168_v40 = vmax.f32 %v4166_v63, %v4167_v30 }
0x14a1   :  { %v4175_v31 = vmax.f32 %v4173_v36, %v4174_v12 }
0x14a2   :  { %v5959_v47 = vadd.f32 -1.0, %v4168_v40 }
0x14a3   :  { %v5960_v6 = vadd.f32 -1.0, %v4175_v31 }
0x14a4   :  { %v4178_v42 = vadd.f32 %v5959_v47, %v4168_v40 }
0x14a5   :  { %v4179_v32 = vadd.f32 %v5960_v6, %v4175_v31 }
0x14a6   :  { %v4180_v18 = vmul.f32 0.5, %v4178_v42 }
0x14a7   :  { %v4181_v49 = vmul.f32 0.5, %v4179_v32 }
0x14a8   :  { %v4182_v51 = vsub.f32 %v7344_v61, %v4180_v18  ;;  %v4184_v4 = vsub.f32 %v7354_v9, %v4180_v18 }
0x14a9   :  { %v4183_v54 = vsub.f32 %v7346_v33, %v4181_v49  ;;  %v4185_v56 = vsub.f32 %v7356_v62, %v4181_v49 }
0x14aa   :  { %v4186_v53 = vmax.f32 %v4182_v51, 0.0  ;;  %v4188_v0 = vmax.f32 %v4184_v4, 0.0 }
0x14ab   :  { %v4187_v59 = vmax.f32 %v4183_v54, 0.0  ;;  %v4189_v52 = vmax.f32 %v4185_v56, 0.0 }
0x14ac   :  { %v4190_v50 = vadd.f32 %v4188_v0, %v4186_v53 }
0x14ad   :  { %v4197_v5 = vadd.f32 %v4189_v52, %v4187_v59 }
0x14ae   :  { %v4191_v1 = vrot.slane %v4190_v50, 4 }
0x14af   :  { %v4198_v57 = vrot.slane %v4197_v5, 4 }
0x14b0   :  { %v4192_v34 = vadd.f32 %v4191_v1, %v4190_v50 }
0x14b1   :  { %v4199_v41 = vadd.f32 %v4198_v57, %v4197_v5 }
0x14b2   :  { %v4193_v35 = vrot.slane %v4192_v34, 2 }
0x14b3   :  { %v4200_v28 = vrot.slane %v4199_v41, 2 }
0x14b4   :  { %v4194_v46 = vadd.f32 %v4193_v35, %v4192_v34 }
0x14b5   :  { %v4201_v11 = vadd.f32 %v4200_v28, %v4199_v41 }
0x14b6   :  { %v4195_v8 = vrot.slane %v4194_v46, 1 }
0x14b7   :  { %v4202_v55 = vrot.slane %v4201_v11, 1 }
0x14b8   :  { %v4196_v7 = vadd.f32 %v4195_v8, %v4194_v46 }
0x14b9   :  { %v4203_v15 = vadd.f32 %v4202_v55, %v4201_v11 }
0x14ba   :  { %v5961_v13 = vadd.f32 -1.0, %v4196_v7 }
0x14bb   :  { %v5962_v43 = vadd.f32 -1.0, %v4203_v15 }
0x14bc   :  { %vm4206_vm8 = vcmp.gt.f32.partialorder %v5961_v13, 0.0 }
0x14bd   :  { %vm4207_vm9 = vcmp.gt.f32.partialorder %v5962_v43, 0.0  ;;  %v4208_v58 = vsel %vm4206_vm8, %v4180_v18, %v5959_v47  ;;  %v4210_v3 = vsel %vm4206_vm8, %v4168_v40, %v4180_v18 }
0x14be   :  { %v4209_v29 = vsel %vm4207_vm9, %v4181_v49, %v5960_v6  ;;  %v4211_v39 = vsel %vm4207_vm9, %v4175_v31, %v4181_v49  ;;  %v4212_v38 = vadd.f32 %v4210_v3, %v4208_v58 }
0x14bf   :  { %v4213_v17 = vadd.f32 %v4211_v39, %v4209_v29 }
0x14c0   :  { %v4214_v27 = vmul.f32 0.5, %v4212_v38 }
0x14c1   :  { %v4215_v2 = vmul.f32 0.5, %v4213_v17 }
0x14c2   :  { %v4216_v16 = vsub.f32 %v7344_v61, %v4214_v27  ;;  %v4218_v60 = vsub.f32 %v7354_v9, %v4214_v27 }
0x14c3   :  { %v4217_v26 = vsub.f32 %v7346_v33, %v4215_v2  ;;  %v4219_v37 = vsub.f32 %v7356_v62, %v4215_v2 }
0x14c4   :  { %v4220_v45 = vmax.f32 %v4216_v16, 0.0  ;;  %v4222_v48 = vmax.f32 %v4218_v60, 0.0 }
0x14c5   :  { %v4221_v63 = vmax.f32 %v4217_v26, 0.0  ;;  %v4223_v36 = vmax.f32 %v4219_v37, 0.0 }
0x14c6   :  { %v4224_v30 = vadd.f32 %v4222_v48, %v4220_v45 }
0x14c7   :  { %v4231_v12 = vadd.f32 %v4223_v36, %v4221_v63 }
0x14c8   :  { %v4225_v40 = vrot.slane %v4224_v30, 4 }
0x14c9   :  { %v4232_v31 = vrot.slane %v4231_v12, 4 }
0x14ca   :  { %v4226_v47 = vadd.f32 %v4225_v40, %v4224_v30 }
0x14cb   :  { %v4233_v6 = vadd.f32 %v4232_v31, %v4231_v12 }
0x14cc   :  { %v4227_v42 = vrot.slane %v4226_v47, 2 }
0x14cd   :  { %v4234_v32 = vrot.slane %v4233_v6, 2 }
0x14ce   :  { %v4228_v18 = vadd.f32 %v4227_v42, %v4226_v47 }
0x14cf   :  { %v4235_v49 = vadd.f32 %v4234_v32, %v4233_v6 }
0x14d0   :  { %v4229_v51 = vrot.slane %v4228_v18, 1 }
0x14d1   :  { %v4236_v4 = vrot.slane %v4235_v49, 1 }
0x14d2   :  { %v4230_v54 = vadd.f32 %v4229_v51, %v4228_v18 }
0x14d3   :  { %v4237_v56 = vadd.f32 %v4236_v4, %v4235_v49 }
0x14d4   :  { %v5963_v53 = vadd.f32 -1.0, %v4230_v54 }
0x14d5   :  { %v5964_v0 = vadd.f32 -1.0, %v4237_v56 }
0x14d6   :  { %vm4240_vm10 = vcmp.gt.f32.partialorder %v5963_v53, 0.0 }
0x14d7   :  { %vm4241_vm11 = vcmp.gt.f32.partialorder %v5964_v0, 0.0  ;;  %v4242_v59 = vsel %vm4240_vm10, %v4214_v27, %v4208_v58  ;;  %v4244_v52 = vsel %vm4240_vm10, %v4210_v3, %v4214_v27 }
0x14d8   :  { %v4243_v50 = vsel %vm4241_vm11, %v4215_v2, %v4209_v29  ;;  %v4245_v5 = vsel %vm4241_vm11, %v4211_v39, %v4215_v2  ;;  %v4246_v1 = vadd.f32 %v4244_v52, %v4242_v59 }
0x14d9   :  { %v4247_v57 = vadd.f32 %v4245_v5, %v4243_v50 }
0x14da   :  { %v4248_v34 = vmul.f32 0.5, %v4246_v1 }
0x14db   :  { %v4249_v41 = vmul.f32 0.5, %v4247_v57 }
0x14dc   :  { %v4250_v35 = vsub.f32 %v7344_v61, %v4248_v34  ;;  %v4252_v28 = vsub.f32 %v7354_v9, %v4248_v34 }
0x14dd   :  { %v4251_v46 = vsub.f32 %v7346_v33, %v4249_v41  ;;  %v4253_v11 = vsub.f32 %v7356_v62, %v4249_v41 }
0x14de   :  { %v4254_v8 = vmax.f32 %v4250_v35, 0.0  ;;  %v4256_v55 = vmax.f32 %v4252_v28, 0.0 }
0x14df   :  { %v4255_v7 = vmax.f32 %v4251_v46, 0.0  ;;  %v4257_v15 = vmax.f32 %v4253_v11, 0.0 }
0x14e0   :  { %v4258_v13 = vadd.f32 %v4256_v55, %v4254_v8 }
0x14e1   :  { %v4265_v43 = vadd.f32 %v4257_v15, %v4255_v7 }
0x14e2   :  { %v4259_v58 = vrot.slane %v4258_v13, 4 }
0x14e3   :  { %v4266_v3 = vrot.slane %v4265_v43, 4 }
0x14e4   :  { %v4260_v29 = vadd.f32 %v4259_v58, %v4258_v13 }
0x14e5   :  { %v4267_v39 = vadd.f32 %v4266_v3, %v4265_v43 }
0x14e6   :  { %v4261_v38 = vrot.slane %v4260_v29, 2 }
0x14e7   :  { %v4268_v17 = vrot.slane %v4267_v39, 2 }
0x14e8   :  { %v4262_v27 = vadd.f32 %v4261_v38, %v4260_v29 }
0x14e9   :  { %v4269_v2 = vadd.f32 %v4268_v17, %v4267_v39 }
0x14ea   :  { %v4263_v16 = vrot.slane %v4262_v27, 1 }
0x14eb   :  { %v4270_v60 = vrot.slane %v4269_v2, 1 }
0x14ec   :  { %v4264_v26 = vadd.f32 %v4263_v16, %v4262_v27 }
0x14ed   :  { %v4271_v37 = vadd.f32 %v4270_v60, %v4269_v2 }
0x14ee   :  { %v5965_v45 = vadd.f32 -1.0, %v4264_v26 }
0x14ef   :  { %v5966_v48 = vadd.f32 -1.0, %v4271_v37 }
0x14f0   :  { %vm4274_vm12 = vcmp.gt.f32.partialorder %v5965_v45, 0.0 }
0x14f1   :  { %vm4275_vm13 = vcmp.gt.f32.partialorder %v5966_v48, 0.0  ;;  %v4276_v63 = vsel %vm4274_vm12, %v4248_v34, %v4242_v59  ;;  %v4278_v36 = vsel %vm4274_vm12, %v4244_v52, %v4248_v34 }
0x14f2   :  { %v4277_v30 = vsel %vm4275_vm13, %v4249_v41, %v4243_v50  ;;  %v4279_v12 = vsel %vm4275_vm13, %v4245_v5, %v4249_v41  ;;  %v4280_v40 = vadd.f32 %v4278_v36, %v4276_v63 }
0x14f3   :  { %v4281_v31 = vadd.f32 %v4279_v12, %v4277_v30 }
0x14f4   :  { %v4282_v47 = vmul.f32 0.5, %v4280_v40 }
0x14f5   :  { %v4283_v6 = vmul.f32 0.5, %v4281_v31 }
0x14f6   :  { %v4284_v42 = vsub.f32 %v7344_v61, %v4282_v47  ;;  %v4286_v32 = vsub.f32 %v7354_v9, %v4282_v47 }
0x14f7   :  { %v4285_v18 = vsub.f32 %v7346_v33, %v4283_v6  ;;  %v4287_v49 = vsub.f32 %v7356_v62, %v4283_v6 }
0x14f8   :  { %v4288_v51 = vmax.f32 %v4284_v42, 0.0  ;;  %v4290_v4 = vmax.f32 %v4286_v32, 0.0 }
0x14f9   :  { %v4289_v54 = vmax.f32 %v4285_v18, 0.0  ;;  %v4291_v56 = vmax.f32 %v4287_v49, 0.0 }
0x14fa   :  { %v4292_v53 = vadd.f32 %v4290_v4, %v4288_v51 }
0x14fb   :  { %v4299_v0 = vadd.f32 %v4291_v56, %v4289_v54 }
0x14fc   :  { %v4293_v59 = vrot.slane %v4292_v53, 4 }
0x14fd   :  { %v4300_v52 = vrot.slane %v4299_v0, 4 }
0x14fe   :  { %v4294_v50 = vadd.f32 %v4293_v59, %v4292_v53 }
0x14ff   :  { %v4301_v5 = vadd.f32 %v4300_v52, %v4299_v0 }
0x1500   :  { %v4295_v1 = vrot.slane %v4294_v50, 2 }
0x1501   :  { %v4302_v57 = vrot.slane %v4301_v5, 2 }
0x1502   :  { %v4296_v34 = vadd.f32 %v4295_v1, %v4294_v50 }
0x1503   :  { %v4303_v41 = vadd.f32 %v4302_v57, %v4301_v5 }
0x1504   :  { %v4297_v35 = vrot.slane %v4296_v34, 1 }
0x1505   :  { %v4304_v28 = vrot.slane %v4303_v41, 1 }
0x1506   :  { %v4298_v46 = vadd.f32 %v4297_v35, %v4296_v34 }
0x1507   :  { %v4305_v11 = vadd.f32 %v4304_v28, %v4303_v41 }
0x1508   :  { %v5967_v8 = vadd.f32 -1.0, %v4298_v46 }
0x1509   :  { %v5968_v55 = vadd.f32 -1.0, %v4305_v11 }
0x150a   :  { %vm4308_vm14 = vcmp.gt.f32.partialorder %v5967_v8, 0.0 }
0x150b   :  { %vm4309_vm15 = vcmp.gt.f32.partialorder %v5968_v55, 0.0  ;;  %v4310_v7 = vsel %vm4308_vm14, %v4282_v47, %v4276_v63  ;;  %v4312_v15 = vsel %vm4308_vm14, %v4278_v36, %v4282_v47 }
0x150c   :  { %v4311_v13 = vsel %vm4309_vm15, %v4283_v6, %v4277_v30  ;;  %v4313_v43 = vsel %vm4309_vm15, %v4279_v12, %v4283_v6  ;;  %v4314_v58 = vadd.f32 %v4312_v15, %v4310_v7 }
0x150d   :  { %v4315_v3 = vadd.f32 %v4313_v43, %v4311_v13 }
0x150e   :  { %v4316_v29 = vmul.f32 0.5, %v4314_v58 }
0x150f   :  { %v4317_v39 = vmul.f32 0.5, %v4315_v3 }
0x1510   :  { %v4318_v38 = vsub.f32 %v7344_v61, %v4316_v29  ;;  %v4320_v17 = vsub.f32 %v7354_v9, %v4316_v29 }
0x1511   :  { %v4319_v27 = vsub.f32 %v7346_v33, %v4317_v39  ;;  %v4321_v2 = vsub.f32 %v7356_v62, %v4317_v39 }
0x1512   :  { %v4322_v16 = vmax.f32 %v4318_v38, 0.0  ;;  %v4324_v60 = vmax.f32 %v4320_v17, 0.0 }
0x1513   :  { %v4323_v26 = vmax.f32 %v4319_v27, 0.0  ;;  %v4325_v37 = vmax.f32 %v4321_v2, 0.0 }
0x1514   :  { %v4326_v45 = vadd.f32 %v4324_v60, %v4322_v16 }
0x1515   :  { %v4333_v48 = vadd.f32 %v4325_v37, %v4323_v26 }
0x1516   :  { %v4327_v63 = vrot.slane %v4326_v45, 4 }
0x1517   :  { %v4334_v36 = vrot.slane %v4333_v48, 4 }
0x1518   :  { %v4328_v30 = vadd.f32 %v4327_v63, %v4326_v45 }
0x1519   :  { %v4335_v12 = vadd.f32 %v4334_v36, %v4333_v48 }
0x151a   :  { %v4329_v40 = vrot.slane %v4328_v30, 2 }
0x151b   :  { %v4336_v31 = vrot.slane %v4335_v12, 2 }
0x151c   :  { %v4330_v47 = vadd.f32 %v4329_v40, %v4328_v30 }
0x151d   :  { %v4337_v6 = vadd.f32 %v4336_v31, %v4335_v12 }
0x151e   :  { %v4331_v42 = vrot.slane %v4330_v47, 1 }
0x151f   :  { %v4338_v32 = vrot.slane %v4337_v6, 1 }
0x1520   :  { %v4332_v18 = vadd.f32 %v4331_v42, %v4330_v47 }
0x1521   :  { %v4339_v49 = vadd.f32 %v4338_v32, %v4337_v6 }
0x1522   :  { %v5969_v51 = vadd.f32 -1.0, %v4332_v18 }
0x1523   :  { %v5970_v4 = vadd.f32 -1.0, %v4339_v49 }
0x1524   :  { %vm4342_vm2 = vcmp.gt.f32.partialorder %v5969_v51, 0.0 }
0x1525   :  { %vm4343_vm3 = vcmp.gt.f32.partialorder %v5970_v4, 0.0  ;;  %v4344_v54 = vsel %vm4342_vm2, %v4316_v29, %v4310_v7  ;;  %v4346_v56 = vsel %vm4342_vm2, %v4312_v15, %v4316_v29 }
0x1526   :  { %v4345_v53 = vsel %vm4343_vm3, %v4317_v39, %v4311_v13  ;;  %v4347_v0 = vsel %vm4343_vm3, %v4313_v43, %v4317_v39  ;;  %v4348_v59 = vadd.f32 %v4346_v56, %v4344_v54 }
0x1527   :  { %v4349_v52 = vadd.f32 %v4347_v0, %v4345_v53 }
0x1528   :  { %v4350_v50 = vmul.f32 0.5, %v4348_v59 }
0x1529   :  { %v4351_v5 = vmul.f32 0.5, %v4349_v52 }
0x152a   :  { %v4352_v1 = vsub.f32 %v7344_v61, %v4350_v50  ;;  %v4354_v57 = vsub.f32 %v7354_v9, %v4350_v50 }
0x152b   :  { %v4353_v34 = vsub.f32 %v7346_v33, %v4351_v5  ;;  %v4355_v41 = vsub.f32 %v7356_v62, %v4351_v5 }
0x152c   :  { %v4356_v35 = vmax.f32 %v4352_v1, 0.0  ;;  %v4358_v28 = vmax.f32 %v4354_v57, 0.0 }
0x152d   :  { %v4357_v46 = vmax.f32 %v4353_v34, 0.0  ;;  %v4359_v11 = vmax.f32 %v4355_v41, 0.0 }
0x152e   :  { %v4360_v8 = vadd.f32 %v4358_v28, %v4356_v35 }
0x152f   :  { %v4367_v55 = vadd.f32 %v4359_v11, %v4357_v46 }
0x1530   :  { %v4361_v7 = vrot.slane %v4360_v8, 4 }
0x1531   :  { %v4368_v15 = vrot.slane %v4367_v55, 4 }
0x1532   :  { %v4362_v13 = vadd.f32 %v4361_v7, %v4360_v8 }
0x1533   :  { %v4369_v43 = vadd.f32 %v4368_v15, %v4367_v55 }
0x1534   :  { %v4363_v58 = vrot.slane %v4362_v13, 2 }
0x1535   :  { %v4370_v3 = vrot.slane %v4369_v43, 2 }
0x1536   :  { %v4364_v29 = vadd.f32 %v4363_v58, %v4362_v13 }
0x1537   :  { %v4371_v39 = vadd.f32 %v4370_v3, %v4369_v43 }
0x1538   :  { %v4365_v38 = vrot.slane %v4364_v29, 1 }
0x1539   :  { %v4372_v17 = vrot.slane %v4371_v39, 1 }
0x153a   :  { %v4366_v27 = vadd.f32 %v4365_v38, %v4364_v29 }
0x153b   :  { %v4373_v2 = vadd.f32 %v4372_v17, %v4371_v39 }
0x153c   :  { %v5971_v16 = vadd.f32 -1.0, %v4366_v27 }
0x153d   :  { %v5972_v60 = vadd.f32 -1.0, %v4373_v2 }
0x153e   :  { %vm4376_vm4 = vcmp.gt.f32.partialorder %v5971_v16, 0.0 }
0x153f   :  { %vm4377_vm5 = vcmp.gt.f32.partialorder %v5972_v60, 0.0  ;;  %v4378_v26 = vsel %vm4376_vm4, %v4350_v50, %v4344_v54  ;;  %v4380_v37 = vsel %vm4376_vm4, %v4346_v56, %v4350_v50 }
0x1540   :  { %v4379_v45 = vsel %vm4377_vm5, %v4351_v5, %v4345_v53  ;;  %v4381_v48 = vsel %vm4377_vm5, %v4347_v0, %v4351_v5  ;;  %v4382_v63 = vadd.f32 %v4380_v37, %v4378_v26 }
0x1541   :  { %v4383_v36 = vadd.f32 %v4381_v48, %v4379_v45 }
0x1542   :  { %v4384_v30 = vmul.f32 0.5, %v4382_v63 }
0x1543   :  { %v4385_v12 = vmul.f32 0.5, %v4383_v36 }
0x1544   :  { %v4386_v40 = vsub.f32 %v7344_v61, %v4384_v30  ;;  %v4388_v31 = vsub.f32 %v7354_v9, %v4384_v30 }
0x1545   :  { %v4387_v47 = vsub.f32 %v7346_v33, %v4385_v12  ;;  %v4389_v6 = vsub.f32 %v7356_v62, %v4385_v12 }
0x1546   :  { %v4390_v42 = vmax.f32 %v4386_v40, 0.0  ;;  %v4392_v32 = vmax.f32 %v4388_v31, 0.0 }
0x1547   :  { %v4391_v18 = vmax.f32 %v4387_v47, 0.0  ;;  %v4393_v49 = vmax.f32 %v4389_v6, 0.0 }
0x1548   :  { %v4394_v51 = vadd.f32 %v4392_v32, %v4390_v42 }
0x1549   :  { %v4401_v4 = vadd.f32 %v4393_v49, %v4391_v18 }
0x154a   :  { %v4395_v54 = vrot.slane %v4394_v51, 4 }
0x154b   :  { %v4402_v56 = vrot.slane %v4401_v4, 4 }
0x154c   :  { %v4396_v53 = vadd.f32 %v4395_v54, %v4394_v51 }
0x154d   :  { %v4403_v0 = vadd.f32 %v4402_v56, %v4401_v4 }
0x154e   :  { %v4397_v59 = vrot.slane %v4396_v53, 2 }
0x154f   :  { %v4404_v52 = vrot.slane %v4403_v0, 2 }
0x1550   :  { %v4398_v50 = vadd.f32 %v4397_v59, %v4396_v53 }
0x1551   :  { %v4405_v5 = vadd.f32 %v4404_v52, %v4403_v0 }
0x1552   :  { %v4399_v1 = vrot.slane %v4398_v50, 1 }
0x1553   :  { %v4406_v57 = vrot.slane %v4405_v5, 1 }
0x1554   :  { %v4400_v34 = vadd.f32 %v4399_v1, %v4398_v50 }
0x1555   :  { %v4407_v41 = vadd.f32 %v4406_v57, %v4405_v5 }
0x1556   :  { %v5973_v35 = vadd.f32 -1.0, %v4400_v34 }
0x1557   :  { %v5974_v28 = vadd.f32 -1.0, %v4407_v41 }
0x1558   :  { %vm4410_vm6 = vcmp.gt.f32.partialorder %v5973_v35, 0.0 }
0x1559   :  { %vm4411_vm7 = vcmp.gt.f32.partialorder %v5974_v28, 0.0  ;;  %v4412_v46 = vsel %vm4410_vm6, %v4384_v30, %v4378_v26  ;;  %v4414_v11 = vsel %vm4410_vm6, %v4380_v37, %v4384_v30 }
0x155a   :  { %v4413_v8 = vsel %vm4411_vm7, %v4385_v12, %v4379_v45  ;;  %v4415_v55 = vsel %vm4411_vm7, %v4381_v48, %v4385_v12  ;;  %v4416_v7 = vadd.f32 %v4414_v11, %v4412_v46 }
0x155b   :  { %v4417_v15 = vadd.f32 %v4415_v55, %v4413_v8 }
0x155c   :  { %v4418_v13 = vmul.f32 0.5, %v4416_v7 }
0x155d   :  { %v4419_v43 = vmul.f32 0.5, %v4417_v15 }
0x155e   :  { %v4420_v58 = vsub.f32 %v7344_v61, %v4418_v13  ;;  %v4422_v3 = vsub.f32 %v7354_v9, %v4418_v13 }
0x155f   :  { %v4421_v29 = vsub.f32 %v7346_v33, %v4419_v43  ;;  %v4423_v39 = vsub.f32 %v7356_v62, %v4419_v43 }
0x1560   :  { %v4424_v38 = vmax.f32 %v4420_v58, 0.0  ;;  %v4426_v17 = vmax.f32 %v4422_v3, 0.0 }
0x1561   :  { %v4425_v27 = vmax.f32 %v4421_v29, 0.0  ;;  %v4427_v2 = vmax.f32 %v4423_v39, 0.0 }
0x1562   :  { %v4428_v16 = vadd.f32 %v4426_v17, %v4424_v38 }
0x1563   :  { %v4435_v60 = vadd.f32 %v4427_v2, %v4425_v27 }
0x1564   :  { %v4429_v26 = vrot.slane %v4428_v16, 4 }
0x1565   :  { %v4436_v37 = vrot.slane %v4435_v60, 4 }
0x1566   :  { %v4430_v45 = vadd.f32 %v4429_v26, %v4428_v16 }
0x1567   :  { %v4437_v48 = vadd.f32 %v4436_v37, %v4435_v60 }
0x1568   :  { %v4431_v63 = vrot.slane %v4430_v45, 2 }
0x1569   :  { %v4438_v36 = vrot.slane %v4437_v48, 2 }
0x156a   :  { %v4432_v30 = vadd.f32 %v4431_v63, %v4430_v45 }
0x156b   :  { %v4439_v12 = vadd.f32 %v4438_v36, %v4437_v48 }
0x156c   :  { %v4433_v40 = vrot.slane %v4432_v30, 1 }
0x156d   :  { %v4440_v31 = vrot.slane %v4439_v12, 1 }
0x156e   :  { %v4434_v47 = vadd.f32 %v4433_v40, %v4432_v30 }
0x156f   :  { %v4441_v6 = vadd.f32 %v4440_v31, %v4439_v12 }
0x1570   :  { %v5975_v42 = vadd.f32 -1.0, %v4434_v47 }
0x1571   :  { %v5976_v32 = vadd.f32 -1.0, %v4441_v6 }
0x1572   :  { %vm4444_vm8 = vcmp.gt.f32.partialorder %v5975_v42, 0.0 }
0x1573   :  { %vm4445_vm9 = vcmp.gt.f32.partialorder %v5976_v32, 0.0  ;;  %v4446_v18 = vsel %vm4444_vm8, %v4418_v13, %v4412_v46  ;;  %v4448_v49 = vsel %vm4444_vm8, %v4414_v11, %v4418_v13 }
0x1574   :  { %v4447_v51 = vsel %vm4445_vm9, %v4419_v43, %v4413_v8  ;;  %v4449_v4 = vsel %vm4445_vm9, %v4415_v55, %v4419_v43  ;;  %v4450_v54 = vadd.f32 %v4448_v49, %v4446_v18 }
0x1575   :  { %v4451_v56 = vadd.f32 %v4449_v4, %v4447_v51 }
0x1576   :  { %v4452_v53 = vmul.f32 0.5, %v4450_v54 }
0x1577   :  { %v4453_v0 = vmul.f32 0.5, %v4451_v56 }
0x1578   :  { %v4454_v59 = vsub.f32 %v7344_v61, %v4452_v53  ;;  %v4456_v52 = vsub.f32 %v7354_v9, %v4452_v53 }
0x1579   :  { %v4455_v50 = vsub.f32 %v7346_v33, %v4453_v0  ;;  %v4457_v5 = vsub.f32 %v7356_v62, %v4453_v0 }
0x157a   :  { %v4458_v1 = vmax.f32 %v4454_v59, 0.0  ;;  %v4460_v57 = vmax.f32 %v4456_v52, 0.0 }
0x157b   :  { %v4459_v34 = vmax.f32 %v4455_v50, 0.0  ;;  %v4461_v41 = vmax.f32 %v4457_v5, 0.0 }
0x157c   :  { %v4462_v35 = vadd.f32 %v4460_v57, %v4458_v1 }
0x157d   :  { %v4469_v28 = vadd.f32 %v4461_v41, %v4459_v34 }
0x157e   :  { %v4463_v46 = vrot.slane %v4462_v35, 4 }
0x157f   :  { %v4470_v11 = vrot.slane %v4469_v28, 4 }
0x1580   :  { %v4464_v8 = vadd.f32 %v4463_v46, %v4462_v35 }
0x1581   :  { %v4471_v55 = vadd.f32 %v4470_v11, %v4469_v28 }
0x1582   :  { %v4465_v7 = vrot.slane %v4464_v8, 2 }
0x1583   :  { %v4472_v15 = vrot.slane %v4471_v55, 2 }
0x1584   :  { %v4466_v13 = vadd.f32 %v4465_v7, %v4464_v8 }
0x1585   :  { %v4473_v43 = vadd.f32 %v4472_v15, %v4471_v55 }
0x1586   :  { %v4467_v58 = vrot.slane %v4466_v13, 1 }
0x1587   :  { %v4474_v3 = vrot.slane %v4473_v43, 1 }
0x1588   :  { %v4468_v29 = vadd.f32 %v4467_v58, %v4466_v13 }
0x1589   :  { %v4475_v39 = vadd.f32 %v4474_v3, %v4473_v43 }
0x158a   :  { %v5977_v38 = vadd.f32 -1.0, %v4468_v29 }
0x158b   :  { %v5978_v17 = vadd.f32 -1.0, %v4475_v39 }
0x158c   :  { %vm4478_vm10 = vcmp.gt.f32.partialorder %v5977_v38, 0.0 }
0x158d   :  { %vm4479_vm11 = vcmp.gt.f32.partialorder %v5978_v17, 0.0  ;;  %v4480_v27 = vsel %vm4478_vm10, %v4452_v53, %v4446_v18  ;;  %v4482_v2 = vsel %vm4478_vm10, %v4448_v49, %v4452_v53 }
0x158e   :  { %v4481_v16 = vsel %vm4479_vm11, %v4453_v0, %v4447_v51  ;;  %v4483_v60 = vsel %vm4479_vm11, %v4449_v4, %v4453_v0  ;;  %v4484_v26 = vadd.f32 %v4482_v2, %v4480_v27 }
0x158f   :  { %v4485_v37 = vadd.f32 %v4483_v60, %v4481_v16 }
0x1590   :  { %v4486_v45 = vmul.f32 0.5, %v4484_v26 }
0x1591   :  { %v4487_v48 = vmul.f32 0.5, %v4485_v37 }
0x1592   :  { %v4488_v63 = vsub.f32 %v7344_v61, %v4486_v45  ;;  %v4490_v36 = vsub.f32 %v7354_v9, %v4486_v45 }
0x1593   :  { %v4489_v30 = vsub.f32 %v7346_v33, %v4487_v48  ;;  %v4491_v12 = vsub.f32 %v7356_v62, %v4487_v48 }
0x1594   :  { %v4492_v40 = vmax.f32 %v4488_v63, 0.0  ;;  %v4494_v31 = vmax.f32 %v4490_v36, 0.0 }
0x1595   :  { %v4493_v47 = vmax.f32 %v4489_v30, 0.0  ;;  %v4495_v6 = vmax.f32 %v4491_v12, 0.0 }
0x1596   :  { %v4496_v42 = vadd.f32 %v4494_v31, %v4492_v40 }
0x1597   :  { %v4503_v32 = vadd.f32 %v4495_v6, %v4493_v47 }
0x1598   :  { %v4497_v18 = vrot.slane %v4496_v42, 4 }
0x1599   :  { %v4504_v49 = vrot.slane %v4503_v32, 4 }
0x159a   :  { %v4498_v51 = vadd.f32 %v4497_v18, %v4496_v42 }
0x159b   :  { %v4505_v4 = vadd.f32 %v4504_v49, %v4503_v32 }
0x159c   :  { %v4499_v54 = vrot.slane %v4498_v51, 2 }
0x159d   :  { %v4506_v56 = vrot.slane %v4505_v4, 2 }
0x159e   :  { %v4500_v53 = vadd.f32 %v4499_v54, %v4498_v51 }
0x159f   :  { %v4507_v0 = vadd.f32 %v4506_v56, %v4505_v4 }
0x15a0   :  { %v4501_v59 = vrot.slane %v4500_v53, 1 }
0x15a1   :  { %v4508_v52 = vrot.slane %v4507_v0, 1 }
0x15a2   :  { %v4502_v50 = vadd.f32 %v4501_v59, %v4500_v53 }
0x15a3   :  { %v4509_v5 = vadd.f32 %v4508_v52, %v4507_v0 }
0x15a4   :  { %v5979_v1 = vadd.f32 -1.0, %v4502_v50 }
0x15a5   :  { %v5980_v57 = vadd.f32 -1.0, %v4509_v5 }
0x15a6   :  { %vm4512_vm12 = vcmp.gt.f32.partialorder %v5979_v1, 0.0 }
0x15a7   :  { %vm4513_vm13 = vcmp.gt.f32.partialorder %v5980_v57, 0.0  ;;  %v4514_v34 = vsel %vm4512_vm12, %v4486_v45, %v4480_v27  ;;  %v4516_v41 = vsel %vm4512_vm12, %v4482_v2, %v4486_v45 }
0x15a8   :  { %v4515_v35 = vsel %vm4513_vm13, %v4487_v48, %v4481_v16  ;;  %v4517_v28 = vsel %vm4513_vm13, %v4483_v60, %v4487_v48  ;;  %v4518_v46 = vadd.f32 %v4516_v41, %v4514_v34 }
0x15a9   :  { %v4519_v11 = vadd.f32 %v4517_v28, %v4515_v35 }
0x15aa   :  { %v4520_v8 = vmul.f32 0.5, %v4518_v46 }
0x15ab   :  { %v4521_v55 = vmul.f32 0.5, %v4519_v11 }
0x15ac   :  { %v4522_v7 = vsub.f32 %v7344_v61, %v4520_v8  ;;  %v4524_v15 = vsub.f32 %v7354_v9, %v4520_v8 }
0x15ad   :  { %v4523_v13 = vsub.f32 %v7346_v33, %v4521_v55  ;;  %v4525_v43 = vsub.f32 %v7356_v62, %v4521_v55 }
0x15ae   :  { %v4526_v58 = vmax.f32 %v4522_v7, 0.0  ;;  %v4528_v3 = vmax.f32 %v4524_v15, 0.0 }
0x15af   :  { %v4527_v29 = vmax.f32 %v4523_v13, 0.0  ;;  %v4529_v39 = vmax.f32 %v4525_v43, 0.0 }
0x15b0   :  { %v4530_v38 = vadd.f32 %v4528_v3, %v4526_v58 }
0x15b1   :  { %v4537_v17 = vadd.f32 %v4529_v39, %v4527_v29 }
0x15b2   :  { %v4531_v27 = vrot.slane %v4530_v38, 4 }
0x15b3   :  { %v4538_v2 = vrot.slane %v4537_v17, 4 }
0x15b4   :  { %v4532_v16 = vadd.f32 %v4531_v27, %v4530_v38 }
0x15b5   :  { %v4539_v60 = vadd.f32 %v4538_v2, %v4537_v17 }
0x15b6   :  { %v4533_v26 = vrot.slane %v4532_v16, 2 }
0x15b7   :  { %v4540_v37 = vrot.slane %v4539_v60, 2 }
0x15b8   :  { %v4534_v45 = vadd.f32 %v4533_v26, %v4532_v16 }
0x15b9   :  { %v4541_v48 = vadd.f32 %v4540_v37, %v4539_v60 }
0x15ba   :  { %v4535_v63 = vrot.slane %v4534_v45, 1 }
0x15bb   :  { %v4542_v36 = vrot.slane %v4541_v48, 1 }
0x15bc   :  { %v4536_v30 = vadd.f32 %v4535_v63, %v4534_v45 }
0x15bd   :  { %v4543_v12 = vadd.f32 %v4542_v36, %v4541_v48 }
0x15be   :  { %v5981_v40 = vadd.f32 -1.0, %v4536_v30 }
0x15bf   :  { %v5982_v31 = vadd.f32 -1.0, %v4543_v12 }
0x15c0   :  { %vm4546_vm14 = vcmp.gt.f32.partialorder %v5981_v40, 0.0 }
0x15c1   :  { %vm4547_vm15 = vcmp.gt.f32.partialorder %v5982_v31, 0.0  ;;  %v4548_v47 = vsel %vm4546_vm14, %v4520_v8, %v4514_v34  ;;  %v4550_v6 = vsel %vm4546_vm14, %v4516_v41, %v4520_v8 }
0x15c2   :  { %v4549_v42 = vsel %vm4547_vm15, %v4521_v55, %v4515_v35  ;;  %v4551_v32 = vsel %vm4547_vm15, %v4517_v28, %v4521_v55  ;;  %v4552_v18 = vadd.f32 %v4550_v6, %v4548_v47 }
0x15c3   :  { %v4553_v49 = vadd.f32 %v4551_v32, %v4549_v42 }
0x15c4   :  { %v4554_v51 = vmul.f32 0.5, %v4552_v18 }
0x15c5   :  { %v4555_v4 = vmul.f32 0.5, %v4553_v49 }
0x15c6   :  { %v4556_v54 = vsub.f32 %v7344_v61, %v4554_v51  ;;  %v4558_v56 = vsub.f32 %v7354_v9, %v4554_v51 }
0x15c7   :  { %v4557_v53 = vsub.f32 %v7346_v33, %v4555_v4  ;;  %v4559_v0 = vsub.f32 %v7356_v62, %v4555_v4 }
0x15c8   :  { %v4560_v59 = vmax.f32 %v4556_v54, 0.0  ;;  %v4562_v52 = vmax.f32 %v4558_v56, 0.0 }
0x15c9   :  { %v4561_v50 = vmax.f32 %v4557_v53, 0.0  ;;  %v4563_v5 = vmax.f32 %v4559_v0, 0.0 }
0x15ca   :  { %v4564_v1 = vadd.f32 %v4562_v52, %v4560_v59 }
0x15cb   :  { %v4571_v57 = vadd.f32 %v4563_v5, %v4561_v50 }
0x15cc   :  { %v4565_v34 = vrot.slane %v4564_v1, 4 }
0x15cd   :  { %v4572_v41 = vrot.slane %v4571_v57, 4 }
0x15ce   :  { %v4566_v35 = vadd.f32 %v4565_v34, %v4564_v1 }
0x15cf   :  { %v4573_v28 = vadd.f32 %v4572_v41, %v4571_v57 }
0x15d0   :  { %v4567_v46 = vrot.slane %v4566_v35, 2 }
0x15d1   :  { %v4574_v11 = vrot.slane %v4573_v28, 2 }
0x15d2   :  { %v4568_v8 = vadd.f32 %v4567_v46, %v4566_v35 }
0x15d3   :  { %v4575_v55 = vadd.f32 %v4574_v11, %v4573_v28 }
0x15d4   :  { %v4569_v7 = vrot.slane %v4568_v8, 1 }
0x15d5   :  { %v4576_v15 = vrot.slane %v4575_v55, 1 }
0x15d6   :  { %v4570_v13 = vadd.f32 %v4569_v7, %v4568_v8 }
0x15d7   :  { %v4577_v43 = vadd.f32 %v4576_v15, %v4575_v55 }
0x15d8   :  { %v5983_v58 = vadd.f32 -1.0, %v4570_v13 }
0x15d9   :  { %v5984_v3 = vadd.f32 -1.0, %v4577_v43 }
0x15da   :  { %vm4580_vm2 = vcmp.gt.f32.partialorder %v5983_v58, 0.0 }
0x15db   :  { %vm4581_vm3 = vcmp.gt.f32.partialorder %v5984_v3, 0.0  ;;  %v4582_v29 = vsel %vm4580_vm2, %v4554_v51, %v4548_v47  ;;  %v4584_v39 = vsel %vm4580_vm2, %v4550_v6, %v4554_v51 }
0x15dc   :  { %v4583_v38 = vsel %vm4581_vm3, %v4555_v4, %v4549_v42  ;;  %v4585_v17 = vsel %vm4581_vm3, %v4551_v32, %v4555_v4  ;;  %v4586_v27 = vadd.f32 %v4584_v39, %v4582_v29 }
0x15dd   :  { %v4587_v2 = vadd.f32 %v4585_v17, %v4583_v38 }
0x15de   :  { %v4588_v16 = vmul.f32 0.5, %v4586_v27 }
0x15df   :  { %v4589_v60 = vmul.f32 0.5, %v4587_v2 }
0x15e0   :  { %v4590_v26 = vsub.f32 %v7344_v61, %v4588_v16  ;;  %v4592_v37 = vsub.f32 %v7354_v9, %v4588_v16 }
0x15e1   :  { %v4591_v45 = vsub.f32 %v7346_v33, %v4589_v60  ;;  %v4593_v48 = vsub.f32 %v7356_v62, %v4589_v60 }
0x15e2   :  { %v4594_v63 = vmax.f32 %v4590_v26, 0.0  ;;  %v4596_v36 = vmax.f32 %v4592_v37, 0.0 }
0x15e3   :  { %v4595_v30 = vmax.f32 %v4591_v45, 0.0  ;;  %v4597_v12 = vmax.f32 %v4593_v48, 0.0 }
0x15e4   :  { %v4598_v40 = vadd.f32 %v4596_v36, %v4594_v63 }
0x15e5   :  { %v4605_v31 = vadd.f32 %v4597_v12, %v4595_v30 }
0x15e6   :  { %v4599_v47 = vrot.slane %v4598_v40, 4 }
0x15e7   :  { %v4606_v6 = vrot.slane %v4605_v31, 4 }
0x15e8   :  { %v4600_v42 = vadd.f32 %v4599_v47, %v4598_v40 }
0x15e9   :  { %v4607_v32 = vadd.f32 %v4606_v6, %v4605_v31 }
0x15ea   :  { %v4601_v18 = vrot.slane %v4600_v42, 2 }
0x15eb   :  { %v4608_v49 = vrot.slane %v4607_v32, 2 }
0x15ec   :  { %v4602_v51 = vadd.f32 %v4601_v18, %v4600_v42 }
0x15ed   :  { %v4609_v4 = vadd.f32 %v4608_v49, %v4607_v32 }
0x15ee   :  { %v4603_v54 = vrot.slane %v4602_v51, 1 }
0x15ef   :  { %v4610_v56 = vrot.slane %v4609_v4, 1 }
0x15f0   :  { %v4604_v53 = vadd.f32 %v4603_v54, %v4602_v51 }
0x15f1   :  { %v4611_v0 = vadd.f32 %v4610_v56, %v4609_v4 }
0x15f2   :  { %v5985_v59 = vadd.f32 -1.0, %v4604_v53 }
0x15f3   :  { %v5986_v52 = vadd.f32 -1.0, %v4611_v0 }
0x15f4   :  { %vm4614_vm4 = vcmp.gt.f32.partialorder %v5985_v59, 0.0 }
0x15f5   :  { %vm4615_vm5 = vcmp.gt.f32.partialorder %v5986_v52, 0.0  ;;  %v4616_v50 = vsel %vm4614_vm4, %v4588_v16, %v4582_v29  ;;  %v4618_v5 = vsel %vm4614_vm4, %v4584_v39, %v4588_v16 }
0x15f6   :  { %v4617_v1 = vsel %vm4615_vm5, %v4589_v60, %v4583_v38  ;;  %v4619_v57 = vsel %vm4615_vm5, %v4585_v17, %v4589_v60  ;;  %v4620_v34 = vadd.f32 %v4618_v5, %v4616_v50 }
0x15f7   :  { %v4621_v41 = vadd.f32 %v4619_v57, %v4617_v1 }
0x15f8   :  { %v4622_v35 = vmul.f32 0.5, %v4620_v34 }
0x15f9   :  { %v4623_v28 = vmul.f32 0.5, %v4621_v41 }
0x15fa   :  { %v4624_v46 = vsub.f32 %v7344_v61, %v4622_v35  ;;  %v4626_v11 = vsub.f32 %v7354_v9, %v4622_v35 }
0x15fb   :  { %v4625_v8 = vsub.f32 %v7346_v33, %v4623_v28  ;;  %v4627_v55 = vsub.f32 %v7356_v62, %v4623_v28 }
0x15fc   :  { %v4628_v7 = vmax.f32 %v4624_v46, 0.0  ;;  %v4630_v15 = vmax.f32 %v4626_v11, 0.0 }
0x15fd   :  { %v4629_v13 = vmax.f32 %v4625_v8, 0.0  ;;  %v4631_v43 = vmax.f32 %v4627_v55, 0.0 }
0x15fe   :  { %v4632_v58 = vadd.f32 %v4630_v15, %v4628_v7 }
0x15ff   :  { %v4639_v3 = vadd.f32 %v4631_v43, %v4629_v13 }
0x1600   :  { %v4633_v29 = vrot.slane %v4632_v58, 4 }
0x1601   :  { %v4640_v39 = vrot.slane %v4639_v3, 4 }
0x1602   :  { %v4634_v38 = vadd.f32 %v4633_v29, %v4632_v58 }
0x1603   :  { %v4641_v17 = vadd.f32 %v4640_v39, %v4639_v3 }
0x1604   :  { %v4635_v27 = vrot.slane %v4634_v38, 2 }
0x1605   :  { %v4642_v2 = vrot.slane %v4641_v17, 2 }
0x1606   :  { %v4636_v16 = vadd.f32 %v4635_v27, %v4634_v38 }
0x1607   :  { %v4643_v60 = vadd.f32 %v4642_v2, %v4641_v17 }
0x1608   :  { %v4637_v26 = vrot.slane %v4636_v16, 1 }
0x1609   :  { %v4644_v37 = vrot.slane %v4643_v60, 1 }
0x160a   :  { %v4638_v45 = vadd.f32 %v4637_v26, %v4636_v16 }
0x160b   :  { %v4645_v48 = vadd.f32 %v4644_v37, %v4643_v60 }
0x160c   :  { %v5987_v63 = vadd.f32 -1.0, %v4638_v45 }
0x160d   :  { %v5988_v36 = vadd.f32 -1.0, %v4645_v48 }
0x160e   :  { %vm4648_vm6 = vcmp.gt.f32.partialorder %v5987_v63, 0.0 }
0x160f   :  { %vm4649_vm7 = vcmp.gt.f32.partialorder %v5988_v36, 0.0  ;;  %v4650_v30 = vsel %vm4648_vm6, %v4622_v35, %v4616_v50  ;;  %v4652_v12 = vsel %vm4648_vm6, %v4618_v5, %v4622_v35 }
0x1610   :  { %v4651_v40 = vsel %vm4649_vm7, %v4623_v28, %v4617_v1  ;;  %v4653_v31 = vsel %vm4649_vm7, %v4619_v57, %v4623_v28  ;;  %v4654_v47 = vadd.f32 %v4652_v12, %v4650_v30 }
0x1611   :  { %v4655_v6 = vadd.f32 %v4653_v31, %v4651_v40 }
0x1612   :  { %v4656_v42 = vmul.f32 0.5, %v4654_v47 }
0x1613   :  { %v4657_v32 = vmul.f32 0.5, %v4655_v6 }
0x1614   :  { %v4658_v18 = vsub.f32 %v7344_v61, %v4656_v42  ;;  %v4660_v49 = vsub.f32 %v7354_v9, %v4656_v42 }
0x1615   :  { %v4659_v51 = vsub.f32 %v7346_v33, %v4657_v32  ;;  %v4661_v4 = vsub.f32 %v7356_v62, %v4657_v32 }
0x1616   :  { %v4662_v54 = vmax.f32 %v4658_v18, 0.0  ;;  %v4664_v56 = vmax.f32 %v4660_v49, 0.0 }
0x1617   :  { %v4663_v53 = vmax.f32 %v4659_v51, 0.0  ;;  %v4665_v0 = vmax.f32 %v4661_v4, 0.0 }
0x1618   :  { %v4666_v59 = vadd.f32 %v4664_v56, %v4662_v54 }
0x1619   :  { %v4673_v52 = vadd.f32 %v4665_v0, %v4663_v53 }
0x161a   :  { %v4667_v50 = vrot.slane %v4666_v59, 4 }
0x161b   :  { %v4674_v5 = vrot.slane %v4673_v52, 4 }
0x161c   :  { %v4668_v1 = vadd.f32 %v4667_v50, %v4666_v59 }
0x161d   :  { %v4675_v57 = vadd.f32 %v4674_v5, %v4673_v52 }
0x161e   :  { %v4669_v34 = vrot.slane %v4668_v1, 2 }
0x161f   :  { %v4676_v41 = vrot.slane %v4675_v57, 2 }
0x1620   :  { %v4670_v35 = vadd.f32 %v4669_v34, %v4668_v1 }
0x1621   :  { %v4677_v28 = vadd.f32 %v4676_v41, %v4675_v57 }
0x1622   :  { %v4671_v46 = vrot.slane %v4670_v35, 1 }
0x1623   :  { %v4678_v11 = vrot.slane %v4677_v28, 1 }
0x1624   :  { %v4672_v8 = vadd.f32 %v4671_v46, %v4670_v35 }
0x1625   :  { %v4679_v55 = vadd.f32 %v4678_v11, %v4677_v28 }
0x1626   :  { %v5989_v7 = vadd.f32 -1.0, %v4672_v8 }
0x1627   :  { %v5990_v15 = vadd.f32 -1.0, %v4679_v55 }
0x1628   :  { %vm4682_vm8 = vcmp.gt.f32.partialorder %v5989_v7, 0.0 }
0x1629   :  { %vm4683_vm9 = vcmp.gt.f32.partialorder %v5990_v15, 0.0  ;;  %v4684_v13 = vsel %vm4682_vm8, %v4656_v42, %v4650_v30  ;;  %v4686_v43 = vsel %vm4682_vm8, %v4652_v12, %v4656_v42 }
0x162a   :  { %v4685_v58 = vsel %vm4683_vm9, %v4657_v32, %v4651_v40  ;;  %v4687_v3 = vsel %vm4683_vm9, %v4653_v31, %v4657_v32  ;;  %v4688_v29 = vadd.f32 %v4686_v43, %v4684_v13 }
0x162b   :  { %v4689_v39 = vadd.f32 %v4687_v3, %v4685_v58 }
0x162c   :  { %v4690_v38 = vmul.f32 0.5, %v4688_v29 }
0x162d   :  { %v4691_v17 = vmul.f32 0.5, %v4689_v39 }
0x162e   :  { %v4692_v27 = vsub.f32 %v7344_v61, %v4690_v38  ;;  %v4694_v2 = vsub.f32 %v7354_v9, %v4690_v38 }
0x162f   :  { %v4693_v16 = vsub.f32 %v7346_v33, %v4691_v17  ;;  %v4695_v60 = vsub.f32 %v7356_v62, %v4691_v17 }
0x1630   :  { %v4696_v26 = vmax.f32 %v4692_v27, 0.0  ;;  %v4698_v37 = vmax.f32 %v4694_v2, 0.0 }
0x1631   :  { %v4697_v45 = vmax.f32 %v4693_v16, 0.0  ;;  %v4699_v48 = vmax.f32 %v4695_v60, 0.0 }
0x1632   :  { %v4700_v63 = vadd.f32 %v4698_v37, %v4696_v26 }
0x1633   :  { %v4707_v36 = vadd.f32 %v4699_v48, %v4697_v45 }
0x1634   :  { %v4701_v30 = vrot.slane %v4700_v63, 4 }
0x1635   :  { %v4708_v12 = vrot.slane %v4707_v36, 4 }
0x1636   :  { %v4702_v40 = vadd.f32 %v4701_v30, %v4700_v63 }
0x1637   :  { %v4709_v31 = vadd.f32 %v4708_v12, %v4707_v36 }
0x1638   :  { %v4703_v47 = vrot.slane %v4702_v40, 2 }
0x1639   :  { %v4710_v6 = vrot.slane %v4709_v31, 2 }
0x163a   :  { %v4704_v42 = vadd.f32 %v4703_v47, %v4702_v40 }
0x163b   :  { %v4711_v32 = vadd.f32 %v4710_v6, %v4709_v31 }
0x163c   :  { %v4705_v18 = vrot.slane %v4704_v42, 1 }
0x163d   :  { %v4712_v49 = vrot.slane %v4711_v32, 1 }
0x163e   :  { %v4706_v51 = vadd.f32 %v4705_v18, %v4704_v42 }
0x163f   :  { %v4713_v4 = vadd.f32 %v4712_v49, %v4711_v32 }
0x1640   :  { %v5991_v54 = vadd.f32 -1.0, %v4706_v51 }
0x1641   :  { %v5992_v56 = vadd.f32 -1.0, %v4713_v4 }
0x1642   :  { %vm4716_vm10 = vcmp.gt.f32.partialorder %v5991_v54, 0.0 }
0x1643   :  { %vm4717_vm11 = vcmp.gt.f32.partialorder %v5992_v56, 0.0  ;;  %v4718_v53 = vsel %vm4716_vm10, %v4690_v38, %v4684_v13  ;;  %v4720_v0 = vsel %vm4716_vm10, %v4686_v43, %v4690_v38 }
0x1644   :  { %v4719_v59 = vsel %vm4717_vm11, %v4691_v17, %v4685_v58  ;;  %v4721_v52 = vsel %vm4717_vm11, %v4687_v3, %v4691_v17  ;;  %v4722_v50 = vadd.f32 %v4720_v0, %v4718_v53 }
0x1645   :  { %v4723_v5 = vadd.f32 %v4721_v52, %v4719_v59 }
0x1646   :  { %v4724_v1 = vmul.f32 0.5, %v4722_v50 }
0x1647   :  { %v4725_v57 = vmul.f32 0.5, %v4723_v5 }
0x1648   :  { %v4726_v34 = vsub.f32 %v7344_v61, %v4724_v1  ;;  %v4728_v41 = vsub.f32 %v7354_v9, %v4724_v1 }
0x1649   :  { %v4727_v35 = vsub.f32 %v7346_v33, %v4725_v57  ;;  %v4729_v28 = vsub.f32 %v7356_v62, %v4725_v57 }
0x164a   :  { %v4730_v46 = vmax.f32 %v4726_v34, 0.0  ;;  %v4732_v11 = vmax.f32 %v4728_v41, 0.0 }
0x164b   :  { %v4731_v8 = vmax.f32 %v4727_v35, 0.0  ;;  %v4733_v55 = vmax.f32 %v4729_v28, 0.0 }
0x164c   :  { %v4734_v7 = vadd.f32 %v4732_v11, %v4730_v46 }
0x164d   :  { %v4741_v15 = vadd.f32 %v4733_v55, %v4731_v8 }
0x164e   :  { %v4735_v13 = vrot.slane %v4734_v7, 4 }
0x164f   :  { %v4742_v43 = vrot.slane %v4741_v15, 4 }
0x1650   :  { %v4736_v58 = vadd.f32 %v4735_v13, %v4734_v7 }
0x1651   :  { %v4743_v3 = vadd.f32 %v4742_v43, %v4741_v15 }
0x1652   :  { %v4737_v29 = vrot.slane %v4736_v58, 2 }
0x1653   :  { %v4744_v39 = vrot.slane %v4743_v3, 2 }
0x1654   :  { %v4738_v38 = vadd.f32 %v4737_v29, %v4736_v58 }
0x1655   :  { %v4745_v17 = vadd.f32 %v4744_v39, %v4743_v3 }
0x1656   :  { %v4739_v27 = vrot.slane %v4738_v38, 1 }
0x1657   :  { %v4746_v2 = vrot.slane %v4745_v17, 1 }
0x1658   :  { %v4740_v16 = vadd.f32 %v4739_v27, %v4738_v38 }
0x1659   :  { %v4747_v60 = vadd.f32 %v4746_v2, %v4745_v17 }
0x165a   :  { %v5993_v26 = vadd.f32 -1.0, %v4740_v16 }
0x165b   :  { %v5994_v37 = vadd.f32 -1.0, %v4747_v60 }
0x165c   :  { %vm4750_vm12 = vcmp.gt.f32.partialorder %v5993_v26, 0.0 }
0x165d   :  { %vm4751_vm13 = vcmp.gt.f32.partialorder %v5994_v37, 0.0  ;;  %v4752_v45 = vsel %vm4750_vm12, %v4724_v1, %v4718_v53  ;;  %v4754_v48 = vsel %vm4750_vm12, %v4720_v0, %v4724_v1 }
0x165e   :  { %v4753_v63 = vsel %vm4751_vm13, %v4725_v57, %v4719_v59  ;;  %v4755_v36 = vsel %vm4751_vm13, %v4721_v52, %v4725_v57  ;;  %v4756_v30 = vadd.f32 %v4754_v48, %v4752_v45 }
0x165f   :  { %v4757_v12 = vadd.f32 %v4755_v36, %v4753_v63 }
0x1660   :  { %v4758_v40 = vmul.f32 0.5, %v4756_v30 }
0x1661   :  { %v4759_v31 = vmul.f32 0.5, %v4757_v12 }
0x1662   :  { %v4760_v47 = vsub.f32 %v7344_v61, %v4758_v40  ;;  %v4762_v6 = vsub.f32 %v7354_v9, %v4758_v40 }
0x1663   :  { %v4761_v42 = vsub.f32 %v7346_v33, %v4759_v31  ;;  %v4763_v32 = vsub.f32 %v7356_v62, %v4759_v31 }
0x1664   :  { %v4764_v18 = vmax.f32 %v4760_v47, 0.0  ;;  %v4766_v49 = vmax.f32 %v4762_v6, 0.0 }
0x1665   :  { %v4765_v51 = vmax.f32 %v4761_v42, 0.0  ;;  %v4767_v4 = vmax.f32 %v4763_v32, 0.0 }
0x1666   :  { %v4768_v54 = vadd.f32 %v4766_v49, %v4764_v18 }
0x1667   :  { %v4775_v56 = vadd.f32 %v4767_v4, %v4765_v51 }
0x1668   :  { %v4769_v53 = vrot.slane %v4768_v54, 4 }
0x1669   :  { %v4776_v0 = vrot.slane %v4775_v56, 4 }
0x166a   :  { %v4770_v59 = vadd.f32 %v4769_v53, %v4768_v54 }
0x166b   :  { %v4777_v52 = vadd.f32 %v4776_v0, %v4775_v56 }
0x166c   :  { %v4771_v50 = vrot.slane %v4770_v59, 2 }
0x166d   :  { %v4778_v5 = vrot.slane %v4777_v52, 2 }
0x166e   :  { %v4772_v1 = vadd.f32 %v4771_v50, %v4770_v59 }
0x166f   :  { %v4779_v57 = vadd.f32 %v4778_v5, %v4777_v52 }
0x1670   :  { %v4773_v34 = vrot.slane %v4772_v1, 1 }
0x1671   :  { %v4780_v41 = vrot.slane %v4779_v57, 1 }
0x1672   :  { %v4774_v35 = vadd.f32 %v4773_v34, %v4772_v1 }
0x1673   :  { %v4781_v28 = vadd.f32 %v4780_v41, %v4779_v57 }
0x1674   :  { %v5995_v46 = vadd.f32 -1.0, %v4774_v35 }
0x1675   :  { %v5996_v11 = vadd.f32 -1.0, %v4781_v28 }
0x1676   :  { %vm4784_vm14 = vcmp.gt.f32.partialorder %v5995_v46, 0.0 }
0x1677   :  { %vm4785_vm15 = vcmp.gt.f32.partialorder %v5996_v11, 0.0  ;;  %v4786_v8 = vsel %vm4784_vm14, %v4758_v40, %v4752_v45  ;;  %v4788_v55 = vsel %vm4784_vm14, %v4754_v48, %v4758_v40 }
0x1678   :  { %v4787_v7 = vsel %vm4785_vm15, %v4759_v31, %v4753_v63  ;;  %v4789_v15 = vsel %vm4785_vm15, %v4755_v36, %v4759_v31  ;;  %v4790_v13 = vadd.f32 %v4788_v55, %v4786_v8 }
0x1679   :  { %v4791_v43 = vadd.f32 %v4789_v15, %v4787_v7 }
0x167a   :  { %v4792_v58 = vmul.f32 0.5, %v4790_v13 }
0x167b   :  { %v4793_v3 = vmul.f32 0.5, %v4791_v43 }
0x167c   :  { %v4794_v29 = vsub.f32 %v7344_v61, %v4792_v58  ;;  %v4796_v39 = vsub.f32 %v7354_v9, %v4792_v58 }
0x167d   :  { %v4795_v38 = vsub.f32 %v7346_v33, %v4793_v3  ;;  %v4797_v17 = vsub.f32 %v7356_v62, %v4793_v3 }
0x167e   :  { %v4798_v27 = vmax.f32 %v4794_v29, 0.0  ;;  %v4800_v2 = vmax.f32 %v4796_v39, 0.0 }
0x167f   :  { %v4799_v16 = vmax.f32 %v4795_v38, 0.0  ;;  %v4801_v60 = vmax.f32 %v4797_v17, 0.0 }
0x1680   :  { %v4802_v26 = vadd.f32 %v4800_v2, %v4798_v27 }
0x1681   :  { %v4809_v37 = vadd.f32 %v4801_v60, %v4799_v16 }
0x1682   :  { %v4803_v45 = vrot.slane %v4802_v26, 4 }
0x1683   :  { %v4810_v48 = vrot.slane %v4809_v37, 4 }
0x1684   :  { %v4804_v63 = vadd.f32 %v4803_v45, %v4802_v26 }
0x1685   :  { %v4811_v36 = vadd.f32 %v4810_v48, %v4809_v37 }
0x1686   :  { %v4805_v30 = vrot.slane %v4804_v63, 2 }
0x1687   :  { %v4812_v12 = vrot.slane %v4811_v36, 2 }
0x1688   :  { %v4806_v40 = vadd.f32 %v4805_v30, %v4804_v63 }
0x1689   :  { %v4813_v31 = vadd.f32 %v4812_v12, %v4811_v36 }
0x168a   :  { %v4807_v47 = vrot.slane %v4806_v40, 1 }
0x168b   :  { %v4814_v6 = vrot.slane %v4813_v31, 1 }
0x168c   :  { %v4808_v42 = vadd.f32 %v4807_v47, %v4806_v40 }
0x168d   :  { %v4815_v32 = vadd.f32 %v4814_v6, %v4813_v31 }
0x168e   :  { %v5997_v18 = vadd.f32 -1.0, %v4808_v42 }
0x168f   :  { %v5998_v49 = vadd.f32 -1.0, %v4815_v32 }
0x1690   :  { %vm4818_vm2 = vcmp.gt.f32.partialorder %v5997_v18, 0.0 }
0x1691   :  { %vm4819_vm3 = vcmp.gt.f32.partialorder %v5998_v49, 0.0  ;;  %v4820_v51 = vsel %vm4818_vm2, %v4792_v58, %v4786_v8  ;;  %v4822_v4 = vsel %vm4818_vm2, %v4788_v55, %v4792_v58 }
0x1692   :  { %v4821_v54 = vsel %vm4819_vm3, %v4793_v3, %v4787_v7  ;;  %v4823_v56 = vsel %vm4819_vm3, %v4789_v15, %v4793_v3  ;;  %v4824_v53 = vadd.f32 %v4822_v4, %v4820_v51 }
0x1693   :  { %v4825_v0 = vadd.f32 %v4823_v56, %v4821_v54 }
0x1694   :  { %v4826_v59 = vmul.f32 0.5, %v4824_v53 }
0x1695   :  { %v4827_v52 = vmul.f32 0.5, %v4825_v0 }
0x1696   :  { %v4828_v50 = vsub.f32 %v7344_v61, %v4826_v59  ;;  %v4830_v5 = vsub.f32 %v7354_v9, %v4826_v59 }
0x1697   :  { %v4829_v1 = vsub.f32 %v7346_v33, %v4827_v52  ;;  %v4831_v57 = vsub.f32 %v7356_v62, %v4827_v52 }
0x1698   :  { %v4832_v34 = vmax.f32 %v4828_v50, 0.0  ;;  %v4834_v41 = vmax.f32 %v4830_v5, 0.0 }
0x1699   :  { %v4833_v35 = vmax.f32 %v4829_v1, 0.0  ;;  %v4835_v28 = vmax.f32 %v4831_v57, 0.0 }
0x169a   :  { %v4836_v46 = vadd.f32 %v4834_v41, %v4832_v34 }
0x169b   :  { %v4843_v11 = vadd.f32 %v4835_v28, %v4833_v35 }
0x169c   :  { %v4837_v8 = vrot.slane %v4836_v46, 4 }
0x169d   :  { %v4844_v55 = vrot.slane %v4843_v11, 4 }
0x169e   :  { %v4838_v7 = vadd.f32 %v4837_v8, %v4836_v46 }
0x169f   :  { %v4845_v15 = vadd.f32 %v4844_v55, %v4843_v11 }
0x16a0   :  { %v4839_v13 = vrot.slane %v4838_v7, 2 }
0x16a1   :  { %v4846_v43 = vrot.slane %v4845_v15, 2 }
0x16a2   :  { %v4840_v58 = vadd.f32 %v4839_v13, %v4838_v7 }
0x16a3   :  { %v4847_v3 = vadd.f32 %v4846_v43, %v4845_v15 }
0x16a4   :  { %v4841_v29 = vrot.slane %v4840_v58, 1 }
0x16a5   :  { %v4848_v39 = vrot.slane %v4847_v3, 1 }
0x16a6   :  { %v4842_v38 = vadd.f32 %v4841_v29, %v4840_v58 }
0x16a7   :  { %v4849_v17 = vadd.f32 %v4848_v39, %v4847_v3 }
0x16a8   :  { %v5999_v27 = vadd.f32 -1.0, %v4842_v38 }
0x16a9   :  { %v6000_v2 = vadd.f32 -1.0, %v4849_v17 }
0x16aa   :  { %vm4852_vm4 = vcmp.gt.f32.partialorder %v5999_v27, 0.0 }
0x16ab   :  { %vm4853_vm5 = vcmp.gt.f32.partialorder %v6000_v2, 0.0  ;;  %v4854_v16 = vsel %vm4852_vm4, %v4826_v59, %v4820_v51  ;;  %v4856_v60 = vsel %vm4852_vm4, %v4822_v4, %v4826_v59 }
0x16ac   :  { %v4855_v26 = vsel %vm4853_vm5, %v4827_v52, %v4821_v54  ;;  %v4857_v37 = vsel %vm4853_vm5, %v4823_v56, %v4827_v52  ;;  %v4858_v45 = vadd.f32 %v4856_v60, %v4854_v16 }
0x16ad   :  { %v4859_v48 = vadd.f32 %v4857_v37, %v4855_v26 }
0x16ae   :  { %v4860_v63 = vmul.f32 0.5, %v4858_v45 }
0x16af   :  { %v4861_v36 = vmul.f32 0.5, %v4859_v48 }
0x16b0   :  { %v4862_v30 = vsub.f32 %v7344_v61, %v4860_v63  ;;  %v4864_v12 = vsub.f32 %v7354_v9, %v4860_v63 }
0x16b1   :  { %v4863_v40 = vsub.f32 %v7346_v33, %v4861_v36  ;;  %v4865_v31 = vsub.f32 %v7356_v62, %v4861_v36 }
0x16b2   :  { %v4866_v47 = vmax.f32 %v4862_v30, 0.0  ;;  %v4868_v6 = vmax.f32 %v4864_v12, 0.0 }
0x16b3   :  { %v4867_v42 = vmax.f32 %v4863_v40, 0.0  ;;  %v4869_v32 = vmax.f32 %v4865_v31, 0.0 }
0x16b4   :  { %v4870_v18 = vadd.f32 %v4868_v6, %v4866_v47 }
0x16b5   :  { %v4877_v49 = vadd.f32 %v4869_v32, %v4867_v42 }
0x16b6   :  { %v4871_v51 = vrot.slane %v4870_v18, 4 }
0x16b7   :  { %v4878_v4 = vrot.slane %v4877_v49, 4 }
0x16b8   :  { %v4872_v54 = vadd.f32 %v4871_v51, %v4870_v18 }
0x16b9   :  { %v4879_v56 = vadd.f32 %v4878_v4, %v4877_v49 }
0x16ba   :  { %v4873_v53 = vrot.slane %v4872_v54, 2 }
0x16bb   :  { %v4880_v0 = vrot.slane %v4879_v56, 2 }
0x16bc   :  { %v4874_v59 = vadd.f32 %v4873_v53, %v4872_v54 }
0x16bd   :  { %v4881_v52 = vadd.f32 %v4880_v0, %v4879_v56 }
0x16be   :  { %v4875_v50 = vrot.slane %v4874_v59, 1 }
0x16bf   :  { %v4882_v5 = vrot.slane %v4881_v52, 1 }
0x16c0   :  { %v4876_v1 = vadd.f32 %v4875_v50, %v4874_v59 }
0x16c1   :  { %v4883_v57 = vadd.f32 %v4882_v5, %v4881_v52 }
0x16c2   :  { %v6001_v34 = vadd.f32 -1.0, %v4876_v1 }
0x16c3   :  { %v6002_v41 = vadd.f32 -1.0, %v4883_v57 }
0x16c4   :  { %vm4886_vm6 = vcmp.gt.f32.partialorder %v6001_v34, 0.0 }
0x16c5   :  { %vm4887_vm7 = vcmp.gt.f32.partialorder %v6002_v41, 0.0  ;;  %v4888_v35 = vsel %vm4886_vm6, %v4860_v63, %v4854_v16  ;;  %v4890_v28 = vsel %vm4886_vm6, %v4856_v60, %v4860_v63 }
0x16c6   :  { %v4889_v46 = vsel %vm4887_vm7, %v4861_v36, %v4855_v26  ;;  %v4891_v11 = vsel %vm4887_vm7, %v4857_v37, %v4861_v36  ;;  %v4892_v8 = vadd.f32 %v4890_v28, %v4888_v35 }
0x16c7   :  { %v4893_v55 = vadd.f32 %v4891_v11, %v4889_v46 }
0x16c8   :  { %v4894_v7 = vmul.f32 0.5, %v4892_v8 }
0x16c9   :  { %v4895_v15 = vmul.f32 0.5, %v4893_v55 }
0x16ca   :  { %v4896_v13 = vsub.f32 %v7344_v61, %v4894_v7  ;;  %v4898_v43 = vsub.f32 %v7354_v9, %v4894_v7 }
0x16cb   :  { %v4897_v58 = vsub.f32 %v7346_v33, %v4895_v15  ;;  %v4899_v3 = vsub.f32 %v7356_v62, %v4895_v15 }
0x16cc   :  { %v4900_v29 = vmax.f32 %v4896_v13, 0.0  ;;  %v4902_v39 = vmax.f32 %v4898_v43, 0.0 }
0x16cd   :  { %v4901_v38 = vmax.f32 %v4897_v58, 0.0  ;;  %v4903_v17 = vmax.f32 %v4899_v3, 0.0 }
0x16ce   :  { %v4904_v27 = vadd.f32 %v4902_v39, %v4900_v29 }
0x16cf   :  { %v4911_v2 = vadd.f32 %v4903_v17, %v4901_v38 }
0x16d0   :  { %v4905_v16 = vrot.slane %v4904_v27, 4 }
0x16d1   :  { %v4912_v60 = vrot.slane %v4911_v2, 4 }
0x16d2   :  { %v4906_v26 = vadd.f32 %v4905_v16, %v4904_v27 }
0x16d3   :  { %v4913_v37 = vadd.f32 %v4912_v60, %v4911_v2 }
0x16d4   :  { %v4907_v45 = vrot.slane %v4906_v26, 2 }
0x16d5   :  { %v4914_v48 = vrot.slane %v4913_v37, 2 }
0x16d6   :  { %v4908_v63 = vadd.f32 %v4907_v45, %v4906_v26 }
0x16d7   :  { %v4915_v36 = vadd.f32 %v4914_v48, %v4913_v37 }
0x16d8   :  { %v4909_v30 = vrot.slane %v4908_v63, 1 }
0x16d9   :  { %v4916_v12 = vrot.slane %v4915_v36, 1 }
0x16da   :  { %v4910_v40 = vadd.f32 %v4909_v30, %v4908_v63 }
0x16db   :  { %v4917_v31 = vadd.f32 %v4916_v12, %v4915_v36 }
0x16dc   :  { %v6003_v47 = vadd.f32 -1.0, %v4910_v40 }
0x16dd   :  { %v6004_v6 = vadd.f32 -1.0, %v4917_v31 }
0x16de   :  { %vm4920_vm8 = vcmp.gt.f32.partialorder %v6003_v47, 0.0 }
0x16df   :  { %vm4921_vm9 = vcmp.gt.f32.partialorder %v6004_v6, 0.0  ;;  %v4922_v42 = vsel %vm4920_vm8, %v4894_v7, %v4888_v35  ;;  %v4924_v32 = vsel %vm4920_vm8, %v4890_v28, %v4894_v7 }
0x16e0   :  { %v4923_v18 = vsel %vm4921_vm9, %v4895_v15, %v4889_v46  ;;  %v4925_v49 = vsel %vm4921_vm9, %v4891_v11, %v4895_v15  ;;  %v4926_v51 = vadd.f32 %v4924_v32, %v4922_v42 }
0x16e1   :  { %v4927_v4 = vadd.f32 %v4925_v49, %v4923_v18 }
0x16e2   :  { %v4928_v54 = vmul.f32 0.5, %v4926_v51 }
0x16e3   :  { %v4929_v56 = vmul.f32 0.5, %v4927_v4 }
0x16e4   :  { %v4930_v53 = vsub.f32 %v7344_v61, %v4928_v54  ;;  %v4932_v0 = vsub.f32 %v7354_v9, %v4928_v54 }
0x16e5   :  { %v4931_v59 = vsub.f32 %v7346_v33, %v4929_v56  ;;  %v4933_v52 = vsub.f32 %v7356_v62, %v4929_v56 }
0x16e6   :  { %v4934_v50 = vmax.f32 %v4930_v53, 0.0  ;;  %v4936_v5 = vmax.f32 %v4932_v0, 0.0 }
0x16e7   :  { %v4935_v1 = vmax.f32 %v4931_v59, 0.0  ;;  %v4937_v57 = vmax.f32 %v4933_v52, 0.0 }
0x16e8   :  { %v4938_v34 = vadd.f32 %v4936_v5, %v4934_v50 }
0x16e9   :  { %v4945_v41 = vadd.f32 %v4937_v57, %v4935_v1 }
0x16ea   :  { %v4939_v35 = vrot.slane %v4938_v34, 4 }
0x16eb   :  { %v4946_v28 = vrot.slane %v4945_v41, 4 }
0x16ec   :  { %v4940_v46 = vadd.f32 %v4939_v35, %v4938_v34 }
0x16ed   :  { %v4947_v11 = vadd.f32 %v4946_v28, %v4945_v41 }
0x16ee   :  { %v4941_v8 = vrot.slane %v4940_v46, 2 }
0x16ef   :  { %v4948_v55 = vrot.slane %v4947_v11, 2 }
0x16f0   :  { %v4942_v7 = vadd.f32 %v4941_v8, %v4940_v46 }
0x16f1   :  { %v4949_v15 = vadd.f32 %v4948_v55, %v4947_v11 }
0x16f2   :  { %v4943_v13 = vrot.slane %v4942_v7, 1 }
0x16f3   :  { %v4950_v43 = vrot.slane %v4949_v15, 1 }
0x16f4   :  { %v4944_v58 = vadd.f32 %v4943_v13, %v4942_v7 }
0x16f5   :  { %v4951_v3 = vadd.f32 %v4950_v43, %v4949_v15 }
0x16f6   :  { %v6005_v29 = vadd.f32 -1.0, %v4944_v58 }
0x16f7   :  { %v6006_v39 = vadd.f32 -1.0, %v4951_v3 }
0x16f8   :  { %vm4954_vm10 = vcmp.gt.f32.partialorder %v6005_v29, 0.0 }
0x16f9   :  { %vm4955_vm11 = vcmp.gt.f32.partialorder %v6006_v39, 0.0  ;;  %v4956_v38 = vsel %vm4954_vm10, %v4928_v54, %v4922_v42  ;;  %v4958_v17 = vsel %vm4954_vm10, %v4924_v32, %v4928_v54 }
0x16fa   :  { %v4957_v27 = vsel %vm4955_vm11, %v4929_v56, %v4923_v18  ;;  %v4959_v2 = vsel %vm4955_vm11, %v4925_v49, %v4929_v56  ;;  %v4960_v16 = vadd.f32 %v4958_v17, %v4956_v38 }
0x16fb   :  { %v4961_v60 = vadd.f32 %v4959_v2, %v4957_v27 }
0x16fc   :  { %v4962_v26 = vmul.f32 0.5, %v4960_v16 }
0x16fd   :  { %v4963_v37 = vmul.f32 0.5, %v4961_v60 }
0x16fe   :  { %v4964_v45 = vsub.f32 %v7344_v61, %v4962_v26  ;;  %v4966_v48 = vsub.f32 %v7354_v9, %v4962_v26 }
0x16ff   :  { %v4965_v63 = vsub.f32 %v7346_v33, %v4963_v37  ;;  %v4967_v36 = vsub.f32 %v7356_v62, %v4963_v37 }
0x1700   :  { %v4968_v30 = vmax.f32 %v4964_v45, 0.0  ;;  %v4970_v12 = vmax.f32 %v4966_v48, 0.0 }
0x1701   :  { %v4969_v40 = vmax.f32 %v4965_v63, 0.0  ;;  %v4971_v31 = vmax.f32 %v4967_v36, 0.0 }
0x1702   :  { %v4972_v47 = vadd.f32 %v4970_v12, %v4968_v30 }
0x1703   :  { %v4979_v6 = vadd.f32 %v4971_v31, %v4969_v40 }
0x1704   :  { %v4973_v42 = vrot.slane %v4972_v47, 4 }
0x1705   :  { %v4980_v32 = vrot.slane %v4979_v6, 4 }
0x1706   :  { %v4974_v18 = vadd.f32 %v4973_v42, %v4972_v47 }
0x1707   :  { %v4981_v49 = vadd.f32 %v4980_v32, %v4979_v6 }
0x1708   :  { %v4975_v51 = vrot.slane %v4974_v18, 2 }
0x1709   :  { %v4982_v4 = vrot.slane %v4981_v49, 2 }
0x170a   :  { %v4976_v54 = vadd.f32 %v4975_v51, %v4974_v18 }
0x170b   :  { %v4983_v56 = vadd.f32 %v4982_v4, %v4981_v49 }
0x170c   :  { %v4977_v53 = vrot.slane %v4976_v54, 1 }
0x170d   :  { %v4984_v0 = vrot.slane %v4983_v56, 1 }
0x170e   :  { %v4978_v59 = vadd.f32 %v4977_v53, %v4976_v54 }
0x170f   :  { %v4985_v52 = vadd.f32 %v4984_v0, %v4983_v56 }
0x1710   :  { %v6007_v50 = vadd.f32 -1.0, %v4978_v59 }
0x1711   :  { %v6008_v5 = vadd.f32 -1.0, %v4985_v52 }
0x1712   :  { %vm4988_vm12 = vcmp.gt.f32.partialorder %v6007_v50, 0.0 }
0x1713   :  { %vm4989_vm13 = vcmp.gt.f32.partialorder %v6008_v5, 0.0  ;;  %v4990_v1 = vsel %vm4988_vm12, %v4962_v26, %v4956_v38  ;;  %v4992_v57 = vsel %vm4988_vm12, %v4958_v17, %v4962_v26 }
0x1714   :  { %v4991_v34 = vsel %vm4989_vm13, %v4963_v37, %v4957_v27  ;;  %v4993_v41 = vsel %vm4989_vm13, %v4959_v2, %v4963_v37  ;;  %v4994_v35 = vadd.f32 %v4992_v57, %v4990_v1 }
0x1715   :  { %v4995_v28 = vadd.f32 %v4993_v41, %v4991_v34 }
0x1716   :  { %v4996_v46 = vmul.f32 0.5, %v4994_v35 }
0x1717   :  { %v4997_v11 = vmul.f32 0.5, %v4995_v28 }
0x1718   :  { %v4998_v8 = vsub.f32 %v7344_v61, %v4996_v46  ;;  %v5000_v55 = vsub.f32 %v7354_v9, %v4996_v46 }
0x1719   :  { %v4999_v7 = vsub.f32 %v7346_v33, %v4997_v11  ;;  %v5001_v15 = vsub.f32 %v7356_v62, %v4997_v11 }
0x171a   :  { %v5002_v13 = vmax.f32 %v4998_v8, 0.0  ;;  %v5004_v43 = vmax.f32 %v5000_v55, 0.0 }
0x171b   :  { %v5003_v58 = vmax.f32 %v4999_v7, 0.0  ;;  %v5005_v3 = vmax.f32 %v5001_v15, 0.0 }
0x171c   :  { %v5006_v29 = vadd.f32 %v5004_v43, %v5002_v13 }
0x171d   :  { %v5013_v39 = vadd.f32 %v5005_v3, %v5003_v58 }
0x171e   :  { %v5007_v38 = vrot.slane %v5006_v29, 4 }
0x171f   :  { %v5014_v17 = vrot.slane %v5013_v39, 4 }
0x1720   :  { %v5008_v27 = vadd.f32 %v5007_v38, %v5006_v29 }
0x1721   :  { %v5015_v2 = vadd.f32 %v5014_v17, %v5013_v39 }
0x1722   :  { %v5009_v16 = vrot.slane %v5008_v27, 2 }
0x1723   :  { %v5016_v60 = vrot.slane %v5015_v2, 2 }
0x1724   :  { %v5010_v26 = vadd.f32 %v5009_v16, %v5008_v27 }
0x1725   :  { %v5017_v37 = vadd.f32 %v5016_v60, %v5015_v2 }
0x1726   :  { %v5011_v45 = vrot.slane %v5010_v26, 1 }
0x1727   :  { %v5018_v48 = vrot.slane %v5017_v37, 1 }
0x1728   :  { %v5012_v63 = vadd.f32 %v5011_v45, %v5010_v26 }
0x1729   :  { %v5019_v36 = vadd.f32 %v5018_v48, %v5017_v37 }
0x172a   :  { %v6009_v30 = vadd.f32 -1.0, %v5012_v63 }
0x172b   :  { %v6010_v12 = vadd.f32 -1.0, %v5019_v36 }
0x172c   :  { %vm5022_vm14 = vcmp.gt.f32.partialorder %v6009_v30, 0.0 }
0x172d   :  { %vm5023_vm15 = vcmp.gt.f32.partialorder %v6010_v12, 0.0  ;;  %v5024_v40 = vsel %vm5022_vm14, %v4996_v46, %v4990_v1  ;;  %v5026_v31 = vsel %vm5022_vm14, %v4992_v57, %v4996_v46 }
0x172e   :  { %v5025_v47 = vsel %vm5023_vm15, %v4997_v11, %v4991_v34  ;;  %v5027_v6 = vsel %vm5023_vm15, %v4993_v41, %v4997_v11  ;;  %v5028_v42 = vadd.f32 %v5026_v31, %v5024_v40 }
0x172f   :  { %v5029_v32 = vadd.f32 %v5027_v6, %v5025_v47 }
0x1730   :  { %v5030_v18 = vmul.f32 0.5, %v5028_v42 }
0x1731   :  { %v5031_v49 = vmul.f32 0.5, %v5029_v32 }
0x1732   :  { %v5032_v51 = vsub.f32 %v7344_v61, %v5030_v18  ;;  %v5034_v4 = vsub.f32 %v7354_v9, %v5030_v18 }
0x1733   :  { %v5033_v54 = vsub.f32 %v7346_v33, %v5031_v49  ;;  %v5035_v56 = vsub.f32 %v7356_v62, %v5031_v49 }
0x1734   :  { %v5036_v53 = vmax.f32 %v5032_v51, 0.0  ;;  %v5038_v0 = vmax.f32 %v5034_v4, 0.0 }
0x1735   :  { %v5037_v59 = vmax.f32 %v5033_v54, 0.0  ;;  %v5039_v52 = vmax.f32 %v5035_v56, 0.0 }
0x1736   :  { %v5040_v50 = vadd.f32 %v5038_v0, %v5036_v53 }
0x1737   :  { %v5047_v5 = vadd.f32 %v5039_v52, %v5037_v59  ;;  %v61_v52 = vld [vmem:[%s7607_s2 + $0x78] sm:$0xff] }
0x1738   :  { %v5041_v1 = vrot.slane %v5040_v50, 4 }
0x1739   :  { %v5048_v57 = vrot.slane %v5047_v5, 4 }
0x173a   :  { %v5042_v34 = vadd.f32 %v5041_v1, %v5040_v50 }
0x173b   :  { %v5049_v41 = vadd.f32 %v5048_v57, %v5047_v5 }
0x173c   :  { %v5043_v35 = vrot.slane %v5042_v34, 2 }
0x173d   :  { %v5050_v28 = vrot.slane %v5049_v41, 2 }
0x173e   :  { %v5044_v46 = vadd.f32 %v5043_v35, %v5042_v34 }
0x173f   :  { %v5051_v11 = vadd.f32 %v5050_v28, %v5049_v41 }
0x1740   :  { %v5045_v8 = vrot.slane %v5044_v46, 1 }
0x1741   :  { %v5052_v55 = vrot.slane %v5051_v11, 1 }
0x1742   :  { %v5046_v7 = vadd.f32 %v5045_v8, %v5044_v46  ;;  %v6252_v46 = vmov 1966171168   ;;  %v5772_v8 = vlaneseq }
0x1743   :  { %v5053_v15 = vadd.f32 %v5052_v55, %v5051_v11  ;;  %v5770_v11 = vunpack.c.l.s4 %v6252_v46  ;;  %v91_v46 = vld [vmem:[%s7608_s4 + $0x68] sm:$0xff] }
0x1744   :  { %v6011_v13 = vadd.f32 -1.0, %v5046_v7  ;;  %vm5786_vm4 = vcmp.lt.s32.totalorder %v5772_v8, 256 }
0x1745   :  { %v6012_v43 = vadd.f32 -1.0, %v5053_v15 }
0x1746   :  { %vm5056_vm2 = vcmp.gt.f32.partialorder %v6011_v13, 0.0 }
0x1747   :  { %vm5057_vm3 = vcmp.gt.f32.partialorder %v6012_v43, 0.0  ;;  %v5058_v58 = vsel %vm5056_vm2, %v5030_v18, %v5024_v40  ;;  %v5060_v3 = vsel %vm5056_vm2, %v5026_v31, %v5030_v18  ;;  %v5771_v43 = vunpack.c.0.s8 %v5770_v11  ;;  %v92_v11 = vld [vmem:[%s7608_s4 + $0x70] sm:$0xff] }
0x1748   :  { %v5059_v29 = vsel %vm5057_vm3, %v5031_v49, %v5025_v47  ;;  %v5061_v39 = vsel %vm5057_vm3, %v5027_v6, %v5031_v49  ;;  %v5062_v38 = vadd.f32 %v5060_v3, %v5058_v58  ;;  %v60_v49 = vld [vmem:[%s7607_s2 + $0x70] sm:$0xff]  ;;  %v5773_v58 = vshrl.u32 %v5772_v8, 7  ;;  %v93_v8 = vld [vmem:[%s7608_s4 + $0x78] sm:$0xff] }
0x1749   :  { %v5063_v17 = vadd.f32 %v5061_v39, %v5059_v29 }
0x174a   :  { %v5064_v27 = vmul.f32 0.5, %v5062_v38 }
0x174b   :  { %v5065_v2 = vmul.f32 0.5, %v5063_v17  ;;  %v5774_v17 = vsub.s32 %v5771_v43, %v5773_v58  ;;  %v7659_v58 = vld [vmem:[#allocation7_spill] sm:$0xff] }
0x174c   :  { %v5066_v16 = vsub.f32 %v7344_v61, %v5064_v27  ;;  %v5068_v60 = vsub.f32 %v7354_v9, %v5064_v27 }
0x174d   :  { %v5067_v26 = vsub.f32 %v7346_v33, %v5065_v2  ;;  %v5069_v37 = vsub.f32 %v7356_v62, %v5065_v2 }
0x174e   :  { %v5070_v45 = vmax.f32 %v5066_v16, 0.0  ;;  %v5072_v48 = vmax.f32 %v5068_v60, 0.0 }
0x174f   :  { %v5071_v63 = vmax.f32 %v5067_v26, 0.0  ;;  %v5073_v36 = vmax.f32 %v5069_v37, 0.0 }
0x1750   :  { %v5074_v30 = vadd.f32 1e-15, %v5070_v45  ;;  %v5076_v12 = vadd.f32 1e-15, %v5072_v48  ;;  %v5106_v40 = vmul.f32 %v5070_v45, %v6533_v19  ;;  %v5108_v31 = vmul.f32 %v5072_v48, %v6537_v21  ;;  %v58_v19 = vld [vmem:[%s7607_s2 + $0x60] sm:$0xff] }
0x1751   :  { %v5075_v47 = vadd.f32 1e-15, %v5071_v63  ;;  %v5077_v6 = vadd.f32 1e-15, %v5073_v36  ;;  %v5107_v61 = vmul.f32 %v5071_v63, %v6535_v20  ;;  %v5109_v9 = vmul.f32 %v5073_v36, %v6539_v22  ;;  %v59_v20 = vld [vmem:[%s7607_s2 + $0x68] sm:$0xff] }
0x1752   :  { %6209 = vlog2.f32 %v5074_v30  ;;  %v6080_v62 = vpack.c.bf16 %v5108_v31, %v5106_v40  ;;  %v7656_v31 = vld [vmem:[#allocation6_spill] sm:$0xff] }
0x1753   :  { %6211 = vlog2.f32 %v5075_v47  ;;  %v6078_v33 = vpack.c.bf16 %v5109_v9, %v5107_v61 }
0x1754   :  { %6213 = vlog2.f32 %v5077_v6 }
0x1755   :  { %6079 = vmatprep.subr.bf16.mxu1 %v6078_v33  ;;  %6215 = vlog2.f32 %v5076_v12 }
0x1756   :  { %6081 = vmatpush1.bf16.msra.mxu1 %v6080_v62 }
0x1759   :  { %6013 = vmatmul.mubr.msk.f32.vlgmr.msra.gmra.mrb[52].mxu1 %vm233_vm0, %v58_v19 }
0x175a   :  { %5212 = vmatprep.mubr.f32.mxu1 %v7648_v23 }
0x175c   :  { %v6210_v21 = vpop.eup %6209 }
0x175d   :  { %v6212_v22 = vpop.eup %6211  ;;  %v5079_v42 = vmul.f32 0.6931472, %v6210_v21  ;;  %6014 = vmatmul.mubr.msk.f32.gmra.mrb[54].mxu1 %vm233_vm0, %v59_v20 }
0x175e   :  { %v6214_v32 = vpop.eup %6213  ;;  %v5081_v18 = vmul.f32 0.6931472, %v6212_v22  ;;  %5218 = vmatprep.mubr.f32.mxu1 %v7648_v23  ;;  %v7657_v22 = vld [vmem:[#allocation5_spill] sm:$0xff] }
0x175f   :  { %v6216_v51 = vpop.eup %6215  ;;  %v5085_v4 = vmul.f32 0.6931472, %v6214_v32  ;;  %v5086_v53 = vmul.f32 %v5079_v42, %v5070_v45 }
0x1760   :  { %v5087_v54 = vmul.f32 %v5081_v18, %v5071_v63  ;;  %v5083_v56 = vmul.f32 0.6931472, %v6216_v51  ;;  %v7655_v63 = vld [vmem:[#allocation3_spill] sm:$0xff] }
0x1761   :  { %v5089_v0 = vmul.f32 %v5085_v4, %v5073_v36  ;;  %6015 = vmatmul.mubr.msk.f32.gmra.mrb[56].mxu1 %vm233_vm0, %v60_v49 }
0x1762   :  { %v5088_v59 = vmul.f32 %v5083_v56, %v5072_v48  ;;  %5224 = vmatprep.mubr.f32.mxu1 %v7648_v23 }
0x1763   :  { %v5097_v50 = vadd.f32 %v5089_v0, %v5087_v54 }
0x1764   :  { %v5090_v5 = vadd.f32 %v5088_v59, %v5086_v53  ;;  %v7658_v59 = vld [vmem:[#allocation8_spill] sm:$0xff] }
0x1765   :  { %v5098_v1 = vrot.slane %v5097_v50, 4  ;;  %6016 = vmatmul.mubr.msk.f32.gmra.mrb[58].mxu1 %vm233_vm0, %v61_v52 }
0x1766   :  { %v5091_v57 = vrot.slane %v5090_v5, 4  ;;  %5496 = vmatprep.mubr.f32.mxu1 %v7648_v23 }
0x1767   :  { %v5099_v34 = vadd.f32 %v5098_v1, %v5097_v50 }
0x1768   :  { %v5092_v41 = vadd.f32 %v5091_v57, %v5090_v5 }
0x1769   :  { %v5100_v35 = vrot.slane %v5099_v34, 2 }
0x176a   :  { %v5093_v28 = vrot.slane %v5092_v41, 2 }
0x176b   :  { %v5101_v55 = vadd.f32 %v5100_v35, %v5099_v34 }
0x176c   :  { %v5094_v7 = vadd.f32 %v5093_v28, %v5092_v41  ;;  %v90_v28 = vld [vmem:[%s7608_s4 + $0x60] sm:$0xff] }
0x176d   :  { %v5102_v15 = vrot.slane %v5101_v55, 1 }
0x176e   :  { %v5095_v13 = vrot.slane %v5094_v7, 1 }
0x176f   :  { %v5103_v3 = vadd.f32 %v5102_v15, %v5101_v55 }
0x1770   :  { %v5096_v29 = vadd.f32 %v5095_v13, %v5094_v7 }
0x1771   :  { %v5105_v39 = vadd.f32 %v5103_v3, %v7204_v44 }
0x1772   :  { %v5104_v38 = vadd.f32 %v5096_v29, %v7206_v25 }
0x1774   :  { %v5768_v27 = vcombine.low %v5104_v38, %v5105_v39 }
0x1776   :  { %v5775_v2 = vrot.slane %v5768_v27, %v5774_v17 }
0x1778   :  { %v5782_v16 = vrot.slane %v5775_v2, %v5774_v17  ;;  %v7660_v2 = vld [vmem:[#allocation10_spill] sm:$0xff] }
0x177a   :  { %5788 = vst.msk [vmem:[%s7611_s12] sm:$0x3] %vm5786_vm4, %v5782_v16 }
0x182c   :  { %v5208_v60 = vpop.f32.mrb[52].mxu1 }
0x182d   :  { %v5210_v26 = vpop.f32.mrb[53].mxu1  ;;  %v5209_v42 = vadd.f32 %v5208_v60, %v7657_v22 }
0x182e   :  { %v5211_v49 = vadd.f32 %v5210_v26, %v7657_v22 }
0x1830   :  { %v5214_v37 = vpop.f32.mrb[54].mxu1 }
0x1831   :  { %v5216_v45 = vpop.f32.mrb[55].mxu1  ;;  %v5215_v52 = vadd.f32 %v5214_v37, %v7658_v59 }
0x1832   :  { %v5217_v5 = vadd.f32 %v5216_v45, %v7658_v59 }
0x1834   :  { %v5220_v48 = vpop.f32.mrb[56].mxu1 }
0x1835   :  { %v5221_v36 = vadd.f32 %v5220_v48, %v7655_v63  ;;  %v5222_v30 = vpop.f32.mrb[57].mxu1 }
0x1836   :  { %v5223_v44 = vadd.f32 %v5222_v30, %v7655_v63 }
0x1837   :  { %v5231_v25 = vmul.f32 0.5, %v5221_v36 }
0x1838   :  { %v5232_v12 = vmul.f32 0.5, %v5223_v44  ;;  %v5226_v40 = vpop.f32.mrb[58].mxu1  ;;  %v7661_v44 = vld [vmem:[#allocation9_spill] sm:$0xff] }
0x1839   :  { %6217 = vtanh.f32 %v5231_v25  ;;  %v5227_v47 = vadd.f32 %v5226_v40, %v7656_v31  ;;  %v5228_v6 = vpop.f32.mrb[59].mxu1 }
0x183a   :  { %6219 = vtanh.f32 %v5232_v12  ;;  %v5229_v61 = vadd.f32 %v5228_v6, %v7656_v31 }
0x183b   :  { %v5233_v9 = vmul.f32 0.5, %v5227_v47 }
0x183c   :  { %v5234_v33 = vmul.f32 0.5, %v5229_v61 }
0x183d   :  { %6221 = vtanh.f32 %v5233_v9 }
0x183e   :  { %6223 = vtanh.f32 %v5234_v33 }
0x1843   :  { %v6218_v62 = vpop.eup %6217 }
0x1844   :  { %v6220_v19 = vpop.eup %6219  ;;  %v5239_v20 = vmul.f32 0.5, %v6218_v62 }
0x1845   :  { %v5240_v21 = vmul.f32 0.5, %v6220_v19  ;;  %v7662_v19 = vld [vmem:[#allocation12_spill] sm:$0xff] }
0x1846   :  { %v5243_v32 = vadd.f32 0.5, %v5239_v20 }
0x1847   :  { %v6222_v18 = vpop.eup %6221  ;;  %v5244_v51 = vadd.f32 0.5, %v5240_v21 }
0x1848   :  { %v6224_v4 = vpop.eup %6223  ;;  %v7505_v54 = vmul.f32 %v5243_v32, %v5209_v42  ;;  %v5241_v56 = vmul.f32 0.5, %v6222_v18 }
0x1849   :  { %v5242_v53 = vmul.f32 0.5, %v6224_v4  ;;  %v7507_v0 = vmul.f32 %v5244_v51, %v5211_v49 }
0x184a   :  { %v5245_v50 = vadd.f32 0.5, %v5241_v56 }
0x184b   :  { %v5246_v1 = vadd.f32 0.5, %v5242_v53 }
0x184c   :  { %v5249_v57 = vmul.f32 %v5245_v50, %v5215_v52 }
0x184d   :  { %v5250_v34 = vmul.f32 %v5246_v1, %v5217_v5 }
0x184e   :  { %v6084_v35 = vpack.c.bf16 %v5249_v57, %v7505_v54 }
0x184f   :  { %v6082_v41 = vpack.c.bf16 %v5250_v34, %v7507_v0 }
0x1851   :  { %6083 = vmatprep.subr.bf16.mxu0 %v6082_v41  ;;  %v134_v41 = vld [vmem:[%s7609_s6 + $0xc0] sm:$0xff] }
0x1852   :  { %6085 = vmatpush1.bf16.msra.mxu0 %v6084_v35 }
0x1855   :  { %6017 = vmatmul.mubr.msk.f32.vlgmr.msra.gmra.mrb[56].mxu0 %vm233_vm0, %v90_v28 }
0x1856   :  { %5353 = vmatprep.mubr.f32.mxu0 %v7648_v23 }
0x1859   :  { %6018 = vmatmul.mubr.msk.f32.gmra.mrb[58].mxu0 %vm233_vm0, %v91_v46 }
0x185a   :  { %5359 = vmatprep.mubr.f32.mxu0 %v7648_v23 }
0x185d   :  { %6019 = vmatmul.mubr.msk.f32.gmra.mrb[60].mxu0 %vm233_vm0, %v92_v11 }
0x185e   :  { %5365 = vmatprep.mubr.f32.mxu0 %v7648_v23 }
0x1861   :  { %6020 = vmatmul.mubr.msk.f32.gmra.mrb[62].mxu0 %vm233_vm0, %v93_v8  ;;  %v7663_v8 = vld [vmem:[#allocation11_spill] sm:$0xff] }
0x1862   :  { %5643 = vmatprep.mubr.f32.mxu0 %v7648_v23 }
0x1928   :  { %v5349_v55 = vpop.f32.mrb[56].mxu0 }
0x1929   :  { %v5351_v7 = vpop.f32.mrb[57].mxu0  ;;  %v5350_v25 = vadd.f32 %v5349_v55, %v7661_v44 }
0x192a   :  { %v5352_v31 = vadd.f32 %v5351_v7, %v7661_v44 }
0x192c   :  { %v5355_v15 = vpop.f32.mrb[58].mxu0 }
0x192d   :  { %v5357_v13 = vpop.f32.mrb[59].mxu0  ;;  %v5356_v20 = vadd.f32 %v5355_v15, %v7662_v19 }
0x192e   :  { %v5358_v22 = vadd.f32 %v5357_v13, %v7662_v19 }
0x1930   :  { %v5361_v43 = vpop.f32.mrb[60].mxu0 }
0x1931   :  { %v5362_v3 = vadd.f32 %v5361_v43, %v7659_v58  ;;  %v5363_v29 = vpop.f32.mrb[61].mxu0 }
0x1932   :  { %v5364_v39 = vadd.f32 %v5363_v29, %v7659_v58 }
0x1933   :  { %v5372_v38 = vmul.f32 0.5, %v5362_v3  ;;  %v7664_v3 = vld [vmem:[#allocation14_spill] sm:$0xff] }
0x1934   :  { %v5373_v17 = vmul.f32 0.5, %v5364_v39  ;;  %v5367_v27 = vpop.f32.mrb[62].mxu0 }
0x1935   :  { %6225 = vtanh.f32 %v5372_v38  ;;  %v5368_v16 = vadd.f32 %v5367_v27, %v7660_v2  ;;  %v5369_v60 = vpop.f32.mrb[63].mxu0 }
0x1936   :  { %6227 = vtanh.f32 %v5373_v17  ;;  %v5370_v26 = vadd.f32 %v5369_v60, %v7660_v2 }
0x1937   :  { %v5374_v37 = vmul.f32 0.5, %v5368_v16 }
0x1938   :  { %v5375_v45 = vmul.f32 0.5, %v5370_v26 }
0x1939   :  { %6229 = vtanh.f32 %v5374_v37  ;;  %v7665_v37 = vld [vmem:[#allocation13_spill] sm:$0xff] }
0x193a   :  { %6231 = vtanh.f32 %v5375_v45 }
0x193f   :  { %v6226_v48 = vpop.eup %6225 }
0x1940   :  { %v6228_v63 = vpop.eup %6227  ;;  %v5380_v36 = vmul.f32 0.5, %v6226_v48 }
0x1941   :  { %v5381_v30 = vmul.f32 0.5, %v6228_v63 }
0x1942   :  { %v5384_v12 = vadd.f32 0.5, %v5380_v36 }
0x1943   :  { %v6230_v40 = vpop.eup %6229  ;;  %v5385_v47 = vadd.f32 0.5, %v5381_v30 }
0x1944   :  { %v6232_v6 = vpop.eup %6231  ;;  %v5388_v61 = vmul.f32 %v5384_v12, %v5350_v25  ;;  %v5382_v9 = vmul.f32 0.5, %v6230_v40 }
0x1945   :  { %v5389_v33 = vmul.f32 %v5385_v47, %v5352_v31  ;;  %v5383_v62 = vmul.f32 0.5, %v6232_v6  ;;  %v7666_v47 = vld [vmem:[#allocation15_spill] sm:$0xff] }
0x1946   :  { %v5386_v21 = vadd.f32 0.5, %v5382_v9  ;;  %v5392_v51 = vadd.f32 %v5388_v61, %v7505_v54  ;;  %v135_v54 = vld [vmem:[%s7609_s6 + $0xc8] sm:$0xff] }
0x1947   :  { %v5387_v42 = vadd.f32 0.5, %v5383_v62  ;;  %v5393_v49 = vadd.f32 %v5389_v33, %v7507_v0  ;;  %v136_v0 = vld [vmem:[%s7609_s6 + $0xd0] sm:$0xff] }
0x1948   :  { %v5390_v32 = vmul.f32 %v5386_v21, %v5356_v20  ;;  %v5396_v50 = vmul.f32 0.70710677, %v5392_v51 }
0x1949   :  { %v5391_v18 = vmul.f32 %v5387_v42, %v5358_v22  ;;  %v5397_v59 = vmul.f32 0.70710677, %v5393_v49 }
0x194a   :  { %v5394_v4 = vadd.f32 %v5390_v32, %v5249_v57  ;;  %v137_v57 = vld [vmem:[%s7609_s6 + $0xd8] sm:$0xff] }
0x194b   :  { %v5395_v56 = vadd.f32 %v5391_v18, %v5250_v34 }
0x194c   :  { %v5398_v53 = vmul.f32 0.70710677, %v5394_v4 }
0x194d   :  { %v5399_v52 = vmul.f32 0.70710677, %v5395_v56 }
0x194e   :  { %v6088_v1 = vpack.c.bf16 %v5398_v53, %v5396_v50 }
0x194f   :  { %v6086_v5 = vpack.c.bf16 %v5399_v52, %v5397_v59 }
0x1951   :  { %6087 = vmatprep.subr.bf16.mxu1 %v6086_v5  ;;  %v138_v5 = vld [vmem:[%s7609_s6 + $0xe0] sm:$0xff] }
0x1952   :  { %6089 = vmatpush1.bf16.msra.mxu1 %v6088_v1 }
0x1955   :  { %6021 = vmatmul.mubr.msk.f32.vlgmr.msra.gmra.mrb[60].mxu1 %vm233_vm0, %v134_v41 }
0x1956   :  { %5502 = vmatprep.mubr.f32.mxu1 %v7648_v23 }
0x1959   :  { %6022 = vmatmul.mubr.msk.f32.gmra.mrb[62].mxu1 %vm233_vm0, %v135_v54 }
0x195a   :  { %5508 = vmatprep.mubr.f32.mxu1 %v7648_v23 }
0x195d   :  { %6023 = vmatmul.mubr.msk.f32.gmra.mrb[64].mxu1 %vm233_vm0, %v136_v0 }
0x195e   :  { %5514 = vmatprep.mubr.f32.mxu1 %v7648_v23 }
0x1961   :  { %6024 = vmatmul.mubr.msk.f32.gmra.mrb[66].mxu1 %vm233_vm0, %v137_v57 }
0x1962   :  { %5749 = vmatprep.mubr.f32.mxu1 %v7648_v23 }
0x1a28   :  { %v5498_v34 = vpop.f32.mrb[60].mxu1 }
0x1a29   :  { %v5500_v35 = vpop.f32.mrb[61].mxu1  ;;  %v5499_v45 = vadd.f32 %v5498_v34, %v7665_v37 }
0x1a2a   :  { %v5501_v36 = vadd.f32 %v5500_v35, %v7665_v37 }
0x1a2c   :  { %v5504_v28 = vpop.f32.mrb[62].mxu1 }
0x1a2d   :  { %v5506_v46 = vpop.f32.mrb[63].mxu1  ;;  %v5505_v6 = vadd.f32 %v5504_v28, %v7666_v47 }
0x1a2e   :  { %v5507_v9 = vadd.f32 %v5506_v46, %v7666_v47 }
0x1a30   :  { %v5510_v11 = vpop.f32.mrb[64].mxu1 }
0x1a31   :  { %v5511_v55 = vadd.f32 %v5510_v11, %v7663_v8  ;;  %v5512_v7 = vpop.f32.mrb[65].mxu1 }
0x1a32   :  { %v5513_v15 = vadd.f32 %v5512_v7, %v7663_v8 }
0x1a33   :  { %v5521_v13 = vmul.f32 0.5, %v5511_v55  ;;  %v5552_v55 = vpop.permute.xlu1 %5551 }
0x1a34   :  { %v5522_v43 = vmul.f32 0.5, %v5513_v15  ;;  %v5516_v58 = vpop.f32.mrb[66].mxu1 }
0x1a35   :  { %6233 = vtanh.f32 %v5521_v13  ;;  %v5517_v29 = vadd.f32 %v5516_v58, %v7664_v3  ;;  %v5518_v39 = vpop.f32.mrb[67].mxu1 }
0x1a36   :  { %6235 = vtanh.f32 %v5522_v43  ;;  %v5519_v38 = vadd.f32 %v5518_v39, %v7664_v3 }
0x1a37   :  { %v5523_v17 = vmul.f32 0.5, %v5517_v29 }
0x1a38   :  { %v5524_v27 = vmul.f32 0.5, %v5519_v38 }
0x1a39   :  { %6237 = vtanh.f32 %v5523_v17 }
0x1a3a   :  { %6239 = vtanh.f32 %v5524_v27 }
0x1a3f   :  { %v6234_v2 = vpop.eup %6233 }
0x1a40   :  { %v6236_v16 = vpop.eup %6235  ;;  %v5529_v60 = vmul.f32 0.5, %v6234_v2 }
0x1a41   :  { %v5530_v26 = vmul.f32 0.5, %v6236_v16 }
0x1a42   :  { %v5533_v48 = vadd.f32 0.5, %v5529_v60 }
0x1a43   :  { %v6238_v63 = vpop.eup %6237  ;;  %v5534_v30 = vadd.f32 0.5, %v5530_v26  ;;  %v186_v26 = vld [vmem:[%s7612_s10] sm:$0x1] }
0x1a44   :  { %v6240_v44 = vpop.eup %6239  ;;  %v5537_v25 = vmul.f32 %v5533_v48, %v5499_v45  ;;  %v5531_v12 = vmul.f32 0.5, %v6238_v63 }
0x1a45   :  { %v5538_v40 = vmul.f32 %v5534_v30, %v5501_v36  ;;  %v5532_v31 = vmul.f32 0.5, %v6240_v44 }
0x1a46   :  { %v5535_v61 = vadd.f32 0.5, %v5531_v12  ;;  %v5541_v21 = vadd.f32 %v5537_v25, %v5396_v50 }
0x1a47   :  { %v5536_v33 = vadd.f32 0.5, %v5532_v31  ;;  %v5542_v20 = vadd.f32 %v5538_v40, %v5397_v59  ;;  %v140_v59 = vld [vmem:[%s7609_s6 + $0xf0] sm:$0xff] }
0x1a48   :  { %v5539_v62 = vmul.f32 %v5535_v61, %v5505_v6  ;;  %v5545_v51 = vmul.f32 0.70710677, %v5541_v21 }
0x1a49   :  { %v5540_v19 = vmul.f32 %v5536_v33, %v5507_v9  ;;  %v5546_v18 = vmul.f32 0.70710677, %v5542_v20 }
0x1a4a   :  { %v5543_v22 = vadd.f32 %v5539_v62, %v5398_v53  ;;  %v139_v53 = vld [vmem:[%s7609_s6 + $0xe8] sm:$0xff] }
0x1a4b   :  { %v5544_v42 = vadd.f32 %v5540_v19, %v5399_v52  ;;  %v141_v52 = vld [vmem:[%s7609_s6 + $0xf8] sm:$0xff] }
0x1a4c   :  { %v5547_v32 = vmul.f32 0.70710677, %v5543_v22 }
0x1a4d   :  { %v5548_v49 = vmul.f32 0.70710677, %v5544_v42 }
0x1a4e   :  { %v6092_v56 = vpack.c.bf16 %v5547_v32, %v5545_v51 }
0x1a4f   :  { %v6090_v4 = vpack.c.bf16 %v5548_v49, %v5546_v18 }
0x1a51   :  { %6091 = vmatprep.subr.bf16.mxu0 %v6090_v4 }
0x1a52   :  { %6093 = vmatpush1.bf16.msra.mxu0 %v6092_v56 }
0x1a55   :  { %6025 = vmatmul.mubr.msk.f32.vlgmr.msra.gmra.mrb[64].mxu0 %vm233_vm0, %v138_v5 }
0x1a56   :  { %5649 = vmatprep.mubr.f32.mxu0 %v7648_v23 }
0x1a59   :  { %6026 = vmatmul.mubr.msk.f32.gmra.mrb[66].mxu0 %vm233_vm0, %v139_v53 }
0x1a5a   :  { %5653 = vmatprep.mubr.f32.mxu0 %v7648_v23 }
0x1a5d   :  { %6027 = vmatmul.mubr.msk.f32.gmra.mrb[68].mxu0 %vm233_vm0, %v140_v59 }
0x1a5e   :  { %5659 = vmatprep.mubr.f32.mxu0 %v7648_v23 }
0x1a61   :  { %6028 = vmatmul.mubr.msk.f32.gmra.mrb[70].mxu0 %vm233_vm0, %v141_v52 }
0x1b28   :  { %v5645_v50 = vpop.f32.mrb[64].mxu0 }
0x1b29   :  { %v5647_v1 = vpop.f32.mrb[65].mxu0  ;;  %v5646_v15 = vadd.f32 %v5645_v50, %v5552_v55 }
0x1b2a   :  { %v5648_v43 = vadd.f32 %v5647_v1, %v5552_v55 }
0x1b2c   :  { %v5651_v41 = vpop.f32.mrb[66].mxu0 }
0x1b2d   :  { %v5652_v54 = vpop.f32.mrb[67].mxu0 }
0x1b30   :  { %v5655_v0 = vpop.f32.mrb[68].mxu0 }
0x1b31   :  { %v5656_v57 = vadd.f32 %v5655_v0, %v7310_v14  ;;  %v5657_v34 = vpop.f32.mrb[69].mxu0 }
0x1b32   :  { %v5658_v35 = vadd.f32 %v5657_v34, %v7310_v14 }
0x1b33   :  { %v5664_v28 = vmul.f32 0.5, %v5656_v57 }
0x1b34   :  { %v5665_v46 = vmul.f32 0.5, %v5658_v35  ;;  %v5661_v37 = vpop.f32.mrb[70].mxu0 }
0x1b35   :  { %6241 = vtanh.f32 %v5664_v28  ;;  %v5662_v45 = vpop.f32.mrb[71].mxu0 }
0x1b36   :  { %6243 = vtanh.f32 %v5665_v46 }
0x1b3f   :  { %v6242_v23 = vpop.eup %6241 }
0x1b40   :  { %v6244_v11 = vpop.eup %6243  ;;  %v5668_v8 = vmul.f32 0.5, %v6242_v23 }
0x1b41   :  { %v5669_v7 = vmul.f32 0.5, %v6244_v11 }
0x1b42   :  { %v5670_v13 = vadd.f32 0.5, %v5668_v8 }
0x1b43   :  { %v5671_v58 = vadd.f32 0.5, %v5669_v7 }
0x1b44   :  { %v5672_v3 = vmul.f32 %v5670_v13, %v5646_v15 }
0x1b45   :  { %v5673_v29 = vmul.f32 %v5671_v58, %v5648_v43 }
0x1b46   :  { %v5674_v39 = vadd.f32 %v5672_v3, %v5545_v51 }
0x1b47   :  { %v5675_v38 = vadd.f32 %v5673_v29, %v5546_v18 }
0x1b48   :  { %v5676_v17 = vmul.f32 0.70710677, %v5674_v39 }
0x1b49   :  { %v5677_v27 = vmul.f32 0.70710677, %v5675_v38 }
0x1b4a   :  { %v5678_v14 = vmax.f32 %v5676_v17, 0.0 }
0x1b4b   :  { %v5679_v2 = vmax.f32 %v5677_v27, 0.0 }
0x1b4c   :  { %v5680_v16 = vadd.f32 %v5678_v14, %v7320_v10 }
0x1b4d   :  { %v5681_v60 = vadd.f32 %v5679_v2, %v7322_v24 }
0x1b4f   :  { %5685 = vmatprep.subr.mxu1 %v5681_v60 }
0x1b50   :  { %5686 = vmatpush1.msra.mxu1 %v5680_v16 }
0x1b51   :  { %6029 = vmatmul.mubr.msk.f32.vlgmr.msra.gmra.mrb[68].mxu1 %vm792_vm1, %v186_v26 }
0x1c24   :  { %v5751_v48 = vpop.f32.mrb[68].mxu1 }
0x1c25   :  { %v5756_v63 = vmul.f32 0.5, %v5751_v48  ;;  %v5753_v36 = vpop.f32.mrb[69].mxu1 }
0x1c26   :  { %v5760_v30 = vmul.f32 0.5, %v5753_v36 }
0x1c27   :  { %6245 = vtanh.f32 %v5756_v63 }
0x1c28   :  { %6247 = vtanh.f32 %v5760_v30 }
0x1c31   :  { %v6246_v44 = vpop.eup %6245 }
0x1c32   :  { %v6248_v10 = vpop.eup %6247  ;;  %v5758_v25 = vmul.f32 0.5, %v6246_v44 }
0x1c33   :  { %v5762_v24 = vmul.f32 0.5, %v6248_v10 }
0x1c34   :  { %v5759_v12 = vadd.f32 0.5, %v5758_v25 }
0x1c35   :  { %v5763_v40 = vadd.f32 0.5, %v5762_v24 }
0x1c37   :  { %v5764_v31 = vmul.f32 %v5763_v40, %v5759_v12 }
0x1c39   :  { %5765 = vst [vmem:[%s7613_s11] sm:$0x1] %v5764_v31 }

</bundles_post_ra>
